<compile_context>
chip_gen: v5e
topology: v5e:2x2
jax: 0.10.0
libtpu: 0.0.40
codegen_flags: <defaults>
</compile_context>

<pallas_src>
import jax
import jax.numpy as jnp
from jax import lax
from jax.experimental import pallas as pl
from jax.experimental.pallas import tpu as pltpu

LANE = 128
EPS = 1e-5


def _round_up(x, m):
    return (x + m - 1) // m * m


# --------------------------------------------------------------------------------
# Kernel 1: 3x3 conv (input pre-padded by 1px) + per-image BN partial statistics.
# --------------------------------------------------------------------------------
def conv_stats_kernel(xp_ref, w_ref, b_ref, y_ref, st_ref, patch_ref):
    # xp_ref   : (1, H+2, W+2, Cin_p) bf16   one padded image
    # w_ref    : (9*Cin_p, Cout_p)    bf16   taps folded into the contraction dim
    # b_ref    : (1, Cout_p)          f32
    # y_ref    : (1, H, W, Cout_p)    f32    raw conv output (pre-BN)
    # st_ref   : (1, 2, Cout_p)       f32    per-image [sum, sum-of-squares]
    # patch_ref: (H*W, 9*Cin_p)       bf16   im2col scratch
    _, Hp, Wp, Cin_p = xp_ref.shape
    H, W = Hp - 2, Wp - 2
    Cout_p = y_ref.shape[-1]

    # im2col: 9 shifted tile copies, then ONE wide-K MXU matmul (K = 9*Cin_p).
    for dy in range(3):
        for dx in range(3):
            k = (dy * 3 + dx) * Cin_p
            patch_ref[:, k:k + Cin_p] = (
                xp_ref[0, dy:dy + H, dx:dx + W, :].reshape(H * W, Cin_p))

    acc = jnp.dot(patch_ref[...], w_ref[...],
                  preferred_element_type=jnp.float32)      # (H*W, Cout_p) f32
    y = acc + b_ref[0]

    y_ref[0] = y.reshape(H, W, Cout_p)
    # BN statistics fused into the conv epilogue (finalized across N in the wrapper).
    st_ref[0, 0:1, :] = jnp.sum(y, axis=0, keepdims=True)
    st_ref[0, 1:2, :] = jnp.sum(y * y, axis=0, keepdims=True)


# --------------------------------------------------------------------------------
# Kernel 2: apply BN1 + LeakyReLU, pad, 3x3 conv2, per-image BN partial statistics.
# --------------------------------------------------------------------------------
def bn_act_conv_stats_kernel(y1_ref, sc_ref, sh_ref, w_ref, b_ref,
                             y2_ref, st_ref, ap_ref, patch_ref):
    # y1_ref   : (1, H, W, Cmid_p) f32   raw conv1 output
    # sc_ref   : (1, Cmid_p)       f32   fused BN1 scale  = gamma * rsqrt(var+eps)
    # sh_ref   : (1, Cmid_p)       f32   fused BN1 shift  = beta - mean*scale
    # w_ref    : (9*Cmid_p, Cout_p) bf16
    # b_ref    : (1, Cout_p)        f32
    # y2_ref   : (1, H, W, Cout_p)  f32  raw conv2 output (pre-BN)
    # st_ref   : (1, 2, Cout_p)     f32
    # ap_ref   : (H+2, W+2, Cmid_p) bf16 padded activation scratch
    # patch_ref: (H*W, 9*Cmid_p)    bf16 im2col scratch
    _, H, W, Cmid_p = y1_ref.shape
    Hp, Wp = H + 2, W + 2
    Cout_p = y2_ref.shape[-1]

    # BN1 (training-mode batch stats, already folded into scale/shift) + LeakyReLU(0.1).
    a = y1_ref[0] * sc_ref[0] + sh_ref[0]
    a = jnp.where(a > 0, a, 0.1 * a).astype(jnp.bfloat16)

    # Zero only the 1-pixel border (4 thin writes) and write the interior once.
    ap_ref[0:1, :, :] = jnp.zeros((1, Wp, Cmid_p), jnp.bfloat16)
    ap_ref[Hp - 1:Hp, :, :] = jnp.zeros((1, Wp, Cmid_p), jnp.bfloat16)
    ap_ref[:, 0:1, :] = jnp.zeros((Hp, 1, Cmid_p), jnp.bfloat16)
    ap_ref[:, Wp - 1:Wp, :] = jnp.zeros((Hp, 1, Cmid_p), jnp.bfloat16)
    ap_ref[1:H + 1, 1:W + 1, :] = a

    for dy in range(3):
        for dx in range(3):
            k = (dy * 3 + dx) * Cmid_p
            patch_ref[:, k:k + Cmid_p] = (
                ap_ref[dy:dy + H, dx:dx + W, :].reshape(H * W, Cmid_p))

    acc = jnp.dot(patch_ref[...], w_ref[...],
                  preferred_element_type=jnp.float32)
    y = acc + b_ref[0]

    y2_ref[0] = y.reshape(H, W, Cout_p)
    st_ref[0, 0:1, :] = jnp.sum(y, axis=0, keepdims=True)
    st_ref[0, 1:2, :] = jnp.sum(y * y, axis=0, keepdims=True)


# --------------------------------------------------------------------------------
# Kernel 3: pointwise BN2-apply + LeakyReLU.
# --------------------------------------------------------------------------------
def bn_act_kernel(y_ref, sc_ref, sh_ref, o_ref):
    a = y_ref[...] * sc_ref[0] + sh_ref[0]
    o_ref[...] = jnp.where(a > 0, a, 0.1 * a)


# --------------------------------------------------------------------------------
# Wrapper
# --------------------------------------------------------------------------------
@jax.jit
def double_conv(x_nchw, params):
    """x_nchw: (N, Cin, H, W) f32 -> (N, Cout, H, W) f32 (PyTorch layout)."""
    w1, b1, g1, be1, w2, b2, g2, be2 = params
    N, Cin, H, W = x_nchw.shape
    Cmid = w1.shape[3]
    Cout = w2.shape[3]
    Cin_p = _round_up(Cin, LANE)
    Cmid_p = _round_up(Cmid, LANE)
    Cout_p = _round_up(Cout, LANE)
    Hp, Wp = H + 2, W + 2
    cnt = float(N * H * W)

    # NCHW -> NHWC + 1px halo + channel pad to a lane multiple + bf16 cast.
    # (these fuse into one XLA op feeding the first kernel)
    x_nhwc = jnp.transpose(x_nchw, (0, 2, 3, 1)).astype(jnp.bfloat16)
    xp = jnp.pad(x_nhwc, ((0, 0), (1, 1), (1, 1), (0, Cin_p - Cin)))

    def prep_w(w, ci, ci_p, co, co_p):
        wp = jnp.pad(w, ((0, 0), (0, 0), (0, ci_p - ci), (0, co_p - co)))
        return wp.reshape(9 * ci_p, co_p).astype(jnp.bfloat16)

    def pad_vec(v, c, c_p):
        return jnp.pad(v, ((0, 0), (0, c_p - c)))

    w1f = prep_w(w1, Cin, Cin_p, Cmid, Cmid_p)
    w2f = prep_w(w2, Cmid, Cmid_p, Cout, Cout_p)
    b1p, g1p, be1p = (pad_vec(v, Cmid, Cmid_p) for v in (b1, g1, be1))
    b2p, g2p, be2p = (pad_vec(v, Cout, Cout_p) for v in (b2, g2, be2))

    cparams = pltpu.CompilerParams(
        dimension_semantics=("parallel",),          # shard batch over v7x's 2 TCs
        vmem_limit_bytes=32 * 1024 * 1024,          # explicit budget, safe on v5e/v6e/v7x
    )
    full = lambda shape: pl.BlockSpec(shape, lambda n, s=shape: (0,) * len(s))
    per_n4 = lambda h, w, c: pl.BlockSpec((1, h, w, c), lambda n: (n, 0, 0, 0))
    per_n3 = lambda a, c: pl.BlockSpec((1, a, c), lambda n: (n, 0, 0))

    # ---- pass 1: conv1 + partial stats -------------------------------------------
    y1, st1 = pl.pallas_call(
        conv_stats_kernel,
        grid=(N,),
        in_specs=[per_n4(Hp, Wp, Cin_p),
                  full((9 * Cin_p, Cmid_p)),
                  full((1, Cmid_p))],
        out_specs=(per_n4(H, W, Cmid_p), per_n3(2, Cmid_p)),
        out_shape=(jax.ShapeDtypeStruct((N, H, W, Cmid_p), jnp.float32),
                   jax.ShapeDtypeStruct((N, 2, Cmid_p), jnp.float32)),
        scratch_shapes=[pltpu.VMEM((H * W, 9 * Cin_p), jnp.bfloat16)],
        compiler_params=cparams,
    )(xp, w1f, b1p)

    def finalize(st, gamma, beta):
        s = jnp.sum(st, axis=0)                        # (2, C) across the batch grid
        mean = s[0] / cnt
        var = jnp.maximum(s[1] / cnt - mean * mean, 0.0)   # biased variance
        scale = gamma[0] * lax.rsqrt(var + EPS)
        shift = beta[0] - mean * scale
        return scale[None, :], shift[None, :]

    sc1, sh1 = finalize(st1, g1p, be1p)

    # ---- pass 2: BN1 + LeakyReLU + conv2 + partial stats --------------------------
    y2, st2 = pl.pallas_call(
        bn_act_conv_stats_kernel,
        grid=(N,),
        in_specs=[per_n4(H, W, Cmid_p),
                  full((1, Cmid_p)), full((1, Cmid_p)),
                  full((9 * Cmid_p, Cout_p)),
                  full((1, Cout_p))],
        out_specs=(per_n4(H, W, Cout_p), per_n3(2, Cout_p)),
        out_shape=(jax.ShapeDtypeStruct((N, H, W, Cout_p), jnp.float32),
                   jax.ShapeDtypeStruct((N, 2, Cout_p), jnp.float32)),
        scratch_shapes=[pltpu.VMEM((Hp, Wp, Cmid_p), jnp.bfloat16),
                        pltpu.VMEM((H * W, 9 * Cmid_p), jnp.bfloat16)],
        compiler_params=cparams,
    )(y1, sc1, sh1, w2f, b2p)

    sc2, sh2 = finalize(st2, g2p, be2p)

    # ---- pass 3: BN2 + LeakyReLU (pointwise, lane-dense output) -------------------
    out_p = pl.pallas_call(
        bn_act_kernel,
        grid=(N,),
        in_specs=[per_n4(H, W, Cout_p), full((1, Cout_p)), full((1, Cout_p))],
        out_specs=per_n4(H, W, Cout_p),
        out_shape=jax.ShapeDtypeStruct((N, H, W, Cout_p), jnp.float32),
        compiler_params=cparams,
    )(y2, sc2, sh2)

    # drop channel padding, back to NCHW
    return jnp.transpose(out_p[..., :Cout], (0, 3, 1, 2))


# --------------------------------------------------------------------------------
# Parameters + pure-JAX reference (PyTorch training-mode semantics)
# --------------------------------------------------------------------------------
def make_params(key, in_channels, out_channels, mid_channels=None):
    if not mid_channels:
        mid_channels = out_channels
    k1, k2, k3, k4 = jax.random.split(key, 4)
    # Conv weights stored as HWIO for the NHWC kernels.
    w1 = 0.1 * jax.random.normal(k1, (3, 3, in_channels, mid_channels), jnp.float32)
    b1 = 0.1 * jax.random.normal(k2, (1, mid_channels), jnp.float32)
    w2 = 0.1 * jax.random.normal(k3, (3, 3, mid_channels, out_channels), jnp.float32)
    b2 = 0.1 * jax.random.normal(k4, (1, out_channels), jnp.float32)
    # BatchNorm affine params (PyTorch default init: gamma=1, beta=0).
    g1 = jnp.ones((1, mid_channels), jnp.float32)
    be1 = jnp.zeros((1, mid_channels), jnp.float32)
    g2 = jnp.ones((1, out_channels), jnp.float32)
    be2 = jnp.zeros((1, out_channels), jnp.float32)
    return (w1, b1, g1, be1, w2, b2, g2, be2)


def double_conv_ref(x_nchw, params):
    """Pure-JAX reference. Convs use bf16 inputs + f32 accumulation (like the kernel's
    MXU path); BatchNorm uses batch statistics with biased variance (training mode)."""
    w1, b1, g1, be1, w2, b2, g2, be2 = params

    def conv_bn_lrelu(x, w, b, g, be):
        y = lax.conv_general_dilated(
            x.astype(jnp.bfloat16), w.astype(jnp.bfloat16),
            window_strides=(1, 1), padding="SAME",
            dimension_numbers=("NHWC", "HWIO", "NHWC"),
            preferred_element_type=jnp.float32) + b[0]
        m = jnp.mean(y, axis=(0, 1, 2))
        v = jnp.mean((y - m) ** 2, axis=(0, 1, 2))       # biased variance
        y = (y - m) / jnp.sqrt(v + EPS) * g[0] + be[0]
        return jnp.where(y > 0, y, 0.1 * y)

    x = jnp.transpose(x_nchw, (0, 2, 3, 1))
    x = conv_bn_lrelu(x, w1, b1, g1, be1)
    x = conv_bn_lrelu(x, w2, b2, g2, be2)
    return jnp.transpose(x, (0, 3, 1, 2))


if __name__ == "__main__":
    key = jax.random.PRNGKey(0)
    kx, kp = jax.random.split(key)

    # Small shapes consistent with the module (NCHW input like PyTorch).
    N, Cin, H, W = 2, 3, 16, 16
    Cout = 8
    x = jax.random.normal(kx, (N, Cin, H, W), jnp.float32)
    params = make_params(kp, Cin, Cout)

    out = jax.block_until_ready(double_conv(x, params))
    ref = jax.block_until_ready(double_conv_ref(x, params))

    assert out.shape == (N, Cout, H, W)
    err = float(jnp.max(jnp.abs(out - ref)))
    # Tolerance covers bf16 MXU inputs (matched in the reference) + accumulation order.
    assert err < 5e-3, f"mismatch vs pure-JAX reference: max abs err = {err}"

    print("KERNEL_OK")
</pallas_src>

<mosaic_0001>
module attributes {stable_mosaic.version = 11 : i64} {
  func.func @conv_stats_kernel(%arg0: i32, %arg1: memref<1x18x18x128xbf16, #tpu.memory_space<vmem>>, %arg2: memref<1152x128xbf16, #tpu.memory_space<vmem>>, %arg3: memref<1x128xf32, #tpu.memory_space<vmem>>, %arg4: memref<1x16x16x128xf32, #tpu.memory_space<vmem>>, %arg5: memref<1x2x128xf32, #tpu.memory_space<vmem>>, %arg6: memref<256x1152xbf16, #tpu.memory_space<vmem>>) attributes {dimension_semantics = [#tpu.dimension_semantics<parallel>], iteration_bounds = array<i64: 2>, scalar_prefetch = 0 : i64, scratch_operands = 1 : i64, tpu.core_type = #tpu.core_type<tc>, window_params = [{transform_indices = @transform_0, window_bounds = array<i64: 1, 18, 18, 128>}, {pipeline_mode = #tpu.pipeline_mode<synchronous>, transform_indices = @transform_1, window_bounds = array<i64: 1152, 128>}, {pipeline_mode = #tpu.pipeline_mode<synchronous>, transform_indices = @transform_2, window_bounds = array<i64: 1, 128>}, {transform_indices = @transform_3, window_bounds = array<i64: 1, 16, 16, 128>}, {transform_indices = @transform_4, window_bounds = array<i64: 1, 2, 128>}]} {
    %c0 = arith.constant 0 : index
    %c0_0 = arith.constant 0 : index
    %c0_1 = arith.constant 0 : index
    %c0_2 = arith.constant 0 : index
    %0 = vector.load %arg1[%c0, %c0_0, %c0_1, %c0_2] : memref<1x18x18x128xbf16, #tpu.memory_space<vmem>>, vector<1x16x16x128xbf16>
    %1 = vector.shape_cast %0 : vector<1x16x16x128xbf16> to vector<16x16x128xbf16>
    %2 = vector.shape_cast %1 : vector<16x16x128xbf16> to vector<256x128xbf16>
    %c0_3 = arith.constant 0 : index
    %c0_4 = arith.constant 0 : index
    %3 = vector.load %arg6[%c0_3, %c0_4] : memref<256x1152xbf16, #tpu.memory_space<vmem>>, vector<256x128xbf16>
    tpu.vector_store %arg6[%c0_3, %c0_4], %2 {strides = array<i32>} : memref<256x1152xbf16, #tpu.memory_space<vmem>>, vector<256x128xbf16>,
    %c0_5 = arith.constant 0 : index
    %c0_6 = arith.constant 0 : index
    %c1 = arith.constant 1 : index
    %c0_7 = arith.constant 0 : index
    %4 = vector.load %arg1[%c0_5, %c0_6, %c1, %c0_7] : memref<1x18x18x128xbf16, #tpu.memory_space<vmem>>, vector<1x16x16x128xbf16>
    %5 = vector.shape_cast %4 : vector<1x16x16x128xbf16> to vector<16x16x128xbf16>
    %6 = vector.shape_cast %5 : vector<16x16x128xbf16> to vector<256x128xbf16>
    %c0_8 = arith.constant 0 : index
    %c128 = arith.constant 128 : index
    %7 = vector.load %arg6[%c0_8, %c128] : memref<256x1152xbf16, #tpu.memory_space<vmem>>, vector<256x128xbf16>
    tpu.vector_store %arg6[%c0_8, %c128], %6 {strides = array<i32>} : memref<256x1152xbf16, #tpu.memory_space<vmem>>, vector<256x128xbf16>,
    %c0_9 = arith.constant 0 : index
    %c0_10 = arith.constant 0 : index
    %c2 = arith.constant 2 : index
    %c0_11 = arith.constant 0 : index
    %8 = vector.load %arg1[%c0_9, %c0_10, %c2, %c0_11] : memref<1x18x18x128xbf16, #tpu.memory_space<vmem>>, vector<1x16x16x128xbf16>
    %9 = vector.shape_cast %8 : vector<1x16x16x128xbf16> to vector<16x16x128xbf16>
    %10 = vector.shape_cast %9 : vector<16x16x128xbf16> to vector<256x128xbf16>
    %c0_12 = arith.constant 0 : index
    %c256 = arith.constant 256 : index
    %11 = vector.load %arg6[%c0_12, %c256] : memref<256x1152xbf16, #tpu.memory_space<vmem>>, vector<256x128xbf16>
    tpu.vector_store %arg6[%c0_12, %c256], %10 {strides = array<i32>} : memref<256x1152xbf16, #tpu.memory_space<vmem>>, vector<256x128xbf16>,
    %c0_13 = arith.constant 0 : index
    %c1_14 = arith.constant 1 : index
    %c0_15 = arith.constant 0 : index
    %c0_16 = arith.constant 0 : index
    %12 = vector.load %arg1[%c0_13, %c1_14, %c0_15, %c0_16] : memref<1x18x18x128xbf16, #tpu.memory_space<vmem>>, vector<1x16x16x128xbf16>
    %13 = vector.shape_cast %12 : vector<1x16x16x128xbf16> to vector<16x16x128xbf16>
    %14 = vector.shape_cast %13 : vector<16x16x128xbf16> to vector<256x128xbf16>
    %c0_17 = arith.constant 0 : index
    %c384 = arith.constant 384 : index
    %15 = vector.load %arg6[%c0_17, %c384] : memref<256x1152xbf16, #tpu.memory_space<vmem>>, vector<256x128xbf16>
    tpu.vector_store %arg6[%c0_17, %c384], %14 {strides = array<i32>} : memref<256x1152xbf16, #tpu.memory_space<vmem>>, vector<256x128xbf16>,
    %c0_18 = arith.constant 0 : index
    %c1_19 = arith.constant 1 : index
    %c1_20 = arith.constant 1 : index
    %c0_21 = arith.constant 0 : index
    %16 = vector.load %arg1[%c0_18, %c1_19, %c1_20, %c0_21] : memref<1x18x18x128xbf16, #tpu.memory_space<vmem>>, vector<1x16x16x128xbf16>
    %17 = vector.shape_cast %16 : vector<1x16x16x128xbf16> to vector<16x16x128xbf16>
    %18 = vector.shape_cast %17 : vector<16x16x128xbf16> to vector<256x128xbf16>
    %c0_22 = arith.constant 0 : index
    %c512 = arith.constant 512 : index
    %19 = vector.load %arg6[%c0_22, %c512] : memref<256x1152xbf16, #tpu.memory_space<vmem>>, vector<256x128xbf16>
    tpu.vector_store %arg6[%c0_22, %c512], %18 {strides = array<i32>} : memref<256x1152xbf16, #tpu.memory_space<vmem>>, vector<256x128xbf16>,
    %c0_23 = arith.constant 0 : index
    %c1_24 = arith.constant 1 : index
    %c2_25 = arith.constant 2 : index
    %c0_26 = arith.constant 0 : index
    %20 = vector.load %arg1[%c0_23, %c1_24, %c2_25, %c0_26] : memref<1x18x18x128xbf16, #tpu.memory_space<vmem>>, vector<1x16x16x128xbf16>
    %21 = vector.shape_cast %20 : vector<1x16x16x128xbf16> to vector<16x16x128xbf16>
    %22 = vector.shape_cast %21 : vector<16x16x128xbf16> to vector<256x128xbf16>
    %c0_27 = arith.constant 0 : index
    %c640 = arith.constant 640 : index
    %23 = vector.load %arg6[%c0_27, %c640] : memref<256x1152xbf16, #tpu.memory_space<vmem>>, vector<256x128xbf16>
    tpu.vector_store %arg6[%c0_27, %c640], %22 {strides = array<i32>} : memref<256x1152xbf16, #tpu.memory_space<vmem>>, vector<256x128xbf16>,
    %c0_28 = arith.constant 0 : index
    %c2_29 = arith.constant 2 : index
    %c0_30 = arith.constant 0 : index
    %c0_31 = arith.constant 0 : index
    %24 = vector.load %arg1[%c0_28, %c2_29, %c0_30, %c0_31] : memref<1x18x18x128xbf16, #tpu.memory_space<vmem>>, vector<1x16x16x128xbf16>
    %25 = vector.shape_cast %24 : vector<1x16x16x128xbf16> to vector<16x16x128xbf16>
    %26 = vector.shape_cast %25 : vector<16x16x128xbf16> to vector<256x128xbf16>
    %c0_32 = arith.constant 0 : index
    %c768 = arith.constant 768 : index
    %27 = vector.load %arg6[%c0_32, %c768] : memref<256x1152xbf16, #tpu.memory_space<vmem>>, vector<256x128xbf16>
    tpu.vector_store %arg6[%c0_32, %c768], %26 {strides = array<i32>} : memref<256x1152xbf16, #tpu.memory_space<vmem>>, vector<256x128xbf16>,
    %c0_33 = arith.constant 0 : index
    %c2_34 = arith.constant 2 : index
    %c1_35 = arith.constant 1 : index
    %c0_36 = arith.constant 0 : index
    %28 = vector.load %arg1[%c0_33, %c2_34, %c1_35, %c0_36] : memref<1x18x18x128xbf16, #tpu.memory_space<vmem>>, vector<1x16x16x128xbf16>
    %29 = vector.shape_cast %28 : vector<1x16x16x128xbf16> to vector<16x16x128xbf16>
    %30 = vector.shape_cast %29 : vector<16x16x128xbf16> to vector<256x128xbf16>
    %c0_37 = arith.constant 0 : index
    %c896 = arith.constant 896 : index
    %31 = vector.load %arg6[%c0_37, %c896] : memref<256x1152xbf16, #tpu.memory_space<vmem>>, vector<256x128xbf16>
    tpu.vector_store %arg6[%c0_37, %c896], %30 {strides = array<i32>} : memref<256x1152xbf16, #tpu.memory_space<vmem>>, vector<256x128xbf16>,
    %c0_38 = arith.constant 0 : index
    %c2_39 = arith.constant 2 : index
    %c2_40 = arith.constant 2 : index
    %c0_41 = arith.constant 0 : index
    %32 = vector.load %arg1[%c0_38, %c2_39, %c2_40, %c0_41] : memref<1x18x18x128xbf16, #tpu.memory_space<vmem>>, vector<1x16x16x128xbf16>
    %33 = vector.shape_cast %32 : vector<1x16x16x128xbf16> to vector<16x16x128xbf16>
    %34 = vector.shape_cast %33 : vector<16x16x128xbf16> to vector<256x128xbf16>
    %c0_42 = arith.constant 0 : index
    %c1024 = arith.constant 1024 : index
    %35 = vector.load %arg6[%c0_42, %c1024] : memref<256x1152xbf16, #tpu.memory_space<vmem>>, vector<256x128xbf16>
    tpu.vector_store %arg6[%c0_42, %c1024], %34 {strides = array<i32>} : memref<256x1152xbf16, #tpu.memory_space<vmem>>, vector<256x128xbf16>,
    %c0_43 = arith.constant 0 : index
    %c0_44 = arith.constant 0 : index
    %36 = vector.load %arg6[%c0_43, %c0_44] : memref<256x1152xbf16, #tpu.memory_space<vmem>>, vector<256x1152xbf16>
    %c0_45 = arith.constant 0 : index
    %c0_46 = arith.constant 0 : index
    %37 = vector.load %arg2[%c0_45, %c0_46] : memref<1152x128xbf16, #tpu.memory_space<vmem>>, vector<1152x128xbf16>
    %cst = arith.constant dense<0.000000e+00> : vector<256x128xf32>
    %38 = tpu.matmul %36, %37, %cst {dimension_numbers = #tpu.dot_dimension_numbers<[1], [0], [0], [1], [0, 0, 1, 1], [], []>} : vector<256x1152xbf16>, vector<1152x128xbf16>, vector<256x128xf32> -> vector<256x128xf32>
    %c0_47 = arith.constant 0 : index
    %c0_48 = arith.constant 0 : index
    %39 = vector.load %arg3[%c0_47, %c0_48] : memref<1x128xf32, #tpu.memory_space<vmem>>, vector<1x128xf32>
    %40 = vector.shape_cast %39 : vector<1x128xf32> to vector<128xf32>
    %41 = vector.shape_cast %40 : vector<128xf32> to vector<1x128xf32>
    %42 = vector.broadcast %41 : vector<1x128xf32> to vector<256x128xf32>
    %43 = arith.addf %38, %42 : vector<256x128xf32>
    %44 = vector.shape_cast %43 : vector<256x128xf32> to vector<16x16x128xf32>
    %c0_49 = arith.constant 0 : index
    %c0_50 = arith.constant 0 : index
    %c0_51 = arith.constant 0 : index
    %c0_52 = arith.constant 0 : index
    %45 = vector.load %arg4[%c0_49, %c0_50, %c0_51, %c0_52] : memref<1x16x16x128xf32, #tpu.memory_space<vmem>>, vector<1x16x16x128xf32>
    %46 = vector.shape_cast %45 : vector<1x16x16x128xf32> to vector<16x16x128xf32>
    %47 = vector.shape_cast %44 : vector<16x16x128xf32> to vector<1x16x16x128xf32>
    tpu.vector_store %arg4[%c0_49, %c0_50, %c0_51, %c0_52], %47 {strides = array<i32>} : memref<1x16x16x128xf32, #tpu.memory_space<vmem>>, vector<1x16x16x128xf32>,
    %cst_53 = arith.constant dense<0.000000e+00> : vector<128xf32>
    %48 = vector.multi_reduction <add>, %43, %cst_53 [0] : vector<256x128xf32> to vector<128xf32>
    %49 = vector.shape_cast %48 : vector<128xf32> to vector<1x128xf32>
    %c0_54 = arith.constant 0 : index
    %c0_55 = arith.constant 0 : index
    %c0_56 = arith.constant 0 : index
    %50 = vector.load %arg5[%c0_54, %c0_55, %c0_56] : memref<1x2x128xf32, #tpu.memory_space<vmem>>, vector<1x1x128xf32>
    %51 = vector.shape_cast %50 : vector<1x1x128xf32> to vector<1x128xf32>
    %52 = vector.shape_cast %49 : vector<1x128xf32> to vector<1x1x128xf32>
    tpu.vector_store %arg5[%c0_54, %c0_55, %c0_56], %52 {strides = array<i32>} : memref<1x2x128xf32, #tpu.memory_space<vmem>>, vector<1x1x128xf32>,
    %53 = arith.mulf %43, %43 : vector<256x128xf32>
    %cst_57 = arith.constant dense<0.000000e+00> : vector<128xf32>
    %54 = vector.multi_reduction <add>, %53, %cst_57 [0] : vector<256x128xf32> to vector<128xf32>
    %55 = vector.shape_cast %54 : vector<128xf32> to vector<1x128xf32>
    %c0_58 = arith.constant 0 : index
    %c1_59 = arith.constant 1 : index
    %c0_60 = arith.constant 0 : index
    %56 = vector.load %arg5[%c0_58, %c1_59, %c0_60] : memref<1x2x128xf32, #tpu.memory_space<vmem>>, vector<1x1x128xf32>
    %57 = vector.shape_cast %56 : vector<1x1x128xf32> to vector<1x128xf32>
    %58 = vector.shape_cast %55 : vector<1x128xf32> to vector<1x1x128xf32>
    tpu.vector_store %arg5[%c0_58, %c1_59, %c0_60], %58 {strides = array<i32>} : memref<1x2x128xf32, #tpu.memory_space<vmem>>, vector<1x1x128xf32>,
    return
  }
  func.func @transform_0(%arg0: i32) -> (i32, i32, i32, i32) {
    %c0_i32 = arith.constant 0 : i32
    %c0_i32_0 = arith.constant 0 : i32
    %c0_i32_1 = arith.constant 0 : i32
    %c0_i32_2 = arith.constant 0 : i32
    return %arg0, %c0_i32, %c0_i32_0, %c0_i32_1 : i32, i32, i32, i32
  }
  func.func @transform_1(%arg0: i32) -> (i32, i32) {
    %c0_i32 = arith.constant 0 : i32
    %c0_i32_0 = arith.constant 0 : i32
    %c0_i32_1 = arith.constant 0 : i32
    return %c0_i32, %c0_i32_0 : i32, i32
  }
  func.func @transform_2(%arg0: i32) -> (i32, i32) {
    %c0_i32 = arith.constant 0 : i32
    %c0_i32_0 = arith.constant 0 : i32
    %c0_i32_1 = arith.constant 0 : i32
    return %c0_i32, %c0_i32_0 : i32, i32
  }
  func.func @transform_3(%arg0: i32) -> (i32, i32, i32, i32) {
    %c0_i32 = arith.constant 0 : i32
    %c0_i32_0 = arith.constant 0 : i32
    %c0_i32_1 = arith.constant 0 : i32
    %c0_i32_2 = arith.constant 0 : i32
    return %arg0, %c0_i32, %c0_i32_0, %c0_i32_1 : i32, i32, i32, i32
  }
  func.func @transform_4(%arg0: i32) -> (i32, i32, i32) {
    %c0_i32 = arith.constant 0 : i32
    %c0_i32_0 = arith.constant 0 : i32
    %c0_i32_1 = arith.constant 0 : i32
    return %arg0, %c0_i32, %c0_i32_0 : i32, i32, i32
  }
}

module attributes {stable_mosaic.version = 11 : i64} {
  func.func @bn_act_kernel(%arg0: i32, %arg1: memref<1x16x16x128xf32, #tpu.memory_space<vmem>>, %arg2: memref<1x128xf32, #tpu.memory_space<vmem>>, %arg3: memref<1x128xf32, #tpu.memory_space<vmem>>, %arg4: memref<1x16x16x128xf32, #tpu.memory_space<vmem>>) attributes {dimension_semantics = [#tpu.dimension_semantics<parallel>], iteration_bounds = array<i64: 2>, scalar_prefetch = 0 : i64, scratch_operands = 0 : i64, tpu.core_type = #tpu.core_type<tc>, window_params = [{transform_indices = @transform_0, window_bounds = array<i64: 1, 16, 16, 128>}, {pipeline_mode = #tpu.pipeline_mode<synchronous>, transform_indices = @transform_1, window_bounds = array<i64: 1, 128>}, {pipeline_mode = #tpu.pipeline_mode<synchronous>, transform_indices = @transform_2, window_bounds = array<i64: 1, 128>}, {transform_indices = @transform_3, window_bounds = array<i64: 1, 16, 16, 128>}]} {
    %c0 = arith.constant 0 : index
    %c0_0 = arith.constant 0 : index
    %c0_1 = arith.constant 0 : index
    %c0_2 = arith.constant 0 : index
    %0 = vector.load %arg1[%c0, %c0_0, %c0_1, %c0_2] : memref<1x16x16x128xf32, #tpu.memory_space<vmem>>, vector<1x16x16x128xf32>
    %c0_3 = arith.constant 0 : index
    %c0_4 = arith.constant 0 : index
    %1 = vector.load %arg2[%c0_3, %c0_4] : memref<1x128xf32, #tpu.memory_space<vmem>>, vector<1x128xf32>
    %2 = vector.shape_cast %1 : vector<1x128xf32> to vector<128xf32>
    %3 = vector.shape_cast %2 : vector<128xf32> to vector<1x1x1x128xf32>
    %4 = vector.broadcast %3 : vector<1x1x1x128xf32> to vector<1x16x16x128xf32>
    %5 = arith.mulf %0, %4 : vector<1x16x16x128xf32>
    %c0_5 = arith.constant 0 : index
    %c0_6 = arith.constant 0 : index
    %6 = vector.load %arg3[%c0_5, %c0_6] : memref<1x128xf32, #tpu.memory_space<vmem>>, vector<1x128xf32>
    %7 = vector.shape_cast %6 : vector<1x128xf32> to vector<128xf32>
    %8 = vector.shape_cast %7 : vector<128xf32> to vector<1x1x1x128xf32>
    %9 = vector.broadcast %8 : vector<1x1x1x128xf32> to vector<1x16x16x128xf32>
    %10 = arith.addf %5, %9 : vector<1x16x16x128xf32>
    %cst = arith.constant 0.000000e+00 : f32
    %11 = vector.broadcast %cst : f32 to vector<1x16x16x128xf32>
    %12 = arith.cmpf ogt, %10, %11 : vector<1x16x16x128xf32>
    %cst_7 = arith.constant 1.000000e-01 : f32
    %13 = vector.broadcast %cst_7 : f32 to vector<1x16x16x128xf32>
    %14 = arith.mulf %13, %10 : vector<1x16x16x128xf32>
    %15 = arith.select %12, %10, %14 : vector<1x16x16x128xi1>, vector<1x16x16x128xf32>
    %c0_8 = arith.constant 0 : index
    %c0_9 = arith.constant 0 : index
    %c0_10 = arith.constant 0 : index
    %c0_11 = arith.constant 0 : index
    %16 = vector.load %arg4[%c0_8, %c0_9, %c0_10, %c0_11] : memref<1x16x16x128xf32, #tpu.memory_space<vmem>>, vector<1x16x16x128xf32>
    tpu.vector_store %arg4[%c0_8, %c0_9, %c0_10, %c0_11], %15 {strides = array<i32>} : memref<1x16x16x128xf32, #tpu.memory_space<vmem>>, vector<1x16x16x128xf32>,
    return
  }
  func.func @transform_0(%arg0: i32) -> (i32, i32, i32, i32) {
    %c0_i32 = arith.constant 0 : i32
    %c0_i32_0 = arith.constant 0 : i32
    %c0_i32_1 = arith.constant 0 : i32
    %c0_i32_2 = arith.constant 0 : i32
    return %arg0, %c0_i32, %c0_i32_0, %c0_i32_1 : i32, i32, i32, i32
  }
  func.func @transform_1(%arg0: i32) -> (i32, i32) {
    %c0_i32 = arith.constant 0 : i32
    %c0_i32_0 = arith.constant 0 : i32
    %c0_i32_1 = arith.constant 0 : i32
    return %c0_i32, %c0_i32_0 : i32, i32
  }
  func.func @transform_2(%arg0: i32) -> (i32, i32) {
    %c0_i32 = arith.constant 0 : i32
    %c0_i32_0 = arith.constant 0 : i32
    %c0_i32_1 = arith.constant 0 : i32
    return %c0_i32, %c0_i32_0 : i32, i32
  }
  func.func @transform_3(%arg0: i32) -> (i32, i32, i32, i32) {
    %c0_i32 = arith.constant 0 : i32
    %c0_i32_0 = arith.constant 0 : i32
    %c0_i32_1 = arith.constant 0 : i32
    %c0_i32_2 = arith.constant 0 : i32
    return %arg0, %c0_i32, %c0_i32_0, %c0_i32_1 : i32, i32, i32, i32
  }
}

module attributes {stable_mosaic.version = 11 : i64} {
  func.func @bn_act_conv_stats_kernel(%arg0: i32, %arg1: memref<1x16x16x128xf32, #tpu.memory_space<vmem>>, %arg2: memref<1x128xf32, #tpu.memory_space<vmem>>, %arg3: memref<1x128xf32, #tpu.memory_space<vmem>>, %arg4: memref<1152x128xbf16, #tpu.memory_space<vmem>>, %arg5: memref<1x128xf32, #tpu.memory_space<vmem>>, %arg6: memref<1x16x16x128xf32, #tpu.memory_space<vmem>>, %arg7: memref<1x2x128xf32, #tpu.memory_space<vmem>>, %arg8: memref<18x18x128xbf16, #tpu.memory_space<vmem>>, %arg9: memref<256x1152xbf16, #tpu.memory_space<vmem>>) attributes {dimension_semantics = [#tpu.dimension_semantics<parallel>], iteration_bounds = array<i64: 2>, scalar_prefetch = 0 : i64, scratch_operands = 2 : i64, tpu.core_type = #tpu.core_type<tc>, window_params = [{transform_indices = @transform_0, window_bounds = array<i64: 1, 16, 16, 128>}, {pipeline_mode = #tpu.pipeline_mode<synchronous>, transform_indices = @transform_1, window_bounds = array<i64: 1, 128>}, {pipeline_mode = #tpu.pipeline_mode<synchronous>, transform_indices = @transform_2, window_bounds = array<i64: 1, 128>}, {pipeline_mode = #tpu.pipeline_mode<synchronous>, transform_indices = @transform_3, window_bounds = array<i64: 1152, 128>}, {pipeline_mode = #tpu.pipeline_mode<synchronous>, transform_indices = @transform_4, window_bounds = array<i64: 1, 128>}, {transform_indices = @transform_5, window_bounds = array<i64: 1, 16, 16, 128>}, {transform_indices = @transform_6, window_bounds = array<i64: 1, 2, 128>}]} {
    %c0 = arith.constant 0 : index
    %c0_0 = arith.constant 0 : index
    %c0_1 = arith.constant 0 : index
    %c0_2 = arith.constant 0 : index
    %0 = vector.load %arg1[%c0, %c0_0, %c0_1, %c0_2] : memref<1x16x16x128xf32, #tpu.memory_space<vmem>>, vector<1x16x16x128xf32>
    %1 = vector.shape_cast %0 : vector<1x16x16x128xf32> to vector<16x16x128xf32>
    %c0_3 = arith.constant 0 : index
    %c0_4 = arith.constant 0 : index
    %2 = vector.load %arg2[%c0_3, %c0_4] : memref<1x128xf32, #tpu.memory_space<vmem>>, vector<1x128xf32>
    %3 = vector.shape_cast %2 : vector<1x128xf32> to vector<128xf32>
    %4 = vector.shape_cast %3 : vector<128xf32> to vector<1x1x128xf32>
    %5 = vector.broadcast %4 : vector<1x1x128xf32> to vector<16x16x128xf32>
    %6 = arith.mulf %1, %5 : vector<16x16x128xf32>
    %c0_5 = arith.constant 0 : index
    %c0_6 = arith.constant 0 : index
    %7 = vector.load %arg3[%c0_5, %c0_6] : memref<1x128xf32, #tpu.memory_space<vmem>>, vector<1x128xf32>
    %8 = vector.shape_cast %7 : vector<1x128xf32> to vector<128xf32>
    %9 = vector.shape_cast %8 : vector<128xf32> to vector<1x1x128xf32>
    %10 = vector.broadcast %9 : vector<1x1x128xf32> to vector<16x16x128xf32>
    %11 = arith.addf %6, %10 : vector<16x16x128xf32>
    %cst = arith.constant 0.000000e+00 : f32
    %12 = vector.broadcast %cst : f32 to vector<16x16x128xf32>
    %13 = arith.cmpf ogt, %11, %12 : vector<16x16x128xf32>
    %cst_7 = arith.constant 1.000000e-01 : f32
    %14 = vector.broadcast %cst_7 : f32 to vector<16x16x128xf32>
    %15 = arith.mulf %14, %11 : vector<16x16x128xf32>
    %16 = arith.select %13, %11, %15 : vector<16x16x128xi1>, vector<16x16x128xf32>
    %17 = arith.truncf %16 : vector<16x16x128xf32> to vector<16x16x128xbf16>
    %cst_8 = arith.constant 0.000000e+00 : bf16
    %18 = vector.broadcast %cst_8 : bf16 to vector<1x18x128xbf16>
    %c0_9 = arith.constant 0 : index
    %c0_10 = arith.constant 0 : index
    %c0_11 = arith.constant 0 : index
    %19 = vector.load %arg8[%c0_9, %c0_10, %c0_11] : memref<18x18x128xbf16, #tpu.memory_space<vmem>>, vector<1x18x128xbf16>
    tpu.vector_store %arg8[%c0_9, %c0_10, %c0_11], %18 {strides = array<i32>} : memref<18x18x128xbf16, #tpu.memory_space<vmem>>, vector<1x18x128xbf16>,
    %cst_12 = arith.constant 0.000000e+00 : bf16
    %20 = vector.broadcast %cst_12 : bf16 to vector<1x18x128xbf16>
    %c17 = arith.constant 17 : index
    %c0_13 = arith.constant 0 : index
    %c0_14 = arith.constant 0 : index
    %21 = vector.load %arg8[%c17, %c0_13, %c0_14] : memref<18x18x128xbf16, #tpu.memory_space<vmem>>, vector<1x18x128xbf16>
    tpu.vector_store %arg8[%c17, %c0_13, %c0_14], %20 {strides = array<i32>} : memref<18x18x128xbf16, #tpu.memory_space<vmem>>, vector<1x18x128xbf16>,
    %cst_15 = arith.constant 0.000000e+00 : bf16
    %22 = vector.broadcast %cst_15 : bf16 to vector<18x1x128xbf16>
    %c0_16 = arith.constant 0 : index
    %c0_17 = arith.constant 0 : index
    %c0_18 = arith.constant 0 : index
    %23 = vector.load %arg8[%c0_16, %c0_17, %c0_18] : memref<18x18x128xbf16, #tpu.memory_space<vmem>>, vector<18x1x128xbf16>
    tpu.vector_store %arg8[%c0_16, %c0_17, %c0_18], %22 {strides = array<i32>} : memref<18x18x128xbf16, #tpu.memory_space<vmem>>, vector<18x1x128xbf16>,
    %cst_19 = arith.constant 0.000000e+00 : bf16
    %24 = vector.broadcast %cst_19 : bf16 to vector<18x1x128xbf16>
    %c0_20 = arith.constant 0 : index
    %c17_21 = arith.constant 17 : index
    %c0_22 = arith.constant 0 : index
    %25 = vector.load %arg8[%c0_20, %c17_21, %c0_22] : memref<18x18x128xbf16, #tpu.memory_space<vmem>>, vector<18x1x128xbf16>
    tpu.vector_store %arg8[%c0_20, %c17_21, %c0_22], %24 {strides = array<i32>} : memref<18x18x128xbf16, #tpu.memory_space<vmem>>, vector<18x1x128xbf16>,
    %c1 = arith.constant 1 : index
    %c1_23 = arith.constant 1 : index
    %c0_24 = arith.constant 0 : index
    %26 = vector.load %arg8[%c1, %c1_23, %c0_24] : memref<18x18x128xbf16, #tpu.memory_space<vmem>>, vector<16x16x128xbf16>
    tpu.vector_store %arg8[%c1, %c1_23, %c0_24], %17 {strides = array<i32>} : memref<18x18x128xbf16, #tpu.memory_space<vmem>>, vector<16x16x128xbf16>,
    %c0_25 = arith.constant 0 : index
    %c0_26 = arith.constant 0 : index
    %c0_27 = arith.constant 0 : index
    %27 = vector.load %arg8[%c0_25, %c0_26, %c0_27] : memref<18x18x128xbf16, #tpu.memory_space<vmem>>, vector<16x16x128xbf16>
    %28 = vector.shape_cast %27 : vector<16x16x128xbf16> to vector<256x128xbf16>
    %c0_28 = arith.constant 0 : index
    %c0_29 = arith.constant 0 : index
    %29 = vector.load %arg9[%c0_28, %c0_29] : memref<256x1152xbf16, #tpu.memory_space<vmem>>, vector<256x128xbf16>
    tpu.vector_store %arg9[%c0_28, %c0_29], %28 {strides = array<i32>} : memref<256x1152xbf16, #tpu.memory_space<vmem>>, vector<256x128xbf16>,
    %c0_30 = arith.constant 0 : index
    %c1_31 = arith.constant 1 : index
    %c0_32 = arith.constant 0 : index
    %30 = vector.load %arg8[%c0_30, %c1_31, %c0_32] : memref<18x18x128xbf16, #tpu.memory_space<vmem>>, vector<16x16x128xbf16>
    %31 = vector.shape_cast %30 : vector<16x16x128xbf16> to vector<256x128xbf16>
    %c0_33 = arith.constant 0 : index
    %c128 = arith.constant 128 : index
    %32 = vector.load %arg9[%c0_33, %c128] : memref<256x1152xbf16, #tpu.memory_space<vmem>>, vector<256x128xbf16>
    tpu.vector_store %arg9[%c0_33, %c128], %31 {strides = array<i32>} : memref<256x1152xbf16, #tpu.memory_space<vmem>>, vector<256x128xbf16>,
    %c0_34 = arith.constant 0 : index
    %c2 = arith.constant 2 : index
    %c0_35 = arith.constant 0 : index
    %33 = vector.load %arg8[%c0_34, %c2, %c0_35] : memref<18x18x128xbf16, #tpu.memory_space<vmem>>, vector<16x16x128xbf16>
    %34 = vector.shape_cast %33 : vector<16x16x128xbf16> to vector<256x128xbf16>
    %c0_36 = arith.constant 0 : index
    %c256 = arith.constant 256 : index
    %35 = vector.load %arg9[%c0_36, %c256] : memref<256x1152xbf16, #tpu.memory_space<vmem>>, vector<256x128xbf16>
    tpu.vector_store %arg9[%c0_36, %c256], %34 {strides = array<i32>} : memref<256x1152xbf16, #tpu.memory_space<vmem>>, vector<256x128xbf16>,
    %c1_37 = arith.constant 1 : index
    %c0_38 = arith.constant 0 : index
    %c0_39 = arith.constant 0 : index
    %36 = vector.load %arg8[%c1_37, %c0_38, %c0_39] : memref<18x18x128xbf16, #tpu.memory_space<vmem>>, vector<16x16x128xbf16>
    %37 = vector.shape_cast %36 : vector<16x16x128xbf16> to vector<256x128xbf16>
    %c0_40 = arith.constant 0 : index
    %c384 = arith.constant 384 : index
    %38 = vector.load %arg9[%c0_40, %c384] : memref<256x1152xbf16, #tpu.memory_space<vmem>>, vector<256x128xbf16>
    tpu.vector_store %arg9[%c0_40, %c384], %37 {strides = array<i32>} : memref<256x1152xbf16, #tpu.memory_space<vmem>>, vector<256x128xbf16>,
    %c1_41 = arith.constant 1 : index
    %c1_42 = arith.constant 1 : index
    %c0_43 = arith.constant 0 : index
    %39 = vector.load %arg8[%c1_41, %c1_42, %c0_43] : memref<18x18x128xbf16, #tpu.memory_space<vmem>>, vector<16x16x128xbf16>
    %40 = vector.shape_cast %39 : vector<16x16x128xbf16> to vector<256x128xbf16>
    %c0_44 = arith.constant 0 : index
    %c512 = arith.constant 512 : index
    %41 = vector.load %arg9[%c0_44, %c512] : memref<256x1152xbf16, #tpu.memory_space<vmem>>, vector<256x128xbf16>
    tpu.vector_store %arg9[%c0_44, %c512], %40 {strides = array<i32>} : memref<256x1152xbf16, #tpu.memory_space<vmem>>, vector<256x128xbf16>,
    %c1_45 = arith.constant 1 : index
    %c2_46 = arith.constant 2 : index
    %c0_47 = arith.constant 0 : index
    %42 = vector.load %arg8[%c1_45, %c2_46, %c0_47] : memref<18x18x128xbf16, #tpu.memory_space<vmem>>, vector<16x16x128xbf16>
    %43 = vector.shape_cast %42 : vector<16x16x128xbf16> to vector<256x128xbf16>
    %c0_48 = arith.constant 0 : index
    %c640 = arith.constant 640 : index
    %44 = vector.load %arg9[%c0_48, %c640] : memref<256x1152xbf16, #tpu.memory_space<vmem>>, vector<256x128xbf16>
    tpu.vector_store %arg9[%c0_48, %c640], %43 {strides = array<i32>} : memref<256x1152xbf16, #tpu.memory_space<vmem>>, vector<256x128xbf16>,
    %c2_49 = arith.constant 2 : index
    %c0_50 = arith.constant 0 : index
    %c0_51 = arith.constant 0 : index
    %45 = vector.load %arg8[%c2_49, %c0_50, %c0_51] : memref<18x18x128xbf16, #tpu.memory_space<vmem>>, vector<16x16x128xbf16>
    %46 = vector.shape_cast %45 : vector<16x16x128xbf16> to vector<256x128xbf16>
    %c0_52 = arith.constant 0 : index
    %c768 = arith.constant 768 : index
    %47 = vector.load %arg9[%c0_52, %c768] : memref<256x1152xbf16, #tpu.memory_space<vmem>>, vector<256x128xbf16>
    tpu.vector_store %arg9[%c0_52, %c768], %46 {strides = array<i32>} : memref<256x1152xbf16, #tpu.memory_space<vmem>>, vector<256x128xbf16>,
    %c2_53 = arith.constant 2 : index
    %c1_54 = arith.constant 1 : index
    %c0_55 = arith.constant 0 : index
    %48 = vector.load %arg8[%c2_53, %c1_54, %c0_55] : memref<18x18x128xbf16, #tpu.memory_space<vmem>>, vector<16x16x128xbf16>
    %49 = vector.shape_cast %48 : vector<16x16x128xbf16> to vector<256x128xbf16>
    %c0_56 = arith.constant 0 : index
    %c896 = arith.constant 896 : index
    %50 = vector.load %arg9[%c0_56, %c896] : memref<256x1152xbf16, #tpu.memory_space<vmem>>, vector<256x128xbf16>
    tpu.vector_store %arg9[%c0_56, %c896], %49 {strides = array<i32>} : memref<256x1152xbf16, #tpu.memory_space<vmem>>, vector<256x128xbf16>,
    %c2_57 = arith.constant 2 : index
    %c2_58 = arith.constant 2 : index
    %c0_59 = arith.constant 0 : index
    %51 = vector.load %arg8[%c2_57, %c2_58, %c0_59] : memref<18x18x128xbf16, #tpu.memory_space<vmem>>, vector<16x16x128xbf16>
    %52 = vector.shape_cast %51 : vector<16x16x128xbf16> to vector<256x128xbf16>
    %c0_60 = arith.constant 0 : index
    %c1024 = arith.constant 1024 : index
    %53 = vector.load %arg9[%c0_60, %c1024] : memref<256x1152xbf16, #tpu.memory_space<vmem>>, vector<256x128xbf16>
    tpu.vector_store %arg9[%c0_60, %c1024], %52 {strides = array<i32>} : memref<256x1152xbf16, #tpu.memory_space<vmem>>, vector<256x128xbf16>,
    %c0_61 = arith.constant 0 : index
    %c0_62 = arith.constant 0 : index
    %54 = vector.load %arg9[%c0_61, %c0_62] : memref<256x1152xbf16, #tpu.memory_space<vmem>>, vector<256x1152xbf16>
    %c0_63 = arith.constant 0 : index
    %c0_64 = arith.constant 0 : index
    %55 = vector.load %arg4[%c0_63, %c0_64] : memref<1152x128xbf16, #tpu.memory_space<vmem>>, vector<1152x128xbf16>
    %cst_65 = arith.constant dense<0.000000e+00> : vector<256x128xf32>
    %56 = tpu.matmul %54, %55, %cst_65 {dimension_numbers = #tpu.dot_dimension_numbers<[1], [0], [0], [1], [0, 0, 1, 1], [], []>} : vector<256x1152xbf16>, vector<1152x128xbf16>, vector<256x128xf32> -> vector<256x128xf32>
    %c0_66 = arith.constant 0 : index
    %c0_67 = arith.constant 0 : index
    %57 = vector.load %arg5[%c0_66, %c0_67] : memref<1x128xf32, #tpu.memory_space<vmem>>, vector<1x128xf32>
    %58 = vector.shape_cast %57 : vector<1x128xf32> to vector<128xf32>
    %59 = vector.shape_cast %58 : vector<128xf32> to vector<1x128xf32>
    %60 = vector.broadcast %59 : vector<1x128xf32> to vector<256x128xf32>
    %61 = arith.addf %56, %60 : vector<256x128xf32>
    %62 = vector.shape_cast %61 : vector<256x128xf32> to vector<16x16x128xf32>
    %c0_68 = arith.constant 0 : index
    %c0_69 = arith.constant 0 : index
    %c0_70 = arith.constant 0 : index
    %c0_71 = arith.constant 0 : index
    %63 = vector.load %arg6[%c0_68, %c0_69, %c0_70, %c0_71] : memref<1x16x16x128xf32, #tpu.memory_space<vmem>>, vector<1x16x16x128xf32>
    %64 = vector.shape_cast %63 : vector<1x16x16x128xf32> to vector<16x16x128xf32>
    %65 = vector.shape_cast %62 : vector<16x16x128xf32> to vector<1x16x16x128xf32>
    tpu.vector_store %arg6[%c0_68, %c0_69, %c0_70, %c0_71], %65 {strides = array<i32>} : memref<1x16x16x128xf32, #tpu.memory_space<vmem>>, vector<1x16x16x128xf32>,
    %cst_72 = arith.constant dense<0.000000e+00> : vector<128xf32>
    %66 = vector.multi_reduction <add>, %61, %cst_72 [0] : vector<256x128xf32> to vector<128xf32>
    %67 = vector.shape_cast %66 : vector<128xf32> to vector<1x128xf32>
    %c0_73 = arith.constant 0 : index
    %c0_74 = arith.constant 0 : index
    %c0_75 = arith.constant 0 : index
    %68 = vector.load %arg7[%c0_73, %c0_74, %c0_75] : memref<1x2x128xf32, #tpu.memory_space<vmem>>, vector<1x1x128xf32>
    %69 = vector.shape_cast %68 : vector<1x1x128xf32> to vector<1x128xf32>
    %70 = vector.shape_cast %67 : vector<1x128xf32> to vector<1x1x128xf32>
    tpu.vector_store %arg7[%c0_73, %c0_74, %c0_75], %70 {strides = array<i32>} : memref<1x2x128xf32, #tpu.memory_space<vmem>>, vector<1x1x128xf32>,
    %71 = arith.mulf %61, %61 : vector<256x128xf32>
    %cst_76 = arith.constant dense<0.000000e+00> : vector<128xf32>
    %72 = vector.multi_reduction <add>, %71, %cst_76 [0] : vector<256x128xf32> to vector<128xf32>
    %73 = vector.shape_cast %72 : vector<128xf32> to vector<1x128xf32>
    %c0_77 = arith.constant 0 : index
    %c1_78 = arith.constant 1 : index
    %c0_79 = arith.constant 0 : index
    %74 = vector.load %arg7[%c0_77, %c1_78, %c0_79] : memref<1x2x128xf32, #tpu.memory_space<vmem>>, vector<1x1x128xf32>
    %75 = vector.shape_cast %74 : vector<1x1x128xf32> to vector<1x128xf32>
    %76 = vector.shape_cast %73 : vector<1x128xf32> to vector<1x1x128xf32>
    tpu.vector_store %arg7[%c0_77, %c1_78, %c0_79], %76 {strides = array<i32>} : memref<1x2x128xf32, #tpu.memory_space<vmem>>, vector<1x1x128xf32>,
    return
  }
  func.func @transform_0(%arg0: i32) -> (i32, i32, i32, i32) {
    %c0_i32 = arith.constant 0 : i32
    %c0_i32_0 = arith.constant 0 : i32
    %c0_i32_1 = arith.constant 0 : i32
    %c0_i32_2 = arith.constant 0 : i32
    return %arg0, %c0_i32, %c0_i32_0, %c0_i32_1 : i32, i32, i32, i32
  }
  func.func @transform_1(%arg0: i32) -> (i32, i32) {
    %c0_i32 = arith.constant 0 : i32
    %c0_i32_0 = arith.constant 0 : i32
    %c0_i32_1 = arith.constant 0 : i32
    return %c0_i32, %c0_i32_0 : i32, i32
  }
  func.func @transform_2(%arg0: i32) -> (i32, i32) {
    %c0_i32 = arith.constant 0 : i32
    %c0_i32_0 = arith.constant 0 : i32
    %c0_i32_1 = arith.constant 0 : i32
    return %c0_i32, %c0_i32_0 : i32, i32
  }
  func.func @transform_3(%arg0: i32) -> (i32, i32) {
    %c0_i32 = arith.constant 0 : i32
    %c0_i32_0 = arith.constant 0 : i32
    %c0_i32_1 = arith.constant 0 : i32
    return %c0_i32, %c0_i32_0 : i32, i32
  }
  func.func @transform_4(%arg0: i32) -> (i32, i32) {
    %c0_i32 = arith.constant 0 : i32
    %c0_i32_0 = arith.constant 0 : i32
    %c0_i32_1 = arith.constant 0 : i32
    return %c0_i32, %c0_i32_0 : i32, i32
  }
  func.func @transform_5(%arg0: i32) -> (i32, i32, i32, i32) {
    %c0_i32 = arith.constant 0 : i32
    %c0_i32_0 = arith.constant 0 : i32
    %c0_i32_1 = arith.constant 0 : i32
    %c0_i32_2 = arith.constant 0 : i32
    return %arg0, %c0_i32, %c0_i32_0, %c0_i32_1 : i32, i32, i32, i32
  }
  func.func @transform_6(%arg0: i32) -> (i32, i32, i32) {
    %c0_i32 = arith.constant 0 : i32
    %c0_i32_0 = arith.constant 0 : i32
    %c0_i32_1 = arith.constant 0 : i32
    return %arg0, %c0_i32, %c0_i32_0 : i32, i32, i32
  }
}

</mosaic_0001>

<bundles_post_ra>
// kernel: double_conv.5
= control target key start
LH: loop header
LB: loop body
LE: loop exit
PB: predicated region body
PF: predicated region fallthrough
CT: control target
= control target key end

     0   :  { %s509_s12 = smov 0   ;;  %s672_s0 = inlined_call_operand.vmem [shape: f32[2,16,16,128], index: 0, kind: input, shape index: {}]   ;;  %s673_s1 = inlined_call_operand.vmem [shape: f32[1,128], index: 1, kind: input, shape index: {}]   ;;  %s674_s2 = inlined_call_operand.vmem [shape: f32[1,128], index: 2, kind: input, shape index: {}]   ;;  %s675_s3 = inlined_call_operand.vmem [shape: f32[2,16,16,128], index: 3, kind: output, shape index: {}]  }
   0x1 LB: > { %s458_s13 = sadd.s32 4294967295, %s487_s12   ;;  %p462_p0 = scmp.ge.s32.totalorder %s487_s12, 1  ;;  %s487_s12 = sphi %s509_s12, %s13_s12  }
   0x2   : > { %p137_p1 = scmp.lt.s32.totalorder %s487_s12, 3 }
   0x4   : > { %p138_p2 = pnand %p462_p0, %p137_p1 }
   0x5   : > { %p161_p3 = scmp.lt.s32.totalorder (!%p138_p2), %s458_s13, 1 }
   0x6   : > { %141 = sbr.rel (%p138_p2) target bundleno = 59 (0x3b), region = 32 }
   0xb   : > { %s677_s13 = smov (!%p161_p3, %s458_s13), 1  ;;  %v522_v0 = vld [vmem:[%s673_s1] ss:$0 sm:$0xff] }
   0xc   : > { %s469_s16 = sshll.u32 %s677_s13, 8  ;;  %v533_v1 = vld [vmem:[%s674_s2] ss:$0 sm:$0xff] }
   0xd   : > { %s528_s19 = scalar_lea.vmem %s672_s0, %s469_s16  ;;  %s561_s24 = scalar_lea.vmem %s675_s3, %s469_s16 }
   0xe   : > { %v171_v2 = vld [vmem:[%s528_s19] sm:$0xff]  ;;  %v172_v3 = vld [vmem:[%s528_s19 + $0x8] sm:$0xff]  ;;  %v173_v4 = vld [vmem:[%s528_s19 + $0x10] sm:$0xff] }
   0xf   : > { %v207_v5 = vmul.f32 %v522_v0, %v171_v2  ;;  %v208_v6 = vmul.f32 %v522_v0, %v172_v3  ;;  %v209_v7 = vmul.f32 %v522_v0, %v173_v4  ;;  %v174_v8 = vld [vmem:[%s528_s19 + $0x18] sm:$0xff]  ;;  %v175_v9 = vld [vmem:[%s528_s19 + $0x20] sm:$0xff]  ;;  %v176_v10 = vld [vmem:[%s528_s19 + $0x28] sm:$0xff] }
  0x10   : > { %v210_v11 = vmul.f32 %v522_v0, %v174_v8  ;;  %v211_v12 = vmul.f32 %v522_v0, %v175_v9  ;;  %v212_v13 = vmul.f32 %v522_v0, %v176_v10  ;;  %v177_v14 = vld [vmem:[%s528_s19 + $0x30] sm:$0xff]  ;;  %v178_v15 = vld [vmem:[%s528_s19 + $0x38] sm:$0xff]  ;;  %v179_v24 = vld [vmem:[%s528_s19 + $0x40] sm:$0xff] }
  0x11   : > { %v243_v16 = vadd.f32 %v533_v1, %v207_v5  ;;  %v244_v17 = vadd.f32 %v533_v1, %v208_v6  ;;  %v245_v18 = vadd.f32 %v533_v1, %v209_v7  ;;  %v213_v19 = vmul.f32 %v522_v0, %v177_v14  ;;  %v180_v32 = vld [vmem:[%s528_s19 + $0x48] sm:$0xff]  ;;  %v181_v33 = vld [vmem:[%s528_s19 + $0x50] sm:$0xff]  ;;  %v182_v34 = vld [vmem:[%s528_s19 + $0x58] sm:$0xff] }
  0x12   : > { %v246_v20 = vadd.f32 %v533_v1, %v210_v11  ;;  %v247_v21 = vadd.f32 %v533_v1, %v211_v12  ;;  %v248_v22 = vadd.f32 %v533_v1, %v212_v13  ;;  %v214_v23 = vmul.f32 %v522_v0, %v178_v15  ;;  %v183_v46 = vld [vmem:[%s528_s19 + $0x60] sm:$0xff]  ;;  %v184_v53 = vld [vmem:[%s528_s19 + $0x68] sm:$0xff]  ;;  %v185_v57 = vld [vmem:[%s528_s19 + $0x70] sm:$0xff] }
  0x13   : > { %vm275_vm0 = vcmp.gt.f32.partialorder %v243_v16, 0.0  ;;  %v307_v25 = vmul.f32 0.1, %v243_v16  ;;  %vm276_vm1 = vcmp.gt.f32.partialorder %v244_v17, 0.0  ;;  %v308_v26 = vmul.f32 0.1, %v244_v17 }
  0x14   : > { %vm277_vm2 = vcmp.gt.f32.partialorder %v245_v18, 0.0  ;;  %v309_v27 = vmul.f32 0.1, %v245_v18  ;;  %vm278_vm3 = vcmp.gt.f32.partialorder %v246_v20, 0.0  ;;  %v310_v28 = vmul.f32 0.1, %v246_v20 }
  0x15   : > { %v339_v29 = vsel %vm275_vm0, %v243_v16, %v307_v25  ;;  %v340_v30 = vsel %vm276_vm1, %v244_v17, %v308_v26  ;;  %vm279_vm4 = vcmp.gt.f32.partialorder %v247_v21, 0.0  ;;  %v311_v31 = vmul.f32 0.1, %v247_v21  ;;  %v186_v58 = vld [vmem:[%s528_s19 + $0x78] sm:$0xff]  ;;  %v187_v61 = vld [vmem:[%s528_s19 + $0x80] sm:$0xff]  ;;  %v188_v7 = vld [vmem:[%s528_s19 + $0x88] sm:$0xff] }
  0x16   : > { %371 = vst [vmem:[%s561_s24] sm:$0xff] %v339_v29  ;;  %v341_v35 = vsel %vm277_vm2, %v245_v18, %v309_v27  ;;  %v342_v36 = vsel %vm278_vm3, %v246_v20, %v310_v28  ;;  %vm280_vm5 = vcmp.gt.f32.partialorder %v248_v22, 0.0  ;;  %v312_v37 = vmul.f32 0.1, %v248_v22  ;;  %v189_v8 = vld [vmem:[%s528_s19 + $0x90] sm:$0xff]  ;;  %v191_v29 = vld [vmem:[%s528_s19 + $0xa0] sm:$0xff] }
  0x17   : > { %372 = vst [vmem:[%s561_s24 + $0x8] sm:$0xff] %v340_v30  ;;  %v343_v38 = vsel %vm279_vm4, %v247_v21, %v311_v31  ;;  %v249_v39 = vadd.f32 %v533_v1, %v213_v19  ;;  %v250_v40 = vadd.f32 %v533_v1, %v214_v23  ;;  %v215_v41 = vmul.f32 %v522_v0, %v179_v24  ;;  %v192_v30 = vld [vmem:[%s528_s19 + $0xa8] sm:$0xff]  ;;  %v193_v31 = vld [vmem:[%s528_s19 + $0xb0] sm:$0xff] }
  0x18   : > { %373 = vst [vmem:[%s561_s24 + $0x10] sm:$0xff] %v341_v35  ;;  %v344_v42 = vsel %vm280_vm5, %v248_v22, %v312_v37  ;;  %v216_v43 = vmul.f32 %v522_v0, %v180_v32  ;;  %v217_v44 = vmul.f32 %v522_v0, %v181_v33  ;;  %v218_v45 = vmul.f32 %v522_v0, %v182_v34  ;;  %v190_v22 = vld [vmem:[%s528_s19 + $0x98] sm:$0xff] }
  0x19   : > { %374 = vst [vmem:[%s561_s24 + $0x18] sm:$0xff] %v342_v36  ;;  %vm281_vm6 = vcmp.gt.f32.partialorder %v249_v39, 0.0  ;;  %v313_v47 = vmul.f32 0.1, %v249_v39  ;;  %vm282_vm7 = vcmp.gt.f32.partialorder %v250_v40, 0.0  ;;  %v251_v48 = vadd.f32 %v533_v1, %v215_v41  ;;  %v194_v35 = vld [vmem:[%s528_s19 + $0xb8] sm:$0xff] }
  0x1a   : > { %375 = vst [vmem:[%s561_s24 + $0x20] sm:$0xff] %v343_v38  ;;  %v314_v49 = vmul.f32 0.1, %v250_v40  ;;  %v252_v50 = vadd.f32 %v533_v1, %v216_v43  ;;  %v253_v51 = vadd.f32 %v533_v1, %v217_v44  ;;  %v254_v52 = vadd.f32 %v533_v1, %v218_v45  ;;  %v195_v36 = vld [vmem:[%s528_s19 + $0xc0] sm:$0xff] }
  0x1b   : > { %376 = vst [vmem:[%s561_s24 + $0x28] sm:$0xff] %v344_v42  ;;  %v345_v54 = vsel %vm281_vm6, %v249_v39, %v313_v47  ;;  %vm283_vm8 = vcmp.gt.f32.partialorder %v251_v48, 0.0  ;;  %v315_v55 = vmul.f32 0.1, %v251_v48  ;;  %v219_v56 = vmul.f32 %v522_v0, %v183_v46 }
  0x1c   : > { %377 = vst [vmem:[%s561_s24 + $0x30] sm:$0xff] %v345_v54  ;;  %v346_v59 = vsel %vm282_vm7, %v250_v40, %v314_v49  ;;  %vm284_vm9 = vcmp.gt.f32.partialorder %v252_v50, 0.0  ;;  %v316_v60 = vmul.f32 0.1, %v252_v50  ;;  %vm285_vm10 = vcmp.gt.f32.partialorder %v253_v51, 0.0  ;;  %v196_v40 = vld [vmem:[%s528_s19 + $0xc8] sm:$0xff] }
  0x1d   : > { %378 = vst [vmem:[%s561_s24 + $0x38] sm:$0xff] %v346_v59  ;;  %v347_v62 = vsel %vm283_vm8, %v251_v48, %v315_v55  ;;  %v317_v63 = vmul.f32 0.1, %v253_v51  ;;  %vm286_vm11 = vcmp.gt.f32.partialorder %v254_v52, 0.0  ;;  %v318_v2 = vmul.f32 0.1, %v254_v52 }
  0x1e   : > { %379 = vst [vmem:[%s561_s24 + $0x40] sm:$0xff] %v347_v62  ;;  %v348_v3 = vsel %vm284_vm9, %v252_v50, %v316_v60  ;;  %v255_v4 = vadd.f32 %v533_v1, %v219_v56  ;;  %v220_v5 = vmul.f32 %v522_v0, %v184_v53  ;;  %v221_v6 = vmul.f32 %v522_v0, %v185_v57  ;;  %v197_v56 = vld [vmem:[%s528_s19 + $0xd0] sm:$0xff]  ;;  %v198_v57 = vld [vmem:[%s528_s19 + $0xd8] sm:$0xff]  ;;  %v199_v62 = vld [vmem:[%s528_s19 + $0xe0] sm:$0xff] }
  0x1f   : > { %380 = vst [vmem:[%s561_s24 + $0x48] sm:$0xff] %v348_v3  ;;  %v349_v9 = vsel %vm285_vm10, %v253_v51, %v317_v63  ;;  %v350_v10 = vsel %vm286_vm11, %v254_v52, %v318_v2  ;;  %v222_v11 = vmul.f32 %v522_v0, %v186_v58  ;;  %v223_v12 = vmul.f32 %v522_v0, %v187_v61  ;;  %v200_v63 = vld [vmem:[%s528_s19 + $0xe8] sm:$0xff] }
  0x20   : > { %381 = vst [vmem:[%s561_s24 + $0x50] sm:$0xff] %v349_v9  ;;  %vm287_vm12 = vcmp.gt.f32.partialorder %v255_v4, 0.0  ;;  %v319_v13 = vmul.f32 0.1, %v255_v4  ;;  %v256_v14 = vadd.f32 %v533_v1, %v220_v5  ;;  %v257_v15 = vadd.f32 %v533_v1, %v221_v6  ;;  %v201_v9 = vld [vmem:[%s528_s19 + $0xf0] sm:$0xff] }
  0x21   : > { %382 = vst [vmem:[%s561_s24 + $0x58] sm:$0xff] %v350_v10  ;;  %v258_v16 = vadd.f32 %v533_v1, %v222_v11  ;;  %v259_v17 = vadd.f32 %v533_v1, %v223_v12  ;;  %v224_v18 = vmul.f32 %v522_v0, %v188_v7  ;;  %v225_v19 = vmul.f32 %v522_v0, %v189_v8 }
  0x22   : > { %v351_v20 = vsel %vm287_vm12, %v255_v4, %v319_v13  ;;  %vm288_vm13 = vcmp.gt.f32.partialorder %v256_v14, 0.0  ;;  %v320_v21 = vmul.f32 0.1, %v256_v14  ;;  %vm289_vm14 = vcmp.gt.f32.partialorder %v257_v15, 0.0 }
  0x23   : > { %383 = vst [vmem:[%s561_s24 + $0x60] sm:$0xff] %v351_v20  ;;  %v321_v23 = vmul.f32 0.1, %v257_v15  ;;  %vm290_vm15 = vcmp.gt.f32.partialorder %v258_v16, 0.0  ;;  %v322_v24 = vmul.f32 0.1, %v258_v16  ;;  %v260_v25 = vadd.f32 %v533_v1, %v224_v18 }
  0x24   : > { %v352_v26 = vsel %vm288_vm13, %v256_v14, %v320_v21  ;;  %vm291_vm0 = vcmp.gt.f32.partialorder %v259_v17, 0.0  ;;  %v323_v27 = vmul.f32 0.1, %v259_v17  ;;  %v261_v28 = vadd.f32 %v533_v1, %v225_v19  ;;  %v202_v14 = vld [vmem:[%s528_s19 + $0xf8] sm:$0xff] }
  0x25   : > { %384 = vst [vmem:[%s561_s24 + $0x68] sm:$0xff] %v352_v26  ;;  %v353_v32 = vsel %vm289_vm14, %v257_v15, %v321_v23  ;;  %v354_v33 = vsel %vm290_vm15, %v258_v16, %v322_v24  ;;  %vm292_vm1 = vcmp.gt.f32.partialorder %v260_v25, 0.0  ;;  %v324_v34 = vmul.f32 0.1, %v260_v25 }
  0x26   : > { %385 = vst [vmem:[%s561_s24 + $0x70] sm:$0xff] %v353_v32  ;;  %v355_v37 = vsel %vm291_vm0, %v259_v17, %v323_v27  ;;  %vm293_vm2 = vcmp.gt.f32.partialorder %v261_v28, 0.0  ;;  %v325_v38 = vmul.f32 0.1, %v261_v28  ;;  %v226_v39 = vmul.f32 %v522_v0, %v190_v22 }
  0x27   : > { %386 = vst [vmem:[%s561_s24 + $0x78] sm:$0xff] %v354_v33  ;;  %v356_v41 = vsel %vm292_vm1, %v260_v25, %v324_v34  ;;  %v227_v42 = vmul.f32 %v522_v0, %v191_v29  ;;  %v228_v43 = vmul.f32 %v522_v0, %v192_v30  ;;  %v229_v44 = vmul.f32 %v522_v0, %v193_v31 }
  0x28   : > { %387 = vst [vmem:[%s561_s24 + $0x80] sm:$0xff] %v355_v37  ;;  %v357_v45 = vsel %vm293_vm2, %v261_v28, %v325_v38  ;;  %v262_v46 = vadd.f32 %v533_v1, %v226_v39  ;;  %v230_v47 = vmul.f32 %v522_v0, %v194_v35  ;;  %v231_v48 = vmul.f32 %v522_v0, %v195_v36 }
  0x29   : > { %388 = vst [vmem:[%s561_s24 + $0x88] sm:$0xff] %v356_v41  ;;  %v263_v49 = vadd.f32 %v533_v1, %v227_v42  ;;  %v264_v50 = vadd.f32 %v533_v1, %v228_v43  ;;  %v265_v51 = vadd.f32 %v533_v1, %v229_v44  ;;  %v232_v52 = vmul.f32 %v522_v0, %v196_v40 }
  0x2a   : > { %389 = vst [vmem:[%s561_s24 + $0x90] sm:$0xff] %v357_v45  ;;  %vm294_vm3 = vcmp.gt.f32.partialorder %v262_v46, 0.0  ;;  %v326_v53 = vmul.f32 0.1, %v262_v46  ;;  %v266_v54 = vadd.f32 %v533_v1, %v230_v47  ;;  %v267_v55 = vadd.f32 %v533_v1, %v231_v48 }
  0x2b   : > { %vm295_vm4 = vcmp.gt.f32.partialorder %v263_v49, 0.0  ;;  %v327_v58 = vmul.f32 0.1, %v263_v49  ;;  %vm296_vm5 = vcmp.gt.f32.partialorder %v264_v50, 0.0  ;;  %v328_v59 = vmul.f32 0.1, %v264_v50 }
  0x2c   : > { %v358_v60 = vsel %vm294_vm3, %v262_v46, %v326_v53  ;;  %vm297_vm6 = vcmp.gt.f32.partialorder %v265_v51, 0.0  ;;  %v329_v61 = vmul.f32 0.1, %v265_v51  ;;  %vm298_vm7 = vcmp.gt.f32.partialorder %v266_v54, 0.0 }
  0x2d   : > { %390 = vst [vmem:[%s561_s24 + $0x98] sm:$0xff] %v358_v60  ;;  %v359_v2 = vsel %vm295_vm4, %v263_v49, %v327_v58  ;;  %v360_v3 = vsel %vm296_vm5, %v264_v50, %v328_v59  ;;  %v330_v4 = vmul.f32 0.1, %v266_v54  ;;  %vm299_vm8 = vcmp.gt.f32.partialorder %v267_v55, 0.0 }
  0x2e   : > { %391 = vst [vmem:[%s561_s24 + $0xa0] sm:$0xff] %v359_v2  ;;  %v361_v5 = vsel %vm297_vm6, %v265_v51, %v329_v61  ;;  %v331_v6 = vmul.f32 0.1, %v267_v55  ;;  %v268_v7 = vadd.f32 %v533_v1, %v232_v52  ;;  %v233_v8 = vmul.f32 %v522_v0, %v197_v56 }
  0x2f   : > { %392 = vst [vmem:[%s561_s24 + $0xa8] sm:$0xff] %v360_v3  ;;  %v362_v10 = vsel %vm298_vm7, %v266_v54, %v330_v4  ;;  %v234_v11 = vmul.f32 %v522_v0, %v198_v57  ;;  %v235_v12 = vmul.f32 %v522_v0, %v199_v62  ;;  %v236_v13 = vmul.f32 %v522_v0, %v200_v63 }
  0x30   : > { %393 = vst [vmem:[%s561_s24 + $0xb0] sm:$0xff] %v361_v5  ;;  %v363_v15 = vsel %vm299_vm8, %v267_v55, %v331_v6  ;;  %vm300_vm9 = vcmp.gt.f32.partialorder %v268_v7, 0.0  ;;  %v332_v16 = vmul.f32 0.1, %v268_v7  ;;  %v269_v17 = vadd.f32 %v533_v1, %v233_v8 }
  0x31   : > { %394 = vst [vmem:[%s561_s24 + $0xb8] sm:$0xff] %v362_v10  ;;  %v270_v18 = vadd.f32 %v533_v1, %v234_v11  ;;  %v271_v19 = vadd.f32 %v533_v1, %v235_v12  ;;  %v272_v20 = vadd.f32 %v533_v1, %v236_v13  ;;  %v237_v21 = vmul.f32 %v522_v0, %v201_v9 }
  0x32   : > { %395 = vst [vmem:[%s561_s24 + $0xc0] sm:$0xff] %v363_v15  ;;  %v364_v22 = vsel %vm300_vm9, %v268_v7, %v332_v16  ;;  %vm301_vm10 = vcmp.gt.f32.partialorder %v269_v17, 0.0  ;;  %v333_v23 = vmul.f32 0.1, %v269_v17  ;;  %v238_v24 = vmul.f32 %v522_v0, %v202_v14 }
  0x33   : > { %396 = vst [vmem:[%s561_s24 + $0xc8] sm:$0xff] %v364_v22  ;;  %vm302_vm11 = vcmp.gt.f32.partialorder %v270_v18, 0.0  ;;  %v334_v25 = vmul.f32 0.1, %v270_v18  ;;  %vm303_vm12 = vcmp.gt.f32.partialorder %v271_v19, 0.0  ;;  %vm304_vm13 = vcmp.gt.f32.partialorder %v272_v20, 0.0 }
  0x34   : > { %v365_v26 = vsel %vm301_vm10, %v269_v17, %v333_v23  ;;  %v335_v27 = vmul.f32 0.1, %v271_v19  ;;  %v336_v28 = vmul.f32 0.1, %v272_v20  ;;  %v273_v29 = vadd.f32 %v533_v1, %v237_v21 }
  0x35   : > { %397 = vst [vmem:[%s561_s24 + $0xd0] sm:$0xff] %v365_v26  ;;  %v366_v30 = vsel %vm302_vm11, %v270_v18, %v334_v25  ;;  %v274_v31 = vadd.f32 %v533_v1, %v238_v24 }
  0x36   : > { %398 = vst [vmem:[%s561_s24 + $0xd8] sm:$0xff] %v366_v30  ;;  %v367_v0 = vsel %vm303_vm12, %v271_v19, %v335_v27  ;;  %v368_v32 = vsel %vm304_vm13, %v272_v20, %v336_v28  ;;  %vm305_vm14 = vcmp.gt.f32.partialorder %v273_v29, 0.0  ;;  %v337_v33 = vmul.f32 0.1, %v273_v29 }
  0x37   : > { %399 = vst [vmem:[%s561_s24 + $0xe0] sm:$0xff] %v367_v0  ;;  %vm306_vm15 = vcmp.gt.f32.partialorder %v274_v31, 0.0  ;;  %v338_v34 = vmul.f32 0.1, %v274_v31 }
  0x38   : > { %400 = vst [vmem:[%s561_s24 + $0xe8] sm:$0xff] %v368_v32  ;;  %v369_v35 = vsel %vm305_vm14, %v273_v29, %v337_v33 }
  0x39   : > { %401 = vst [vmem:[%s561_s24 + $0xf0] sm:$0xff] %v369_v35  ;;  %v370_v36 = vsel %vm306_vm15, %v274_v31, %v338_v34 }
  0x3a   : > { %402 = vst [vmem:[%s561_s24 + $0xf8] sm:$0xff] %v370_v36 }
  0x3b PF: > { %s13_s12 = sadd.s32 1, %s487_s12  }
  0x3c   : > { %p10_p4 = scmp.ge.s32.totalorder %s13_s12, 4  }
  0x3e   :  { %12 = sbr.rel (!%p10_p4) target bundleno = 1 (0x1), region = 62 }

// kernel: double_conv.3
= control target key start
LH: loop header
LB: loop body
LE: loop exit
PB: predicated region body
PF: predicated region fallthrough
CT: control target
= control target key end

     0   :  { %s6680_s15 = smov 0   ;;  %s8004_s0 = inlined_call_operand.vmem [shape: bf16[2,18,18,128], index: 0, kind: input, shape index: {}]   ;;  %s8005_s1 = inlined_call_operand.vmem [shape: bf16[1152,128], index: 1, kind: input, shape index: {}]   ;;  %s8006_s2 = inlined_call_operand.vmem [shape: f32[1,128], index: 2, kind: input, shape index: {}]   ;;  %s8007_s3 = inlined_call_operand.vmem [shape: f32[2,16,16,128], index: 3, kind: output, shape index: {0}]   ;;  %s8008_s4 = inlined_call_operand.vmem [shape: f32[2,2,128], index: 4, kind: output, shape index: {1}]  }
   0x1 LB: > { %s5216_s16 = sadd.s32 4294967295, %s6653_s15   ;;  %p5220_p0 = scmp.ge.s32.totalorder %s6653_s15, 1  ;;  %s6653_s15 = sphi %s6680_s15, %s15_s15  }
   0x2   : > { %p165_p1 = scmp.lt.s32.totalorder %s6653_s15, 3 }
   0x4   : > { %p166_p2 = pnand %p5220_p0, %p165_p1 }
   0x6   : > { %169 = sbr.rel (%p166_p2) target bundleno = 766 (0x2fe), region = 32 }
   0xb   : > { %v6547_v0 = vld [vmem:[%s8005_s1 + $0x38] sm:$0xff]  ;;  %p195_p3 = scmp.lt.s32.totalorder %s5216_s16, 1  ;;  %v6546_v1 = vld [vmem:[%s8005_s1 + $0x30] sm:$0xff]  ;;  %v6545_v2 = vld [vmem:[%s8005_s1 + $0x28] sm:$0xff]  ;;  %vm321_vm0 = vsmask.f32 3328 }
   0xc   : > { %6612 = vmatpush.bf16.msra.mxu1 %v6547_v0  ;;  %6613 = vmatpush.bf16.msra.mxu2 %v6547_v0  ;;  %v6544_v8 = vld [vmem:[%s8005_s1 + $0x20] sm:$0xff]  ;;  %v6543_v13 = vld [vmem:[%s8005_s1 + $0x18] sm:$0xff]  ;;  %v6542_v18 = vld [vmem:[%s8005_s1 + $0x10] sm:$0xff]  ;;  %vm322_vm1 = vsmask.f32 7440  ;;  %vm868_vm2 = vcmask 1042432  }
   0xd   : > { %s8024_s16 = smov (!%p195_p3, %s5216_s16), 1  ;;  %6614 = vmatpush.bf16.msra.mxu3 %v6547_v0  ;;  %4189 = vmatpush.bf16.msra.mxu0 %v6547_v0  ;;  %v6541_v22 = vld [vmem:[%s8005_s1 + $0x8] sm:$0xff]  ;;  %v6540_v25 = vld [vmem:[%s8005_s1] sm:$0xff]  ;;  %v6563_v38 = vld [vmem:[%s8005_s1 + $0xb8] sm:$0xff]  ;;  %vm869_vm4 = vcmask 1046532  }
   0xe   : > { %s6636_s21 = smul.u32 216, %s8024_s16  ;;  %v6571_v39 = vld [vmem:[%s8005_s1 + $0xf8] sm:$0xff]  ;;  %v6562_v48 = vld [vmem:[%s8005_s1 + $0xb0] sm:$0xff]  ;;  %v6561_v52 = vld [vmem:[%s8005_s1 + $0xa8] sm:$0xff]  ;;  %s6395_s5 = sshll.u32 %s8024_s16, 8 }
   0xf   : > { %v6555_v46 = vld [vmem:[%s8005_s1 + $0x78] sm:$0xff]  ;;  %v6570_v49 = vld [vmem:[%s8005_s1 + $0xf0] sm:$0xff]  ;;  %v6569_v53 = vld [vmem:[%s8005_s1 + $0xe8] sm:$0xff]  ;;  %s7829_s8 = scalar_lea.vmem %s8007_s3, %s6395_s5 }
  0x10   : > { %6615 = vmatpush.bf16.msra.mxu1 %v6546_v1  ;;  %6616 = vmatpush.bf16.msra.mxu2 %v6546_v1  ;;  %s6703_s26 = scalar_lea.vmem %s8004_s0, %s6636_s21  ;;  %v6579_v47 = vld [vmem:[%s8005_s1 + $0x138] sm:$0xff]  ;;  %v6554_v50 = vld [vmem:[%s8005_s1 + $0x70] sm:$0xff]  ;;  %v6553_v54 = vld [vmem:[%s8005_s1 + $0x68] sm:$0xff] }
  0x11   : > { %6617 = vmatpush.bf16.msra.mxu3 %v6546_v1  ;;  %4190 = vmatpush.bf16.msra.mxu0 %v6546_v1  ;;  %v217_v3 = vld [vmem:[%s6703_s26 + $0x30] sm:$0xf]  ;;  %v218_v4 = vld [vmem:[%s6703_s26 + $0x34] sm:$0xf]  ;;  %v225_v5 = vld [vmem:[%s6703_s26 + $0x60] sm:$0xf] }
  0x12   : > { %249 = vst [vmem:[#allocation2 + $0x120] sm:$0xf] %v217_v3  ;;  %v226_v6 = vld [vmem:[%s6703_s26 + $0x64] sm:$0xf]  ;;  %v233_v7 = vld [vmem:[%s6703_s26 + $0x90] sm:$0xf]  ;;  %vm6850_vm3 = vmor %vm321_vm0, %vm322_vm1 }
  0x13   : > { %250 = vst [vmem:[#allocation2 + $0x144] sm:$0xf] %v218_v4  ;;  %v234_v9 = vld [vmem:[%s6703_s26 + $0x94] sm:$0xf]  ;;  %v209_v10 = vld [vmem:[%s6703_s26] sm:$0xf]  ;;  %vm6864_vm5 = vmor %vm868_vm2, %vm869_vm4 }
  0x14   : > { %6618 = vmatpush.bf16.msra.mxu1 %v6545_v2  ;;  %6619 = vmatpush.bf16.msra.mxu2 %v6545_v2  ;;  %257 = vst [vmem:[#allocation2 + $0x240] sm:$0xf] %v225_v5  ;;  %v210_v11 = vld [vmem:[%s6703_s26 + $0x4] sm:$0xf]  ;;  %v219_v12 = vld [vmem:[%s6703_s26 + $0x3c] sm:$0xf] }
  0x15   : > { %6620 = vmatpush.bf16.msra.mxu3 %v6545_v2  ;;  %4191 = vmatpush.bf16.msra.mxu0 %v6545_v2  ;;  %258 = vst [vmem:[#allocation2 + $0x264] sm:$0xf] %v226_v6  ;;  %v220_v14 = vld [vmem:[%s6703_s26 + $0x40] sm:$0xf]  ;;  %v227_v15 = vld [vmem:[%s6703_s26 + $0x6c] sm:$0xf] }
  0x16   : > { %265 = vst [vmem:[#allocation2 + $0x360] sm:$0xf] %v233_v7  ;;  %v228_v16 = vld [vmem:[%s6703_s26 + $0x70] sm:$0xf]  ;;  %v235_v17 = vld [vmem:[%s6703_s26 + $0x9c] sm:$0xf] }
  0x17   : > { %266 = vst [vmem:[#allocation2 + $0x384] sm:$0xf] %v234_v9  ;;  %v236_v19 = vld [vmem:[%s6703_s26 + $0xa0] sm:$0xf]  ;;  %v211_v20 = vld [vmem:[%s6703_s26 + $0xc] sm:$0xf] }
  0x18   : > { %6621 = vmatpush.bf16.msra.mxu1 %v6544_v8  ;;  %6622 = vmatpush.bf16.msra.mxu2 %v6544_v8  ;;  %241 = vst [vmem:[#allocation2] sm:$0xf] %v209_v10  ;;  %v212_v21 = vld [vmem:[%s6703_s26 + $0x10] sm:$0xf]  ;;  %v221_v23 = vld [vmem:[%s6703_s26 + $0x48] sm:$0xf] }
  0x19   : > { %6623 = vmatpush.bf16.msra.mxu3 %v6544_v8  ;;  %4192 = vmatpush.bf16.msra.mxu0 %v6544_v8  ;;  %242 = vst [vmem:[#allocation2 + $0x24] sm:$0xf] %v210_v11  ;;  %v222_v24 = vld [vmem:[%s6703_s26 + $0x4c] sm:$0xf]  ;;  %v5675_v26 = vld [vmem:[#allocation2 + $0x120] sm:$0xf] }
  0x1a   : > { %251 = vst [vmem:[#allocation2 + $0x168] sm:$0xf] %v219_v12  ;;  %v6436_v27 = vld [vmem:[#allocation2 + $0x140] sm:$0xf0]  ;;  %v229_v30 = vld [vmem:[%s6703_s26 + $0x78] sm:$0xf] }
  0x1b   : > { %252 = vst [vmem:[#allocation2 + $0x18c] sm:$0xf] %v220_v14  ;;  %v5819_v28 = vld [vmem:[#allocation2 + $0x240] sm:$0xf]  ;;  %v230_v33 = vld [vmem:[%s6703_s26 + $0x7c] sm:$0xf]  ;;  %v5676_v41 = vor.u32 %v6436_v27, %v5675_v26 }
  0x1c   : > { %6624 = vmatpush.bf16.msra.mxu1 %v6543_v13  ;;  %6625 = vmatpush.bf16.msra.mxu2 %v6543_v13  ;;  %259 = vst [vmem:[#allocation2 + $0x288] sm:$0xf] %v227_v15  ;;  %v6472_v29 = vld [vmem:[#allocation2 + $0x260] sm:$0xf0]  ;;  %v237_v35 = vld [vmem:[%s6703_s26 + $0xa8] sm:$0xf] }
  0x1d   : > { %6626 = vmatpush.bf16.msra.mxu3 %v6543_v13  ;;  %4193 = vmatpush.bf16.msra.mxu0 %v6543_v13  ;;  %260 = vst [vmem:[#allocation2 + $0x2ac] sm:$0xf] %v228_v16  ;;  %v5963_v31 = vld [vmem:[#allocation2 + $0x360] sm:$0xf]  ;;  %v238_v37 = vld [vmem:[%s6703_s26 + $0xac] sm:$0xf]  ;;  %v5820_v42 = vor.u32 %v6472_v29, %v5819_v28 }
  0x1e   : > { %267 = vst [vmem:[#allocation2 + $0x3a8] sm:$0xf] %v235_v17  ;;  %v6508_v32 = vld [vmem:[#allocation2 + $0x380] sm:$0xf0]  ;;  %v213_v40 = vld [vmem:[%s6703_s26 + $0x18] sm:$0xf] }
  0x1f   : > { %268 = vst [vmem:[#allocation2 + $0x3cc] sm:$0xf] %v236_v19  ;;  %v5531_v34 = vld [vmem:[#allocation2] sm:$0xf]  ;;  %v214_v43 = vld [vmem:[%s6703_s26 + $0x1c] sm:$0xf]  ;;  %v5964_v44 = vor.u32 %v6508_v32, %v5963_v31 }
  0x20   : > { %6627 = vmatpush.bf16.msra.mxu1 %v6542_v18  ;;  %6628 = vmatpush.bf16.msra.mxu2 %v6542_v18  ;;  %243 = vst [vmem:[#allocation2 + $0x48] sm:$0xf] %v211_v20  ;;  %v6400_v36 = vld [vmem:[#allocation2 + $0x20] sm:$0xf0]  ;;  %v6578_v51 = vld [vmem:[%s8005_s1 + $0x130] sm:$0xff]  ;;  %v6577_v57 = vld [vmem:[%s8005_s1 + $0x128] sm:$0xff] }
  0x21   : > { %6629 = vmatpush.bf16.msra.mxu3 %v6542_v18  ;;  %4194 = vmatpush.bf16.msra.mxu0 %v6542_v18  ;;  %244 = vst [vmem:[#allocation2 + $0x6c] sm:$0xf] %v212_v21  ;;  %v5532_v45 = vor.u32 %v6400_v36, %v5531_v34  ;;  %v6560_v55 = vld [vmem:[%s8005_s1 + $0xa0] sm:$0xff]  ;;  %v223_v58 = vld [vmem:[%s6703_s26 + $0x54] sm:$0xf]  ;;  %v6559_v12 = vld [vmem:[%s8005_s1 + $0x98] sm:$0xff] }
  0x22   : > { %253 = vst [vmem:[#allocation2 + $0x1b0] sm:$0xf] %v221_v23  ;;  %v6568_v56 = vld [vmem:[%s8005_s1 + $0xe0] sm:$0xff]  ;;  %v224_v59 = vld [vmem:[%s6703_s26 + $0x58] sm:$0xf]  ;;  %v6550_v31 = vld [vmem:[%s8005_s1 + $0x50] sm:$0xff] }
  0x23   : > { %254 = vst [vmem:[#allocation2 + $0x1d4] sm:$0xf] %v222_v24  ;;  %v231_v60 = vld [vmem:[%s6703_s26 + $0x84] sm:$0xf]  ;;  %v232_v61 = vld [vmem:[%s6703_s26 + $0x88] sm:$0xf] }
  0x24   : > { %6630 = vmatpush.bf16.msra.mxu1 %v6541_v22  ;;  %6631 = vmatpush.bf16.msra.mxu2 %v6541_v22  ;;  %261 = vst [vmem:[#allocation2 + $0x2d0] sm:$0xf] %v229_v30  ;;  %v5711_v62 = vld [vmem:[#allocation2 + $0x168] sm:$0xf]  ;;  %v6445_v63 = vld [vmem:[#allocation2 + $0x188] sm:$0xf0] }
  0x25   : > { %6632 = vmatpush.bf16.msra.mxu3 %v6541_v22  ;;  %4195 = vmatpush.bf16.msra.mxu0 %v6541_v22  ;;  %262 = vst [vmem:[#allocation2 + $0x2f4] sm:$0xf] %v230_v33  ;;  %v5855_v0 = vld [vmem:[#allocation2 + $0x288] sm:$0xf]  ;;  %v6481_v1 = vld [vmem:[#allocation2 + $0x2a8] sm:$0xf0]  ;;  %v5712_v14 = vor.u32 %v6445_v63, %v5711_v62 }
  0x26   : > { %269 = vst [vmem:[#allocation2 + $0x3f0] sm:$0xf] %v237_v35  ;;  %v239_v2 = vld [vmem:[%s6703_s26 + $0xb4] sm:$0xf]  ;;  %v5999_v3 = vld [vmem:[#allocation2 + $0x3a8] sm:$0xf]  ;;  %v5856_v15 = vor.u32 %v6481_v1, %v5855_v0 }
  0x27   : > { %270 = vst [vmem:[#allocation2 + $0x414] sm:$0xf] %v238_v37  ;;  %v6517_v4 = vld [vmem:[#allocation2 + $0x3c8] sm:$0xf0]  ;;  %v5567_v5 = vld [vmem:[#allocation2 + $0x48] sm:$0xf] }
  0x28   : > { %6633 = vmatpush.bf16.msra.mxu1 %v6540_v25  ;;  %6634 = vmatpush.bf16.msra.mxu2 %v6540_v25  ;;  %245 = vst [vmem:[#allocation2 + $0x90] sm:$0xf] %v213_v40  ;;  %v240_v6 = vld [vmem:[%s6703_s26 + $0xb8] sm:$0xf]  ;;  %v6409_v7 = vld [vmem:[#allocation2 + $0x68] sm:$0xf0]  ;;  %v6000_v16 = vor.u32 %v6517_v4, %v5999_v3 }
  0x29   : > { %6635 = vmatpush.bf16.msra.mxu3 %v6540_v25  ;;  %4196 = vmatpush.bf16.msra.mxu0 %v6540_v25  ;;  %246 = vst [vmem:[#allocation2 + $0xb4] sm:$0xf] %v214_v43  ;;  %v215_v8 = vld [vmem:[%s6703_s26 + $0x24] sm:$0xf]  ;;  %v216_v11 = vld [vmem:[%s6703_s26 + $0x28] sm:$0xf]  ;;  %v5568_v17 = vor.u32 %v6409_v7, %v5567_v5 }
  0x2a   : > { %255 = vst [vmem:[#allocation2 + $0x1f8] sm:$0xf] %v223_v58  ;;  %v6552_v9 = vld [vmem:[%s8005_s1 + $0x60] sm:$0xff]  ;;  %v6567_v13 = vld [vmem:[%s8005_s1 + $0xd8] sm:$0xff]  ;;  %v6558_v24 = vld [vmem:[%s8005_s1 + $0x90] sm:$0xff] }
  0x2b   : > { %4217 = vmatmul.bf16.vlgmr.msra.gmra.mxu1 %v5676_v41  ;;  %4237 = vmatmul.bf16.vlgmr.msra.gmra.mxu2 %v5820_v42  ;;  %256 = vst [vmem:[#allocation2 + $0x21c] sm:$0xf] %v224_v59  ;;  %v6576_v10 = vld [vmem:[%s8005_s1 + $0x120] sm:$0xff]  ;;  %v6551_v19 = vld [vmem:[%s8005_s1 + $0x58] sm:$0xff]  ;;  %v6566_v25 = vld [vmem:[%s8005_s1 + $0xd0] sm:$0xff] }
  0x2c   : > { %4367 = vmatpush.bf16.msrb.mxu2 %v6563_v38  ;;  %4257 = vmatmul.bf16.vlgmr.msra.gmra.mxu3 %v5964_v44  ;;  %263 = vst [vmem:[#allocation2 + $0x318] sm:$0xf] %v231_v60  ;;  %v273_v18 = vld [vmem:[%s6703_s26] sm:$0xf]  ;;  %v6575_v20 = vld [vmem:[%s8005_s1 + $0x118] sm:$0xff]  ;;  %v6574_v32 = vld [vmem:[%s8005_s1 + $0x110] sm:$0xff] }
  0x2d   : > { %4456 = vmatpush.bf16.msrb.mxu3 %v6571_v39  ;;  %4197 = vmatmul.bf16.vlgmr.msra.gmra.mxu0 %v5532_v45  ;;  %264 = vst [vmem:[#allocation2 + $0x33c] sm:$0xf] %v232_v61  ;;  %v274_v21 = vld [vmem:[%s6703_s26 + $0x4] sm:$0xf]  ;;  %v325_v22 = vshrl.u32 %v273_v18, 16  ;;  %v328_v23 = vshll.u32 %v273_v18, 16 }
  0x2e   : > { %4278 = vmatpush.bf16.msrb.mxu1 %v6555_v46  ;;  %4545 = vmatpush.bf16.msrb.mxu0 %v6579_v47  ;;  %271 = vst [vmem:[#allocation2 + $0x438] sm:$0xf] %v239_v2  ;;  %v334_v26 = vshll.u32 %v274_v21, 16  ;;  %v338_v27 = vshrl.u32 %v274_v21, 16  ;;  %v6821_v30 = vld [vmem:[%s6703_s26 + $0xc] sm:$0xf] }
  0x2f   : > { %272 = vst [vmem:[#allocation2 + $0x45c] sm:$0xf] %v240_v6  ;;  %v327_v28 = vrot.slane %v325_v22, 4  ;;  %v330_v29 = vrot.slane %v328_v23, 5  ;;  %v6557_v34 = vld [vmem:[%s8005_s1 + $0x88] sm:$0xff]  ;;  %v6556_v40 = vld [vmem:[%s8005_s1 + $0x80] sm:$0xff] }
  0x30   : > { %4368 = vmatpush.bf16.msrb.mxu2 %v6562_v48  ;;  %247 = vst [vmem:[#allocation2 + $0xd8] sm:$0xf] %v215_v8  ;;  %v6565_v35 = vld [vmem:[%s8005_s1 + $0xc8] sm:$0xff]  ;;  %v336_v36 = vrot.slane %v334_v26, 5  ;;  %v340_v37 = vrot.slane %v338_v27, 4  ;;  %v6564_v41 = vld [vmem:[%s8005_s1 + $0xc0] sm:$0xff] }
  0x31   : > { %4457 = vmatpush.bf16.msrb.mxu3 %v6570_v49  ;;  %248 = vst [vmem:[#allocation2 + $0xfc] sm:$0xf] %v216_v11  ;;  %v331_v33 = vor.u32 %v330_v29, %v327_v28  ;;  %v6549_v38 = vld [vmem:[%s8005_s1 + $0x48] sm:$0xff]  ;;  %v1161_v46 = vshrl.u32 %v6821_v30, 16  ;;  %v772_v49 = vld [vmem:[%s6703_s26] sm:$0xe] }
  0x32   : > { %4279 = vmatpush.bf16.msrb.mxu1 %v6554_v50  ;;  %4546 = vmatpush.bf16.msrb.mxu0 %v6578_v51  ;;  %v6573_v42 = vld [vmem:[%s8005_s1 + $0x108] sm:$0xff]  ;;  %v341_v45 = vor.u32 %v340_v37, %v336_v36  ;;  %v773_v50 = vld [vmem:[%s6703_s26 + $0x4] sm:$0xf]  ;;  %v5274_v51 = vld [vmem:[%s6703_s26 + $0x10] sm:$0xf]  ;;  %v5225_v60 = vrot.slane %v772_v49, 9 }
  0x33   : > { %v332_v39 = vrot.slane %v331_v33, 4  ;;  %v275_v43 = vld [vmem:[%s6703_s26 + $0x8] sm:$0x1]  ;;  %v6035_v61 = vld [vmem:[#allocation2 + $0x3f0] sm:$0xf]  ;;  %v873_v2 = vrot.slane %v773_v50, 5 }
  0x34   : > { %4369 = vmatpush.bf16.msrb.mxu2 %v6561_v52  ;;  %v344_v48 = vshll.u32 %v275_v43, 16  ;;  %v1164_v52 = vshll.u32 %v6821_v30, 16  ;;  %v774_v58 = vld [vmem:[%s6703_s26 + $0x8] sm:$0x1]  ;;  %v6526_v62 = vld [vmem:[#allocation2 + $0x410] sm:$0xf0] }
  0x35   : > { %4458 = vmatpush.bf16.msrb.mxu3 %v6569_v53  ;;  %v337_v47 = vsel %vm6850_vm3, %v332_v39, %v336_v36  ;;  %v5747_v53 = vld [vmem:[#allocation2 + $0x1b0] sm:$0xf]  ;;  %v6418_v0 = vld [vmem:[#allocation2 + $0xb0] sm:$0xf0]  ;;  %v876_v3 = vrot.slane %v774_v58, 5  ;;  %v1163_v5 = vrot.slane %v1161_v46, 4  ;;  %v874_v11 = vsel %vm6864_vm5, %v5225_v60, %v873_v2 }
  0x36   : > { %4280 = vmatpush.bf16.msrb.mxu1 %v6553_v54  ;;  %4547 = vmatpush.bf16.msrb.mxu0 %v6577_v57  ;;  %v6454_v54 = vld [vmem:[#allocation2 + $0x1d0] sm:$0xf0]  ;;  %v342_v57 = vrot.slane %v341_v45, 4  ;;  %740 = vst [vmem:[#allocation2 + $0x4] sm:$0xf] %v337_v47  ;;  %v346_v1 = vrot.slane %v344_v48, 5  ;;  %v6036_v21 = vor.u32 %v6526_v62, %v6035_v61 }
  0x37   : > { %v5603_v63 = vld [vmem:[#allocation2 + $0x90] sm:$0xf]  ;;  %v5241_v4 = vld [vmem:[%s6703_s26 + $0xc] sm:$0xf]  ;;  %v5275_v7 = vld [vmem:[%s6703_s26 + $0x14] sm:$0x1] }
  0x38   : > { %4370 = vmatpush.bf16.msrb.mxu2 %v6560_v55  ;;  %v5891_v55 = vld [vmem:[#allocation2 + $0x2d0] sm:$0xf]  ;;  %1080 = vst [vmem:[#allocation2 + $0xc] sm:$0xf] %v5241_v4  ;;  %v6548_v8 = vld [vmem:[%s8005_s1 + $0x40] sm:$0xff]  ;;  %v5604_v22 = vor.u32 %v6418_v0, %v5603_v63  ;;  %v6603_v37 = vld [vmem:[%s8005_s1 + $0x1f8] sm:$0xff] }
  0x39   : > { %4459 = vmatpush.bf16.msrb.mxu3 %v6568_v56  ;;  %v6490_v56 = vld [vmem:[#allocation2 + $0x2f0] sm:$0xf0]  ;;  %v5242_v6 = vld [vmem:[%s6703_s26 + $0x10] sm:$0xf]  ;;  %1015 = vst [vmem:[#allocation2 + $0x8] sm:$0xf] %v874_v11 }
  0x3a   : > { %4281 = vmatpush.bf16.msrb.mxu1 %v6552_v9  ;;  %4548 = vmatpush.bf16.msrb.mxu0 %v6576_v10  ;;  %v6572_v9 = vld [vmem:[%s8005_s1 + $0x100] sm:$0xff]  ;;  %v347_v10 = vsel %vm6850_vm3, %v342_v57, %v346_v1  ;;  %1081 = vst [vmem:[#allocation2 + $0x30] sm:$0xf] %v5242_v6  ;;  %v5892_v18 = vor.u32 %v6490_v56, %v5891_v55  ;;  %v276_v26 = vld [vmem:[%s6703_s26 + $0xc] sm:$0xf] }
  0x3b   : > { %4222 = vmatmul.bf16.gmra.mxu1 %v5712_v14  ;;  %4242 = vmatmul.bf16.gmra.mxu2 %v5856_v15  ;;  %741 = vst [vmem:[#allocation2 + $0x28] sm:$0xf] %v347_v10  ;;  %v1170_v14 = vshll.u32 %v5274_v51, 16  ;;  %v1174_v15 = vshrl.u32 %v5274_v51, 16  ;;  %v277_v29 = vld [vmem:[%s6703_s26 + $0x10] sm:$0xf] }
  0x3c   : > { %4371 = vmatpush.bf16.msrb.mxu2 %v6559_v12  ;;  %4262 = vmatmul.bf16.gmra.mxu3 %v6000_v16  ;;  %v875_v12 = vrot.slane %v873_v2, 4  ;;  %v1180_v16 = vshll.u32 %v5275_v7, 16  ;;  %v349_v30 = vshrl.u32 %v276_v26, 16  ;;  %v358_v33 = vshll.u32 %v277_v29, 16  ;;  %v278_v43 = vld [vmem:[%s6703_s26 + $0x14] sm:$0x1] }
  0x3d   : > { %4460 = vmatpush.bf16.msrb.mxu3 %v6567_v13  ;;  %4202 = vmatmul.bf16.gmra.mxu0 %v5568_v17  ;;  %v1166_v13 = vrot.slane %v1164_v52, 5  ;;  %v5748_v17 = vor.u32 %v6454_v54, %v5747_v53  ;;  %v1172_v23 = vrot.slane %v1170_v14, 5  ;;  %v368_v48 = vshll.u32 %v278_v43, 16  ;;  %v5276_v49 = vld [vmem:[%s6703_s26 + $0x18] sm:$0xf] }
  0x3e   : > { %4282 = vmatpush.bf16.msrb.mxu1 %v6551_v19  ;;  %4549 = vmatpush.bf16.msrb.mxu0 %v6575_v20  ;;  %v877_v19 = vsel %vm6864_vm5, %v875_v12, %v876_v3  ;;  %v1182_v28 = vrot.slane %v1180_v16, 5  ;;  %v351_v39 = vrot.slane %v349_v30, 4  ;;  %v360_v45 = vrot.slane %v358_v33, 5  ;;  %v775_v50 = vld [vmem:[%s6703_s26 + $0xc] sm:$0xe] }
  0x3f   : > { %v1167_v20 = vor.u32 %v1166_v13, %v1163_v5  ;;  %1016 = vst [vmem:[#allocation2 + $0x2c] sm:$0xf] %v877_v19  ;;  %v776_v51 = vld [vmem:[%s6703_s26 + $0x10] sm:$0xf]  ;;  %v777_v52 = vld [vmem:[%s6703_s26 + $0x14] sm:$0x1] }
  0x40   : > { %4372 = vmatpush.bf16.msrb.mxu2 %v6558_v24  ;;  %v1176_v24 = vrot.slane %v1174_v15, 4  ;;  %v5277_v53 = vld [vmem:[%s6703_s26 + $0x1c] sm:$0xf]  ;;  %v370_v56 = vrot.slane %v368_v48, 5  ;;  %v5226_v57 = vrot.slane %v775_v50, 9  ;;  %v880_v0 = vrot.slane %v776_v51, 5 }
  0x41   : > { %4461 = vmatpush.bf16.msrb.mxu3 %v6566_v25  ;;  %v1168_v25 = vrot.slane %v1167_v20, 4  ;;  %v5243_v58 = vld [vmem:[%s6703_s26 + $0x18] sm:$0xf]  ;;  %v6463_v61 = vld [vmem:[#allocation2 + $0x218] sm:$0xf0]  ;;  %v883_v1 = vrot.slane %v777_v52, 5 }
  0x42   : > { %4283 = vmatpush.bf16.msrb.mxu1 %v6550_v31  ;;  %4550 = vmatpush.bf16.msrb.mxu0 %v6574_v32  ;;  %v1177_v27 = vor.u32 %v1176_v24, %v1172_v23  ;;  %v352_v31 = vshll.u32 %v276_v26, 16  ;;  %v5783_v60 = vld [vmem:[#allocation2 + $0x1f8] sm:$0xf]  ;;  %v6499_v63 = vld [vmem:[#allocation2 + $0x338] sm:$0xf0]  ;;  %v881_v10 = vsel %vm6864_vm5, %v5226_v57, %v880_v0  ;;  %v882_v11 = vrot.slane %v880_v0, 4 }
  0x43   : > { %v1173_v32 = vsel %vm6850_vm3, %v1168_v25, %v1172_v23  ;;  %v5927_v62 = vld [vmem:[#allocation2 + $0x318] sm:$0xf]  ;;  %v5244_v2 = vld [vmem:[%s6703_s26 + $0x1c] sm:$0xf]  ;;  %1082 = vst [vmem:[#allocation2 + $0x54] sm:$0xf] %v5243_v58 }
  0x44   : > { %4373 = vmatpush.bf16.msrb.mxu2 %v6557_v34  ;;  %v362_v34 = vshrl.u32 %v277_v29, 16  ;;  %v1178_v36 = vrot.slane %v1177_v27, 4  ;;  %1576 = vst [vmem:[#allocation2 + $0x10] sm:$0xf] %v1173_v32  ;;  %v6071_v3 = vld [vmem:[#allocation2 + $0x438] sm:$0xf] }
  0x45   : > { %4462 = vmatpush.bf16.msrb.mxu3 %v6565_v35  ;;  %v6595_v35 = vld [vmem:[%s8005_s1 + $0x1b8] sm:$0xff]  ;;  %1083 = vst [vmem:[#allocation2 + $0x78] sm:$0xf] %v5244_v2  ;;  %v5278_v12 = vld [vmem:[%s6703_s26 + $0x20] sm:$0x1]  ;;  %v1188_v13 = vshll.u32 %v5276_v49, 16 }
  0x46   : > { %4284 = vmatpush.bf16.msrb.mxu1 %v6549_v38  ;;  %4551 = vmatpush.bf16.msrb.mxu0 %v6573_v42  ;;  %v6587_v38 = vld [vmem:[%s8005_s1 + $0x178] sm:$0xff]  ;;  %v364_v47 = vrot.slane %v362_v34, 4  ;;  %1017 = vst [vmem:[#allocation2 + $0x50] sm:$0xf] %v881_v10  ;;  %v1194_v16 = vshll.u32 %v5277_v53, 16  ;;  %v1204_v20 = vshll.u32 %v5278_v12, 16 }
  0x47   : > { %v6611_v42 = vld [vmem:[%s8005_s1 + $0x238] sm:$0xff]  ;;  %v1190_v19 = vrot.slane %v1188_v13, 5  ;;  %v6396_v0 = vld [vmem:[#allocation2 + $0x4] sm:$0xf]  ;;  %v5539_v2 = vld [vmem:[#allocation2 + $0x8] sm:$0xf] }
  0x48   : > { %4374 = vmatpush.bf16.msrb.mxu2 %v6556_v40  ;;  %v354_v40 = vrot.slane %v352_v31, 5  ;;  %v365_v55 = vor.u32 %v364_v47, %v360_v45  ;;  %v6535_v4 = vld [vmem:[#allocation2 + $0x458] sm:$0xf0]  ;;  %v5639_v5 = vld [vmem:[#allocation2 + $0xd8] sm:$0xf]  ;;  %v1196_v23 = vrot.slane %v1194_v16, 5 }
  0x49   : > { %4463 = vmatpush.bf16.msrb.mxu3 %v6564_v41  ;;  %v1183_v41 = vsel %vm6850_vm3, %v1178_v36, %v1182_v28  ;;  %v6427_v6 = vld [vmem:[#allocation2 + $0xf8] sm:$0xf0]  ;;  %v6072_v25 = vor.u32 %v6535_v4, %v6071_v3  ;;  %v1206_v28 = vrot.slane %v1204_v20, 5  ;;  %v279_v29 = vld [vmem:[%s6703_s26 + $0x18] sm:$0xf] }
  0x4a   : > { %4285 = vmatpush.bf16.msrb.mxu1 %v6548_v8  ;;  %4552 = vmatpush.bf16.msrb.mxu0 %v6572_v9  ;;  %1577 = vst [vmem:[#allocation2 + $0x34] sm:$0xf] %v1183_v41  ;;  %v355_v46 = vor.u32 %v354_v40, %v351_v39  ;;  %v366_v8 = vrot.slane %v365_v55, 4  ;;  %v1185_v9 = vshrl.u32 %v5276_v49, 16  ;;  %v5640_v26 = vor.u32 %v6427_v6, %v5639_v5  ;;  %v280_v30 = vld [vmem:[%s6703_s26 + $0x1c] sm:$0xf] }
  0x4b   : > { %4227 = vmatmul.bf16.gmra.mxu1 %v5748_v17  ;;  %4247 = vmatmul.bf16.gmra.mxu2 %v5892_v18  ;;  %v1198_v17 = vshrl.u32 %v5277_v53, 16  ;;  %v884_v18 = vsel %vm6864_vm5, %v882_v11, %v883_v1  ;;  %v373_v32 = vshrl.u32 %v279_v29, 16  ;;  %v376_v33 = vshll.u32 %v279_v29, 16  ;;  %v5279_v40 = vld [vmem:[%s6703_s26 + $0x24] sm:$0xf] }
  0x4c   : > { %4267 = vmatmul.bf16.gmra.mxu3 %v6036_v21  ;;  %4723 = vmatpush.bf16.msra.mxu2 %v6595_v35  ;;  %v356_v54 = vrot.slane %v355_v46, 4  ;;  %v371_v14 = vsel %vm6850_vm3, %v366_v8, %v370_v56  ;;  %v1187_v15 = vrot.slane %v1185_v9, 4  ;;  %v5784_v21 = vor.u32 %v6463_v61, %v5783_v60  ;;  %1018 = vst [vmem:[#allocation2 + $0x74] sm:$0xf] %v884_v18  ;;  %v778_v50 = vld [vmem:[%s6703_s26 + $0x18] sm:$0xe] }
  0x4d   : > { %4207 = vmatmul.bf16.gmra.mxu0 %v5604_v22  ;;  %4812 = vmatpush.bf16.msra.mxu3 %v6603_v37  ;;  %743 = vst [vmem:[#allocation2 + $0x70] sm:$0xf] %v371_v14  ;;  %v5928_v22 = vor.u32 %v6499_v63, %v5927_v62  ;;  %v1200_v24 = vrot.slane %v1198_v17, 4  ;;  %v382_v34 = vshll.u32 %v280_v30, 16  ;;  %v386_v36 = vshrl.u32 %v280_v30, 16 }
  0x4e   : > { %4634 = vmatpush.bf16.msra.mxu1 %v6587_v38  ;;  %4901 = vmatpush.bf16.msra.mxu0 %v6611_v42  ;;  %v361_v7 = vsel %vm6850_vm3, %v356_v54, %v360_v45  ;;  %v1191_v27 = vor.u32 %v1190_v19, %v1187_v15  ;;  %v375_v38 = vrot.slane %v373_v32, 4  ;;  %v378_v39 = vrot.slane %v376_v33, 5  ;;  %v281_v42 = vld [vmem:[%s6703_s26 + $0x20] sm:$0x1]  ;;  %v779_v54 = vld [vmem:[%s6703_s26 + $0x1c] sm:$0xf] }
  0x4f   : > { %742 = vst [vmem:[#allocation2 + $0x4c] sm:$0xf] %v361_v7  ;;  %v1201_v31 = vor.u32 %v1200_v24, %v1196_v23  ;;  %v384_v43 = vrot.slane %v382_v34, 5  ;;  %v388_v45 = vrot.slane %v386_v36, 4  ;;  %v392_v48 = vshll.u32 %v281_v42, 16  ;;  %v6602_v42 = vld [vmem:[%s8005_s1 + $0x1f0] sm:$0xff] }
  0x50   : > { %v1192_v35 = vrot.slane %v1191_v27, 4  ;;  %v379_v47 = vor.u32 %v378_v39, %v375_v38  ;;  %v1209_v51 = vshrl.u32 %v5279_v40, 16  ;;  %v780_v55 = vld [vmem:[%s6703_s26 + $0x20] sm:$0x1]  ;;  %v5227_v57 = vrot.slane %v778_v50, 9 }
  0x51   : > { %v1202_v37 = vrot.slane %v1201_v31, 4  ;;  %v389_v49 = vor.u32 %v388_v45, %v384_v43  ;;  %v394_v53 = vrot.slane %v392_v48, 5  ;;  %v887_v58 = vrot.slane %v779_v54, 5  ;;  %v5280_v61 = vld [vmem:[%s6703_s26 + $0x28] sm:$0xf]  ;;  %v6610_v45 = vld [vmem:[%s8005_s1 + $0x230] sm:$0xff]  ;;  %4813 = vmatpush.bf16.msra.mxu3 %v6602_v42 }
  0x52   : > { %v1197_v41 = vsel %vm6850_vm3, %v1192_v35, %v1196_v23  ;;  %v380_v52 = vrot.slane %v379_v47, 4  ;;  %v890_v60 = vrot.slane %v780_v55, 5  ;;  %v5281_v63 = vld [vmem:[%s6703_s26 + $0x2c] sm:$0x1]  ;;  %v5533_v1 = vld [vmem:[#allocation2 + $0x24] sm:$0xf0]  ;;  %4902 = vmatpush.bf16.msra.mxu0 %v6610_v45 }
  0x53   : > { %v1207_v46 = vsel %vm6850_vm3, %v1202_v37, %v1206_v28  ;;  %1578 = vst [vmem:[#allocation2 + $0x58] sm:$0xf] %v1197_v41  ;;  %v390_v56 = vrot.slane %v389_v49, 4  ;;  %v6401_v3 = vld [vmem:[#allocation2 + $0x28] sm:$0xf0]  ;;  %v888_v5 = vsel %vm6864_vm5, %v5227_v57, %v887_v58  ;;  %v889_v6 = vrot.slane %v887_v58, 4 }
  0x54   : > { %1579 = vst [vmem:[#allocation2 + $0x7c] sm:$0xf] %v1207_v46  ;;  %v385_v62 = vsel %vm6850_vm3, %v380_v52, %v384_v43  ;;  %v5245_v7 = vld [vmem:[%s6703_s26 + $0x24] sm:$0xf]  ;;  %v6397_v8 = vld [vmem:[#allocation2 + $0xc] sm:$0xf]  ;;  %v5540_v23 = vor.u32 %v6401_v3, %v5539_v2 }
  0x55   : > { %v395_v4 = vsel %vm6850_vm3, %v390_v56, %v394_v53  ;;  %744 = vst [vmem:[#allocation2 + $0x94] sm:$0xf] %v385_v62  ;;  %v5541_v9 = vld [vmem:[#allocation2 + $0x2c] sm:$0xf0]  ;;  %v1211_v11 = vrot.slane %v1209_v51, 4  ;;  %v1212_v12 = vshll.u32 %v5279_v40, 16  ;;  %v891_v15 = vsel %vm6864_vm5, %v889_v6, %v890_v60 }
  0x56   : > { %v5547_v10 = vld [vmem:[#allocation2 + $0x10] sm:$0xf]  ;;  %745 = vst [vmem:[#allocation2 + $0xb8] sm:$0xf] %v395_v4  ;;  %v1218_v13 = vshll.u32 %v5280_v61, 16  ;;  %v1222_v14 = vshrl.u32 %v5280_v61, 16 }
  0x57   : > { %1019 = vst [vmem:[#allocation2 + $0x98] sm:$0xf] %v888_v5  ;;  %v5246_v16 = vld [vmem:[%s6703_s26 + $0x28] sm:$0xf]  ;;  %v1228_v17 = vshll.u32 %v5281_v63, 16  ;;  %v1214_v19 = vrot.slane %v1212_v12, 5 }
  0x58   : > { %v6402_v18 = vld [vmem:[#allocation2 + $0x30] sm:$0xf0]  ;;  %1020 = vst [vmem:[#allocation2 + $0xbc] sm:$0xf] %v891_v15  ;;  %v1220_v20 = vrot.slane %v1218_v13, 5 }
  0x59   : > { %1084 = vst [vmem:[#allocation2 + $0x9c] sm:$0xf] %v5245_v7  ;;  %v1215_v24 = vor.u32 %v1214_v19, %v1211_v11  ;;  %v1230_v28 = vrot.slane %v1228_v17, 5  ;;  %v282_v29 = vld [vmem:[%s6703_s26 + $0x24] sm:$0xf]  ;;  %v6594_v40 = vld [vmem:[%s8005_s1 + $0x1b0] sm:$0xff] }
  0x5a   : > { %1085 = vst [vmem:[#allocation2 + $0xc0] sm:$0xf] %v5246_v16  ;;  %v283_v30 = vld [vmem:[%s6703_s26 + $0x28] sm:$0xf]  ;;  %v397_v32 = vshrl.u32 %v282_v29, 16  ;;  %v400_v33 = vshll.u32 %v282_v29, 16  ;;  %4724 = vmatpush.bf16.msra.mxu2 %v6594_v40 }
  0x5b   : > { %4232 = vmatmul.bf16.gmra.mxu1 %v5784_v21  ;;  %4252 = vmatmul.bf16.gmra.mxu2 %v5928_v22  ;;  %v1224_v21 = vrot.slane %v1222_v14, 4  ;;  %v5536_v22 = vor.u32 %v6396_v0, %v5533_v1  ;;  %v1216_v31 = vrot.slane %v1215_v24, 4  ;;  %v406_v35 = vshll.u32 %v283_v30, 16  ;;  %v6586_v43 = vld [vmem:[%s8005_s1 + $0x170] sm:$0xff]  ;;  %v284_v47 = vld [vmem:[%s6703_s26 + $0x2c] sm:$0x1] }
  0x5c   : > { %4272 = vmatmul.bf16.gmra.mxu3 %v6072_v25  ;;  %v5544_v25 = vor.u32 %v6397_v8, %v5541_v9  ;;  %v410_v36 = vshrl.u32 %v283_v30, 16  ;;  %v399_v38 = vrot.slane %v397_v32, 4  ;;  %v402_v39 = vrot.slane %v400_v33, 5  ;;  %v5282_v50 = vld [vmem:[%s6703_s26 + $0x30] sm:$0xf]  ;;  %4635 = vmatpush.bf16.msra.mxu1 %v6586_v43 }
  0x5d   : > { %4212 = vmatmul.bf16.gmra.mxu0 %v5640_v26  ;;  %v5548_v26 = vor.u32 %v6402_v18, %v5547_v10  ;;  %v1225_v27 = vor.u32 %v1224_v21, %v1220_v20  ;;  %v1221_v37 = vsel %vm6850_vm3, %v1216_v31, %v1220_v20  ;;  %v408_v48 = vrot.slane %v406_v35, 5  ;;  %v781_v53 = vld [vmem:[%s6703_s26 + $0x24] sm:$0xe]  ;;  %v782_v54 = vld [vmem:[%s6703_s26 + $0x28] sm:$0xf] }
  0x5e   : > { %1580 = vst [vmem:[#allocation2 + $0xa0] sm:$0xf] %v1221_v37  ;;  %v403_v46 = vor.u32 %v402_v39, %v399_v38  ;;  %v412_v49 = vrot.slane %v410_v36, 4  ;;  %v416_v52 = vshll.u32 %v284_v47, 16  ;;  %v783_v56 = vld [vmem:[%s6703_s26 + $0x2c] sm:$0x1] }
  0x5f   : > { %v1226_v34 = vrot.slane %v1225_v27, 4  ;;  %v5228_v57 = vrot.slane %v781_v53, 9  ;;  %v894_v58 = vrot.slane %v782_v54, 5  ;;  %v5283_v60 = vld [vmem:[%s6703_s26 + $0x34] sm:$0xf]  ;;  %v897_v63 = vrot.slane %v783_v56, 5 }
  0x60   : > { %v404_v51 = vrot.slane %v403_v46, 4  ;;  %v413_v55 = vor.u32 %v412_v49, %v408_v48  ;;  %v418_v62 = vrot.slane %v416_v52, 5  ;;  %v5247_v0 = vld [vmem:[%s6703_s26 + $0x30] sm:$0xf]  ;;  %v5284_v1 = vld [vmem:[%s6703_s26 + $0x38] sm:$0x1] }
  0x61   : > { %v1231_v41 = vsel %vm6850_vm3, %v1226_v34, %v1230_v28  ;;  %v6405_v2 = vld [vmem:[#allocation2 + $0x4c] sm:$0xf]  ;;  %v5569_v3 = vld [vmem:[#allocation2 + $0x6c] sm:$0xf0]  ;;  %v6410_v5 = vld [vmem:[#allocation2 + $0x70] sm:$0xf0]  ;;  %v895_v7 = vsel %vm6864_vm5, %v5228_v57, %v894_v58 }
  0x62   : > { %1581 = vst [vmem:[#allocation2 + $0xc4] sm:$0xf] %v1231_v41  ;;  %v409_v61 = vsel %vm6850_vm3, %v404_v51, %v408_v48  ;;  %v5575_v4 = vld [vmem:[#allocation2 + $0x50] sm:$0xf]  ;;  %v414_v6 = vrot.slane %v413_v55, 4  ;;  %v896_v8 = vrot.slane %v894_v58, 4 }
  0x63   : > { %746 = vst [vmem:[#allocation2 + $0xdc] sm:$0xf] %v409_v61  ;;  %v1233_v9 = vshrl.u32 %v5282_v50, 16  ;;  %v6406_v10 = vld [vmem:[#allocation2 + $0x54] sm:$0xf]  ;;  %v1236_v14 = vshll.u32 %v5282_v50, 16 }
  0x64   : > { %v5577_v11 = vld [vmem:[#allocation2 + $0x74] sm:$0xf0]  ;;  %v6411_v13 = vld [vmem:[#allocation2 + $0x78] sm:$0xf0]  ;;  %1021 = vst [vmem:[#allocation2 + $0xe0] sm:$0xf] %v895_v7  ;;  %v419_v16 = vsel %vm6850_vm3, %v414_v6, %v418_v62  ;;  %v898_v17 = vsel %vm6864_vm5, %v896_v8, %v897_v63 }
  0x65   : > { %v5583_v12 = vld [vmem:[#allocation2 + $0x58] sm:$0xf]  ;;  %v1242_v15 = vshll.u32 %v5283_v60, 16  ;;  %v5248_v18 = vld [vmem:[%s6703_s26 + $0x34] sm:$0xf]  ;;  %v1235_v19 = vrot.slane %v1233_v9, 4  ;;  %v5580_v28 = vor.u32 %v6406_v10, %v5577_v11 }
  0x66   : > { %1086 = vst [vmem:[#allocation2 + $0xe4] sm:$0xf] %v5247_v0  ;;  %v1246_v20 = vshrl.u32 %v5283_v60, 16  ;;  %v1238_v21 = vrot.slane %v1236_v14, 5  ;;  %v5584_v29 = vor.u32 %v6411_v13, %v5583_v12  ;;  %v285_v32 = vld [vmem:[%s6703_s26 + $0x30] sm:$0xf] }
  0x67   : > { %747 = vst [vmem:[#allocation2 + $0x100] sm:$0xf] %v419_v16  ;;  %v286_v33 = vld [vmem:[%s6703_s26 + $0x34] sm:$0xf]  ;;  %v421_v35 = vshrl.u32 %v285_v32, 16  ;;  %v424_v36 = vshll.u32 %v285_v32, 16 }
  0x68   : > { %1022 = vst [vmem:[#allocation2 + $0x104] sm:$0xf] %v898_v17  ;;  %v1248_v24 = vrot.slane %v1246_v20, 4  ;;  %v1239_v27 = vor.u32 %v1238_v21, %v1235_v19  ;;  %v430_v37 = vshll.u32 %v286_v33, 16  ;;  %v434_v39 = vshrl.u32 %v286_v33, 16 }
  0x69   : > { %1087 = vst [vmem:[#allocation2 + $0x108] sm:$0xf] %v5248_v18  ;;  %v423_v41 = vrot.slane %v421_v35, 4  ;;  %v426_v42 = vrot.slane %v424_v36, 5  ;;  %v287_v46 = vld [vmem:[%s6703_s26 + $0x38] sm:$0x1] }
  0x6a   : > { %v1240_v34 = vrot.slane %v1239_v27, 4  ;;  %v432_v45 = vrot.slane %v430_v37, 5  ;;  %v436_v48 = vrot.slane %v434_v39, 4  ;;  %v440_v49 = vshll.u32 %v287_v46, 16  ;;  %v784_v50 = vld [vmem:[%s6703_s26 + $0x30] sm:$0xe] }
  0x6b   : > { %4286 = vmatmul.bf16.vlgmr.msrb.gmra.mxu1 %v5536_v22  ;;  %4375 = vmatmul.bf16.vlgmr.msrb.gmra.mxu2 %v5540_v23  ;;  %v1244_v22 = vrot.slane %v1242_v15, 5  ;;  %v1252_v23 = vshll.u32 %v5284_v1, 16  ;;  %v427_v47 = vor.u32 %v426_v42, %v423_v41  ;;  %v5285_v51 = vld [vmem:[%s6703_s26 + $0x3c] sm:$0xf]  ;;  %v785_v53 = vld [vmem:[%s6703_s26 + $0x34] sm:$0xf] }
  0x6c   : > { %4464 = vmatmul.bf16.vlgmr.msrb.gmra.mxu3 %v5544_v25  ;;  %v5572_v25 = vor.u32 %v6405_v2, %v5569_v3  ;;  %v786_v54 = vld [vmem:[%s6703_s26 + $0x38] sm:$0x1]  ;;  %v5229_v55 = vrot.slane %v784_v50, 9  ;;  %v437_v56 = vor.u32 %v436_v48, %v432_v45  ;;  %v442_v57 = vrot.slane %v440_v49, 5  ;;  %v5286_v61 = vld [vmem:[%s6703_s26 + $0x40] sm:$0xf] }
  0x6d   : > { %4553 = vmatmul.bf16.vlgmr.msrb.gmra.mxu0 %v5548_v26  ;;  %v5576_v26 = vor.u32 %v6410_v5, %v5575_v4  ;;  %v1249_v30 = vor.u32 %v1248_v24, %v1244_v22  ;;  %v1254_v31 = vrot.slane %v1252_v23, 5  ;;  %v1245_v40 = vsel %vm6850_vm3, %v1240_v34, %v1244_v22  ;;  %v5249_v63 = vld [vmem:[%s6703_s26 + $0x3c] sm:$0xf]  ;;  %v5287_v0 = vld [vmem:[%s6703_s26 + $0x44] sm:$0x1]  ;;  %v6593_v42 = vld [vmem:[%s8005_s1 + $0x1a8] sm:$0xff] }
  0x6e   : > { %1582 = vst [vmem:[#allocation2 + $0xe8] sm:$0xf] %v1245_v40  ;;  %v428_v52 = vrot.slane %v427_v47, 4  ;;  %v901_v58 = vrot.slane %v785_v53, 5  ;;  %v904_v60 = vrot.slane %v786_v54, 5  ;;  %v438_v5 = vrot.slane %v437_v56, 4  ;;  %4725 = vmatpush.bf16.msra.mxu2 %v6593_v42 }
  0x6f   : > { %v1250_v38 = vrot.slane %v1249_v30, 4  ;;  %v6414_v1 = vld [vmem:[#allocation2 + $0x94] sm:$0xf]  ;;  %v5605_v2 = vld [vmem:[#allocation2 + $0xb4] sm:$0xf0]  ;;  %v1257_v8 = vshrl.u32 %v5285_v51, 16 }
  0x70   : > { %v433_v62 = vsel %vm6850_vm3, %v428_v52, %v432_v45  ;;  %v5611_v3 = vld [vmem:[#allocation2 + $0x98] sm:$0xf]  ;;  %v6419_v4 = vld [vmem:[#allocation2 + $0xb8] sm:$0xf0]  ;;  %v902_v6 = vsel %vm6864_vm5, %v5229_v55, %v901_v58  ;;  %v903_v7 = vrot.slane %v901_v58, 4  ;;  %v1260_v13 = vshll.u32 %v5285_v51, 16 }
  0x71   : > { %v1255_v43 = vsel %vm6850_vm3, %v1250_v38, %v1254_v31  ;;  %748 = vst [vmem:[#allocation2 + $0x124] sm:$0xf] %v433_v62  ;;  %v6415_v9 = vld [vmem:[#allocation2 + $0x9c] sm:$0xf]  ;;  %v5613_v10 = vld [vmem:[#allocation2 + $0xbc] sm:$0xf0]  ;;  %v443_v15 = vsel %vm6850_vm3, %v438_v5, %v442_v57  ;;  %v5608_v24 = vor.u32 %v6414_v1, %v5605_v2 }
  0x72   : > { %1583 = vst [vmem:[#allocation2 + $0x10c] sm:$0xf] %v1255_v43  ;;  %v5619_v11 = vld [vmem:[#allocation2 + $0xa0] sm:$0xf]  ;;  %v6420_v12 = vld [vmem:[#allocation2 + $0xc0] sm:$0xf0]  ;;  %v905_v16 = vsel %vm6864_vm5, %v903_v7, %v904_v60  ;;  %v5616_v27 = vor.u32 %v6415_v9, %v5613_v10 }
  0x73   : > { %1023 = vst [vmem:[#allocation2 + $0x128] sm:$0xf] %v902_v6  ;;  %v1266_v14 = vshll.u32 %v5286_v61, 16  ;;  %v5250_v17 = vld [vmem:[%s6703_s26 + $0x40] sm:$0xf]  ;;  %v1259_v18 = vrot.slane %v1257_v8, 4 }
  0x74   : > { %1088 = vst [vmem:[#allocation2 + $0x12c] sm:$0xf] %v5249_v63  ;;  %v1270_v19 = vshrl.u32 %v5286_v61, 16  ;;  %v1262_v20 = vrot.slane %v1260_v13, 5  ;;  %v1276_v22 = vshll.u32 %v5287_v0, 16  ;;  %v6601_v45 = vld [vmem:[%s8005_s1 + $0x1e8] sm:$0xff] }
  0x75   : > { %749 = vst [vmem:[#allocation2 + $0x148] sm:$0xf] %v443_v15  ;;  %v1268_v21 = vrot.slane %v1266_v14, 5  ;;  %v288_v31 = vld [vmem:[%s6703_s26 + $0x3c] sm:$0xf]  ;;  %4814 = vmatpush.bf16.msra.mxu3 %v6601_v45  ;;  %v6585_v57 = vld [vmem:[%s8005_s1 + $0x168] sm:$0xff] }
  0x76   : > { %1024 = vst [vmem:[#allocation2 + $0x14c] sm:$0xf] %v905_v16  ;;  %v1272_v23 = vrot.slane %v1270_v19, 4  ;;  %v1278_v30 = vrot.slane %v1276_v22, 5  ;;  %v289_v32 = vld [vmem:[%s6703_s26 + $0x40] sm:$0xf]  ;;  %4636 = vmatpush.bf16.msra.mxu1 %v6585_v57 }
  0x77   : > { %1089 = vst [vmem:[#allocation2 + $0x150] sm:$0xf] %v5250_v17  ;;  %v445_v34 = vshrl.u32 %v288_v31, 16  ;;  %v448_v35 = vshll.u32 %v288_v31, 16  ;;  %v454_v36 = vshll.u32 %v289_v32, 16  ;;  %v458_v38 = vshrl.u32 %v289_v32, 16 }
  0x78   : > { %v290_v47 = vld [vmem:[%s6703_s26 + $0x44] sm:$0x1]  ;;  %v787_v51 = vld [vmem:[%s6703_s26 + $0x3c] sm:$0xe]  ;;  %v5288_v52 = vld [vmem:[%s6703_s26 + $0x48] sm:$0xf] }
  0x79   : > { %v447_v40 = vrot.slane %v445_v34, 4  ;;  %v450_v41 = vrot.slane %v448_v35, 5  ;;  %v456_v46 = vrot.slane %v454_v36, 5  ;;  %v460_v49 = vrot.slane %v458_v38, 4  ;;  %v788_v54 = vld [vmem:[%s6703_s26 + $0x40] sm:$0xf] }
  0x7a   : > { %v464_v50 = vshll.u32 %v290_v47, 16  ;;  %v789_v55 = vld [vmem:[%s6703_s26 + $0x44] sm:$0x1]  ;;  %v5230_v56 = vrot.slane %v787_v51, 9  ;;  %v908_v61 = vrot.slane %v788_v54, 5  ;;  %v6609_v7 = vld [vmem:[%s8005_s1 + $0x228] sm:$0xff] }
  0x7b   : > { %4291 = vmatmul.bf16.gmra.mxu1 %v5572_v25  ;;  %4380 = vmatmul.bf16.gmra.mxu2 %v5576_v26  ;;  %v5612_v25 = vor.u32 %v6419_v4, %v5611_v3  ;;  %v1263_v26 = vor.u32 %v1262_v20, %v1259_v18  ;;  %v451_v48 = vor.u32 %v450_v41, %v447_v40  ;;  %v911_v62 = vrot.slane %v789_v55, 5  ;;  %v5289_v63 = vld [vmem:[%s6703_s26 + $0x4c] sm:$0xf]  ;;  %v5251_v1 = vld [vmem:[%s6703_s26 + $0x48] sm:$0xf] }
  0x7c   : > { %4469 = vmatmul.bf16.gmra.mxu3 %v5580_v28  ;;  %v5620_v28 = vor.u32 %v6420_v12, %v5619_v11  ;;  %v461_v58 = vor.u32 %v460_v49, %v456_v46  ;;  %v466_v60 = vrot.slane %v464_v50, 5  ;;  %v5290_v2 = vld [vmem:[%s6703_s26 + $0x50] sm:$0x1]  ;;  %v6423_v3 = vld [vmem:[#allocation2 + $0xdc] sm:$0xf]  ;;  %v909_v9 = vsel %vm6864_vm5, %v5230_v56, %v908_v61  ;;  %4903 = vmatpush.bf16.msra.mxu0 %v6609_v7 }
  0x7d   : > { %4558 = vmatmul.bf16.gmra.mxu0 %v5584_v29  ;;  %v1273_v29 = vor.u32 %v1272_v23, %v1268_v21  ;;  %v1264_v33 = vrot.slane %v1263_v26, 4  ;;  %v452_v53 = vrot.slane %v451_v48, 4  ;;  %v5641_v4 = vld [vmem:[#allocation2 + $0xfc] sm:$0xf0]  ;;  %v6428_v6 = vld [vmem:[#allocation2 + $0x100] sm:$0xf0] }
  0x7e   : > { %v5647_v5 = vld [vmem:[#allocation2 + $0xe0] sm:$0xf]  ;;  %v462_v8 = vrot.slane %v461_v58, 4  ;;  %v910_v10 = vrot.slane %v908_v61, 4  ;;  %v1281_v11 = vshrl.u32 %v5288_v52, 16  ;;  %v1284_v16 = vshll.u32 %v5288_v52, 16 }
  0x7f   : > { %v1274_v37 = vrot.slane %v1273_v29, 4  ;;  %v1269_v39 = vsel %vm6850_vm3, %v1264_v33, %v1268_v21  ;;  %v457_v0 = vsel %vm6850_vm3, %v452_v53, %v456_v46  ;;  %v6424_v12 = vld [vmem:[#allocation2 + $0xe4] sm:$0xf]  ;;  %v5649_v13 = vld [vmem:[#allocation2 + $0x104] sm:$0xf0]  ;;  %v1290_v17 = vshll.u32 %v5289_v63, 16 }
  0x80   : > { %1584 = vst [vmem:[#allocation2 + $0x130] sm:$0xf] %v1269_v39  ;;  %v5655_v14 = vld [vmem:[#allocation2 + $0xe8] sm:$0xf]  ;;  %v6429_v15 = vld [vmem:[#allocation2 + $0x108] sm:$0xf0]  ;;  %v467_v18 = vsel %vm6850_vm3, %v462_v8, %v466_v60  ;;  %v912_v19 = vsel %vm6864_vm5, %v910_v10, %v911_v62 }
  0x81   : > { %v1279_v43 = vsel %vm6850_vm3, %v1274_v37, %v1278_v30  ;;  %750 = vst [vmem:[#allocation2 + $0x16c] sm:$0xf] %v457_v0  ;;  %v5252_v20 = vld [vmem:[%s6703_s26 + $0x4c] sm:$0xf]  ;;  %v1283_v21 = vrot.slane %v1281_v11, 4  ;;  %v1294_v22 = vshrl.u32 %v5289_v63, 16  ;;  %v5652_v30 = vor.u32 %v6424_v12, %v5649_v13 }
  0x82   : > { %1585 = vst [vmem:[#allocation2 + $0x154] sm:$0xf] %v1279_v43  ;;  %v1286_v23 = vrot.slane %v1284_v16, 5  ;;  %v5656_v31 = vor.u32 %v6429_v15, %v5655_v14  ;;  %v291_v34 = vld [vmem:[%s6703_s26 + $0x48] sm:$0xf] }
  0x83   : > { %1025 = vst [vmem:[#allocation2 + $0x170] sm:$0xf] %v909_v9  ;;  %v1296_v26 = vrot.slane %v1294_v22, 4  ;;  %v292_v35 = vld [vmem:[%s6703_s26 + $0x4c] sm:$0xf]  ;;  %v469_v37 = vshrl.u32 %v291_v34, 16 }
  0x84   : > { %1090 = vst [vmem:[#allocation2 + $0x174] sm:$0xf] %v5251_v1  ;;  %v1287_v29 = vor.u32 %v1286_v23, %v1283_v21  ;;  %v472_v38 = vshll.u32 %v291_v34, 16  ;;  %v478_v39 = vshll.u32 %v292_v35, 16  ;;  %v482_v41 = vshrl.u32 %v292_v35, 16 }
  0x85   : > { %751 = vst [vmem:[#allocation2 + $0x190] sm:$0xf] %v467_v18  ;;  %v471_v43 = vrot.slane %v469_v37, 4  ;;  %v293_v48 = vld [vmem:[%s6703_s26 + $0x50] sm:$0x1] }
  0x86   : > { %1026 = vst [vmem:[#allocation2 + $0x194] sm:$0xf] %v912_v19  ;;  %v1288_v36 = vrot.slane %v1287_v29, 4  ;;  %v474_v45 = vrot.slane %v472_v38, 5  ;;  %v480_v46 = vrot.slane %v478_v39, 5  ;;  %v484_v50 = vrot.slane %v482_v41, 4 }
  0x87   : > { %1091 = vst [vmem:[#allocation2 + $0x198] sm:$0xf] %v5252_v20  ;;  %v488_v51 = vshll.u32 %v293_v48, 16  ;;  %v5291_v52 = vld [vmem:[%s6703_s26 + $0x54] sm:$0xf] }
  0x88   : > { %v475_v49 = vor.u32 %v474_v45, %v471_v43  ;;  %v790_v53 = vld [vmem:[%s6703_s26 + $0x48] sm:$0xe]  ;;  %v791_v54 = vld [vmem:[%s6703_s26 + $0x4c] sm:$0xf]  ;;  %v485_v56 = vor.u32 %v484_v50, %v480_v46  ;;  %v792_v58 = vld [vmem:[%s6703_s26 + $0x50] sm:$0x1] }
  0x89   : > { %v490_v57 = vrot.slane %v488_v51, 5  ;;  %v5292_v60 = vld [vmem:[%s6703_s26 + $0x58] sm:$0xf]  ;;  %v5231_v61 = vrot.slane %v790_v53, 9  ;;  %v915_v62 = vrot.slane %v791_v54, 5  ;;  %v918_v63 = vrot.slane %v792_v58, 5 }
  0x8a   : > { %v476_v55 = vrot.slane %v475_v49, 4  ;;  %v1305_v0 = vshrl.u32 %v5291_v52, 16  ;;  %v6432_v1 = vld [vmem:[#allocation2 + $0x124] sm:$0xf]  ;;  %v5683_v7 = vld [vmem:[#allocation2 + $0x128] sm:$0xf] }
  0x8b   : > { %4296 = vmatmul.bf16.gmra.mxu1 %v5608_v24  ;;  %4385 = vmatmul.bf16.gmra.mxu2 %v5612_v25  ;;  %v1292_v24 = vrot.slane %v1290_v17, 5  ;;  %v1300_v25 = vshll.u32 %v5290_v2, 16  ;;  %v5677_v2 = vld [vmem:[#allocation2 + $0x144] sm:$0xf0]  ;;  %v6437_v8 = vld [vmem:[#allocation2 + $0x148] sm:$0xf0]  ;;  %v916_v9 = vsel %vm6864_vm5, %v5231_v61, %v915_v62 }
  0x8c   : > { %4474 = vmatmul.bf16.gmra.mxu3 %v5616_v27  ;;  %v5644_v27 = vor.u32 %v6423_v3, %v5641_v4  ;;  %v481_v3 = vsel %vm6850_vm3, %v476_v55, %v480_v46  ;;  %v486_v4 = vrot.slane %v485_v56, 4  ;;  %v917_v10 = vrot.slane %v915_v62, 4  ;;  %v7054_v13 = vld [vmem:[%s8006_s2] ss:$0 sm:$0xff]  ;;  %v6433_v14 = vld [vmem:[#allocation2 + $0x12c] sm:$0xf] }
  0x8d   : > { %4563 = vmatmul.bf16.gmra.mxu0 %v5620_v28  ;;  %v5648_v28 = vor.u32 %v6428_v6, %v5647_v5  ;;  %v1297_v32 = vor.u32 %v1296_v26, %v1292_v24  ;;  %v1302_v33 = vrot.slane %v1300_v25, 5  ;;  %v1293_v42 = vsel %vm6850_vm3, %v1288_v36, %v1292_v24  ;;  %v5293_v5 = vld [vmem:[%s6703_s26 + $0x5c] sm:$0x1]  ;;  %752 = vst [vmem:[#allocation2 + $0x1b4] sm:$0xf] %v481_v3  ;;  %v6592_v49 = vld [vmem:[%s8005_s1 + $0x1a0] sm:$0xff] }
  0x8e   : > { %1586 = vst [vmem:[#allocation2 + $0x178] sm:$0xf] %v1293_v42  ;;  %v1308_v6 = vshll.u32 %v5291_v52, 16  ;;  %v1307_v11 = vrot.slane %v1305_v0, 4  ;;  %v1314_v12 = vshll.u32 %v5292_v60, 16  ;;  %v491_v17 = vsel %vm6850_vm3, %v486_v4, %v490_v57  ;;  %v6600_v50 = vld [vmem:[%s8005_s1 + $0x1e0] sm:$0xff]  ;;  %4726 = vmatpush.bf16.msra.mxu2 %v6592_v49 }
  0x8f   : > { %v1298_v40 = vrot.slane %v1297_v32, 4  ;;  %v5685_v15 = vld [vmem:[#allocation2 + $0x14c] sm:$0xf0]  ;;  %1027 = vst [vmem:[#allocation2 + $0x1b8] sm:$0xf] %v916_v9  ;;  %v1318_v20 = vshrl.u32 %v5292_v60, 16  ;;  %v919_v21 = vsel %vm6864_vm5, %v917_v10, %v918_v63  ;;  %v5684_v29 = vor.u32 %v6437_v8, %v5683_v7  ;;  %4815 = vmatpush.bf16.msra.mxu3 %v6600_v50 }
  0x90   : > { %v5691_v16 = vld [vmem:[#allocation2 + $0x130] sm:$0xf]  ;;  %v5253_v18 = vld [vmem:[%s6703_s26 + $0x54] sm:$0xf]  ;;  %v1310_v19 = vrot.slane %v1308_v6, 5  ;;  %v1316_v23 = vrot.slane %v1314_v12, 5  ;;  %v5688_v34 = vor.u32 %v6433_v14, %v5685_v15 }
  0x91   : > { %v1303_v47 = vsel %vm6850_vm3, %v1298_v40, %v1302_v33  ;;  %753 = vst [vmem:[#allocation2 + $0x1d8] sm:$0xf] %v491_v17  ;;  %v5254_v22 = vld [vmem:[%s6703_s26 + $0x58] sm:$0xf]  ;;  %v1324_v24 = vshll.u32 %v5293_v5, 16  ;;  %v6584_v3 = vld [vmem:[%s8005_s1 + $0x160] sm:$0xff] }
  0x92   : > { %1587 = vst [vmem:[#allocation2 + $0x19c] sm:$0xf] %v1303_v47  ;;  %v6438_v25 = vld [vmem:[#allocation2 + $0x150] sm:$0xf0]  ;;  %v1311_v26 = vor.u32 %v1310_v19, %v1307_v11  ;;  %v295_v37 = vld [vmem:[%s6703_s26 + $0x58] sm:$0xf]  ;;  %4637 = vmatpush.bf16.msra.mxu1 %v6584_v3 }
  0x93   : > { %1028 = vst [vmem:[#allocation2 + $0x1dc] sm:$0xf] %v919_v21  ;;  %v1326_v32 = vrot.slane %v1324_v24, 5  ;;  %v5692_v35 = vor.u32 %v6438_v25, %v5691_v16  ;;  %v294_v36 = vld [vmem:[%s6703_s26 + $0x54] sm:$0xf]  ;;  %v502_v45 = vshll.u32 %v295_v37, 16 }
  0x94   : > { %1092 = vst [vmem:[#allocation2 + $0x1bc] sm:$0xf] %v5253_v18  ;;  %v493_v42 = vshrl.u32 %v294_v36, 16  ;;  %v496_v43 = vshll.u32 %v294_v36, 16  ;;  %v506_v48 = vshrl.u32 %v295_v37, 16  ;;  %v6608_v17 = vld [vmem:[%s8005_s1 + $0x220] sm:$0xff] }
  0x95   : > { %1093 = vst [vmem:[#allocation2 + $0x1e0] sm:$0xf] %v5254_v22  ;;  %v296_v51 = vld [vmem:[%s6703_s26 + $0x5c] sm:$0x1]  ;;  %v504_v53 = vrot.slane %v502_v45, 5  ;;  %4904 = vmatpush.bf16.msra.mxu0 %v6608_v17 }
  0x96   : > { %v495_v47 = vrot.slane %v493_v42, 4  ;;  %v498_v52 = vrot.slane %v496_v43, 5  ;;  %v508_v55 = vrot.slane %v506_v48, 4  ;;  %v512_v56 = vshll.u32 %v296_v51, 16  ;;  %v793_v57 = vld [vmem:[%s6703_s26 + $0x54] sm:$0xe] }
  0x97   : > { %v794_v62 = vld [vmem:[%s6703_s26 + $0x58] sm:$0xf]  ;;  %v795_v63 = vld [vmem:[%s6703_s26 + $0x5c] sm:$0x1]  ;;  %v5232_v0 = vrot.slane %v793_v57, 9 }
  0x98   : > { %v499_v61 = vor.u32 %v498_v52, %v495_v47  ;;  %v509_v4 = vor.u32 %v508_v55, %v504_v53  ;;  %v514_v5 = vrot.slane %v512_v56, 5  ;;  %v922_v6 = vrot.slane %v794_v62, 5  ;;  %v6441_v9 = vld [vmem:[#allocation2 + $0x16c] sm:$0xf]  ;;  %v5713_v10 = vld [vmem:[#allocation2 + $0x18c] sm:$0xf0] }
  0x99   : > { %v5719_v11 = vld [vmem:[#allocation2 + $0x170] sm:$0xf]  ;;  %v6446_v12 = vld [vmem:[#allocation2 + $0x190] sm:$0xf0]  ;;  %v925_v15 = vrot.slane %v795_v63, 5 }
  0x9a   : > { %v500_v14 = vrot.slane %v499_v61, 4  ;;  %v5294_v16 = vld [vmem:[%s6703_s26 + $0x60] sm:$0xf]  ;;  %v510_v18 = vrot.slane %v509_v4, 4  ;;  %v923_v19 = vsel %vm6864_vm5, %v5232_v0, %v922_v6  ;;  %v5295_v21 = vld [vmem:[%s6703_s26 + $0x64] sm:$0xf] }
  0x9b   : > { %4301 = vmatmul.bf16.gmra.mxu1 %v5644_v27  ;;  %4390 = vmatmul.bf16.gmra.mxu2 %v5648_v28  ;;  %v1320_v27 = vrot.slane %v1318_v20, 4  ;;  %v5680_v28 = vor.u32 %v6432_v1, %v5677_v2  ;;  %v924_v20 = vrot.slane %v922_v6, 4  ;;  %v6442_v22 = vld [vmem:[#allocation2 + $0x174] sm:$0xf]  ;;  %v5727_v24 = vld [vmem:[#allocation2 + $0x178] sm:$0xf] }
  0x9c   : > { %4479 = vmatmul.bf16.gmra.mxu3 %v5652_v30  ;;  %v1312_v30 = vrot.slane %v1311_v26, 4  ;;  %v6447_v25 = vld [vmem:[#allocation2 + $0x198] sm:$0xf0]  ;;  %v505_v26 = vsel %vm6850_vm3, %v500_v14, %v504_v53  ;;  %1029 = vst [vmem:[#allocation2 + $0x200] sm:$0xf] %v923_v19 }
  0x9d   : > { %4568 = vmatmul.bf16.gmra.mxu0 %v5656_v31  ;;  %v1321_v31 = vor.u32 %v1320_v27, %v1316_v23  ;;  %v5255_v27 = vld [vmem:[%s6703_s26 + $0x60] sm:$0xf]  ;;  %754 = vst [vmem:[#allocation2 + $0x1fc] sm:$0xf] %v505_v26  ;;  %v5728_v52 = vor.u32 %v6447_v25, %v5727_v24  ;;  %v298_v61 = vld [vmem:[%s6703_s26 + $0x64] sm:$0xf] }
  0x9e   : > { %v1317_v40 = vsel %vm6850_vm3, %v1312_v30, %v1316_v23  ;;  %v5721_v23 = vld [vmem:[#allocation2 + $0x194] sm:$0xf0]  ;;  %v926_v30 = vsel %vm6864_vm5, %v924_v20, %v925_v15  ;;  %1094 = vst [vmem:[#allocation2 + $0x204] sm:$0xf] %v5255_v27  ;;  %v526_v0 = vshll.u32 %v298_v61, 16 }
  0x9f   : > { %v1322_v41 = vrot.slane %v1321_v31, 4  ;;  %1588 = vst [vmem:[#allocation2 + $0x1c0] sm:$0xf] %v1317_v40  ;;  %v5256_v31 = vld [vmem:[%s6703_s26 + $0x64] sm:$0xf]  ;;  %v5716_v40 = vor.u32 %v6441_v9, %v5713_v10  ;;  %v5724_v51 = vor.u32 %v6442_v22, %v5721_v23 }
  0xa0   : > { %1030 = vst [vmem:[#allocation2 + $0x224] sm:$0xf] %v926_v30  ;;  %v299_v6 = vld [vmem:[%s6703_s26 + $0x68] sm:$0x1]  ;;  %v528_v10 = vrot.slane %v526_v0, 5 }
  0xa1   : > { %v1327_v46 = vsel %vm6850_vm3, %v1322_v41, %v1326_v32  ;;  %v1329_v32 = vshrl.u32 %v5294_v16, 16  ;;  %v5720_v41 = vor.u32 %v6446_v12, %v5719_v11  ;;  %1095 = vst [vmem:[#allocation2 + $0x228] sm:$0xf] %v5256_v31  ;;  %v797_v15 = vld [vmem:[%s6703_s26 + $0x64] sm:$0xf] }
  0xa2   : > { %1589 = vst [vmem:[#allocation2 + $0x1e4] sm:$0xf] %v1327_v46  ;;  %v929_v19 = vrot.slane %v797_v15, 5  ;;  %v796_v23 = vld [vmem:[%s6703_s26 + $0x60] sm:$0xe] }
  0xa3   : > { %v1331_v42 = vrot.slane %v1329_v32, 4  ;;  %v6450_v32 = vld [vmem:[#allocation2 + $0x1b4] sm:$0xf] }
  0xa8   : > { %v4218_v33 = vpop.f32.mrf.mxu1 }
  0xa9   : > { %v7065_v38 = vadd.f32 %v7054_v13, %v4218_v33  ;;  %v1332_v33 = vshll.u32 %v5294_v16, 16  ;;  %v6456_v0 = vld [vmem:[#allocation2 + $0x1e0] sm:$0xf0] }
  0xaa   : > { %v7067_v39 = vpop.f32.mrf.mxu0 }
  0xab   : > { %4306 = vmatmul.bf16.gmra.mxu1 %v5680_v28  ;;  %4395 = vmatmul.bf16.gmra.mxu2 %v5684_v29  ;;  %v5296_v28 = vld [vmem:[%s6703_s26 + $0x68] sm:$0x1]  ;;  %v515_v29 = vsel %vm6850_vm3, %v510_v18, %v514_v5  ;;  %v1334_v46 = vrot.slane %v1332_v33, 5  ;;  %v536_v18 = vshll.u32 %v299_v6, 16  ;;  %v5749_v33 = vld [vmem:[#allocation2 + $0x1d4] sm:$0xf0] }
  0xac   : > { %4484 = vmatmul.bf16.gmra.mxu3 %v5688_v34  ;;  %755 = vst [vmem:[#allocation2 + $0x220] sm:$0xf] %v515_v29  ;;  %v1338_v34 = vshll.u32 %v5295_v21, 16  ;;  %v1348_v36 = vshll.u32 %v5296_v28, 16  ;;  %v798_v28 = vld [vmem:[%s6703_s26 + $0x68] sm:$0x1] }
  0xad   : > { %4573 = vmatmul.bf16.gmra.mxu0 %v5692_v35  ;;  %v1342_v35 = vshrl.u32 %v5295_v21, 16  ;;  %v1335_v57 = vor.u32 %v1334_v46, %v1331_v42  ;;  %v538_v27 = vrot.slane %v536_v18, 5  ;;  %v5297_v29 = vld [vmem:[%s6703_s26 + $0x6c] sm:$0xf]  ;;  %v6451_v42 = vld [vmem:[#allocation2 + $0x1bc] sm:$0xf] }
  0xae   : > { %v4238_v54 = vpop.f32.mrf.mxu2  ;;  %v1340_v47 = vrot.slane %v1338_v34, 5  ;;  %v1350_v53 = vrot.slane %v1348_v36, 5  ;;  %v931_v36 = vrot.slane %v929_v19, 4 }
  0xaf   : > { %v7082_v58 = vadd.f32 %v7054_v13, %v4238_v54  ;;  %v4258_v60 = vpop.f32.mrf.mxu3  ;;  %v1344_v48 = vrot.slane %v1342_v35, 4  ;;  %v297_v54 = vld [vmem:[%s6703_s26 + $0x60] sm:$0xf]  ;;  %v1336_v3 = vrot.slane %v1335_v57, 4  ;;  %v5233_v35 = vrot.slane %v796_v23, 9 }
  0xb0   : > { %v7087_v1 = vadd.f32 %v7054_v13, %v4258_v60  ;;  %v4220_v2 = vpop.f32.mrf.mxu1  ;;  %v517_v62 = vshrl.u32 %v297_v54, 16  ;;  %v520_v63 = vshll.u32 %v297_v54, 16  ;;  %v5298_v54 = vld [vmem:[%s6703_s26 + $0x70] sm:$0xf]  ;;  %v5299_v57 = vld [vmem:[%s6703_s26 + $0x74] sm:$0x1] }
  0xb1   : > { %v7093_v7 = vadd.f32 %v7054_v13, %v4220_v2  ;;  %v1345_v60 = vor.u32 %v1344_v48, %v1340_v47  ;;  %v530_v2 = vshrl.u32 %v298_v61, 16  ;;  %v1341_v11 = vsel %vm6850_vm3, %v1336_v3, %v1340_v47  ;;  %v5258_v48 = vld [vmem:[%s6703_s26 + $0x70] sm:$0xf] }
  0xb2   : > { %v7095_v8 = vpop.f32.mrf.mxu0  ;;  %v519_v5 = vrot.slane %v517_v62, 4  ;;  %v522_v9 = vrot.slane %v520_v63, 5  ;;  %1590 = vst [vmem:[#allocation2 + $0x208] sm:$0xf] %v1341_v11  ;;  %v932_v47 = vrot.slane %v798_v28, 5  ;;  %v1356_v62 = vshll.u32 %v5297_v29, 16 }
  0xb3   : > { %v1346_v4 = vrot.slane %v1345_v60, 4  ;;  %v532_v14 = vrot.slane %v530_v2, 4  ;;  %v1362_v63 = vshll.u32 %v5298_v54, 16  ;;  %v1366_v2 = vshrl.u32 %v5298_v54, 16  ;;  %1097 = vst [vmem:[#allocation2 + $0x270] sm:$0xf] %v5258_v48 }
  0xb4   : > { %v523_v17 = vor.u32 %v522_v9, %v519_v5  ;;  %v933_v60 = vsel %vm6864_vm5, %v931_v36, %v932_v47  ;;  %v1372_v3 = vshll.u32 %v5299_v57, 16  ;;  %v5752_v5 = vor.u32 %v6450_v32, %v5749_v33  ;;  %v301_v23 = vld [vmem:[%s6703_s26 + $0x70] sm:$0xf]  ;;  %v302_v48 = vld [vmem:[%s6703_s26 + $0x74] sm:$0x1] }
  0xb5   : > { %v1351_v12 = vsel %vm6850_vm3, %v1346_v4, %v1350_v53  ;;  %v533_v22 = vor.u32 %v532_v14, %v528_v10  ;;  %v930_v53 = vsel %vm6864_vm5, %v5233_v35, %v929_v19  ;;  %1032 = vst [vmem:[#allocation2 + $0x26c] sm:$0xf] %v933_v60  ;;  %v1358_v6 = vrot.slane %v1356_v62, 5  ;;  %v800_v62 = vld [vmem:[%s6703_s26 + $0x70] sm:$0xf] }
  0xb6   : > { %v4240_v37 = vpop.f32.mrf.mxu2  ;;  %1591 = vst [vmem:[#allocation2 + $0x22c] sm:$0xf] %v1351_v12  ;;  %v524_v26 = vrot.slane %v523_v17, 4  ;;  %v1364_v9 = vrot.slane %v1362_v63, 5  ;;  %v1368_v15 = vrot.slane %v1366_v2, 4  ;;  %v550_v33 = vshll.u32 %v301_v23, 16 }
  0xb7   : > { %v7114_v43 = vadd.f32 %v7054_v13, %v4240_v37  ;;  %v4260_v45 = vpop.f32.mrf.mxu3  ;;  %v534_v34 = vrot.slane %v533_v22, 4  ;;  %v5257_v37 = vld [vmem:[%s6703_s26 + $0x6c] sm:$0xf]  ;;  %1031 = vst [vmem:[#allocation2 + $0x248] sm:$0xf] %v930_v53  ;;  %v560_v53 = vshll.u32 %v302_v48, 16 }
  0xb8   : > { %v7117_v49 = vadd.f32 %v7054_v13, %v4260_v45  ;;  %v4223_v50 = vpop.f32.mrf.mxu1  ;;  %v5757_v45 = vld [vmem:[#allocation2 + $0x1dc] sm:$0xf0]  ;;  %v529_v46 = vsel %vm6850_vm3, %v524_v26, %v528_v10  ;;  %1096 = vst [vmem:[#allocation2 + $0x24c] sm:$0xf] %v5257_v37  ;;  %v300_v22 = vld [vmem:[%s6703_s26 + $0x6c] sm:$0xf] }
  0xb9   : > { %v7121_v55 = vadd.f32 %v7054_v13, %v4223_v50  ;;  %v1353_v50 = vshrl.u32 %v5297_v29, 16  ;;  %756 = vst [vmem:[#allocation2 + $0x244] sm:$0xf] %v529_v46  ;;  %v5760_v14 = vor.u32 %v6451_v42, %v5757_v45  ;;  %v541_v28 = vshrl.u32 %v300_v22, 16  ;;  %v6599_v42 = vld [vmem:[%s8005_s1 + $0x1d8] sm:$0xff] }
  0xba   : > { %v7123_v56 = vpop.f32.mrf.mxu0  ;;  %v544_v29 = vshll.u32 %v300_v22, 16  ;;  %v552_v45 = vrot.slane %v550_v33, 5  ;;  %4816 = vmatpush.bf16.msra.mxu3 %v6599_v42  ;;  %v6464_v22 = vld [vmem:[#allocation2 + $0x220] sm:$0xf0]  ;;  %v5799_v33 = vld [vmem:[#allocation2 + $0x208] sm:$0xf] }
  0xbb   : > { %4311 = vmatmul.bf16.gmra.mxu1 %v5716_v40  ;;  %4400 = vmatmul.bf16.gmra.mxu2 %v5720_v41  ;;  %v5755_v40 = vld [vmem:[#allocation2 + $0x1b8] sm:$0xf]  ;;  %v6455_v41 = vld [vmem:[#allocation2 + $0x1d8] sm:$0xf0]  ;;  %v1355_v61 = vrot.slane %v1353_v50, 4  ;;  %v543_v36 = vrot.slane %v541_v28, 4 }
  0xbc   : > { %4489 = vmatmul.bf16.gmra.mxu3 %v5724_v51  ;;  %v5763_v51 = vld [vmem:[#allocation2 + $0x1c0] sm:$0xf]  ;;  %v5756_v12 = vor.u32 %v6455_v41, %v5755_v40  ;;  %v546_v37 = vrot.slane %v544_v29, 5  ;;  %v6591_v40 = vld [vmem:[%s8005_s1 + $0x198] sm:$0xff] }
  0xbd   : > { %4578 = vmatmul.bf16.gmra.mxu0 %v5728_v52  ;;  %v539_v52 = vsel %vm6850_vm3, %v534_v34, %v538_v27  ;;  %v5764_v18 = vor.u32 %v6456_v0, %v5763_v51  ;;  %v1359_v19 = vor.u32 %v1358_v6, %v1355_v61  ;;  %v1369_v27 = vor.u32 %v1368_v15, %v1364_v9  ;;  %v799_v61 = vld [vmem:[%s6703_s26 + $0x6c] sm:$0xe]  ;;  %v6607_v15 = vld [vmem:[%s8005_s1 + $0x218] sm:$0xff] }
  0xbe   : > { %v4243_v16 = vpop.f32.mrf.mxu2  ;;  %757 = vst [vmem:[#allocation2 + $0x268] sm:$0xf] %v539_v52  ;;  %v554_v34 = vshrl.u32 %v301_v23, 16  ;;  %v547_v50 = vor.u32 %v546_v37, %v543_v36  ;;  %4727 = vmatpush.bf16.msra.mxu2 %v6591_v40  ;;  %v6460_v23 = vld [vmem:[#allocation2 + $0x204] sm:$0xf]  ;;  %4905 = vmatpush.bf16.msra.mxu0 %v6607_v15 }
  0xbf   : > { %v7133_v20 = vadd.f32 %v7054_v13, %v4243_v16  ;;  %v4263_v21 = vpop.f32.mrf.mxu3  ;;  %v1360_v32 = vrot.slane %v1359_v19, 4  ;;  %v1370_v35 = vrot.slane %v1369_v27, 4  ;;  %v5793_v27 = vld [vmem:[#allocation2 + $0x224] sm:$0xf0]  ;;  %v5259_v29 = vld [vmem:[%s6703_s26 + $0x78] sm:$0xf] }
  0xc0   : > { %v7137_v24 = vadd.f32 %v7054_v13, %v4263_v21  ;;  %v4225_v25 = vpop.f32.mrf.mxu1  ;;  %v1374_v21 = vrot.slane %v1372_v3, 5  ;;  %v556_v46 = vrot.slane %v554_v34, 4  ;;  %v548_v60 = vrot.slane %v547_v50, 4  ;;  %v5301_v36 = vld [vmem:[%s6703_s26 + $0x7c] sm:$0xf] }
  0xc1   : > { %v7142_v30 = vadd.f32 %v7054_v13, %v4225_v25  ;;  %v1365_v41 = vsel %vm6850_vm3, %v1360_v32, %v1364_v9  ;;  %v562_v3 = vrot.slane %v560_v53, 5  ;;  %v5300_v32 = vld [vmem:[%s6703_s26 + $0x78] sm:$0xf]  ;;  %v5260_v40 = vld [vmem:[%s6703_s26 + $0x7c] sm:$0xf] }
  0xc2   : > { %v7144_v31 = vpop.f32.mrf.mxu0  ;;  %v1375_v47 = vsel %vm6850_vm3, %v1370_v35, %v1374_v21  ;;  %1592 = vst [vmem:[#allocation2 + $0x250] sm:$0xf] %v1365_v41  ;;  %v557_v52 = vor.u32 %v556_v46, %v552_v45  ;;  %v5791_v21 = vld [vmem:[#allocation2 + $0x200] sm:$0xf]  ;;  %v1377_v37 = vshrl.u32 %v5300_v32, 16 }
  0xc3   : > { %1593 = vst [vmem:[#allocation2 + $0x274] sm:$0xf] %v1375_v47  ;;  %v5302_v41 = vld [vmem:[%s6703_s26 + $0x80] sm:$0x1]  ;;  %v6465_v42 = vld [vmem:[#allocation2 + $0x228] sm:$0xf0] }
  0xc4   : > { %v558_v2 = vrot.slane %v557_v52, 4  ;;  %1098 = vst [vmem:[#allocation2 + $0x294] sm:$0xf] %v5259_v29  ;;  %v1379_v46 = vrot.slane %v1377_v37, 4  ;;  %v1380_v47 = vshll.u32 %v5300_v32, 16  ;;  %v1390_v52 = vshrl.u32 %v5301_v36, 16 }
  0xc5   : > { %v1396_v53 = vshll.u32 %v5302_v41, 16  ;;  %1099 = vst [vmem:[#allocation2 + $0x2b8] sm:$0xf] %v5260_v40 }
  0xc6   : > { %v4245_v4 = vpop.f32.mrf.mxu2  ;;  %v563_v28 = vsel %vm6850_vm3, %v558_v2, %v562_v3 }
  0xc7   : > { %v7159_v10 = vadd.f32 %v7054_v13, %v4245_v4  ;;  %v4265_v11 = vpop.f32.mrf.mxu3  ;;  %v801_v4 = vld [vmem:[%s6703_s26 + $0x74] sm:$0x1]  ;;  %759 = vst [vmem:[#allocation2 + $0x2b0] sm:$0xf] %v563_v28 }
  0xc8   : > { %v7162_v16 = vadd.f32 %v7054_v13, %v4265_v11  ;;  %v4228_v17 = vpop.f32.mrf.mxu1  ;;  %v6459_v11 = vld [vmem:[#allocation2 + $0x1fc] sm:$0xf]  ;;  %v939_v19 = vrot.slane %v801_v4, 5  ;;  %v5800_v4 = vor.u32 %v6465_v42, %v5799_v33 }
  0xc9   : > { %v7167_v25 = vadd.f32 %v7054_v13, %v4228_v17  ;;  %v553_v17 = vsel %vm6850_vm3, %v548_v60, %v552_v45 }
  0xca   : > { %v7169_v26 = vpop.f32.mrf.mxu0  ;;  %758 = vst [vmem:[#allocation2 + $0x28c] sm:$0xf] %v553_v17 }
  0xcb   : > { %4316 = vmatmul.bf16.gmra.mxu1 %v5752_v5  ;;  %4405 = vmatmul.bf16.gmra.mxu2 %v5756_v12  ;;  %v5234_v5 = vrot.slane %v799_v61, 9  ;;  %v5785_v12 = vld [vmem:[#allocation2 + $0x21c] sm:$0xf0]  ;;  %v5792_v61 = vor.u32 %v6464_v22, %v5791_v21 }
  0xcc   : > { %4494 = vmatmul.bf16.gmra.mxu3 %v5760_v14  ;;  %v6583_v14 = vld [vmem:[%s8005_s1 + $0x158] sm:$0xff]  ;;  %v5788_v50 = vor.u32 %v6459_v11, %v5785_v12  ;;  %v1392_v11 = vrot.slane %v1390_v52, 4 }
  0xcd   : > { %4583 = vmatmul.bf16.gmra.mxu0 %v5764_v18  ;;  %v936_v18 = vrot.slane %v800_v62, 5  ;;  %4638 = vmatpush.bf16.msra.mxu1 %v6583_v14  ;;  %v5796_v62 = vor.u32 %v6460_v23, %v5793_v27  ;;  %v303_v12 = vld [vmem:[%s6703_s26 + $0x78] sm:$0xf]  ;;  %v1398_v23 = vrot.slane %v1396_v53, 5 }
  0xce   : > { %v4248_v51 = vpop.f32.mrf.mxu2  ;;  %v568_v21 = vshll.u32 %v303_v12, 16 }
  0xcf   : > { %v7183_v54 = vadd.f32 %v7054_v13, %v4248_v51  ;;  %v4268_v57 = vpop.f32.mrf.mxu3  ;;  %v937_v34 = vsel %vm6864_vm5, %v5234_v5, %v936_v18  ;;  %v938_v35 = vrot.slane %v936_v18, 4  ;;  %v1386_v51 = vshll.u32 %v5301_v36, 16  ;;  %v304_v18 = vld [vmem:[%s6703_s26 + $0x7c] sm:$0xf] }
  0xd0   : > { %v7188_v63 = vadd.f32 %v7054_v13, %v4268_v57  ;;  %v4230_v0 = vpop.f32.mrf.mxu1  ;;  %1033 = vst [vmem:[#allocation2 + $0x290] sm:$0xf] %v937_v34  ;;  %v574_v27 = vshll.u32 %v304_v18, 16  ;;  %v578_v28 = vshrl.u32 %v304_v18, 16  ;;  %v570_v33 = vrot.slane %v568_v21, 5 }
  0xd1   : > { %v7192_v6 = vadd.f32 %v7054_v13, %v4230_v0  ;;  %v940_v45 = vsel %vm6864_vm5, %v938_v35, %v939_v19  ;;  %v1382_v0 = vrot.slane %v1380_v47, 5  ;;  %v1388_v5 = vrot.slane %v1386_v51, 5  ;;  %v305_v35 = vld [vmem:[%s6703_s26 + $0x80] sm:$0x1]  ;;  %v6468_v18 = vld [vmem:[#allocation2 + $0x244] sm:$0xf] }
  0xd2   : > { %v7194_v9 = vpop.f32.mrf.mxu0  ;;  %1034 = vst [vmem:[#allocation2 + $0x2b4] sm:$0xf] %v940_v45  ;;  %v565_v19 = vshrl.u32 %v303_v12, 16  ;;  %v576_v36 = vrot.slane %v574_v27, 5  ;;  %v580_v41 = vrot.slane %v578_v28, 4  ;;  %v584_v42 = vshll.u32 %v305_v35, 16 }
  0xd3   : > { %v1383_v17 = vor.u32 %v1382_v0, %v1379_v46  ;;  %v1393_v22 = vor.u32 %v1392_v11, %v1388_v5  ;;  %v803_v45 = vld [vmem:[%s6703_s26 + $0x7c] sm:$0xf]  ;;  %v5304_v11 = vld [vmem:[%s6703_s26 + $0x88] sm:$0xf]  ;;  %v5261_v27 = vld [vmem:[%s6703_s26 + $0x84] sm:$0xf] }
  0xd4   : > { %v567_v32 = vrot.slane %v565_v19, 4  ;;  %v5821_v19 = vld [vmem:[#allocation2 + $0x264] sm:$0xf0]  ;;  %1100 = vst [vmem:[#allocation2 + $0x2dc] sm:$0xf] %v5261_v27 }
  0xd5   : > { %v1384_v29 = vrot.slane %v1383_v17, 4  ;;  %v1394_v34 = vrot.slane %v1393_v22, 4  ;;  %v5827_v28 = vld [vmem:[#allocation2 + $0x248] sm:$0xf] }
  0xd6   : > { %v4250_v48 = vpop.f32.mrf.mxu2  ;;  %v571_v40 = vor.u32 %v570_v33, %v567_v32  ;;  %v6469_v32 = vld [vmem:[#allocation2 + $0x24c] sm:$0xf]  ;;  %v5829_v33 = vld [vmem:[#allocation2 + $0x26c] sm:$0xf0] }
  0xd7   : > { %v7216_v57 = vadd.f32 %v7054_v13, %v4250_v48  ;;  %v4270_v60 = vpop.f32.mrf.mxu3  ;;  %v1389_v37 = vsel %vm6850_vm3, %v1384_v29, %v1388_v5  ;;  %v1399_v47 = vsel %vm6850_vm3, %v1394_v34, %v1398_v23  ;;  %v802_v48 = vld [vmem:[%s6703_s26 + $0x78] sm:$0xe]  ;;  %v943_v5 = vrot.slane %v803_v45, 5  ;;  %v6473_v29 = vld [vmem:[#allocation2 + $0x268] sm:$0xf0] }
  0xd8   : > { %v7219_v2 = vadd.f32 %v7054_v13, %v4270_v60  ;;  %v4233_v3 = vpop.f32.mrf.mxu1  ;;  %1594 = vst [vmem:[#allocation2 + $0x298] sm:$0xf] %v1389_v37  ;;  %v572_v53 = vrot.slane %v571_v40, 4  ;;  %v581_v60 = vor.u32 %v580_v41, %v576_v36  ;;  %v5305_v37 = vld [vmem:[%s6703_s26 + $0x8c] sm:$0x1]  ;;  %v1410_v45 = vshll.u32 %v5304_v11, 16 }
  0xd9   : > { %v7223_v14 = vadd.f32 %v7054_v13, %v4233_v3  ;;  %1595 = vst [vmem:[#allocation2 + $0x2bc] sm:$0xf] %v1399_v47  ;;  %v586_v3 = vrot.slane %v584_v42, 5  ;;  %v945_v35 = vrot.slane %v943_v5, 4  ;;  %v5835_v41 = vld [vmem:[#allocation2 + $0x250] sm:$0xf] }
  0xda   : > { %8013 = vst [vmem:[#allocation3_spill] sm:$0xff] %v7219_v2  ;;  %v7225_v15 = vpop.f32.mrf.mxu0  ;;  %v577_v21 = vsel %vm6850_vm3, %v572_v53, %v576_v36  ;;  %v582_v22 = vrot.slane %v581_v60, 4  ;;  %v1420_v53 = vshll.u32 %v5305_v37, 16  ;;  %v6474_v60 = vld [vmem:[#allocation2 + $0x270] sm:$0xf0] }
  0xdb   : > { %4321 = vmatmul.bf16.gmra.mxu1 %v5788_v50  ;;  %4410 = vmatmul.bf16.gmra.mxu2 %v5792_v61  ;;  %v5303_v50 = vld [vmem:[%s6703_s26 + $0x84] sm:$0xf]  ;;  %v804_v61 = vld [vmem:[%s6703_s26 + $0x80] sm:$0x1]  ;;  %760 = vst [vmem:[#allocation2 + $0x2d4] sm:$0xf] %v577_v21 }
  0xdc   : > { %4499 = vmatmul.bf16.gmra.mxu3 %v5796_v62  ;;  %v946_v23 = vrot.slane %v804_v61, 5  ;;  %v1401_v40 = vshrl.u32 %v5303_v50, 16  ;;  %v587_v42 = vsel %vm6850_vm3, %v582_v22, %v586_v3  ;;  %v1404_v36 = vshll.u32 %v5303_v50, 16 }
  0xdd   : > { %4588 = vmatmul.bf16.gmra.mxu0 %v5800_v4  ;;  %v5235_v4 = vrot.slane %v802_v48, 9  ;;  %761 = vst [vmem:[#allocation2 + $0x2f8] sm:$0xf] %v587_v42  ;;  %v5262_v48 = vld [vmem:[%s6703_s26 + $0x88] sm:$0xf]  ;;  %v5824_v50 = vor.u32 %v6468_v18, %v5821_v19  ;;  %v5828_v22 = vor.u32 %v6473_v29, %v5827_v28  ;;  %v1422_v42 = vrot.slane %v1420_v53, 5 }
  0xde   : > { %v4253_v46 = vpop.f32.mrf.mxu2  ;;  %v947_v47 = vsel %vm6864_vm5, %v945_v35, %v946_v23  ;;  %v1406_v61 = vrot.slane %v1404_v36, 5  ;;  %v5832_v23 = vor.u32 %v6469_v32, %v5829_v33  ;;  %1101 = vst [vmem:[#allocation2 + $0x300] sm:$0xf] %v5262_v48  ;;  %v306_v36 = vld [vmem:[%s6703_s26 + $0x84] sm:$0xf]  ;;  %v6590_v53 = vld [vmem:[%s8005_s1 + $0x190] sm:$0xff] }
  0xdf   : > { %v7237_v51 = vadd.f32 %v7054_v13, %v4253_v46  ;;  %v4273_v52 = vpop.f32.mrf.mxu3  ;;  %v944_v34 = vsel %vm6864_vm5, %v5235_v4, %v943_v5  ;;  %v1414_v46 = vshrl.u32 %v5304_v11, 16  ;;  %1036 = vst [vmem:[#allocation2 + $0x2fc] sm:$0xf] %v947_v47  ;;  %v4199_v4 = vadd.f32 %v7054_v13, %v7067_v39  ;;  %v307_v18 = vld [vmem:[%s6703_s26 + $0x88] sm:$0xf]  ;;  %4728 = vmatpush.bf16.msra.mxu2 %v6590_v53 }
  0xe0   : > { %v7241_v62 = vadd.f32 %v7054_v13, %v4273_v52  ;;  %v4235_v0 = vpop.f32.mrf.mxu1  ;;  %1035 = vst [vmem:[#allocation2 + $0x2d8] sm:$0xf] %v944_v34  ;;  %v1403_v52 = vrot.slane %v1401_v40, 4  ;;  %v5836_v40 = vor.u32 %v6474_v60, %v5835_v41  ;;  %v592_v47 = vshll.u32 %v306_v36, 16  ;;  %v5857_v53 = vld [vmem:[#allocation2 + $0x2ac] sm:$0xf0] }
  0xe1   : > { %v7245_v12 = vadd.f32 %v7054_v13, %v4235_v0  ;;  %v1412_v0 = vrot.slane %v1410_v45, 5  ;;  %v1416_v5 = vrot.slane %v1414_v46, 4  ;;  %v589_v46 = vshrl.u32 %v306_v36, 16 }
  0xe2   : > { %8014 = vst [vmem:[#allocation4_spill] sm:$0xff] %v7241_v62  ;;  %v7247_v17 = vpop.f32.mrf.mxu0  ;;  %v1407_v34 = vor.u32 %v1406_v61, %v1403_v52  ;;  %v598_v29 = vshll.u32 %v307_v18, 16  ;;  %v602_v32 = vshrl.u32 %v307_v18, 16  ;;  %v594_v48 = vrot.slane %v592_v47, 5  ;;  %v5306_v52 = vld [vmem:[%s6703_s26 + $0x90] sm:$0xf] }
  0xe3   : > { %v1417_v39 = vor.u32 %v1416_v5, %v1412_v0  ;;  %v591_v41 = vrot.slane %v589_v46, 4  ;;  %v6598_v61 = vld [vmem:[%s8005_s1 + $0x1d0] sm:$0xff]  ;;  %v1428_v36 = vshll.u32 %v5306_v52, 16  ;;  %v807_v47 = vld [vmem:[%s6703_s26 + $0x8c] sm:$0x1] }
  0xe4   : > { %v1408_v45 = vrot.slane %v1407_v34, 4  ;;  %4817 = vmatpush.bf16.msra.mxu3 %v6598_v61  ;;  %v604_v5 = vrot.slane %v602_v32, 4  ;;  %v5263_v61 = vld [vmem:[%s6703_s26 + $0x90] sm:$0xf] }
  0xe5   : > { %v1418_v28 = vrot.slane %v1417_v39, 4  ;;  %v805_v39 = vld [vmem:[%s6703_s26 + $0x84] sm:$0xe]  ;;  %1102 = vst [vmem:[#allocation2 + $0x324] sm:$0xf] %v5263_v61 }
  0xe6   : > { %v4255_v3 = vpop.f32.mrf.mxu2  ;;  %v1413_v33 = vsel %vm6850_vm3, %v1408_v45, %v1412_v0  ;;  %v308_v0 = vld [vmem:[%s6703_s26 + $0x8c] sm:$0x1]  ;;  %v309_v62 = vld [vmem:[%s6703_s26 + $0x90] sm:$0xf] }
  0xe7   : > { %v7263_v11 = vadd.f32 %v7054_v13, %v4255_v3  ;;  %v4275_v21 = vpop.f32.mrf.mxu3  ;;  %v1423_v60 = vsel %vm6850_vm3, %v1418_v28, %v1422_v42  ;;  %1596 = vst [vmem:[#allocation2 + $0x2e0] sm:$0xf] %v1413_v33  ;;  %v806_v42 = vld [vmem:[%s6703_s26 + $0x88] sm:$0xf]  ;;  %v5236_v28 = vrot.slane %v805_v39, 9 }
  0xe8   : > { %v7266_v35 = vadd.f32 %v7054_v13, %v4275_v21  ;;  %v4287_v37 = vpop.f32.mrf.mxu1  ;;  %1597 = vst [vmem:[#allocation2 + $0x304] sm:$0xf] %v1423_v60  ;;  %v608_v21 = vshll.u32 %v308_v0, 16  ;;  %v950_v33 = vrot.slane %v806_v42, 5  ;;  %v953_v60 = vrot.slane %v807_v47, 5 }
  0xe9   : > { %v4288_v19 = vadd.f32 %v4287_v37, %v4199_v4  ;;  %v595_v4 = vor.u32 %v594_v48, %v591_v41  ;;  %v6477_v48 = vld [vmem:[#allocation2 + $0x28c] sm:$0xf]  ;;  %v5863_v0 = vld [vmem:[#allocation2 + $0x290] sm:$0xf]  ;;  %v6483_v39 = vld [vmem:[#allocation2 + $0x2b8] sm:$0xf0] }
  0xea   : > { %8015 = vst [vmem:[#allocation5_spill] sm:$0xff] %v7266_v35  ;;  %v7270_v27 = vpop.f32.mrf.mxu0  ;;  %v610_v46 = vrot.slane %v608_v21, 5  ;;  %v952_v21 = vrot.slane %v950_v33, 4  ;;  %v5308_v47 = vld [vmem:[%s6703_s26 + $0x98] sm:$0x1] }
  0xeb   : > { %4326 = vmatmul.bf16.gmra.mxu1 %v5824_v50  ;;  %4415 = vmatmul.bf16.gmra.mxu2 %v5828_v22  ;;  %v600_v50 = vrot.slane %v598_v29, 5  ;;  %v1425_v22 = vshrl.u32 %v5306_v52, 16 }
  0xec   : > { %4504 = vmatmul.bf16.gmra.mxu3 %v5832_v23  ;;  %v4201_v23 = vadd.f32 %v7054_v13, %v7095_v8  ;;  %v6582_v8 = vld [vmem:[%s8005_s1 + $0x150] sm:$0xff] }
  0xed   : > { %4593 = vmatmul.bf16.gmra.mxu0 %v5836_v40  ;;  %v596_v40 = vrot.slane %v595_v4, 4  ;;  %v605_v45 = vor.u32 %v604_v5, %v600_v50  ;;  %v6482_v4 = vld [vmem:[#allocation2 + $0x2b0] sm:$0xf0]  ;;  %v951_v5 = vsel %vm6864_vm5, %v5236_v28, %v950_v33  ;;  %4639 = vmatpush.bf16.msra.mxu1 %v6582_v8  ;;  %v1427_v28 = vrot.slane %v1425_v22, 4 }
  0xee   : > { %v4376_v3 = vpop.f32.mrf.mxu2  ;;  %1037 = vst [vmem:[#allocation2 + $0x320] sm:$0xf] %v951_v5  ;;  %v1430_v33 = vrot.slane %v1428_v36, 5  ;;  %v4204_v8 = vadd.f32 %v7054_v13, %v7123_v56  ;;  %v310_v13 = vld [vmem:[%s6703_s26 + $0x94] sm:$0xf] }
  0xef   : > { %v4377_v34 = vadd.f32 %v4376_v3, %v4288_v19  ;;  %v4465_v37 = vpop.f32.mrf.mxu3  ;;  %v6606_v19 = vld [vmem:[%s8005_s1 + $0x210] sm:$0xff]  ;;  %v601_v52 = vsel %vm6850_vm3, %v596_v40, %v600_v50  ;;  %v606_v3 = vrot.slane %v605_v45, 4 }
  0xf0   : > { %v4289_v18 = vpop.f32.mrf.mxu1  ;;  %762 = vst [vmem:[#allocation2 + $0x31c] sm:$0xf] %v601_v52  ;;  %4906 = vmatpush.bf16.msra.mxu0 %v6606_v19  ;;  %v5307_v50 = vld [vmem:[%s6703_s26 + $0x94] sm:$0xf]  ;;  %v1431_v61 = vor.u32 %v1430_v33, %v1427_v28 }
  0xf1   : > { %v4466_v29 = vadd.f32 %v4465_v37, %v4377_v34  ;;  %v4290_v32 = vadd.f32 %v4289_v18, %v4201_v23  ;;  %v6478_v23 = vld [vmem:[#allocation2 + $0x294] sm:$0xf]  ;;  %v5865_v34 = vld [vmem:[#allocation2 + $0x2b4] sm:$0xf0]  ;;  %v611_v42 = vsel %vm6850_vm3, %v606_v3, %v610_v46  ;;  %v954_v18 = vsel %vm6864_vm5, %v952_v21, %v953_v60 }
  0xf2   : > { %v7289_v41 = vpop.f32.mrf.mxu0  ;;  %v5871_v37 = vld [vmem:[#allocation2 + $0x298] sm:$0xf]  ;;  %v5264_v45 = vld [vmem:[%s6703_s26 + $0x94] sm:$0xf]  ;;  %763 = vst [vmem:[#allocation2 + $0x340] sm:$0xf] %v611_v42  ;;  %v5864_v60 = vor.u32 %v6482_v4, %v5863_v0  ;;  %v5868_v22 = vor.u32 %v6478_v23, %v5865_v34 }
  0xf3   : > { %v7304_v40 = vadd.f32 %v7270_v27, %v4466_v29  ;;  %v1434_v52 = vshll.u32 %v5307_v50, 16  ;;  %v5860_v27 = vor.u32 %v6477_v48, %v5857_v53  ;;  %1038 = vst [vmem:[#allocation2 + $0x344] sm:$0xf] %v954_v18  ;;  %v1438_v29 = vshrl.u32 %v5307_v50, 16 }
  0xf4   : > { %v1444_v46 = vshll.u32 %v5308_v47, 16  ;;  %1103 = vst [vmem:[#allocation2 + $0x348] sm:$0xf] %v5264_v45  ;;  %v5872_v36 = vor.u32 %v6483_v39, %v5871_v37  ;;  %v1432_v53 = vrot.slane %v1431_v61, 4  ;;  %v613_v50 = vshrl.u32 %v309_v62, 16 }
  0xf5   : > { %8016 = vst [vmem:[#allocation6_spill] sm:$0xff] %v7304_v40  ;;  %v1436_v21 = vrot.slane %v1434_v52, 5  ;;  %v1440_v40 = vrot.slane %v1438_v29, 4  ;;  %v616_v18 = vshll.u32 %v309_v62, 16  ;;  %v622_v0 = vshll.u32 %v310_v13, 16 }
  0xf6   : > { %v4378_v19 = vpop.f32.mrf.mxu2  ;;  %v1446_v35 = vrot.slane %v1444_v46, 5  ;;  %v626_v4 = vshrl.u32 %v310_v13, 16  ;;  %v615_v34 = vrot.slane %v613_v50, 4  ;;  %v311_v62 = vld [vmem:[%s6703_s26 + $0x98] sm:$0x1] }
  0xf7   : > { %v4379_v3 = vadd.f32 %v4378_v19, %v4290_v32  ;;  %v4467_v5 = vpop.f32.mrf.mxu3  ;;  %v1441_v32 = vor.u32 %v1440_v40, %v1436_v21  ;;  %v1437_v23 = vsel %vm6850_vm3, %v1432_v53, %v1436_v21  ;;  %v618_v45 = vrot.slane %v616_v18, 5  ;;  %v808_v19 = vld [vmem:[%s6703_s26 + $0x90] sm:$0xe]  ;;  %v5310_v13 = vld [vmem:[%s6703_s26 + $0xa0] sm:$0xf] }
  0xf8   : > { %v4292_v42 = vpop.f32.mrf.mxu1  ;;  %1598 = vst [vmem:[#allocation2 + $0x328] sm:$0xf] %v1437_v23  ;;  %v624_v40 = vrot.slane %v622_v0, 5  ;;  %v628_v47 = vrot.slane %v626_v4, 4  ;;  %v5893_v0 = vld [vmem:[#allocation2 + $0x2f4] sm:$0xf0] }
  0xf9   : > { %v4468_v56 = vadd.f32 %v4467_v5, %v4379_v3  ;;  %v4293_v2 = vadd.f32 %v4292_v42, %v4204_v8  ;;  %v1442_v39 = vrot.slane %v1441_v32, 4  ;;  %v619_v52 = vor.u32 %v618_v45, %v615_v34  ;;  %v5899_v4 = vld [vmem:[#allocation2 + $0x2d8] sm:$0xf]  ;;  %v6491_v23 = vld [vmem:[#allocation2 + $0x2f8] sm:$0xf0] }
  0xfa   : > { %v7316_v48 = vpop.f32.mrf.mxu0  ;;  %v632_v8 = vshll.u32 %v311_v62, 16  ;;  %v629_v5 = vor.u32 %v628_v47, %v624_v40  ;;  %v5311_v62 = vld [vmem:[%s6703_s26 + $0xa4] sm:$0x1] }
  0xfb   : > { %4331 = vmatmul.bf16.gmra.mxu1 %v5860_v27  ;;  %4420 = vmatmul.bf16.gmra.mxu2 %v5864_v60  ;;  %v7321_v37 = vadd.f32 %v7289_v41, %v4468_v56  ;;  %v1447_v33 = vsel %vm6850_vm3, %v1442_v39, %v1446_v35  ;;  %v5309_v41 = vld [vmem:[%s6703_s26 + $0x9c] sm:$0xf]  ;;  %v7331_v27 = vld [vmem:[%s8006_s2] ss:$0 sm:$0xff]  ;;  %v809_v60 = vld [vmem:[%s6703_s26 + $0x94] sm:$0xf] }
  0xfc   : > { %4509 = vmatmul.bf16.gmra.mxu3 %v5868_v22  ;;  %v4206_v29 = vadd.f32 %v7331_v27, %v7144_v31  ;;  %1599 = vst [vmem:[#allocation2 + $0x34c] sm:$0xf] %v1447_v33  ;;  %v810_v35 = vld [vmem:[%s6703_s26 + $0x98] sm:$0x1]  ;;  %v620_v21 = vrot.slane %v619_v52, 4  ;;  %v634_v42 = vrot.slane %v632_v8, 5 }
  0xfd   : > { %4598 = vmatmul.bf16.gmra.mxu0 %v5872_v36  ;;  %v5237_v22 = vrot.slane %v808_v19, 9  ;;  %v957_v36 = vrot.slane %v809_v60, 5  ;;  %v630_v32 = vrot.slane %v629_v5, 4  ;;  %v960_v18 = vrot.slane %v810_v35, 5  ;;  %v5265_v31 = vld [vmem:[%s6703_s26 + $0x9c] sm:$0xf] }
  0xfe   : > { %v4381_v28 = vpop.f32.mrf.mxu2  ;;  %v625_v34 = vsel %vm6850_vm3, %v620_v21, %v624_v40  ;;  %1104 = vst [vmem:[#allocation2 + $0x36c] sm:$0xf] %v5265_v31  ;;  %v1449_v47 = vshrl.u32 %v5309_v41, 16  ;;  %v5901_v33 = vld [vmem:[#allocation2 + $0x2fc] sm:$0xf0]  ;;  %v1462_v60 = vshrl.u32 %v5310_v13, 16  ;;  %v5900_v31 = vor.u32 %v6491_v23, %v5899_v4 }
  0xff   : > { %v4382_v46 = vadd.f32 %v4381_v28, %v4293_v2  ;;  %v4470_v3 = vpop.f32.mrf.mxu3  ;;  %v6486_v2 = vld [vmem:[#allocation2 + $0x2d4] sm:$0xf]  ;;  %v958_v39 = vsel %vm6864_vm5, %v5237_v22, %v957_v36  ;;  %v959_v45 = vrot.slane %v957_v36, 4  ;;  %v6487_v28 = vld [vmem:[#allocation2 + $0x2dc] sm:$0xf]  ;;  %v635_v8 = vsel %vm6850_vm3, %v630_v32, %v634_v42 }
 0x100   : > { %v4294_v61 = vpop.f32.mrf.mxu1  ;;  %v5907_v52 = vld [vmem:[#allocation2 + $0x2e0] sm:$0xf]  ;;  %764 = vst [vmem:[#allocation2 + $0x364] sm:$0xf] %v625_v34  ;;  %v1451_v5 = vrot.slane %v1449_v47, 4  ;;  %v1468_v35 = vshll.u32 %v5311_v62, 16  ;;  %v4209_v42 = vadd.f32 %v7331_v27, %v7169_v26  ;;  %v5896_v32 = vor.u32 %v6486_v2, %v5893_v0 }
 0x101   : > { %v4471_v56 = vadd.f32 %v4470_v3, %v4382_v46  ;;  %v4295_v53 = vadd.f32 %v4294_v61, %v4206_v29  ;;  %v5266_v19 = vld [vmem:[%s6703_s26 + $0xa0] sm:$0xf]  ;;  %v1452_v29 = vshll.u32 %v5309_v41, 16  ;;  %v1458_v46 = vshll.u32 %v5310_v13, 16  ;;  %765 = vst [vmem:[#allocation2 + $0x388] sm:$0xf] %v635_v8 }
 0x102   : > { %v4561_v50 = vpop.f32.mrf.mxu0  ;;  %v961_v40 = vsel %vm6864_vm5, %v959_v45, %v960_v18  ;;  %v6492_v61 = vld [vmem:[#allocation2 + $0x300] sm:$0xf0]  ;;  %1039 = vst [vmem:[#allocation2 + $0x368] sm:$0xf] %v958_v39  ;;  %v5904_v34 = vor.u32 %v6487_v28, %v5901_v33  ;;  %v1470_v62 = vrot.slane %v1468_v35, 5  ;;  %v6589_v33 = vld [vmem:[%s8005_s1 + $0x188] sm:$0xff] }
 0x103   : > { %v7348_v3 = vadd.f32 %v7316_v48, %v4471_v56  ;;  %v1454_v21 = vrot.slane %v1452_v29, 5  ;;  %v1460_v22 = vrot.slane %v1458_v46, 5  ;;  %1040 = vst [vmem:[#allocation2 + $0x38c] sm:$0xf] %v961_v40  ;;  %v1464_v48 = vrot.slane %v1462_v60, 4  ;;  %4729 = vmatpush.bf16.msra.mxu2 %v6589_v33 }
 0x104   : > { %1105 = vst [vmem:[#allocation2 + $0x390] sm:$0xf] %v5266_v19  ;;  %v5908_v45 = vor.u32 %v6492_v61, %v5907_v52  ;;  %v312_v47 = vld [vmem:[%s6703_s26 + $0x9c] sm:$0xf]  ;;  %v313_v8 = vld [vmem:[%s6703_s26 + $0xa0] sm:$0xf] }
 0x105   : > { %8017 = vst [vmem:[#allocation7_spill] sm:$0xff] %v7348_v3  ;;  %v1455_v18 = vor.u32 %v1454_v21, %v1451_v5  ;;  %v1465_v39 = vor.u32 %v1464_v48, %v1460_v22  ;;  %v637_v40 = vshrl.u32 %v312_v47, 16  ;;  %v640_v60 = vshll.u32 %v312_v47, 16  ;;  %v6597_v19 = vld [vmem:[%s8005_s1 + $0x1c8] sm:$0xff] }
 0x106   : > { %v4383_v41 = vpop.f32.mrf.mxu2  ;;  %v646_v2 = vshll.u32 %v313_v8, 16  ;;  %v650_v0 = vshrl.u32 %v313_v8, 16  ;;  %4818 = vmatpush.bf16.msra.mxu3 %v6597_v19 }
 0x107   : > { %v4384_v36 = vadd.f32 %v4383_v41, %v4295_v53  ;;  %v4472_v56 = vpop.f32.mrf.mxu3  ;;  %v1456_v3 = vrot.slane %v1455_v18, 4  ;;  %v1466_v53 = vrot.slane %v1465_v39, 4  ;;  %v639_v23 = vrot.slane %v637_v40, 4  ;;  %v6500_v40 = vld [vmem:[#allocation2 + $0x340] sm:$0xf0] }
 0x108   : > { %v4297_v13 = vpop.f32.mrf.mxu1  ;;  %v642_v35 = vrot.slane %v640_v60, 5  ;;  %v648_v61 = vrot.slane %v646_v2, 5  ;;  %v652_v21 = vrot.slane %v650_v0, 4  ;;  %v6605_v60 = vld [vmem:[%s8005_s1 + $0x208] sm:$0xff] }
 0x109   : > { %v4473_v29 = vadd.f32 %v4472_v56, %v4384_v36  ;;  %v4298_v46 = vadd.f32 %v4297_v13, %v4209_v42  ;;  %v1461_v4 = vsel %vm6850_vm3, %v1456_v3, %v1460_v22  ;;  %v1471_v52 = vsel %vm6850_vm3, %v1466_v53, %v1470_v62  ;;  %v7371_v3 = vld [vmem:[%s6703_s26 + $0xa8] sm:$0xf]  ;;  %v811_v36 = vld [vmem:[%s6703_s26 + $0x9c] sm:$0xe]  ;;  %v812_v56 = vld [vmem:[%s6703_s26 + $0xa0] sm:$0xf]  ;;  %4907 = vmatpush.bf16.msra.mxu0 %v6605_v60 }
 0x10a   : > { %v7356_v26 = vpop.f32.mrf.mxu0  ;;  %1600 = vst [vmem:[#allocation2 + $0x370] sm:$0xf] %v1461_v4  ;;  %v4211_v22 = vadd.f32 %v7331_v27, %v7194_v9  ;;  %v643_v18 = vor.u32 %v642_v35, %v639_v23  ;;  %v653_v13 = vor.u32 %v652_v21, %v648_v61  ;;  %v964_v39 = vrot.slane %v812_v56, 5  ;;  %v6495_v9 = vld [vmem:[#allocation2 + $0x31c] sm:$0xf]  ;;  %v6581_v53 = vld [vmem:[%s8005_s1 + $0x148] sm:$0xff] }
 0x10b   : > { %4336 = vmatmul.bf16.gmra.mxu1 %v5896_v32  ;;  %4425 = vmatmul.bf16.gmra.mxu2 %v5900_v31  ;;  %v7360_v28 = vadd.f32 %v4561_v50, %v4473_v29  ;;  %1601 = vst [vmem:[#allocation2 + $0x394] sm:$0xf] %v1471_v52  ;;  %v314_v50 = vld [vmem:[%s6703_s26 + $0xa4] sm:$0x1]  ;;  %v1473_v32 = vshrl.u32 %v7371_v3, 16 }
 0x10c   : > { %4514 = vmatmul.bf16.gmra.mxu3 %v5904_v34  ;;  %v656_v48 = vshll.u32 %v314_v50, 16  ;;  %v813_v34 = vld [vmem:[%s6703_s26 + $0xa4] sm:$0x1]  ;;  %v5929_v29 = vld [vmem:[#allocation2 + $0x33c] sm:$0xf0]  ;;  %v644_v23 = vrot.slane %v643_v18, 4  ;;  %4640 = vmatpush.bf16.msra.mxu1 %v6581_v53 }
 0x10d   : > { %4603 = vmatmul.bf16.gmra.mxu0 %v5908_v45  ;;  %v5238_v45 = vrot.slane %v811_v36, 9  ;;  %v967_v0 = vrot.slane %v813_v34, 5  ;;  %v5267_v4 = vld [vmem:[%s6703_s26 + $0xa8] sm:$0xf]  ;;  %v654_v33 = vrot.slane %v653_v13, 4  ;;  %v966_v19 = vrot.slane %v964_v39, 4 }
 0x10e   : > { %v4386_v5 = vpop.f32.mrf.mxu2  ;;  %v658_v2 = vrot.slane %v656_v48, 5  ;;  %v5313_v50 = vld [vmem:[%s6703_s26 + $0xac] sm:$0xf]  ;;  %v5937_v35 = vld [vmem:[#allocation2 + $0x344] sm:$0xf0]  ;;  %v649_v48 = vsel %vm6850_vm3, %v644_v23, %v648_v61  ;;  %v1475_v18 = vrot.slane %v1473_v32, 4  ;;  %v5932_v61 = vor.u32 %v6495_v9, %v5929_v29 }
 0x10f   : > { %v4387_v42 = vadd.f32 %v4386_v5, %v4298_v46  ;;  %v4475_v41 = vpop.f32.mrf.mxu3  ;;  %v5935_v46 = vld [vmem:[#allocation2 + $0x320] sm:$0xf]  ;;  %v965_v52 = vsel %vm6864_vm5, %v5238_v45, %v964_v39  ;;  %v6496_v5 = vld [vmem:[#allocation2 + $0x324] sm:$0xf]  ;;  %v5943_v21 = vld [vmem:[#allocation2 + $0x328] sm:$0xf]  ;;  %v968_v56 = vsel %vm6864_vm5, %v966_v19, %v967_v0 }
 0x110   : > { %v4299_v31 = vpop.f32.mrf.mxu1  ;;  %1041 = vst [vmem:[#allocation2 + $0x3b0] sm:$0xf] %v965_v52  ;;  %v659_v36 = vsel %vm6850_vm3, %v654_v33, %v658_v2  ;;  %v1476_v13 = vshll.u32 %v7371_v3, 16  ;;  %v1482_v34 = vshll.u32 %v5313_v50, 16  ;;  %v1486_v45 = vshrl.u32 %v5313_v50, 16 }
 0x111   : > { %v4476_v62 = vadd.f32 %v4475_v41, %v4387_v42  ;;  %v4300_v47 = vadd.f32 %v4299_v31, %v4211_v22  ;;  %v5314_v22 = vld [vmem:[%s6703_s26 + $0xb0] sm:$0x1]  ;;  %v6501_v41 = vld [vmem:[#allocation2 + $0x348] sm:$0xf0]  ;;  %1106 = vst [vmem:[#allocation2 + $0x3b4] sm:$0xf] %v5267_v4  ;;  %v5940_v3 = vor.u32 %v6496_v5, %v5937_v35 }
 0x112   : > { %v7380_v8 = vpop.f32.mrf.mxu0  ;;  %v5268_v31 = vld [vmem:[%s6703_s26 + $0xac] sm:$0xf]  ;;  %766 = vst [vmem:[#allocation2 + $0x3ac] sm:$0xf] %v649_v48  ;;  %v1492_v53 = vshll.u32 %v5314_v22, 16  ;;  %v1478_v0 = vrot.slane %v1476_v13, 5  ;;  %v5944_v33 = vor.u32 %v6501_v41, %v5943_v21 }
 0x113   : > { %v7394_v42 = vadd.f32 %v7356_v26, %v4476_v62  ;;  %v4214_v26 = vadd.f32 %v7331_v27, %v7225_v15  ;;  %v5936_v62 = vor.u32 %v6500_v40, %v5935_v46  ;;  %767 = vst [vmem:[#allocation2 + $0x3d0] sm:$0xf] %v659_v36  ;;  %v1484_v4 = vrot.slane %v1482_v34, 5  ;;  %v315_v19 = vld [vmem:[%s6703_s26 + $0xa8] sm:$0xf] }
 0x114   : > { %1042 = vst [vmem:[#allocation2 + $0x3d4] sm:$0xf] %v968_v56  ;;  %v1488_v32 = vrot.slane %v1486_v45, 4  ;;  %v1494_v52 = vrot.slane %v1492_v53, 5  ;;  %v1479_v29 = vor.u32 %v1478_v0, %v1475_v18  ;;  %v661_v40 = vshrl.u32 %v315_v19, 16 }
 0x115   : > { %1107 = vst [vmem:[#allocation2 + $0x3d8] sm:$0xf] %v5268_v31  ;;  %v664_v22 = vshll.u32 %v315_v19, 16  ;;  %v317_v41 = vld [vmem:[%s6703_s26 + $0xb0] sm:$0x1]  ;;  %v4216_v53 = vadd.f32 %v7331_v27, %v7247_v17 }
 0x116   : > { %v4388_v39 = vpop.f32.mrf.mxu2  ;;  %v1489_v46 = vor.u32 %v1488_v32, %v1484_v4  ;;  %v1480_v5 = vrot.slane %v1479_v29, 4  ;;  %v663_v56 = vrot.slane %v661_v40, 4  ;;  %v5315_v32 = vld [vmem:[%s6703_s26 + $0xb4] sm:$0xf]  ;;  %v6504_v27 = vld [vmem:[#allocation2 + $0x364] sm:$0xf] }
 0x117   : > { %v4389_v60 = vadd.f32 %v4388_v39, %v4300_v47  ;;  %v4477_v2 = vpop.f32.mrf.mxu3  ;;  %v316_v47 = vld [vmem:[%s6703_s26 + $0xac] sm:$0xf]  ;;  %v666_v31 = vrot.slane %v664_v22, 5  ;;  %v5269_v17 = vld [vmem:[%s6703_s26 + $0xb4] sm:$0xf] }
 0x118   : > { %v4302_v23 = vpop.f32.mrf.mxu1  ;;  %v670_v48 = vshll.u32 %v316_v47, 16  ;;  %v674_v36 = vshrl.u32 %v316_v47, 16  ;;  %v1490_v35 = vrot.slane %v1489_v46, 4  ;;  %v1485_v18 = vsel %vm6850_vm3, %v1480_v5, %v1484_v4  ;;  %v814_v4 = vld [vmem:[%s6703_s26 + $0xa8] sm:$0xe] }
 0x119   : > { %v4478_v15 = vadd.f32 %v4477_v2, %v4389_v60  ;;  %v4303_v50 = vadd.f32 %v4302_v23, %v4214_v26  ;;  %v815_v26 = vld [vmem:[%s6703_s26 + $0xac] sm:$0xf]  ;;  %1602 = vst [vmem:[#allocation2 + $0x3b8] sm:$0xf] %v1485_v18  ;;  %v5239_v19 = vrot.slane %v814_v4, 9 }
 0x11a   : > { %v7407_v9 = vpop.f32.mrf.mxu0  ;;  %v1495_v13 = vsel %vm6850_vm3, %v1490_v35, %v1494_v52  ;;  %v672_v34 = vrot.slane %v670_v48, 5  ;;  %v676_v45 = vrot.slane %v674_v36, 4  ;;  %v816_v52 = vld [vmem:[%s6703_s26 + $0xb0] sm:$0x1]  ;;  %v5971_v22 = vld [vmem:[#allocation2 + $0x368] sm:$0xf] }
 0x11b   : > { %4341 = vmatmul.bf16.gmra.mxu1 %v5932_v61  ;;  %4430 = vmatmul.bf16.gmra.mxu2 %v5936_v62  ;;  %v7411_v21 = vadd.f32 %v7380_v8, %v4478_v15  ;;  %v667_v8 = vor.u32 %v666_v31, %v663_v56  ;;  %v680_v61 = vshll.u32 %v317_v41, 16  ;;  %v971_v62 = vrot.slane %v815_v26, 5  ;;  %1603 = vst [vmem:[#allocation2 + $0x3dc] sm:$0xf] %v1495_v13  ;;  %v6509_v48 = vld [vmem:[#allocation2 + $0x388] sm:$0xf0] }
 0x11c   : > { %4519 = vmatmul.bf16.gmra.mxu3 %v5940_v3  ;;  %v677_v0 = vor.u32 %v676_v45, %v672_v34  ;;  %v974_v35 = vrot.slane %v816_v52, 5  ;;  %v5270_v41 = vld [vmem:[%s6703_s26 + $0xb8] sm:$0xf]  ;;  %1108 = vst [vmem:[#allocation2 + $0x3fc] sm:$0xf] %v5269_v17  ;;  %v1497_v31 = vshrl.u32 %v5315_v32, 16 }
 0x11d   : > { %4608 = vmatmul.bf16.gmra.mxu0 %v5944_v33  ;;  %v668_v3 = vrot.slane %v667_v8, 4  ;;  %v682_v33 = vrot.slane %v680_v61, 5  ;;  %v973_v40 = vrot.slane %v971_v62, 4  ;;  %v972_v5 = vsel %vm6864_vm5, %v5239_v19, %v971_v62  ;;  %v5316_v56 = vld [vmem:[%s6703_s26 + $0xb8] sm:$0xf] }
 0x11e   : > { %v4391_v39 = vpop.f32.mrf.mxu2  ;;  %v678_v47 = vrot.slane %v677_v0, 4  ;;  %v6505_v18 = vld [vmem:[#allocation2 + $0x36c] sm:$0xf]  ;;  %v5973_v13 = vld [vmem:[#allocation2 + $0x38c] sm:$0xf0]  ;;  %v1500_v8 = vshll.u32 %v5315_v32, 16  ;;  %v5972_v19 = vor.u32 %v6509_v48, %v5971_v22 }
 0x11f   : > { %v4392_v60 = vadd.f32 %v4391_v39, %v4303_v50  ;;  %v4480_v2 = vpop.f32.mrf.mxu3  ;;  %v5965_v50 = vld [vmem:[#allocation2 + $0x384] sm:$0xf0]  ;;  %v673_v36 = vsel %vm6850_vm3, %v668_v3, %v672_v34  ;;  %v5979_v45 = vld [vmem:[#allocation2 + $0x370] sm:$0xf]  ;;  %v5317_v39 = vld [vmem:[%s6703_s26 + $0xbc] sm:$0x1]  ;;  %v975_v62 = vsel %vm6864_vm5, %v973_v40, %v974_v35  ;;  %v5976_v40 = vor.u32 %v6505_v18, %v5973_v13 }
 0x120   : > { %v4304_v23 = vpop.f32.mrf.mxu1  ;;  %v683_v26 = vsel %vm6850_vm3, %v678_v47, %v682_v33  ;;  %768 = vst [vmem:[#allocation2 + $0x3f4] sm:$0xf] %v673_v36  ;;  %v1506_v61 = vshll.u32 %v5316_v56, 16  ;;  %v6510_v0 = vld [vmem:[#allocation2 + $0x390] sm:$0xf0]  ;;  %v1502_v4 = vrot.slane %v1500_v8, 5 }
 0x121   : > { %v4481_v15 = vadd.f32 %v4480_v2, %v4392_v60  ;;  %v4305_v29 = vadd.f32 %v4304_v23, %v4216_v53  ;;  %769 = vst [vmem:[#allocation2 + $0x418] sm:$0xf] %v683_v26  ;;  %v1499_v53 = vrot.slane %v1497_v31, 4  ;;  %v1510_v60 = vshrl.u32 %v5316_v56, 16  ;;  %v318_v56 = vld [vmem:[%s6703_s26 + $0xb4] sm:$0xf] }
 0x122   : > { %v4571_v46 = vpop.f32.mrf.mxu0  ;;  %v1516_v2 = vshll.u32 %v5317_v39, 16  ;;  %1043 = vst [vmem:[#allocation2 + $0x3f8] sm:$0xf] %v972_v5  ;;  %v1508_v23 = vrot.slane %v1506_v61, 5  ;;  %v5980_v17 = vor.u32 %v6510_v0, %v5979_v45  ;;  %v319_v5 = vld [vmem:[%s6703_s26 + $0xb8] sm:$0xf] }
 0x123   : > { %v7435_v34 = vadd.f32 %v7407_v9, %v4481_v15  ;;  %1044 = vst [vmem:[#allocation2 + $0x41c] sm:$0xf] %v975_v62  ;;  %v1512_v32 = vrot.slane %v1510_v60, 4  ;;  %v5968_v9 = vor.u32 %v6504_v27, %v5965_v50  ;;  %v1503_v15 = vor.u32 %v1502_v4, %v1499_v53  ;;  %v6596_v45 = vld [vmem:[%s8005_s1 + $0x1c0] sm:$0xff] }
 0x124   : > { %1109 = vst [vmem:[#allocation2 + $0x420] sm:$0xf] %v5270_v41  ;;  %v1518_v35 = vrot.slane %v1516_v2, 5  ;;  %v685_v61 = vshrl.u32 %v318_v56, 16  ;;  %v688_v27 = vshll.u32 %v318_v56, 16  ;;  %v694_v50 = vshll.u32 %v319_v5, 16  ;;  %4819 = vmatpush.bf16.msra.mxu3 %v6596_v45 }
 0x125   : > { %v1513_v36 = vor.u32 %v1512_v32, %v1508_v23  ;;  %v1504_v8 = vrot.slane %v1503_v15, 4  ;;  %v698_v22 = vshrl.u32 %v319_v5, 16  ;;  %v7457_v62 = vld [vmem:[%s6703_s26 + $0xc0] sm:$0xf]  ;;  %v817_v32 = vld [vmem:[%s6703_s26 + $0xb4] sm:$0xe] }
 0x126   : > { %v4393_v3 = vpop.f32.mrf.mxu2  ;;  %v687_v41 = vrot.slane %v685_v61, 4  ;;  %v690_v60 = vrot.slane %v688_v27, 5  ;;  %v696_v2 = vrot.slane %v694_v50, 5  ;;  %v6513_v5 = vld [vmem:[#allocation2 + $0x3ac] sm:$0xf]  ;;  %v6580_v61 = vld [vmem:[%s8005_s1 + $0x140] sm:$0xff] }
 0x127   : > { %v4394_v33 = vadd.f32 %v4393_v3, %v4305_v29  ;;  %v4482_v52 = vpop.f32.mrf.mxu3  ;;  %v1514_v29 = vrot.slane %v1513_v36, 4  ;;  %v1509_v48 = vsel %vm6850_vm3, %v1504_v8, %v1508_v23  ;;  %v700_v0 = vrot.slane %v698_v22, 4  ;;  %v6518_v8 = vld [vmem:[#allocation2 + $0x3d0] sm:$0xf0]  ;;  %v5271_v22 = vld [vmem:[%s6703_s26 + $0xc0] sm:$0xf]  ;;  %4641 = vmatpush.bf16.msra.mxu1 %v6580_v61 }
 0x128   : > { %v4307_v47 = vpop.f32.mrf.mxu1  ;;  %1604 = vst [vmem:[#allocation2 + $0x400] sm:$0xf] %v1509_v48  ;;  %v6514_v45 = vld [vmem:[#allocation2 + $0x3b4] sm:$0xf] }
 0x129   : > { %v4483_v31 = vadd.f32 %v4482_v52, %v4394_v33  ;;  %v4308_v26 = vadd.f32 %v4307_v47, %v7065_v38  ;;  %v6588_v38 = vld [vmem:[%s8005_s1 + $0x180] sm:$0xff]  ;;  %v1519_v13 = vsel %vm6850_vm3, %v1514_v29, %v1518_v35  ;;  %v818_v33 = vld [vmem:[%s6703_s26 + $0xb8] sm:$0xf]  ;;  %v1521_v52 = vshrl.u32 %v7457_v62, 16  ;;  %v819_v47 = vld [vmem:[%s6703_s26 + $0xbc] sm:$0x1] }
 0x12a   : > { %v7442_v39 = vpop.f32.mrf.mxu0  ;;  %1605 = vst [vmem:[#allocation2 + $0x424] sm:$0xf] %v1519_v13  ;;  %4730 = vmatpush.bf16.msra.mxu2 %v6588_v38  ;;  %v701_v15 = vor.u32 %v700_v0, %v696_v2  ;;  %v6604_v29 = vld [vmem:[%s8005_s1 + $0x200] sm:$0xff]  ;;  %v981_v50 = vrot.slane %v819_v47, 5 }
 0x12b   : > { %4346 = vmatmul.bf16.gmra.mxu1 %v5968_v9  ;;  %4435 = vmatmul.bf16.gmra.mxu2 %v5972_v19  ;;  %v7446_v18 = vadd.f32 %v4571_v46, %v4483_v31  ;;  %v320_v46 = vld [vmem:[%s6703_s26 + $0xbc] sm:$0x1]  ;;  %v691_v19 = vor.u32 %v690_v60, %v687_v41  ;;  %v6001_v31 = vld [vmem:[#allocation2 + $0x3cc] sm:$0xf0]  ;;  %v5319_v13 = vld [vmem:[%s6703_s26 + $0xc4] sm:$0xf] }
 0x12c   : > { %4524 = vmatmul.bf16.gmra.mxu3 %v5976_v40  ;;  %v704_v3 = vshll.u32 %v320_v46, 16  ;;  %v5240_v40 = vrot.slane %v817_v32, 9  ;;  %v702_v41 = vrot.slane %v701_v15, 4  ;;  %v6009_v46 = vld [vmem:[#allocation2 + $0x3d4] sm:$0xf0]  ;;  %4908 = vmatpush.bf16.msra.mxu0 %v6604_v29  ;;  %v1530_v15 = vshll.u32 %v5319_v13, 16 }
 0x12d   : > { %4613 = vmatmul.bf16.gmra.mxu0 %v5980_v17  ;;  %v978_v17 = vrot.slane %v818_v33, 5  ;;  %v692_v48 = vrot.slane %v691_v19, 4  ;;  %v5320_v60 = vld [vmem:[%s6703_s26 + $0xc8] sm:$0x1]  ;;  %v5272_v33 = vld [vmem:[%s6703_s26 + $0xc4] sm:$0xf] }
 0x12e   : > { %v4396_v53 = vpop.f32.mrf.mxu2  ;;  %v706_v27 = vrot.slane %v704_v3, 5  ;;  %1110 = vst [vmem:[#allocation2 + $0x444] sm:$0xf] %v5271_v22  ;;  %v1524_v19 = vshll.u32 %v7457_v62, 16  ;;  %v1534_v47 = vshrl.u32 %v5319_v13, 16 }
 0x12f   : > { %v4397_v4 = vadd.f32 %v4396_v53, %v4308_v26  ;;  %v4485_v23 = vpop.f32.mrf.mxu3  ;;  %v6007_v26 = vld [vmem:[#allocation2 + $0x3b0] sm:$0xf]  ;;  %v980_v38 = vrot.slane %v978_v17, 4  ;;  %v6015_v53 = vld [vmem:[#allocation2 + $0x3b8] sm:$0xf] }
 0x130   : > { %v4309_v9 = vpop.f32.mrf.mxu1  ;;  %v707_v3 = vsel %vm6850_vm3, %v702_v41, %v706_v27  ;;  %v1526_v29 = vrot.slane %v1524_v19, 5  ;;  %v1532_v27 = vrot.slane %v1530_v15, 5  ;;  %1111 = vst [vmem:[#allocation2 + $0x468] sm:$0xf] %v5272_v33  ;;  %v5417_v41 = vld [vmem:[%s6703_s26 + $0x18] sm:$0xf] }
 0x131   : > { %v4486_v36 = vadd.f32 %v4485_v23, %v4397_v4  ;;  %v4310_v35 = vadd.f32 %v4309_v9, %v7093_v7  ;;  %v979_v7 = vsel %vm6864_vm5, %v5240_v40, %v978_v17  ;;  %v6519_v4 = vld [vmem:[#allocation2 + $0x3d8] sm:$0xf0]  ;;  %v697_v23 = vsel %vm6850_vm3, %v692_v48, %v696_v2  ;;  %771 = vst [vmem:[#allocation2 + $0x460] sm:$0xf] %v707_v3 }
 0x132   : > { %v4576_v56 = vpop.f32.mrf.mxu0  ;;  %1045 = vst [vmem:[#allocation2 + $0x440] sm:$0xf] %v979_v7  ;;  %v982_v32 = vsel %vm6864_vm5, %v980_v38, %v981_v50  ;;  %v1523_v9 = vrot.slane %v1521_v52, 4  ;;  %v6004_v40 = vor.u32 %v6513_v5, %v6001_v31  ;;  %v6008_v17 = vor.u32 %v6518_v8, %v6007_v26 }
 0x133   : > { %v7477_v0 = vadd.f32 %v7442_v39, %v4486_v36  ;;  %770 = vst [vmem:[#allocation2 + $0x43c] sm:$0xf] %v697_v23  ;;  %v1540_v2 = vshll.u32 %v5320_v60, 16  ;;  %v1536_v50 = vrot.slane %v1534_v47, 4  ;;  %v6012_v48 = vor.u32 %v6514_v45, %v6009_v46  ;;  %v5322_v46 = vld [vmem:[%s6703_s26 + $0x10] sm:$0xf] }
 0x134   : > { %1046 = vst [vmem:[#allocation2 + $0x464] sm:$0xf] %v982_v32  ;;  %v6016_v52 = vor.u32 %v6519_v4, %v6015_v53  ;;  %v1527_v26 = vor.u32 %v1526_v29, %v1523_v9  ;;  %v1994_v60 = vshrl.u32 %v5417_v41, 16  ;;  %v1997_v53 = vshll.u32 %v5417_v41, 16  ;;  %v5321_v9 = vld [vmem:[%s6703_s26 + $0xc] sm:$0xe] }
 0x135   : > { %v1542_v62 = vrot.slane %v1540_v2, 5  ;;  %v1537_v8 = vor.u32 %v1536_v50, %v1532_v27  ;;  %v1706_v3 = vrot.slane %v5322_v46, 5  ;;  %v5323_v47 = vld [vmem:[%s6703_s26 + $0x14] sm:$0x1]  ;;  %v6045_v46 = vld [vmem:[#allocation2 + $0x41c] sm:$0xf0] }
 0x136   : > { %v4398_v39 = vpop.f32.mrf.mxu2  ;;  %v1528_v38 = vrot.slane %v1527_v26, 4  ;;  %v1999_v41 = vrot.slane %v1997_v53, 5  ;;  %v6527_v26 = vld [vmem:[#allocation2 + $0x418] sm:$0xf0] }
 0x137   : > { %v4399_v36 = vadd.f32 %v4398_v39, %v4310_v35  ;;  %v4487_v61 = vpop.f32.mrf.mxu3  ;;  %v5418_v35 = vld [vmem:[%s6703_s26 + $0x1c] sm:$0xf]  ;;  %v1538_v13 = vrot.slane %v1537_v8, 4  ;;  %v1996_v39 = vrot.slane %v1994_v60, 4  ;;  %v1708_v2 = vrot.slane %v1706_v3, 4 }
 0x138   : > { %v4312_v22 = vpop.f32.mrf.mxu1  ;;  %v2003_v4 = vshll.u32 %v5418_v35, 16  ;;  %v2007_v32 = vshrl.u32 %v5418_v35, 16  ;;  %v6523_v60 = vld [vmem:[#allocation2 + $0x3fc] sm:$0xf] }
 0x139   : > { %v4488_v7 = vadd.f32 %v4487_v61, %v4399_v36  ;;  %v4313_v5 = vadd.f32 %v4312_v22, %v7121_v55  ;;  %v1533_v55 = vsel %vm6850_vm3, %v1528_v38, %v1532_v27  ;;  %v1543_v23 = vsel %vm6850_vm3, %v1538_v13, %v1542_v62  ;;  %v5465_v61 = vld [vmem:[%s6703_s26 + $0x18] sm:$0xe]  ;;  %v6522_v22 = vld [vmem:[#allocation2 + $0x3f4] sm:$0xf]  ;;  %v5386_v62 = vld [vmem:[%s6703_s26 + $0x1c] sm:$0xf] }
 0x13a   : > { %v4579_v31 = vpop.f32.mrf.mxu0  ;;  %1606 = vst [vmem:[#allocation2 + $0x448] sm:$0xf] %v1533_v55  ;;  %v1709_v36 = vrot.slane %v5323_v47, 5  ;;  %v2009_v38 = vrot.slane %v2007_v32, 4  ;;  %v2000_v55 = vor.u32 %v1999_v41, %v1996_v39  ;;  %v6528_v47 = vld [vmem:[#allocation2 + $0x420] sm:$0xf0]  ;;  %v6048_v41 = vor.u32 %v6523_v60, %v6045_v46 }
 0x13b   : > { %4351 = vmatmul.bf16.gmra.mxu1 %v6004_v40  ;;  %4440 = vmatmul.bf16.gmra.mxu2 %v6008_v17  ;;  %v7490_v45 = vadd.f32 %v4576_v56, %v4488_v7  ;;  %v5419_v56 = vld [vmem:[%s6703_s26 + $0x20] sm:$0x1]  ;;  %1607 = vst [vmem:[#allocation2 + $0x46c] sm:$0xf] %v1543_v23  ;;  %v5369_v17 = vrot.slane %v5321_v9, 9  ;;  %v2005_v7 = vrot.slane %v2003_v4, 5 }
 0x13c   : > { %4529 = vmatmul.bf16.gmra.mxu3 %v6012_v48  ;;  %v6037_v48 = vld [vmem:[#allocation2 + $0x414] sm:$0xf0]  ;;  %v1710_v35 = vsel %vm6864_vm5, %v1708_v2, %v1709_v36  ;;  %v2013_v13 = vshll.u32 %v5419_v56, 16  ;;  %v5467_v23 = vld [vmem:[%s6703_s26 + $0x20] sm:$0x1] }
 0x13d   : > { %4618 = vmatmul.bf16.gmra.mxu0 %v6016_v52  ;;  %v5385_v52 = vld [vmem:[%s6703_s26 + $0x18] sm:$0xf]  ;;  %v1707_v8 = vsel %vm6864_vm5, %v5369_v17, %v1706_v3  ;;  %v6051_v9 = vld [vmem:[#allocation2 + $0x400] sm:$0xf]  ;;  %1849 = vst [vmem:[#allocation2 + $0x38] sm:$0xf] %v1710_v35  ;;  %v6040_v17 = vor.u32 %v6522_v22, %v6037_v48 }
 0x13e   : > { %v4401_v33 = vpop.f32.mrf.mxu2  ;;  %1913 = vst [vmem:[#allocation2 + $0x18] sm:$0xf] %v5385_v52  ;;  %v2015_v3 = vrot.slane %v2013_v13, 5  ;;  %v5421_v22 = vld [vmem:[%s6703_s26 + $0x28] sm:$0xf] }
 0x13f   : > { %v4402_v19 = vadd.f32 %v4401_v33, %v4313_v5  ;;  %v4490_v15 = vpop.f32.mrf.mxu3  ;;  %v6043_v5 = vld [vmem:[#allocation2 + $0x3f8] sm:$0xf]  ;;  %1848 = vst [vmem:[#allocation2 + $0x14] sm:$0xf] %v1707_v8  ;;  %v5513_v33 = vrot.slane %v5465_v61, 9  ;;  %v6052_v8 = vor.u32 %v6528_v47, %v6051_v9  ;;  %v2027_v13 = vshll.u32 %v5421_v22, 16 }
 0x140   : > { %v4314_v40 = vpop.f32.mrf.mxu1  ;;  %1914 = vst [vmem:[#allocation2 + $0x3c] sm:$0xf] %v5386_v62  ;;  %v6044_v61 = vor.u32 %v6527_v26, %v6043_v5 }
 0x141   : > { %v4491_v29 = vadd.f32 %v4490_v15, %v4402_v19  ;;  %v4315_v27 = vadd.f32 %v4314_v40, %v7142_v30  ;;  %v5466_v30 = vld [vmem:[%s6703_s26 + $0x1c] sm:$0xf]  ;;  %v2010_v19 = vor.u32 %v2009_v38, %v2005_v7  ;;  %v2542_v15 = vrot.slane %v5467_v23, 5  ;;  %v5420_v38 = vld [vmem:[%s6703_s26 + $0x24] sm:$0xf] }
 0x142   : > { %v4581_v50 = vpop.f32.mrf.mxu0  ;;  %v2539_v53 = vrot.slane %v5466_v30, 5  ;;  %v2001_v40 = vrot.slane %v2000_v55, 4  ;;  %v2021_v26 = vshll.u32 %v5420_v38, 16  ;;  %v2031_v30 = vshrl.u32 %v5421_v22, 16  ;;  %v5325_v23 = vld [vmem:[%s6703_s26 + $0x1c] sm:$0xf] }
 0x143   : > { %v7510_v4 = vadd.f32 %v4579_v31, %v4491_v29  ;;  %v2011_v2 = vrot.slane %v2010_v19, 4  ;;  %v2029_v9 = vrot.slane %v2027_v13, 5  ;;  %v6531_v22 = vld [vmem:[#allocation2 + $0x43c] sm:$0xf] }
 0x144   : > { %v2540_v32 = vsel %vm6864_vm5, %v5513_v33, %v2539_v53  ;;  %v2541_v56 = vrot.slane %v2539_v53, 4  ;;  %v2006_v29 = vsel %vm6850_vm3, %v2001_v40, %v2005_v7  ;;  %v2018_v7 = vshrl.u32 %v5420_v38, 16  ;;  %v5388_v38 = vld [vmem:[%s6703_s26 + $0x28] sm:$0xf] }
 0x145   : > { %2681 = vst [vmem:[#allocation2 + $0x20] sm:$0xf] %v2540_v32  ;;  %v2016_v35 = vsel %vm6850_vm3, %v2011_v2, %v2015_v3  ;;  %v2023_v46 = vrot.slane %v2021_v26, 5  ;;  %v1713_v33 = vrot.slane %v5325_v23, 5  ;;  %v5324_v3 = vld [vmem:[%s6703_s26 + $0x18] sm:$0xe] }
 0x146   : > { %v4403_v39 = vpop.f32.mrf.mxu2  ;;  %v2543_v52 = vsel %vm6864_vm5, %v2541_v56, %v2542_v15  ;;  %2409 = vst [vmem:[#allocation2 + $0x1c] sm:$0xf] %v2006_v29  ;;  %v2020_v60 = vrot.slane %v2018_v7, 4  ;;  %v5326_v15 = vld [vmem:[%s6703_s26 + $0x20] sm:$0x1]  ;;  %v2033_v47 = vrot.slane %v2031_v30, 4 }
 0x147   : > { %v4404_v31 = vadd.f32 %v4403_v39, %v4315_v27  ;;  %v4492_v36 = vpop.f32.mrf.mxu3  ;;  %2410 = vst [vmem:[#allocation2 + $0x40] sm:$0xf] %v2016_v35  ;;  %v5370_v39 = vrot.slane %v5324_v3, 9  ;;  %v5468_v29 = vld [vmem:[%s6703_s26 + $0x24] sm:$0xe] }
 0x148   : > { %v4317_v62 = vpop.f32.mrf.mxu1  ;;  %2682 = vst [vmem:[#allocation2 + $0x44] sm:$0xf] %v2543_v52  ;;  %v2024_v53 = vor.u32 %v2023_v46, %v2020_v60  ;;  %v5387_v35 = vld [vmem:[%s6703_s26 + $0x24] sm:$0xf]  ;;  %v5469_v30 = vld [vmem:[%s6703_s26 + $0x28] sm:$0xf] }
 0x149   : > { %v4493_v48 = vadd.f32 %v4492_v36, %v4404_v31  ;;  %v4318_v27 = vadd.f32 %v4317_v62, %v7167_v25  ;;  %v5422_v25 = vld [vmem:[%s6703_s26 + $0x2c] sm:$0x1]  ;;  %v2034_v36 = vor.u32 %v2033_v47, %v2029_v9  ;;  %v6536_v7 = vld [vmem:[#allocation2 + $0x460] sm:$0xf0]  ;;  %v6081_v46 = vld [vmem:[#allocation2 + $0x464] sm:$0xf0] }
 0x14a   : > { %v4584_v5 = vpop.f32.mrf.mxu0  ;;  %v2037_v40 = vshll.u32 %v5422_v25, 16  ;;  %v2025_v31 = vrot.slane %v2024_v53, 4  ;;  %v6532_v60 = vld [vmem:[#allocation2 + $0x444] sm:$0xf]  ;;  %v5470_v23 = vld [vmem:[%s6703_s26 + $0x2c] sm:$0x1] }
 0x14b   : > { %4356 = vmatmul.bf16.gmra.mxu1 %v6040_v17  ;;  %4445 = vmatmul.bf16.gmra.mxu2 %v6044_v61  ;;  %v7523_v55 = vadd.f32 %v4581_v50, %v4493_v48  ;;  %v1715_v50 = vrot.slane %v1713_v33, 4  ;;  %v1716_v17 = vrot.slane %v5326_v15, 5  ;;  %v6073_v48 = vld [vmem:[#allocation2 + $0x45c] sm:$0xf0]  ;;  %v2035_v13 = vrot.slane %v2034_v36, 4 }
 0x14c   : > { %4534 = vmatmul.bf16.gmra.mxu3 %v6048_v41  ;;  %v2039_v61 = vrot.slane %v2037_v40, 5  ;;  %v5514_v25 = vrot.slane %v5468_v29, 9  ;;  %1915 = vst [vmem:[#allocation2 + $0x60] sm:$0xf] %v5387_v35  ;;  %v2549_v15 = vrot.slane %v5470_v23, 5 }
 0x14d   : > { %4623 = vmatmul.bf16.gmra.mxu0 %v6052_v8  ;;  %v1714_v8 = vsel %vm6864_vm5, %v5370_v39, %v1713_v33  ;;  %v1717_v26 = vsel %vm6864_vm5, %v1715_v50, %v1716_v17  ;;  %v2546_v33 = vrot.slane %v5469_v30, 5  ;;  %v6537_v47 = vld [vmem:[#allocation2 + $0x468] sm:$0xf0]  ;;  %1916 = vst [vmem:[#allocation2 + $0x84] sm:$0xf] %v5388_v38 }
 0x14e   : > { %v4406_v19 = vpop.f32.mrf.mxu2  ;;  %1850 = vst [vmem:[#allocation2 + $0x5c] sm:$0xf] %v1714_v8  ;;  %v2040_v3 = vsel %vm6850_vm3, %v2035_v13, %v2039_v61  ;;  %v5423_v61 = vld [vmem:[%s6703_s26 + $0x30] sm:$0xf]  ;;  %v5424_v29 = vld [vmem:[%s6703_s26 + $0x34] sm:$0xf] }
 0x14f   : > { %v4407_v32 = vadd.f32 %v4406_v19, %v4318_v27  ;;  %v4495_v56 = vpop.f32.mrf.mxu3  ;;  %v6079_v27 = vld [vmem:[#allocation2 + $0x440] sm:$0xf]  ;;  %1851 = vst [vmem:[#allocation2 + $0x80] sm:$0xf] %v1717_v26  ;;  %v6087_v19 = vld [vmem:[#allocation2 + $0x448] sm:$0xf]  ;;  %v2547_v40 = vsel %vm6864_vm5, %v5514_v25, %v2546_v33 }
 0x150   : > { %v4319_v2 = vpop.f32.mrf.mxu1  ;;  %v6080_v50 = vor.u32 %v6536_v7, %v6079_v27  ;;  %2412 = vst [vmem:[#allocation2 + $0x88] sm:$0xf] %v2040_v3  ;;  %v6088_v36 = vor.u32 %v6537_v47, %v6087_v19  ;;  %v2045_v38 = vshll.u32 %v5423_v61, 16  ;;  %v5328_v26 = vld [vmem:[%s6703_s26 + $0x28] sm:$0xf]  ;;  %v2055_v13 = vshrl.u32 %v5424_v29, 16 }
 0x151   : > { %v4496_v52 = vadd.f32 %v4495_v56, %v4407_v32  ;;  %v4320_v62 = vadd.f32 %v4319_v2, %v7192_v6  ;;  %v2030_v6 = vsel %vm6850_vm3, %v2025_v31, %v2029_v9  ;;  %v2548_v32 = vrot.slane %v2546_v33, 4  ;;  %2683 = vst [vmem:[#allocation2 + $0x68] sm:$0xf] %v2547_v40  ;;  %v5329_v23 = vld [vmem:[%s6703_s26 + $0x2c] sm:$0x1] }
 0x152   : > { %v4586_v41 = vpop.f32.mrf.mxu0  ;;  %2411 = vst [vmem:[#allocation2 + $0x64] sm:$0xf] %v2030_v6  ;;  %v6084_v31 = vor.u32 %v6532_v60, %v6081_v46  ;;  %v2047_v27 = vrot.slane %v2045_v38, 5  ;;  %v1720_v30 = vrot.slane %v5328_v26, 5  ;;  %v5327_v6 = vld [vmem:[%s6703_s26 + $0x24] sm:$0xe] }
 0x153   : > { %v7541_v53 = vadd.f32 %v4584_v5, %v4496_v52  ;;  %v6076_v5 = vor.u32 %v6531_v22, %v6073_v48  ;;  %v2550_v17 = vsel %vm6864_vm5, %v2548_v32, %v2549_v15  ;;  %v2051_v22 = vshll.u32 %v5424_v29, 16  ;;  %v5549_v29 = vld [vmem:[#allocation2 + $0x34] sm:$0xf0]  ;;  %v5563_v26 = vld [vmem:[#allocation2 + $0x20] sm:$0xf] }
 0x154   : > { %2684 = vst [vmem:[#allocation2 + $0x8c] sm:$0xf] %v2550_v17  ;;  %v5371_v3 = vrot.slane %v5327_v6, 9  ;;  %v1723_v47 = vrot.slane %v5329_v23, 5  ;;  %v2057_v32 = vrot.slane %v2055_v13, 4 }
 0x155   : > { %v2053_v25 = vrot.slane %v2051_v22, 5  ;;  %v6404_v23 = vld [vmem:[#allocation2 + $0x40] sm:$0xf0] }
 0x156   : > { %v4408_v9 = vpop.f32.mrf.mxu2  ;;  %v1721_v17 = vsel %vm6864_vm5, %v5371_v3, %v1720_v30 }
 0x157   : > { %v4409_v56 = vadd.f32 %v4408_v9, %v4320_v62  ;;  %v4497_v39 = vpop.f32.mrf.mxu3  ;;  %v2042_v62 = vshrl.u32 %v5423_v61, 16  ;;  %v6398_v61 = vld [vmem:[#allocation2 + $0x14] sm:$0xf]  ;;  %1852 = vst [vmem:[#allocation2 + $0xa4] sm:$0xf] %v1721_v17  ;;  %v2058_v22 = vor.u32 %v2057_v32, %v2053_v25 }
 0x158   : > { %v4322_v2 = vpop.f32.mrf.mxu1  ;;  %v5427_v17 = vld [vmem:[%s6703_s26 + $0x40] sm:$0xf] }
 0x159   : > { %v4498_v52 = vadd.f32 %v4497_v39, %v4409_v56  ;;  %v4323_v8 = vadd.f32 %v4322_v2, %v7223_v14  ;;  %v2044_v48 = vrot.slane %v2042_v62, 4  ;;  %v5425_v14 = vld [vmem:[%s6703_s26 + $0x38] sm:$0x1]  ;;  %v5472_v56 = vld [vmem:[%s6703_s26 + $0x34] sm:$0xf]  ;;  %v2059_v6 = vrot.slane %v2058_v22, 4 }
 0x15a   : > { %v4589_v35 = vpop.f32.mrf.mxu0  ;;  %v2061_v9 = vshll.u32 %v5425_v14, 16  ;;  %v5389_v2 = vld [vmem:[%s6703_s26 + $0x30] sm:$0xf]  ;;  %v2079_v22 = vshrl.u32 %v5427_v17, 16 }
 0x15b   : > { %4361 = vmatmul.bf16.gmra.mxu1 %v6076_v5  ;;  %4450 = vmatmul.bf16.gmra.mxu2 %v6080_v50  ;;  %v7552_v7 = vadd.f32 %v4586_v41, %v4498_v52  ;;  %v2048_v60 = vor.u32 %v2047_v27, %v2044_v48  ;;  %v1722_v41 = vrot.slane %v1720_v30, 4  ;;  %v5555_v52 = vld [vmem:[#allocation2 + $0x18] sm:$0xf]  ;;  %v6399_v27 = vld [vmem:[#allocation2 + $0x1c] sm:$0xf]  ;;  %v2553_v30 = vrot.slane %v5472_v56, 5 }
 0x15c   : > { %4539 = vmatmul.bf16.gmra.mxu3 %v6084_v31  ;;  %v5390_v31 = vld [vmem:[%s6703_s26 + $0x34] sm:$0xf]  ;;  %v5473_v48 = vld [vmem:[%s6703_s26 + $0x38] sm:$0x1]  ;;  %1917 = vst [vmem:[#allocation2 + $0xa8] sm:$0xf] %v5389_v2  ;;  %v5564_v56 = vor.u32 %v6404_v23, %v5563_v26 }
 0x15d   : > { %4628 = vmatmul.bf16.gmra.mxu0 %v6088_v36  ;;  %v2049_v40 = vrot.slane %v2048_v60, 4  ;;  %v5471_v36 = vld [vmem:[%s6703_s26 + $0x30] sm:$0xe]  ;;  %v1724_v62 = vsel %vm6864_vm5, %v1722_v41, %v1723_v47  ;;  %v2556_v14 = vrot.slane %v5473_v48, 5  ;;  %1918 = vst [vmem:[#allocation2 + $0xcc] sm:$0xf] %v5390_v31 }
 0x15e   : > { %v4411_v46 = vpop.f32.mrf.mxu2  ;;  %1853 = vst [vmem:[#allocation2 + $0xc8] sm:$0xf] %v1724_v62  ;;  %v5515_v13 = vrot.slane %v5471_v36, 9  ;;  %v5330_v26 = vld [vmem:[%s6703_s26 + $0x30] sm:$0xe] }
 0x15f   : > { %v4412_v33 = vadd.f32 %v4411_v46, %v4323_v8  ;;  %v4500_v19 = vpop.f32.mrf.mxu3  ;;  %v6403_v8 = vld [vmem:[#allocation2 + $0x38] sm:$0xf0]  ;;  %v2054_v38 = vsel %vm6850_vm3, %v2049_v40, %v2053_v25  ;;  %v5557_v46 = vld [vmem:[#allocation2 + $0x3c] sm:$0xf0]  ;;  %v2555_v25 = vrot.slane %v2553_v30, 4 }
 0x160   : > { %v4324_v15 = vpop.f32.mrf.mxu1  ;;  %2413 = vst [vmem:[#allocation2 + $0xac] sm:$0xf] %v2054_v38  ;;  %v5556_v47 = vor.u32 %v6403_v8, %v5555_v52  ;;  %v5331_v38 = vld [vmem:[%s6703_s26 + $0x34] sm:$0xf] }
 0x161   : > { %v4501_v39 = vadd.f32 %v4500_v19, %v4412_v33  ;;  %v4325_v5 = vadd.f32 %v4324_v15, %v7245_v12  ;;  %v2063_v12 = vrot.slane %v2061_v9, 5  ;;  %v2554_v33 = vsel %vm6864_vm5, %v5515_v13, %v2553_v30  ;;  %v5332_v13 = vld [vmem:[%s6703_s26 + $0x38] sm:$0x1] }
 0x162   : > { %v4591_v50 = vpop.f32.mrf.mxu0  ;;  %v2557_v40 = vsel %vm6864_vm5, %v2555_v25, %v2556_v14  ;;  %v5560_v9 = vor.u32 %v6399_v27, %v5557_v46  ;;  %2685 = vst [vmem:[#allocation2 + $0xb0] sm:$0xf] %v2554_v33  ;;  %v1730_v33 = vrot.slane %v5332_v13, 5  ;;  %v6413_v13 = vld [vmem:[#allocation2 + $0x88] sm:$0xf0] }
 0x163   : > { %v7570_v60 = vadd.f32 %v4589_v35, %v4501_v39  ;;  %v2064_v3 = vsel %vm6850_vm3, %v2059_v6, %v2063_v12  ;;  %v5552_v35 = vor.u32 %v6398_v61, %v5549_v29  ;;  %v5426_v39 = vld [vmem:[%s6703_s26 + $0x3c] sm:$0xf]  ;;  %2686 = vst [vmem:[#allocation2 + $0xd4] sm:$0xf] %v2557_v40  ;;  %v2075_v29 = vshll.u32 %v5427_v17, 16 }
 0x164   : > { %2414 = vst [vmem:[#allocation2 + $0xd0] sm:$0xf] %v2064_v3  ;;  %v2069_v61 = vshll.u32 %v5426_v39, 16  ;;  %v1727_v12 = vrot.slane %v5331_v38, 5  ;;  %v5372_v6 = vrot.slane %v5330_v26, 9 }
 0x165   : > { %v2077_v30 = vrot.slane %v2075_v29, 5  ;;  %v5585_v17 = vld [vmem:[#allocation2 + $0x7c] sm:$0xf0]  ;;  %v5593_v38 = vld [vmem:[#allocation2 + $0x84] sm:$0xf0] }
 0x166   : > { %v4413_v19 = vpop.f32.mrf.mxu2  ;;  %v2071_v8 = vrot.slane %v2069_v61, 5  ;;  %v1728_v40 = vsel %vm6864_vm5, %v5372_v6, %v1727_v12 }
 0x167   : > { %v4414_v41 = vadd.f32 %v4413_v19, %v4325_v5  ;;  %v4502_v15 = vpop.f32.mrf.mxu3  ;;  %v2066_v5 = vshrl.u32 %v5426_v39, 16  ;;  %v2081_v19 = vrot.slane %v2079_v22, 4  ;;  %v6407_v39 = vld [vmem:[#allocation2 + $0x5c] sm:$0xf]  ;;  %1854 = vst [vmem:[#allocation2 + $0xec] sm:$0xf] %v1728_v40 }
 0x168   : > { %v4327_v32 = vpop.f32.mrf.mxu1  ;;  %v5430_v40 = vld [vmem:[%s6703_s26 + $0x4c] sm:$0xf] }
 0x169   : > { %v4503_v2 = vadd.f32 %v4502_v15, %v4414_v41  ;;  %v4328_v31 = vadd.f32 %v4327_v32, %v7082_v58  ;;  %v2068_v52 = vrot.slane %v2066_v5, 4  ;;  %v5428_v58 = vld [vmem:[%s6703_s26 + $0x44] sm:$0x1]  ;;  %v5475_v41 = vld [vmem:[%s6703_s26 + $0x40] sm:$0xf]  ;;  %v2082_v29 = vor.u32 %v2081_v19, %v2077_v30 }
 0x16a   : > { %v4594_v36 = vpop.f32.mrf.mxu0  ;;  %v2085_v3 = vshll.u32 %v5428_v58, 16  ;;  %v5391_v32 = vld [vmem:[%s6703_s26 + $0x3c] sm:$0xf] }
 0x16b   : > { %4642 = vmatmul.bf16.vlgmr.msra.gmra.mxu1 %v5552_v35  ;;  %4731 = vmatmul.bf16.vlgmr.msra.gmra.mxu2 %v5556_v47  ;;  %v7581_v62 = vadd.f32 %v4591_v50, %v4503_v2  ;;  %v2072_v48 = vor.u32 %v2071_v8, %v2068_v52  ;;  %v1729_v50 = vrot.slane %v1727_v12, 4  ;;  %v5591_v2 = vld [vmem:[#allocation2 + $0x60] sm:$0xf]  ;;  %v5476_v52 = vld [vmem:[%s6703_s26 + $0x44] sm:$0x1]  ;;  %v2560_v12 = vrot.slane %v5475_v41, 5 }
 0x16c   : > { %4820 = vmatmul.bf16.vlgmr.msra.gmra.mxu3 %v5560_v9  ;;  %v5392_v9 = vld [vmem:[%s6703_s26 + $0x40] sm:$0xf]  ;;  %v6408_v8 = vld [vmem:[#allocation2 + $0x64] sm:$0xf]  ;;  %v2563_v58 = vrot.slane %v5476_v52, 5  ;;  %v2083_v26 = vrot.slane %v2082_v29, 4 }
 0x16d   : > { %4909 = vmatmul.bf16.vlgmr.msra.gmra.mxu0 %v5564_v56  ;;  %v2073_v25 = vrot.slane %v2072_v48, 4  ;;  %v5474_v56 = vld [vmem:[%s6703_s26 + $0x3c] sm:$0xe]  ;;  %v1731_v5 = vsel %vm6864_vm5, %v1729_v50, %v1730_v33  ;;  %1919 = vst [vmem:[#allocation2 + $0xf0] sm:$0xf] %v5391_v32  ;;  %v2103_v29 = vshrl.u32 %v5430_v40, 16 }
 0x16e   : > { %v4416_v27 = vpop.f32.mrf.mxu2  ;;  %1855 = vst [vmem:[#allocation2 + $0x110] sm:$0xf] %v1731_v5  ;;  %v5516_v22 = vrot.slane %v5474_v56, 9 }
 0x16f   : > { %v4417_v14 = vadd.f32 %v4416_v27, %v4328_v31  ;;  %v4505_v46 = vpop.f32.mrf.mxu3  ;;  %v6412_v31 = vld [vmem:[#allocation2 + $0x80] sm:$0xf0]  ;;  %v2078_v61 = vsel %vm6850_vm3, %v2073_v25, %v2077_v30  ;;  %v5599_v27 = vld [vmem:[#allocation2 + $0x68] sm:$0xf]  ;;  %1920 = vst [vmem:[#allocation2 + $0x114] sm:$0xf] %v5392_v9 }
 0x170   : > { %v4329_v23 = vpop.f32.mrf.mxu1  ;;  %v2562_v30 = vrot.slane %v2560_v12, 4  ;;  %2415 = vst [vmem:[#allocation2 + $0xf4] sm:$0xf] %v2078_v61  ;;  %v5592_v33 = vor.u32 %v6412_v31, %v5591_v2  ;;  %v5600_v41 = vor.u32 %v6413_v13, %v5599_v27  ;;  %v5334_v61 = vld [vmem:[%s6703_s26 + $0x40] sm:$0xf] }
 0x171   : > { %v4506_v15 = vadd.f32 %v4505_v46, %v4417_v14  ;;  %v4330_v35 = vadd.f32 %v4329_v23, %v7114_v43  ;;  %v2087_v43 = vrot.slane %v2085_v3, 5  ;;  %v2561_v14 = vsel %vm6864_vm5, %v5516_v22, %v2560_v12  ;;  %v5335_v22 = vld [vmem:[%s6703_s26 + $0x44] sm:$0x1] }
 0x172   : > { %v4596_v47 = vpop.f32.mrf.mxu0  ;;  %v2564_v25 = vsel %vm6864_vm5, %v2562_v30, %v2563_v58  ;;  %v5596_v3 = vor.u32 %v6408_v8, %v5593_v38  ;;  %2687 = vst [vmem:[#allocation2 + $0xf8] sm:$0xf] %v2561_v14  ;;  %v5333_v38 = vld [vmem:[%s6703_s26 + $0x3c] sm:$0xe]  ;;  %v1737_v14 = vrot.slane %v5335_v22, 5 }
 0x173   : > { %v7599_v48 = vadd.f32 %v4594_v36, %v4506_v15  ;;  %v2088_v6 = vsel %vm6850_vm3, %v2083_v26, %v2087_v43  ;;  %v5588_v36 = vor.u32 %v6407_v39, %v5585_v17  ;;  %v5429_v15 = vld [vmem:[%s6703_s26 + $0x48] sm:$0xf]  ;;  %2688 = vst [vmem:[#allocation2 + $0x11c] sm:$0xf] %v2564_v25  ;;  %v2099_v17 = vshll.u32 %v5430_v40, 16 }
 0x174   : > { %2416 = vst [vmem:[#allocation2 + $0x118] sm:$0xf] %v2088_v6  ;;  %v2093_v39 = vshll.u32 %v5429_v15, 16  ;;  %v1734_v43 = vrot.slane %v5334_v61, 5  ;;  %v5373_v26 = vrot.slane %v5333_v38, 9 }
 0x175   : > { %v2101_v12 = vrot.slane %v2099_v17, 5  ;;  %v5621_v40 = vld [vmem:[#allocation2 + $0xc4] sm:$0xf0]  ;;  %v5629_v61 = vld [vmem:[#allocation2 + $0xcc] sm:$0xf0] }
 0x176   : > { %v4418_v46 = vpop.f32.mrf.mxu2  ;;  %v2095_v31 = vrot.slane %v2093_v39, 5  ;;  %v1735_v25 = vsel %vm6864_vm5, %v5373_v26, %v1734_v43  ;;  %v6422_v22 = vld [vmem:[#allocation2 + $0xd0] sm:$0xf0] }
 0x177   : > { %v4419_v50 = vadd.f32 %v4418_v46, %v4330_v35  ;;  %v4507_v23 = vpop.f32.mrf.mxu3  ;;  %v2090_v35 = vshrl.u32 %v5429_v15, 16  ;;  %v2105_v46 = vrot.slane %v2103_v29, 4  ;;  %v6416_v15 = vld [vmem:[#allocation2 + $0xa4] sm:$0xf]  ;;  %1856 = vst [vmem:[#allocation2 + $0x134] sm:$0xf] %v1735_v25 }
 0x178   : > { %v4332_v19 = vpop.f32.mrf.mxu1  ;;  %v5433_v25 = vld [vmem:[%s6703_s26 + $0x58] sm:$0xf] }
 0x179   : > { %v4508_v32 = vadd.f32 %v4507_v23, %v4419_v50  ;;  %v4333_v9 = vadd.f32 %v4332_v19, %v7133_v20  ;;  %v2092_v2 = vrot.slane %v2090_v35, 4  ;;  %v5431_v20 = vld [vmem:[%s6703_s26 + $0x50] sm:$0x1]  ;;  %v5478_v50 = vld [vmem:[%s6703_s26 + $0x4c] sm:$0xf]  ;;  %v2106_v17 = vor.u32 %v2105_v46, %v2101_v12 }
 0x17a   : > { %v4599_v56 = vpop.f32.mrf.mxu0  ;;  %v2109_v6 = vshll.u32 %v5431_v20, 16  ;;  %v5393_v19 = vld [vmem:[%s6703_s26 + $0x48] sm:$0xf] }
 0x17b   : > { %4647 = vmatmul.bf16.gmra.mxu1 %v5588_v36  ;;  %4736 = vmatmul.bf16.gmra.mxu2 %v5592_v33  ;;  %v7610_v5 = vadd.f32 %v4596_v47, %v4508_v32  ;;  %v2096_v52 = vor.u32 %v2095_v31, %v2092_v2  ;;  %v1736_v47 = vrot.slane %v1734_v43, 4  ;;  %v5627_v32 = vld [vmem:[#allocation2 + $0xa8] sm:$0xf]  ;;  %v5479_v2 = vld [vmem:[%s6703_s26 + $0x50] sm:$0x1]  ;;  %v2567_v43 = vrot.slane %v5478_v50, 5 }
 0x17c   : > { %4825 = vmatmul.bf16.gmra.mxu3 %v5596_v3  ;;  %v5394_v3 = vld [vmem:[%s6703_s26 + $0x4c] sm:$0xf]  ;;  %v2570_v20 = vrot.slane %v5479_v2, 5  ;;  %1921 = vst [vmem:[#allocation2 + $0x138] sm:$0xf] %v5393_v19  ;;  %v2107_v38 = vrot.slane %v2106_v17, 4 }
 0x17d   : > { %4914 = vmatmul.bf16.gmra.mxu0 %v5600_v41  ;;  %v2097_v30 = vrot.slane %v2096_v52, 4  ;;  %v5477_v41 = vld [vmem:[%s6703_s26 + $0x48] sm:$0xe]  ;;  %v1738_v35 = vsel %vm6864_vm5, %v1736_v47, %v1737_v14  ;;  %v6417_v31 = vld [vmem:[#allocation2 + $0xac] sm:$0xf]  ;;  %v2127_v17 = vshrl.u32 %v5433_v25, 16 }
 0x17e   : > { %v4421_v8 = vpop.f32.mrf.mxu2  ;;  %1857 = vst [vmem:[#allocation2 + $0x158] sm:$0xf] %v1738_v35  ;;  %v5517_v29 = vrot.slane %v5477_v41, 9 }
 0x17f   : > { %v4422_v58 = vadd.f32 %v4421_v8, %v4333_v9  ;;  %v4510_v27 = vpop.f32.mrf.mxu3  ;;  %v6421_v9 = vld [vmem:[#allocation2 + $0xc8] sm:$0xf0]  ;;  %v2102_v39 = vsel %vm6850_vm3, %v2097_v30, %v2101_v12  ;;  %v5635_v8 = vld [vmem:[#allocation2 + $0xb0] sm:$0xf]  ;;  %1922 = vst [vmem:[#allocation2 + $0x15c] sm:$0xf] %v5394_v3 }
 0x180   : > { %v4334_v13 = vpop.f32.mrf.mxu1  ;;  %v2569_v12 = vrot.slane %v2567_v43, 4  ;;  %2417 = vst [vmem:[#allocation2 + $0x13c] sm:$0xf] %v2102_v39  ;;  %v5628_v14 = vor.u32 %v6421_v9, %v5627_v32  ;;  %v5636_v50 = vor.u32 %v6422_v22, %v5635_v8  ;;  %v5337_v39 = vld [vmem:[%s6703_s26 + $0x4c] sm:$0xf] }
 0x181   : > { %v4511_v23 = vadd.f32 %v4510_v27, %v4422_v58  ;;  %v4335_v36 = vadd.f32 %v4334_v13, %v7159_v10  ;;  %v2111_v10 = vrot.slane %v2109_v6, 5  ;;  %v2568_v58 = vsel %vm6864_vm5, %v5517_v29, %v2567_v43  ;;  %v5338_v29 = vld [vmem:[%s6703_s26 + $0x50] sm:$0x1] }
 0x182   : > { %v4601_v33 = vpop.f32.mrf.mxu0  ;;  %v2571_v30 = vsel %vm6864_vm5, %v2569_v12, %v2570_v20  ;;  %v5632_v6 = vor.u32 %v6417_v31, %v5629_v61  ;;  %2689 = vst [vmem:[#allocation2 + $0x140] sm:$0xf] %v2568_v58  ;;  %v5336_v61 = vld [vmem:[%s6703_s26 + $0x48] sm:$0xe]  ;;  %v1744_v58 = vrot.slane %v5338_v29, 5 }
 0x183   : > { %v7628_v52 = vadd.f32 %v4599_v56, %v4511_v23  ;;  %v2112_v26 = vsel %vm6850_vm3, %v2107_v38, %v2111_v10  ;;  %v5624_v56 = vor.u32 %v6416_v15, %v5621_v40  ;;  %v5432_v23 = vld [vmem:[%s6703_s26 + $0x54] sm:$0xf]  ;;  %2690 = vst [vmem:[#allocation2 + $0x164] sm:$0xf] %v2571_v30  ;;  %v2123_v40 = vshll.u32 %v5433_v25, 16 }
 0x184   : > { %2418 = vst [vmem:[#allocation2 + $0x160] sm:$0xf] %v2112_v26  ;;  %v2117_v15 = vshll.u32 %v5432_v23, 16  ;;  %v1741_v10 = vrot.slane %v5337_v39, 5  ;;  %v5374_v38 = vrot.slane %v5336_v61, 9 }
 0x185   : > { %v2125_v43 = vrot.slane %v2123_v40, 5  ;;  %v5657_v25 = vld [vmem:[#allocation2 + $0x10c] sm:$0xf0]  ;;  %v5665_v39 = vld [vmem:[#allocation2 + $0x114] sm:$0xf0] }
 0x186   : > { %v4423_v27 = vpop.f32.mrf.mxu2  ;;  %v2119_v9 = vrot.slane %v2117_v15, 5  ;;  %v1742_v30 = vsel %vm6864_vm5, %v5374_v38, %v1741_v10  ;;  %v6431_v29 = vld [vmem:[#allocation2 + $0x118] sm:$0xf0] }
 0x187   : > { %v4424_v47 = vadd.f32 %v4423_v27, %v4335_v36  ;;  %v4512_v13 = vpop.f32.mrf.mxu3  ;;  %v2114_v36 = vshrl.u32 %v5432_v23, 16  ;;  %v2129_v27 = vrot.slane %v2127_v17, 4  ;;  %v6425_v23 = vld [vmem:[#allocation2 + $0xec] sm:$0xf]  ;;  %1858 = vst [vmem:[#allocation2 + $0x17c] sm:$0xf] %v1742_v30 }
 0x188   : > { %v4337_v46 = vpop.f32.mrf.mxu1  ;;  %v5436_v30 = vld [vmem:[%s6703_s26 + $0x64] sm:$0xf] }
 0x189   : > { %v4513_v19 = vadd.f32 %v4512_v13, %v4424_v47  ;;  %v4338_v3 = vadd.f32 %v4337_v46, %v7183_v54  ;;  %v2116_v32 = vrot.slane %v2114_v36, 4  ;;  %v5434_v54 = vld [vmem:[%s6703_s26 + $0x5c] sm:$0x1]  ;;  %v5481_v47 = vld [vmem:[%s6703_s26 + $0x58] sm:$0xf]  ;;  %v2130_v40 = vor.u32 %v2129_v27, %v2125_v43 }
 0x18a   : > { %v4604_v41 = vpop.f32.mrf.mxu0  ;;  %v2133_v26 = vshll.u32 %v5434_v54, 16  ;;  %v5395_v46 = vld [vmem:[%s6703_s26 + $0x54] sm:$0xf] }
 0x18b   : > { %4652 = vmatmul.bf16.gmra.mxu1 %v5624_v56  ;;  %4741 = vmatmul.bf16.gmra.mxu2 %v5628_v14  ;;  %v7639_v35 = vadd.f32 %v4601_v33, %v4513_v19  ;;  %v2120_v2 = vor.u32 %v2119_v9, %v2116_v32  ;;  %v1743_v33 = vrot.slane %v1741_v10, 4  ;;  %v5663_v19 = vld [vmem:[#allocation2 + $0xf0] sm:$0xf]  ;;  %v5482_v32 = vld [vmem:[%s6703_s26 + $0x5c] sm:$0x1]  ;;  %v2574_v10 = vrot.slane %v5481_v47, 5 }
 0x18c   : > { %4830 = vmatmul.bf16.gmra.mxu3 %v5632_v6  ;;  %v5396_v6 = vld [vmem:[%s6703_s26 + $0x58] sm:$0xf]  ;;  %v6426_v9 = vld [vmem:[#allocation2 + $0xf4] sm:$0xf]  ;;  %v2577_v54 = vrot.slane %v5482_v32, 5  ;;  %v2131_v61 = vrot.slane %v2130_v40, 4 }
 0x18d   : > { %4919 = vmatmul.bf16.gmra.mxu0 %v5636_v50  ;;  %v2121_v12 = vrot.slane %v2120_v2, 4  ;;  %v5480_v50 = vld [vmem:[%s6703_s26 + $0x54] sm:$0xe]  ;;  %v1745_v36 = vsel %vm6864_vm5, %v1743_v33, %v1744_v58  ;;  %1923 = vst [vmem:[#allocation2 + $0x180] sm:$0xf] %v5395_v46  ;;  %v2151_v40 = vshrl.u32 %v5436_v30, 16 }
 0x18e   : > { %v4426_v31 = vpop.f32.mrf.mxu2  ;;  %1859 = vst [vmem:[#allocation2 + $0x1a0] sm:$0xf] %v1745_v36  ;;  %v5518_v17 = vrot.slane %v5480_v50, 9 }
 0x18f   : > { %v4427_v20 = vadd.f32 %v4426_v31, %v4338_v3  ;;  %v4515_v8 = vpop.f32.mrf.mxu3  ;;  %v6430_v3 = vld [vmem:[#allocation2 + $0x110] sm:$0xf0]  ;;  %v2126_v15 = vsel %vm6850_vm3, %v2121_v12, %v2125_v43  ;;  %v5671_v31 = vld [vmem:[#allocation2 + $0xf8] sm:$0xf]  ;;  %1924 = vst [vmem:[#allocation2 + $0x1a4] sm:$0xf] %v5396_v6 }
 0x190   : > { %v4339_v22 = vpop.f32.mrf.mxu1  ;;  %v2576_v43 = vrot.slane %v2574_v10, 4  ;;  %2419 = vst [vmem:[#allocation2 + $0x184] sm:$0xf] %v2126_v15  ;;  %v5664_v58 = vor.u32 %v6430_v3, %v5663_v19  ;;  %v5672_v47 = vor.u32 %v6431_v29, %v5671_v31  ;;  %v5340_v15 = vld [vmem:[%s6703_s26 + $0x58] sm:$0xf] }
 0x191   : > { %v4516_v13 = vadd.f32 %v4515_v8, %v4427_v20  ;;  %v4340_v56 = vadd.f32 %v4339_v22, %v7216_v57  ;;  %v2135_v57 = vrot.slane %v2133_v26, 5  ;;  %v2575_v20 = vsel %vm6864_vm5, %v5518_v17, %v2574_v10  ;;  %v5341_v17 = vld [vmem:[%s6703_s26 + $0x5c] sm:$0x1] }
 0x192   : > { %v4606_v14 = vpop.f32.mrf.mxu0  ;;  %v2578_v12 = vsel %vm6864_vm5, %v2576_v43, %v2577_v54  ;;  %v5668_v26 = vor.u32 %v6426_v9, %v5665_v39  ;;  %2691 = vst [vmem:[#allocation2 + $0x188] sm:$0xf] %v2575_v20  ;;  %v5339_v39 = vld [vmem:[%s6703_s26 + $0x54] sm:$0xe]  ;;  %v1751_v20 = vrot.slane %v5341_v17, 5 }
 0x193   : > { %v7657_v2 = vadd.f32 %v4604_v41, %v4516_v13  ;;  %v2136_v38 = vsel %vm6850_vm3, %v2131_v61, %v2135_v57  ;;  %v5660_v41 = vor.u32 %v6425_v23, %v5657_v25  ;;  %v5435_v13 = vld [vmem:[%s6703_s26 + $0x60] sm:$0xf]  ;;  %2692 = vst [vmem:[#allocation2 + $0x1ac] sm:$0xf] %v2578_v12  ;;  %v2147_v25 = vshll.u32 %v5436_v30, 16 }
 0x194   : > { %2420 = vst [vmem:[#allocation2 + $0x1a8] sm:$0xf] %v2136_v38  ;;  %v2141_v23 = vshll.u32 %v5435_v13, 16  ;;  %v1748_v57 = vrot.slane %v5340_v15, 5  ;;  %v5375_v61 = vrot.slane %v5339_v39, 9 }
 0x195   : > { %v2149_v10 = vrot.slane %v2147_v25, 5  ;;  %v5693_v30 = vld [vmem:[#allocation2 + $0x154] sm:$0xf0]  ;;  %v5701_v15 = vld [vmem:[#allocation2 + $0x15c] sm:$0xf0] }
 0x196   : > { %v4428_v8 = vpop.f32.mrf.mxu2  ;;  %v2143_v3 = vrot.slane %v2141_v23, 5  ;;  %v1749_v12 = vsel %vm6864_vm5, %v5375_v61, %v1748_v57  ;;  %v6440_v17 = vld [vmem:[#allocation2 + $0x160] sm:$0xf0] }
 0x197   : > { %v4429_v33 = vadd.f32 %v4428_v8, %v4340_v56  ;;  %v4517_v22 = vpop.f32.mrf.mxu3  ;;  %v2138_v56 = vshrl.u32 %v5435_v13, 16  ;;  %v2153_v8 = vrot.slane %v2151_v40, 4  ;;  %v6434_v13 = vld [vmem:[#allocation2 + $0x134] sm:$0xf]  ;;  %1860 = vst [vmem:[#allocation2 + $0x1c4] sm:$0xf] %v1749_v12 }
 0x198   : > { %v4342_v27 = vpop.f32.mrf.mxu1  ;;  %v5439_v12 = vld [vmem:[%s6703_s26 + $0x70] sm:$0xf] }
 0x199   : > { %v4518_v46 = vadd.f32 %v4517_v22, %v4429_v33  ;;  %v4343_v6 = vadd.f32 %v4342_v27, %v7237_v51  ;;  %v2140_v19 = vrot.slane %v2138_v56, 4  ;;  %v5437_v51 = vld [vmem:[%s6703_s26 + $0x68] sm:$0x1]  ;;  %v5484_v33 = vld [vmem:[%s6703_s26 + $0x64] sm:$0xf]  ;;  %v2154_v25 = vor.u32 %v2153_v8, %v2149_v10 }
 0x19a   : > { %v4609_v50 = vpop.f32.mrf.mxu0  ;;  %v2157_v38 = vshll.u32 %v5437_v51, 16  ;;  %v5397_v27 = vld [vmem:[%s6703_s26 + $0x60] sm:$0xf] }
 0x19b   : > { %4657 = vmatmul.bf16.gmra.mxu1 %v5660_v41  ;;  %4746 = vmatmul.bf16.gmra.mxu2 %v5664_v58  ;;  %v7668_v36 = vadd.f32 %v4606_v14, %v4518_v46  ;;  %v2144_v32 = vor.u32 %v2143_v3, %v2140_v19  ;;  %v1750_v14 = vrot.slane %v1748_v57, 4  ;;  %v5699_v46 = vld [vmem:[#allocation2 + $0x138] sm:$0xf]  ;;  %v5485_v19 = vld [vmem:[%s6703_s26 + $0x68] sm:$0x1]  ;;  %v2581_v57 = vrot.slane %v5484_v33, 5 }
 0x19c   : > { %4835 = vmatmul.bf16.gmra.mxu3 %v5668_v26  ;;  %v5398_v26 = vld [vmem:[%s6703_s26 + $0x64] sm:$0xf]  ;;  %v6435_v3 = vld [vmem:[#allocation2 + $0x13c] sm:$0xf]  ;;  %v2584_v51 = vrot.slane %v5485_v19, 5  ;;  %v2155_v39 = vrot.slane %v2154_v25, 4 }
 0x19d   : > { %4924 = vmatmul.bf16.gmra.mxu0 %v5672_v47  ;;  %v2145_v43 = vrot.slane %v2144_v32, 4  ;;  %v5483_v47 = vld [vmem:[%s6703_s26 + $0x60] sm:$0xe]  ;;  %v1752_v56 = vsel %vm6864_vm5, %v1750_v14, %v1751_v20  ;;  %1925 = vst [vmem:[#allocation2 + $0x1c8] sm:$0xf] %v5397_v27  ;;  %v2175_v25 = vshrl.u32 %v5439_v12, 16 }
 0x19e   : > { %v4431_v9 = vpop.f32.mrf.mxu2  ;;  %1861 = vst [vmem:[#allocation2 + $0x1e8] sm:$0xf] %v1752_v56  ;;  %v5519_v40 = vrot.slane %v5483_v47, 9 }
 0x19f   : > { %v4432_v54 = vadd.f32 %v4431_v9, %v4343_v6  ;;  %v4520_v31 = vpop.f32.mrf.mxu3  ;;  %v6439_v6 = vld [vmem:[#allocation2 + $0x158] sm:$0xf0]  ;;  %v2150_v23 = vsel %vm6850_vm3, %v2145_v43, %v2149_v10  ;;  %v5707_v9 = vld [vmem:[#allocation2 + $0x140] sm:$0xf]  ;;  %1926 = vst [vmem:[#allocation2 + $0x1ec] sm:$0xf] %v5398_v26 }
 0x1a0   : > { %v4344_v29 = vpop.f32.mrf.mxu1  ;;  %v2583_v10 = vrot.slane %v2581_v57, 4  ;;  %2421 = vst [vmem:[#allocation2 + $0x1cc] sm:$0xf] %v2150_v23  ;;  %v5700_v20 = vor.u32 %v6439_v6, %v5699_v46  ;;  %v5708_v33 = vor.u32 %v6440_v17, %v5707_v9  ;;  %v5343_v23 = vld [vmem:[%s6703_s26 + $0x64] sm:$0xf] }
 0x1a1   : > { %v4521_v22 = vadd.f32 %v4520_v31, %v4432_v54  ;;  %v4345_v41 = vadd.f32 %v4344_v29, %v7263_v11  ;;  %v2159_v11 = vrot.slane %v2157_v38, 5  ;;  %v2582_v54 = vsel %vm6864_vm5, %v5519_v40, %v2581_v57  ;;  %v5344_v40 = vld [vmem:[%s6703_s26 + $0x68] sm:$0x1] }
 0x1a2   : > { %v4611_v58 = vpop.f32.mrf.mxu0  ;;  %v2585_v43 = vsel %vm6864_vm5, %v2583_v10, %v2584_v51  ;;  %v5704_v38 = vor.u32 %v6435_v3, %v5701_v15  ;;  %2693 = vst [vmem:[#allocation2 + $0x1d0] sm:$0xf] %v2582_v54  ;;  %v5342_v15 = vld [vmem:[%s6703_s26 + $0x60] sm:$0xe]  ;;  %v1758_v54 = vrot.slane %v5344_v40, 5 }
 0x1a3   : > { %v7686_v32 = vadd.f32 %v4609_v50, %v4521_v22  ;;  %v2160_v61 = vsel %vm6850_vm3, %v2155_v39, %v2159_v11  ;;  %v5696_v50 = vor.u32 %v6434_v13, %v5693_v30  ;;  %v5438_v22 = vld [vmem:[%s6703_s26 + $0x6c] sm:$0xf]  ;;  %2694 = vst [vmem:[#allocation2 + $0x1f4] sm:$0xf] %v2585_v43  ;;  %v2171_v30 = vshll.u32 %v5439_v12, 16 }
 0x1a4   : > { %2422 = vst [vmem:[#allocation2 + $0x1f0] sm:$0xf] %v2160_v61  ;;  %v2165_v13 = vshll.u32 %v5438_v22, 16  ;;  %v1755_v11 = vrot.slane %v5343_v23, 5  ;;  %v5376_v39 = vrot.slane %v5342_v15, 9 }
 0x1a5   : > { %v2173_v57 = vrot.slane %v2171_v30, 5  ;;  %v5729_v12 = vld [vmem:[#allocation2 + $0x19c] sm:$0xf0]  ;;  %v5737_v23 = vld [vmem:[#allocation2 + $0x1a4] sm:$0xf0] }
 0x1a6   : > { %v4433_v31 = vpop.f32.mrf.mxu2  ;;  %v2167_v6 = vrot.slane %v2165_v13, 5  ;;  %v1756_v43 = vsel %vm6864_vm5, %v5376_v39, %v1755_v11  ;;  %v6449_v40 = vld [vmem:[#allocation2 + $0x1a8] sm:$0xf0] }
 0x1a7   : > { %v4434_v14 = vadd.f32 %v4433_v31, %v4345_v41  ;;  %v4522_v29 = vpop.f32.mrf.mxu3  ;;  %v2162_v41 = vshrl.u32 %v5438_v22, 16  ;;  %v2177_v31 = vrot.slane %v2175_v25, 4  ;;  %v6443_v22 = vld [vmem:[#allocation2 + $0x17c] sm:$0xf]  ;;  %1862 = vst [vmem:[#allocation2 + $0x20c] sm:$0xf] %v1756_v43 }
 0x1a8   : > { %v4347_v8 = vpop.f32.mrf.mxu1  ;;  %v5442_v43 = vld [vmem:[%s6703_s26 + $0x7c] sm:$0xf] }
 0x1a9   : > { %v4523_v27 = vadd.f32 %v4522_v29, %v4434_v14  ;;  %v4348_v26 = vadd.f32 %v4347_v8, %v7087_v1  ;;  %v2164_v46 = vrot.slane %v2162_v41, 4  ;;  %v5440_v1 = vld [vmem:[%s6703_s26 + $0x74] sm:$0x1]  ;;  %v5487_v14 = vld [vmem:[%s6703_s26 + $0x70] sm:$0xf]  ;;  %v2178_v30 = vor.u32 %v2177_v31, %v2173_v57 }
 0x1aa   : > { %v4614_v47 = vpop.f32.mrf.mxu0  ;;  %v2181_v61 = vshll.u32 %v5440_v1, 16  ;;  %v5399_v8 = vld [vmem:[%s6703_s26 + $0x6c] sm:$0xf] }
 0x1ab   : > { %4662 = vmatmul.bf16.gmra.mxu1 %v5696_v50  ;;  %4751 = vmatmul.bf16.gmra.mxu2 %v5700_v20  ;;  %v7697_v56 = vadd.f32 %v4611_v58, %v4523_v27  ;;  %v2168_v19 = vor.u32 %v2167_v6, %v2164_v46  ;;  %v1757_v58 = vrot.slane %v1755_v11, 4  ;;  %v5735_v27 = vld [vmem:[#allocation2 + $0x180] sm:$0xf]  ;;  %v5488_v46 = vld [vmem:[%s6703_s26 + $0x74] sm:$0x1]  ;;  %v2588_v11 = vrot.slane %v5487_v14, 5 }
 0x1ac   : > { %4840 = vmatmul.bf16.gmra.mxu3 %v5704_v38  ;;  %v5400_v38 = vld [vmem:[%s6703_s26 + $0x70] sm:$0xf]  ;;  %v6444_v6 = vld [vmem:[#allocation2 + $0x184] sm:$0xf]  ;;  %v2591_v1 = vrot.slane %v5488_v46, 5  ;;  %v2179_v15 = vrot.slane %v2178_v30, 4 }
 0x1ad   : > { %4929 = vmatmul.bf16.gmra.mxu0 %v5708_v33  ;;  %v2169_v10 = vrot.slane %v2168_v19, 4  ;;  %v5486_v33 = vld [vmem:[%s6703_s26 + $0x6c] sm:$0xe]  ;;  %v1759_v41 = vsel %vm6864_vm5, %v1757_v58, %v1758_v54  ;;  %1927 = vst [vmem:[#allocation2 + $0x210] sm:$0xf] %v5399_v8  ;;  %v2199_v30 = vshrl.u32 %v5442_v43, 16 }
 0x1ae   : > { %v4436_v3 = vpop.f32.mrf.mxu2  ;;  %1863 = vst [vmem:[#allocation2 + $0x230] sm:$0xf] %v1759_v41  ;;  %v5520_v25 = vrot.slane %v5486_v33, 9 }
 0x1af   : > { %v4437_v51 = vadd.f32 %v4436_v3, %v4348_v26  ;;  %v4525_v9 = vpop.f32.mrf.mxu3  ;;  %v6448_v26 = vld [vmem:[#allocation2 + $0x1a0] sm:$0xf0]  ;;  %v2174_v13 = vsel %vm6850_vm3, %v2169_v10, %v2173_v57  ;;  %v5743_v3 = vld [vmem:[#allocation2 + $0x188] sm:$0xf]  ;;  %1928 = vst [vmem:[#allocation2 + $0x234] sm:$0xf] %v5400_v38 }
 0x1b0   : > { %v4349_v17 = vpop.f32.mrf.mxu1  ;;  %v2590_v57 = vrot.slane %v2588_v11, 4  ;;  %2423 = vst [vmem:[#allocation2 + $0x214] sm:$0xf] %v2174_v13  ;;  %v5736_v54 = vor.u32 %v6448_v26, %v5735_v27  ;;  %v5744_v14 = vor.u32 %v6449_v40, %v5743_v3  ;;  %v5346_v13 = vld [vmem:[%s6703_s26 + $0x70] sm:$0xf] }
 0x1b1   : > { %v4526_v29 = vadd.f32 %v4525_v9, %v4437_v51  ;;  %v4350_v50 = vadd.f32 %v4349_v17, %v7117_v49  ;;  %v2183_v49 = vrot.slane %v2181_v61, 5  ;;  %v2589_v51 = vsel %vm6864_vm5, %v5520_v25, %v2588_v11  ;;  %v5347_v25 = vld [vmem:[%s6703_s26 + $0x74] sm:$0x1] }
 0x1b2   : > { %v4616_v20 = vpop.f32.mrf.mxu0  ;;  %v2592_v10 = vsel %vm6864_vm5, %v2590_v57, %v2591_v1  ;;  %v5740_v61 = vor.u32 %v6444_v6, %v5737_v23  ;;  %2695 = vst [vmem:[#allocation2 + $0x218] sm:$0xf] %v2589_v51  ;;  %v5345_v23 = vld [vmem:[%s6703_s26 + $0x6c] sm:$0xe]  ;;  %v1765_v51 = vrot.slane %v5347_v25, 5 }
 0x1b3   : > { %v7715_v19 = vadd.f32 %v4614_v47, %v4526_v29  ;;  %v2184_v39 = vsel %vm6850_vm3, %v2179_v15, %v2183_v49  ;;  %v5732_v47 = vor.u32 %v6443_v22, %v5729_v12  ;;  %v5441_v29 = vld [vmem:[%s6703_s26 + $0x78] sm:$0xf]  ;;  %2696 = vst [vmem:[#allocation2 + $0x23c] sm:$0xf] %v2592_v10  ;;  %v2195_v12 = vshll.u32 %v5442_v43, 16 }
 0x1b4   : > { %2424 = vst [vmem:[#allocation2 + $0x238] sm:$0xf] %v2184_v39  ;;  %v2189_v22 = vshll.u32 %v5441_v29, 16  ;;  %v1762_v49 = vrot.slane %v5346_v13, 5  ;;  %v5377_v15 = vrot.slane %v5345_v23, 9 }
 0x1b5   : > { %v2197_v11 = vrot.slane %v2195_v12, 5  ;;  %v5765_v43 = vld [vmem:[#allocation2 + $0x1e4] sm:$0xf0]  ;;  %v5773_v13 = vld [vmem:[#allocation2 + $0x1ec] sm:$0xf0] }
 0x1b6   : > { %v4438_v9 = vpop.f32.mrf.mxu2  ;;  %v2191_v26 = vrot.slane %v2189_v22, 5  ;;  %v1763_v10 = vsel %vm6864_vm5, %v5377_v15, %v1762_v49  ;;  %v6458_v25 = vld [vmem:[#allocation2 + $0x1f0] sm:$0xf0] }
 0x1b7   : > { %v4439_v58 = vadd.f32 %v4438_v9, %v4350_v50  ;;  %v4527_v17 = vpop.f32.mrf.mxu3  ;;  %v2186_v50 = vshrl.u32 %v5441_v29, 16  ;;  %v2201_v9 = vrot.slane %v2199_v30, 4  ;;  %v6452_v29 = vld [vmem:[#allocation2 + $0x1c4] sm:$0xf]  ;;  %1864 = vst [vmem:[#allocation2 + $0x254] sm:$0xf] %v1763_v10 }
 0x1b8   : > { %v4352_v31 = vpop.f32.mrf.mxu1  ;;  %v5445_v10 = vld [vmem:[%s6703_s26 + $0x88] sm:$0xf] }
 0x1b9   : > { %v4528_v8 = vadd.f32 %v4527_v17, %v4439_v58  ;;  %v4353_v38 = vadd.f32 %v4352_v31, %v7137_v24  ;;  %v2188_v27 = vrot.slane %v2186_v50, 4  ;;  %v5443_v24 = vld [vmem:[%s6703_s26 + $0x80] sm:$0x1]  ;;  %v5490_v58 = vld [vmem:[%s6703_s26 + $0x7c] sm:$0xf]  ;;  %v2202_v12 = vor.u32 %v2201_v9, %v2197_v11 }
 0x1ba   : > { %v4619_v33 = vpop.f32.mrf.mxu0  ;;  %v2205_v39 = vshll.u32 %v5443_v24, 16  ;;  %v5401_v31 = vld [vmem:[%s6703_s26 + $0x78] sm:$0xf] }
 0x1bb   : > { %4667 = vmatmul.bf16.gmra.mxu1 %v5732_v47  ;;  %4756 = vmatmul.bf16.gmra.mxu2 %v5736_v54  ;;  %v7726_v41 = vadd.f32 %v4616_v20, %v4528_v8  ;;  %v2192_v46 = vor.u32 %v2191_v26, %v2188_v27  ;;  %v1764_v20 = vrot.slane %v1762_v49, 4  ;;  %v5771_v8 = vld [vmem:[#allocation2 + $0x1c8] sm:$0xf]  ;;  %v5491_v27 = vld [vmem:[%s6703_s26 + $0x80] sm:$0x1]  ;;  %v2595_v49 = vrot.slane %v5490_v58, 5 }
 0x1bc   : > { %4845 = vmatmul.bf16.gmra.mxu3 %v5740_v61  ;;  %v5402_v61 = vld [vmem:[%s6703_s26 + $0x7c] sm:$0xf]  ;;  %v6453_v26 = vld [vmem:[#allocation2 + $0x1cc] sm:$0xf]  ;;  %v2598_v24 = vrot.slane %v5491_v27, 5  ;;  %v2203_v23 = vrot.slane %v2202_v12, 4 }
 0x1bd   : > { %4934 = vmatmul.bf16.gmra.mxu0 %v5744_v14  ;;  %v2193_v57 = vrot.slane %v2192_v46, 4  ;;  %v5489_v14 = vld [vmem:[%s6703_s26 + $0x78] sm:$0xe]  ;;  %v1766_v50 = vsel %vm6864_vm5, %v1764_v20, %v1765_v51  ;;  %1929 = vst [vmem:[#allocation2 + $0x258] sm:$0xf] %v5401_v31  ;;  %v2223_v12 = vshrl.u32 %v5445_v10, 16 }
 0x1be   : > { %v4441_v6 = vpop.f32.mrf.mxu2  ;;  %1865 = vst [vmem:[#allocation2 + $0x278] sm:$0xf] %v1766_v50  ;;  %v5521_v30 = vrot.slane %v5489_v14, 9 }
 0x1bf   : > { %v4442_v1 = vadd.f32 %v4441_v6, %v4353_v38  ;;  %v4530_v3 = vpop.f32.mrf.mxu3  ;;  %v6457_v38 = vld [vmem:[#allocation2 + $0x1e8] sm:$0xf0]  ;;  %v2198_v22 = vsel %vm6850_vm3, %v2193_v57, %v2197_v11  ;;  %v5779_v6 = vld [vmem:[#allocation2 + $0x1d0] sm:$0xf]  ;;  %1930 = vst [vmem:[#allocation2 + $0x27c] sm:$0xf] %v5402_v61 }
 0x1c0   : > { %v4354_v40 = vpop.f32.mrf.mxu1  ;;  %v2597_v11 = vrot.slane %v2595_v49, 4  ;;  %2425 = vst [vmem:[#allocation2 + $0x25c] sm:$0xf] %v2198_v22  ;;  %v5772_v51 = vor.u32 %v6457_v38, %v5771_v8  ;;  %v5780_v58 = vor.u32 %v6458_v25, %v5779_v6  ;;  %v5349_v22 = vld [vmem:[%s6703_s26 + $0x7c] sm:$0xf] }
 0x1c1   : > { %v4531_v17 = vadd.f32 %v4530_v3, %v4442_v1  ;;  %v4355_v47 = vadd.f32 %v4354_v40, %v7162_v16  ;;  %v2207_v16 = vrot.slane %v2205_v39, 5  ;;  %v2596_v1 = vsel %vm6864_vm5, %v5521_v30, %v2595_v49  ;;  %v5350_v30 = vld [vmem:[%s6703_s26 + $0x80] sm:$0x1] }
 0x1c2   : > { %v4621_v54 = vpop.f32.mrf.mxu0  ;;  %v2599_v57 = vsel %vm6864_vm5, %v2597_v11, %v2598_v24  ;;  %v5776_v39 = vor.u32 %v6453_v26, %v5773_v13  ;;  %2697 = vst [vmem:[#allocation2 + $0x260] sm:$0xf] %v2596_v1  ;;  %v5348_v13 = vld [vmem:[%s6703_s26 + $0x78] sm:$0xe]  ;;  %v1772_v1 = vrot.slane %v5350_v30, 5 }
 0x1c3   : > { %v7744_v46 = vadd.f32 %v4619_v33, %v4531_v17  ;;  %v2208_v15 = vsel %vm6850_vm3, %v2203_v23, %v2207_v16  ;;  %v5768_v33 = vor.u32 %v6452_v29, %v5765_v43  ;;  %v5444_v17 = vld [vmem:[%s6703_s26 + $0x84] sm:$0xf]  ;;  %2698 = vst [vmem:[#allocation2 + $0x284] sm:$0xf] %v2599_v57  ;;  %v2219_v43 = vshll.u32 %v5445_v10, 16 }
 0x1c4   : > { %2426 = vst [vmem:[#allocation2 + $0x280] sm:$0xf] %v2208_v15  ;;  %v2213_v29 = vshll.u32 %v5444_v17, 16  ;;  %v1769_v16 = vrot.slane %v5349_v22, 5  ;;  %v5378_v23 = vrot.slane %v5348_v13, 9 }
 0x1c5   : > { %v2221_v49 = vrot.slane %v2219_v43, 5  ;;  %v6461_v10 = vld [vmem:[#allocation2 + $0x20c] sm:$0xf]  ;;  %v5815_v30 = vld [vmem:[#allocation2 + $0x218] sm:$0xf] }
 0x1c6   : > { %v4443_v3 = vpop.f32.mrf.mxu2  ;;  %v2215_v38 = vrot.slane %v2213_v29, 5  ;;  %v5494_v22 = vld [vmem:[%s6703_s26 + $0x8c] sm:$0x1] }
 0x1c7   : > { %v4444_v20 = vadd.f32 %v4443_v3, %v4355_v47  ;;  %v4532_v40 = vpop.f32.mrf.mxu3  ;;  %v2210_v47 = vshrl.u32 %v5444_v17, 16  ;;  %v2225_v3 = vrot.slane %v2223_v12, 4  ;;  %v5492_v17 = vld [vmem:[%s6703_s26 + $0x84] sm:$0xe]  ;;  %v6462_v12 = vld [vmem:[#allocation2 + $0x214] sm:$0xf] }
 0x1c8   : > { %v4357_v9 = vpop.f32.mrf.mxu1 }
 0x1c9   : > { %v4533_v31 = vadd.f32 %v4532_v40, %v4444_v20  ;;  %v4358_v61 = vadd.f32 %v4357_v9, %v7188_v63  ;;  %v2212_v8 = vrot.slane %v2210_v47, 4  ;;  %v5446_v63 = vld [vmem:[%s6703_s26 + $0x8c] sm:$0x1]  ;;  %v5493_v20 = vld [vmem:[%s6703_s26 + $0x88] sm:$0xf]  ;;  %v1770_v9 = vsel %vm6864_vm5, %v5378_v23, %v1769_v16 }
 0x1ca   : > { %v4624_v14 = vpop.f32.mrf.mxu0  ;;  %v2229_v15 = vshll.u32 %v5446_v63, 16  ;;  %v6466_v47 = vld [vmem:[#allocation2 + $0x230] sm:$0xf0]  ;;  %1866 = vst [vmem:[#allocation2 + $0x29c] sm:$0xf] %v1770_v9 }
 0x1cb   : > { %4672 = vmatmul.bf16.gmra.mxu1 %v5768_v33  ;;  %4761 = vmatmul.bf16.gmra.mxu2 %v5772_v51  ;;  %v7755_v50 = vadd.f32 %v4621_v54, %v4533_v31  ;;  %v2216_v27 = vor.u32 %v2215_v38, %v2212_v8  ;;  %v1771_v54 = vrot.slane %v1769_v16, 4  ;;  %v8018_v33 = vld [vmem:[#allocation3_spill] sm:$0xff]  ;;  %v5801_v31 = vld [vmem:[#allocation2 + $0x22c] sm:$0xf0]  ;;  %v2226_v8 = vor.u32 %v2225_v3, %v2221_v49  ;;  %v5809_v63 = vld [vmem:[#allocation2 + $0x234] sm:$0xf0] }
 0x1cc   : > { %4850 = vmatmul.bf16.gmra.mxu3 %v5776_v39  ;;  %v5403_v39 = vld [vmem:[%s6703_s26 + $0x84] sm:$0xf]  ;;  %v2231_v38 = vrot.slane %v2229_v15, 5  ;;  %v5522_v16 = vrot.slane %v5492_v17, 9  ;;  %v5447_v9 = vld [vmem:[%s6703_s26 + $0x90] sm:$0xf] }
 0x1cd   : > { %4939 = vmatmul.bf16.gmra.mxu0 %v5780_v58  ;;  %v2217_v11 = vrot.slane %v2216_v27, 4  ;;  %v5404_v58 = vld [vmem:[%s6703_s26 + $0x88] sm:$0xf]  ;;  %v1773_v29 = vsel %vm6864_vm5, %v1771_v54, %v1772_v1  ;;  %v2602_v27 = vrot.slane %v5493_v20, 5  ;;  %1931 = vst [vmem:[#allocation2 + $0x2a0] sm:$0xf] %v5403_v39 }
 0x1ce   : > { %v4446_v26 = vpop.f32.mrf.mxu2  ;;  %1867 = vst [vmem:[#allocation2 + $0x2c0] sm:$0xf] %v1773_v29  ;;  %v5448_v39 = vld [vmem:[%s6703_s26 + $0x94] sm:$0xf]  ;;  %v8019_v17 = vld [vmem:[#allocation4_spill] sm:$0xff] }
 0x1cf   : > { %v4447_v24 = vadd.f32 %v4446_v26, %v4358_v61  ;;  %v4535_v6 = vpop.f32.mrf.mxu3  ;;  %v5807_v61 = vld [vmem:[#allocation2 + $0x210] sm:$0xf]  ;;  %v2222_v43 = vsel %vm6850_vm3, %v2217_v11, %v2221_v49  ;;  %v2605_v26 = vrot.slane %v5494_v22, 5  ;;  %1932 = vst [vmem:[#allocation2 + $0x2c4] sm:$0xf] %v5404_v58  ;;  %v2603_v23 = vsel %vm6864_vm5, %v5522_v16, %v2602_v27 }
 0x1d0   : > { %v4359_v25 = vpop.f32.mrf.mxu1  ;;  %v2604_v49 = vrot.slane %v2602_v27, 4  ;;  %2427 = vst [vmem:[#allocation2 + $0x2a4] sm:$0xf] %v2222_v43  ;;  %v5808_v3 = vor.u32 %v6466_v47, %v5807_v61  ;;  %v2247_v22 = vshrl.u32 %v5448_v39, 16 }
 0x1d1   : > { %v4536_v40 = vadd.f32 %v4535_v6, %v4447_v24  ;;  %v4360_v51 = vadd.f32 %v4359_v25, %v8018_v33  ;;  %v2227_v24 = vrot.slane %v2226_v8, 4  ;;  %v6467_v6 = vld [vmem:[#allocation2 + $0x238] sm:$0xf0]  ;;  %2699 = vst [vmem:[#allocation2 + $0x2a8] sm:$0xf] %v2603_v23 }
 0x1d2   : > { %v4626_v57 = vpop.f32.mrf.mxu0  ;;  %v2606_v15 = vsel %vm6864_vm5, %v2604_v49, %v2605_v26  ;;  %v5816_v33 = vor.u32 %v6467_v6, %v5815_v30  ;;  %v5351_v26 = vld [vmem:[%s6703_s26 + $0x84] sm:$0xe]  ;;  %v5353_v30 = vld [vmem:[%s6703_s26 + $0x8c] sm:$0x1] }
 0x1d3   : > { %v7773_v13 = vadd.f32 %v4624_v14, %v4536_v40  ;;  %v2232_v25 = vsel %vm6850_vm3, %v2227_v24, %v2231_v38  ;;  %v5804_v14 = vor.u32 %v6461_v10, %v5801_v31  ;;  %v5812_v40 = vor.u32 %v6462_v12, %v5809_v63  ;;  %2700 = vst [vmem:[#allocation2 + $0x2cc] sm:$0xf] %v2606_v15  ;;  %v5352_v38 = vld [vmem:[%s6703_s26 + $0x88] sm:$0xf]  ;;  %v5449_v63 = vld [vmem:[%s6703_s26 + $0x98] sm:$0x1] }
 0x1d4   : > { %2428 = vst [vmem:[#allocation2 + $0x2c8] sm:$0xf] %v2232_v25  ;;  %v2237_v10 = vshll.u32 %v5447_v9, 16  ;;  %v2243_v31 = vshll.u32 %v5448_v39, 16  ;;  %v1776_v12 = vrot.slane %v5352_v38, 5  ;;  %v5379_v49 = vrot.slane %v5351_v26, 9 }
 0x1d5   : > { %v1779_v25 = vrot.slane %v5353_v30, 5  ;;  %v5405_v39 = vld [vmem:[%s6703_s26 + $0x90] sm:$0xf] }
 0x1d6   : > { %v4448_v54 = vpop.f32.mrf.mxu2  ;;  %v2239_v47 = vrot.slane %v2237_v10, 5  ;;  %v2245_v24 = vrot.slane %v2243_v31, 5  ;;  %v5843_v10 = vld [vmem:[#allocation2 + $0x258] sm:$0xf]  ;;  %v6475_v31 = vld [vmem:[#allocation2 + $0x278] sm:$0xf0] }
 0x1d7   : > { %v4449_v1 = vadd.f32 %v4448_v54, %v4360_v51  ;;  %v4537_v11 = vpop.f32.mrf.mxu3  ;;  %v2234_v51 = vshrl.u32 %v5447_v9, 16  ;;  %v1777_v9 = vsel %vm6864_vm5, %v5379_v49, %v1776_v12  ;;  %1933 = vst [vmem:[#allocation2 + $0x2e8] sm:$0xf] %v5405_v39 }
 0x1d8   : > { %v4362_v20 = vpop.f32.mrf.mxu1  ;;  %1868 = vst [vmem:[#allocation2 + $0x2e4] sm:$0xf] %v1777_v9 }
 0x1d9   : > { %v4538_v58 = vadd.f32 %v4537_v11, %v4449_v1  ;;  %v4363_v29 = vadd.f32 %v4362_v20, %v8019_v17  ;;  %v2236_v61 = vrot.slane %v2234_v51, 4  ;;  %v2249_v11 = vrot.slane %v2247_v22, 4  ;;  %v8020_v20 = vld [vmem:[#allocation5_spill] sm:$0xff]  ;;  %v5837_v51 = vld [vmem:[#allocation2 + $0x274] sm:$0xf0] }
 0x1da   : > { %v4629_v43 = vpop.f32.mrf.mxu0  ;;  %v5495_v17 = vld [vmem:[%s6703_s26 + $0x90] sm:$0xe] }
 0x1db   : > { %4677 = vmatmul.bf16.gmra.mxu1 %v5804_v14  ;;  %4766 = vmatmul.bf16.gmra.mxu2 %v5808_v3  ;;  %v7784_v8 = vadd.f32 %v4626_v57, %v4538_v58  ;;  %v2240_v16 = vor.u32 %v2239_v47, %v2236_v61  ;;  %v1778_v57 = vrot.slane %v1776_v12, 4  ;;  %v2253_v14 = vshll.u32 %v5449_v63, 16  ;;  %v5496_v3 = vld [vmem:[%s6703_s26 + $0x94] sm:$0xf]  ;;  %v5497_v63 = vld [vmem:[%s6703_s26 + $0x98] sm:$0x1] }
 0x1dc   : > { %4855 = vmatmul.bf16.gmra.mxu3 %v5812_v40  ;;  %v5406_v58 = vld [vmem:[%s6703_s26 + $0x94] sm:$0xf]  ;;  %v2250_v38 = vor.u32 %v2249_v11, %v2245_v24  ;;  %v5523_v12 = vrot.slane %v5495_v17, 9  ;;  %v2609_v26 = vrot.slane %v5496_v3, 5  ;;  %v2612_v30 = vrot.slane %v5497_v63, 5 }
 0x1dd   : > { %4944 = vmatmul.bf16.gmra.mxu0 %v5816_v33  ;;  %v2241_v1 = vrot.slane %v2240_v16, 4  ;;  %v1780_v61 = vsel %vm6864_vm5, %v1778_v57, %v1779_v25  ;;  %v2255_v22 = vrot.slane %v2253_v14, 5  ;;  %v6471_v16 = vld [vmem:[#allocation2 + $0x25c] sm:$0xf]  ;;  %1934 = vst [vmem:[#allocation2 + $0x30c] sm:$0xf] %v5406_v58  ;;  %v5844_v3 = vor.u32 %v6475_v31, %v5843_v10 }
 0x1de   : > { %v4451_v27 = vpop.f32.mrf.mxu2  ;;  %1869 = vst [vmem:[#allocation2 + $0x308] sm:$0xf] %v1780_v61  ;;  %v2251_v49 = vrot.slane %v2250_v38, 4  ;;  %v2610_v57 = vsel %vm6864_vm5, %v5523_v12, %v2609_v26  ;;  %v5450_v58 = vld [vmem:[%s6703_s26 + $0x9c] sm:$0xf] }
 0x1df   : > { %v4452_v6 = vadd.f32 %v4451_v27, %v4363_v29  ;;  %v4540_v23 = vpop.f32.mrf.mxu3  ;;  %v6470_v29 = vld [vmem:[#allocation2 + $0x254] sm:$0xf]  ;;  %v2246_v47 = vsel %vm6850_vm3, %v2241_v1, %v2245_v24  ;;  %v5845_v27 = vld [vmem:[#allocation2 + $0x27c] sm:$0xf0]  ;;  %v2611_v24 = vrot.slane %v2609_v26, 4 }
 0x1e0   : > { %v4364_v54 = vpop.f32.mrf.mxu1  ;;  %v2256_v1 = vsel %vm6850_vm3, %v2251_v49, %v2255_v22  ;;  %2429 = vst [vmem:[#allocation2 + $0x2ec] sm:$0xf] %v2246_v47  ;;  %v5848_v9 = vor.u32 %v6471_v16, %v5845_v27  ;;  %v5451_v17 = vld [vmem:[%s6703_s26 + $0xa0] sm:$0xf]  ;;  %v2258_v47 = vshrl.u32 %v5450_v58, 16  ;;  %v8021_v16 = vld [vmem:[#allocation6_spill] sm:$0xff] }
 0x1e1   : > { %v4541_v15 = vadd.f32 %v4540_v23, %v4452_v6  ;;  %v4365_v40 = vadd.f32 %v4364_v54, %v8020_v20  ;;  %v5851_v23 = vld [vmem:[#allocation2 + $0x260] sm:$0xf]  ;;  %v6476_v54 = vld [vmem:[#allocation2 + $0x280] sm:$0xf0]  ;;  %2430 = vst [vmem:[#allocation2 + $0x310] sm:$0xf] %v2256_v1 }
 0x1e2   : > { %v4631_v33 = vpop.f32.mrf.mxu0  ;;  %v5852_v39 = vor.u32 %v6476_v54, %v5851_v23  ;;  %2701 = vst [vmem:[#allocation2 + $0x2f0] sm:$0xf] %v2610_v57  ;;  %v5355_v22 = vld [vmem:[%s6703_s26 + $0x94] sm:$0xf]  ;;  %v2271_v63 = vshrl.u32 %v5451_v17, 16 }
 0x1e3   : > { %v7802_v6 = vadd.f32 %v4629_v43, %v4541_v15  ;;  %v5840_v43 = vor.u32 %v6470_v29, %v5837_v51  ;;  %v2613_v15 = vsel %vm6864_vm5, %v2611_v24, %v2612_v30  ;;  %v2267_v29 = vshll.u32 %v5451_v17, 16  ;;  %v5452_v26 = vld [vmem:[%s6703_s26 + $0xa4] sm:$0x1]  ;;  %v5354_v49 = vld [vmem:[%s6703_s26 + $0x90] sm:$0xe] }
 0x1e4   : > { %2702 = vst [vmem:[#allocation2 + $0x314] sm:$0xf] %v2613_v15  ;;  %v2260_v51 = vrot.slane %v2258_v47, 4  ;;  %v1783_v12 = vrot.slane %v5355_v22, 5  ;;  %v5356_v54 = vld [vmem:[%s6703_s26 + $0x98] sm:$0x1] }
 0x1e5   : > { %v2269_v57 = vrot.slane %v2267_v29, 5  ;;  %v2277_v15 = vshll.u32 %v5452_v26, 16  ;;  %v5407_v17 = vld [vmem:[%s6703_s26 + $0x9c] sm:$0xf]  ;;  %v5873_v29 = vld [vmem:[#allocation2 + $0x2bc] sm:$0xf0] }
 0x1e6   : > { %v4453_v25 = vpop.f32.mrf.mxu2  ;;  %v1785_v1 = vrot.slane %v1783_v12, 4  ;;  %v5498_v47 = vld [vmem:[%s6703_s26 + $0x9c] sm:$0xe]  ;;  %v6480_v26 = vld [vmem:[#allocation2 + $0x2a4] sm:$0xf] }
 0x1e7   : > { %v4454_v11 = vadd.f32 %v4453_v25, %v4365_v40  ;;  %v4542_v14 = vpop.f32.mrf.mxu3  ;;  %v2261_v40 = vshll.u32 %v5450_v58, 16  ;;  %v5380_v25 = vrot.slane %v5354_v49, 9  ;;  %1935 = vst [vmem:[#allocation2 + $0x330] sm:$0xf] %v5407_v17 }
 0x1e8   : > { %v4643_v20 = vpop.f32.mrf.mxu1 }
 0x1e9   : > { %v4543_v61 = vadd.f32 %v4542_v14, %v4454_v11  ;;  %v2263_v10 = vrot.slane %v2261_v40, 5  ;;  %v4644_v27 = vadd.f32 %v4643_v20, %v8021_v16  ;;  %v1786_v14 = vrot.slane %v5356_v54, 5  ;;  %v5499_v20 = vld [vmem:[%s6703_s26 + $0xa0] sm:$0xf]  ;;  %v6479_v40 = vld [vmem:[#allocation2 + $0x29c] sm:$0xf] }
 0x1ea   : > { %v4910_v38 = vpop.f32.mrf.mxu0  ;;  %v1784_v58 = vsel %vm6864_vm5, %v5380_v25, %v1783_v12  ;;  %v2279_v16 = vrot.slane %v2277_v15, 5  ;;  %v5881_v54 = vld [vmem:[#allocation2 + $0x2c4] sm:$0xf0] }
 0x1eb   : > { %4682 = vmatmul.bf16.gmra.mxu1 %v5840_v43  ;;  %4771 = vmatmul.bf16.gmra.mxu2 %v5844_v3  ;;  %v7812_v31 = vadd.f32 %v4631_v33, %v4543_v61  ;;  %v2264_v30 = vor.u32 %v2263_v10, %v2260_v51  ;;  %v2273_v3 = vrot.slane %v2271_v63, 4  ;;  %v5408_v61 = vld [vmem:[%s6703_s26 + $0xa0] sm:$0xf]  ;;  %v6484_v10 = vld [vmem:[#allocation2 + $0x2c0] sm:$0xf0]  ;;  %v1787_v22 = vsel %vm6864_vm5, %v1785_v1, %v1786_v14 }
 0x1ec   : > { %4860 = vmatmul.bf16.gmra.mxu3 %v5848_v9  ;;  %v5879_v51 = vld [vmem:[#allocation2 + $0x2a0] sm:$0xf]  ;;  %1870 = vst [vmem:[#allocation2 + $0x32c] sm:$0xf] %v1784_v58  ;;  %v5887_v1 = vld [vmem:[#allocation2 + $0x2a8] sm:$0xf]  ;;  %v5884_v17 = vor.u32 %v6480_v26, %v5881_v54 }
 0x1ed   : > { %4949 = vmatmul.bf16.gmra.mxu0 %v5852_v39  ;;  %v2265_v43 = vrot.slane %v2264_v30, 4  ;;  %v2274_v63 = vor.u32 %v2273_v3, %v2269_v57  ;;  %1871 = vst [vmem:[#allocation2 + $0x350] sm:$0xf] %v1787_v22  ;;  %v5524_v30 = vrot.slane %v5498_v47, 9  ;;  %v6485_v14 = vld [vmem:[#allocation2 + $0x2c8] sm:$0xf0] }
 0x1ee   : > { %v4732_v23 = vpop.f32.mrf.mxu2  ;;  %1936 = vst [vmem:[#allocation2 + $0x354] sm:$0xf] %v5408_v61  ;;  %v5888_v47 = vor.u32 %v6485_v14, %v5887_v1  ;;  %v5453_v22 = vld [vmem:[%s6703_s26 + $0xa8] sm:$0xf]  ;;  %v5454_v61 = vld [vmem:[%s6703_s26 + $0xac] sm:$0xf] }
 0x1ef   : > { %v4733_v24 = vadd.f32 %v4732_v23, %v4644_v27  ;;  %v4821_v33 = vpop.f32.mrf.mxu3  ;;  %v5500_v27 = vld [vmem:[%s6703_s26 + $0xa4] sm:$0x1]  ;;  %v2616_v23 = vrot.slane %v5499_v20, 5 }
 0x1f0   : > { %v4645_v11 = vpop.f32.mrf.mxu1  ;;  %v2619_v49 = vrot.slane %v5500_v27, 5 }
 0x1f1   : > { %v4822_v9 = vadd.f32 %v4821_v33, %v4733_v24  ;;  %v2270_v24 = vsel %vm6850_vm3, %v2265_v43, %v2269_v57  ;;  %v2275_v33 = vrot.slane %v2274_v63, 4  ;;  %v4646_v25 = vadd.f32 %v4645_v11, %v7321_v37 }
 0x1f2   : > { %v4912_v39 = vpop.f32.mrf.mxu0  ;;  %v2618_v3 = vrot.slane %v2616_v23, 4  ;;  %v2617_v20 = vsel %vm6864_vm5, %v5524_v30, %v2616_v23  ;;  %v5876_v57 = vor.u32 %v6479_v40, %v5873_v29  ;;  %v5880_v43 = vor.u32 %v6484_v10, %v5879_v51  ;;  %2431 = vst [vmem:[#allocation2 + $0x334] sm:$0xf] %v2270_v24  ;;  %v5358_v24 = vld [vmem:[%s6703_s26 + $0xa0] sm:$0xf] }
 0x1f3   : > { %v4911_v12 = vadd.f32 %v4910_v38, %v4822_v9  ;;  %v2280_v15 = vsel %vm6850_vm3, %v2275_v33, %v2279_v16  ;;  %2703 = vst [vmem:[#allocation2 + $0x338] sm:$0xf] %v2617_v20  ;;  %v2282_v16 = vshrl.u32 %v5453_v22, 16  ;;  %v2285_v30 = vshll.u32 %v5453_v22, 16  ;;  %v5359_v20 = vld [vmem:[%s6703_s26 + $0xa4] sm:$0x1] }
 0x1f4   : > { %v2620_v37 = vsel %vm6864_vm5, %v2618_v3, %v2619_v49  ;;  %2432 = vst [vmem:[#allocation2 + $0x358] sm:$0xf] %v2280_v15  ;;  %v2291_v40 = vshll.u32 %v5454_v61, 16  ;;  %v2295_v29 = vshrl.u32 %v5454_v61, 16  ;;  %v8022_v49 = vld [vmem:[#allocation7_spill] sm:$0xff]  ;;  %v1793_v22 = vrot.slane %v5359_v20, 5 }
 0x1f5   : > { %4990 = vst [vmem:[%s7829_s8] sm:$0xff] %v4911_v12  ;;  %v2284_v10 = vrot.slane %v2282_v16, 4  ;;  %v2287_v26 = vrot.slane %v2285_v30, 5  ;;  %v5060_v23 = vmul.f32 %v4911_v12, %v4911_v12  ;;  %v5357_v15 = vld [vmem:[%s6703_s26 + $0x9c] sm:$0xe]  ;;  %v5502_v61 = vld [vmem:[%s6703_s26 + $0xac] sm:$0xf] }
 0x1f6   : > { %v4734_v38 = vpop.f32.mrf.mxu2  ;;  %2704 = vst [vmem:[#allocation2 + $0x35c] sm:$0xf] %v2620_v37  ;;  %v2293_v33 = vrot.slane %v2291_v40, 5  ;;  %v5381_v37 = vrot.slane %v5357_v15, 9  ;;  %v6488_v30 = vld [vmem:[#allocation2 + $0x2e4] sm:$0xf] }
 0x1f7   : > { %v4735_v9 = vadd.f32 %v4734_v38, %v4646_v25  ;;  %v4823_v58 = vpop.f32.mrf.mxu3  ;;  %v2297_v25 = vrot.slane %v2295_v29, 4  ;;  %v2288_v3 = vor.u32 %v2287_v26, %v2284_v10  ;;  %v5909_v40 = vld [vmem:[#allocation2 + $0x304] sm:$0xf0]  ;;  %v5410_v10 = vld [vmem:[%s6703_s26 + $0xac] sm:$0xf]  ;;  %v2623_v20 = vrot.slane %v5502_v61, 5 }
 0x1f8   : > { %v4648_v11 = vpop.f32.mrf.mxu1  ;;  %v5915_v26 = vld [vmem:[#allocation2 + $0x2e8] sm:$0xf]  ;;  %1938 = vst [vmem:[#allocation2 + $0x39c] sm:$0xf] %v5410_v10 }
 0x1f9   : > { %v4824_v63 = vadd.f32 %v4823_v58, %v4735_v9  ;;  %v4649_v54 = vadd.f32 %v4648_v11, %v8022_v49  ;;  %v2298_v9 = vor.u32 %v2297_v25, %v2293_v33  ;;  %v5501_v25 = vld [vmem:[%s6703_s26 + $0xa8] sm:$0xe] }
 0x1fa   : > { %v4915_v27 = vpop.f32.mrf.mxu0  ;;  %v5525_v15 = vrot.slane %v5501_v25, 9 }
 0x1fb   : > { %v4913_v51 = vadd.f32 %v4912_v39, %v4824_v63  ;;  %4687 = vmatmul.bf16.gmra.mxu1 %v5876_v57  ;;  %4776 = vmatmul.bf16.gmra.mxu2 %v5880_v43  ;;  %v1790_v39 = vrot.slane %v5358_v24, 5 }
 0x1fc   : > { %4865 = vmatmul.bf16.gmra.mxu3 %v5884_v17  ;;  %v5455_v17 = vld [vmem:[%s6703_s26 + $0xb0] sm:$0x1] }
 0x1fd   : > { %4954 = vmatmul.bf16.gmra.mxu0 %v5888_v47  ;;  %4991 = vst [vmem:[%s7829_s8 + $0x8] sm:$0xff] %v4913_v51  ;;  %v5022_v1 = vadd.f32 %v4913_v51, %v4911_v12  ;;  %v5061_v14 = vmul.f32 %v4913_v51, %v4913_v51  ;;  %v1792_v11 = vrot.slane %v1790_v39, 4  ;;  %v2289_v12 = vrot.slane %v2288_v3, 4  ;;  %v5409_v51 = vld [vmem:[%s6703_s26 + $0xa8] sm:$0xf] }
 0x1fe   : > { %v4737_v38 = vpop.f32.mrf.mxu2  ;;  %v1791_v29 = vsel %vm6864_vm5, %v5381_v37, %v1790_v39  ;;  %v2301_v24 = vshll.u32 %v5455_v17, 16  ;;  %v6489_v3 = vld [vmem:[#allocation2 + $0x2ec] sm:$0xf]  ;;  %1937 = vst [vmem:[#allocation2 + $0x378] sm:$0xf] %v5409_v51 }
 0x1ff   : > { %v5092_v58 = vadd.f32 %v5061_v14, %v5060_v23  ;;  %v4738_v57 = vadd.f32 %v4737_v38, %v4649_v54  ;;  %v4826_v43 = vpop.f32.mrf.mxu3  ;;  %v6493_v23 = vld [vmem:[#allocation2 + $0x308] sm:$0xf0]  ;;  %v1794_v49 = vsel %vm6864_vm5, %v1792_v11, %v1793_v22  ;;  %1872 = vst [vmem:[#allocation2 + $0x374] sm:$0xf] %v1791_v29  ;;  %v2299_v54 = vrot.slane %v2298_v9, 4 }
 0x200   : > { %v4650_v47 = vpop.f32.mrf.mxu1  ;;  %1873 = vst [vmem:[#allocation2 + $0x398] sm:$0xf] %v1794_v49  ;;  %v5503_v38 = vld [vmem:[%s6703_s26 + $0xb0] sm:$0x1]  ;;  %v2294_v39 = vsel %vm6850_vm3, %v2289_v12, %v2293_v33  ;;  %v6494_v29 = vld [vmem:[#allocation2 + $0x310] sm:$0xf0]  ;;  %v5912_v49 = vor.u32 %v6488_v30, %v5909_v40  ;;  %v2624_v33 = vsel %vm6864_vm5, %v5525_v15, %v2623_v20 }
 0x201   : > { %v4827_v63 = vadd.f32 %v4826_v43, %v4738_v57  ;;  %v5917_v57 = vld [vmem:[#allocation2 + $0x30c] sm:$0xf0]  ;;  %v2303_v43 = vrot.slane %v2301_v24, 5  ;;  %v2626_v37 = vrot.slane %v5503_v38, 5  ;;  %v4651_v9 = vadd.f32 %v4650_v47, %v7360_v28  ;;  %2433 = vst [vmem:[#allocation2 + $0x37c] sm:$0xf] %v2294_v39 }
 0x202   : > { %v4917_v16 = vpop.f32.mrf.mxu0  ;;  %v5923_v17 = vld [vmem:[#allocation2 + $0x2f0] sm:$0xf]  ;;  %v5916_v24 = vor.u32 %v6493_v23, %v5915_v26  ;;  %v5920_v25 = vor.u32 %v6489_v3, %v5917_v57  ;;  %v5456_v30 = vld [vmem:[%s6703_s26 + $0xb4] sm:$0xf]  ;;  %v5457_v40 = vld [vmem:[%s6703_s26 + $0xb8] sm:$0xf] }
 0x203   : > { %v4916_v14 = vadd.f32 %v4915_v27, %v4827_v63  ;;  %v2625_v27 = vrot.slane %v2623_v20, 4  ;;  %v2304_v61 = vsel %vm6850_vm3, %v2299_v54, %v2303_v43  ;;  %2705 = vst [vmem:[#allocation2 + $0x380] sm:$0xf] %v2624_v33  ;;  %v2306_v38 = vshrl.u32 %v5456_v30, 16  ;;  %v5361_v39 = vld [vmem:[%s6703_s26 + $0xac] sm:$0xf] }
 0x204   : > { %2434 = vst [vmem:[#allocation2 + $0x3a0] sm:$0xf] %v2304_v61  ;;  %v2315_v15 = vshll.u32 %v5457_v40, 16  ;;  %v2319_v26 = vshrl.u32 %v5457_v40, 16  ;;  %v6497_v40 = vld [vmem:[#allocation2 + $0x32c] sm:$0xf] }
 0x205   : > { %4992 = vst [vmem:[%s7829_s8 + $0x10] sm:$0xff] %v4916_v14  ;;  %v5023_v11 = vadd.f32 %v5022_v1, %v4916_v14  ;;  %v5062_v22 = vmul.f32 %v4916_v14, %v4916_v14  ;;  %v2627_v28 = vsel %vm6864_vm5, %v2625_v27, %v2626_v37  ;;  %v5924_v14 = vor.u32 %v6494_v29, %v5923_v17  ;;  %v5360_v27 = vld [vmem:[%s6703_s26 + $0xa8] sm:$0xe] }
 0x206   : > { %v4739_v63 = vpop.f32.mrf.mxu2  ;;  %2706 = vst [vmem:[#allocation2 + $0x3a4] sm:$0xf] %v2627_v28  ;;  %v2308_v3 = vrot.slane %v2306_v38, 4  ;;  %v2317_v43 = vrot.slane %v2315_v15, 5  ;;  %v2321_v37 = vrot.slane %v2319_v26, 4  ;;  %v1797_v17 = vrot.slane %v5361_v39, 5 }
 0x207   : > { %v5093_v12 = vadd.f32 %v5092_v58, %v5062_v22  ;;  %v4740_v51 = vadd.f32 %v4739_v63, %v4651_v9  ;;  %v4828_v1 = vpop.f32.mrf.mxu3  ;;  %v2309_v58 = vshll.u32 %v5456_v30, 16  ;;  %v5362_v63 = vld [vmem:[%s6703_s26 + $0xb0] sm:$0x1]  ;;  %v6502_v26 = vld [vmem:[#allocation2 + $0x350] sm:$0xf0] }
 0x208   : > { %v4653_v47 = vpop.f32.mrf.mxu1  ;;  %v5951_v15 = vld [vmem:[#allocation2 + $0x330] sm:$0xf] }
 0x209   : > { %v4829_v10 = vadd.f32 %v4828_v1, %v4740_v51  ;;  %v2311_v20 = vrot.slane %v2309_v58, 5  ;;  %v4654_v57 = vadd.f32 %v4653_v47, %v7394_v42  ;;  %v5382_v51 = vrot.slane %v5360_v27, 9  ;;  %v5412_v58 = vld [vmem:[%s6703_s26 + $0xb8] sm:$0xf] }
 0x20a   : > { %v4920_v54 = vpop.f32.mrf.mxu0  ;;  %v1799_v1 = vrot.slane %v1797_v17, 4  ;;  %v1800_v47 = vrot.slane %v5362_v63, 5  ;;  %v5953_v27 = vld [vmem:[#allocation2 + $0x354] sm:$0xf0]  ;;  %1940 = vst [vmem:[#allocation2 + $0x3e4] sm:$0xf] %v5412_v58 }
 0x20b   : > { %v4918_v23 = vadd.f32 %v4917_v16, %v4829_v10  ;;  %4692 = vmatmul.bf16.gmra.mxu1 %v5912_v49  ;;  %4781 = vmatmul.bf16.gmra.mxu2 %v5916_v24  ;;  %v2312_v16 = vor.u32 %v2311_v20, %v2308_v3  ;;  %v2322_v49 = vor.u32 %v2321_v37, %v2317_v43  ;;  %v5458_v24 = vld [vmem:[%s6703_s26 + $0xbc] sm:$0x1]  ;;  %v5945_v10 = vld [vmem:[#allocation2 + $0x34c] sm:$0xf0]  ;;  %v6498_v37 = vld [vmem:[#allocation2 + $0x334] sm:$0xf] }
 0x20c   : > { %4870 = vmatmul.bf16.gmra.mxu3 %v5920_v25  ;;  %v5505_v25 = vld [vmem:[%s6703_s26 + $0xb8] sm:$0xf]  ;;  %v1798_v38 = vsel %vm6864_vm5, %v5382_v51, %v1797_v17  ;;  %v2325_v20 = vshll.u32 %v5458_v24, 16  ;;  %v6503_v24 = vld [vmem:[#allocation2 + $0x358] sm:$0xf0] }
 0x20d   : > { %4959 = vmatmul.bf16.gmra.mxu0 %v5924_v14  ;;  %4993 = vst [vmem:[%s7829_s8 + $0x18] sm:$0xff] %v4918_v23  ;;  %v5024_v22 = vadd.f32 %v5023_v11, %v4918_v23  ;;  %v5063_v9 = vmul.f32 %v4918_v23, %v4918_v23  ;;  %v2313_v11 = vrot.slane %v2312_v16, 4  ;;  %v1801_v23 = vsel %vm6864_vm5, %v1799_v1, %v1800_v47  ;;  %v5959_v1 = vld [vmem:[#allocation2 + $0x338] sm:$0xf] }
 0x20e   : > { %v4742_v29 = vpop.f32.mrf.mxu2  ;;  %1874 = vst [vmem:[#allocation2 + $0x3bc] sm:$0xf] %v1798_v38  ;;  %v2323_v3 = vrot.slane %v2322_v49, 4  ;;  %v2327_v63 = vrot.slane %v2325_v20, 5  ;;  %v5960_v20 = vor.u32 %v6503_v24, %v5959_v1  ;;  %v5363_v1 = vld [vmem:[%s6703_s26 + $0xb4] sm:$0xe] }
 0x20f   : > { %v5094_v61 = vadd.f32 %v5093_v12, %v5063_v9  ;;  %v4743_v42 = vadd.f32 %v4742_v29, %v4654_v57  ;;  %v4831_v33 = vpop.f32.mrf.mxu3  ;;  %v5411_v12 = vld [vmem:[%s6703_s26 + $0xb4] sm:$0xf]  ;;  %1875 = vst [vmem:[#allocation2 + $0x3e0] sm:$0xf] %v1801_v23  ;;  %v5506_v9 = vld [vmem:[%s6703_s26 + $0xbc] sm:$0x1]  ;;  %v2318_v17 = vsel %vm6850_vm3, %v2313_v11, %v2317_v43  ;;  %v5956_v23 = vor.u32 %v6498_v37, %v5953_v27 }
 0x210   : > { %v4655_v28 = vpop.f32.mrf.mxu1  ;;  %v5504_v57 = vld [vmem:[%s6703_s26 + $0xb4] sm:$0xe]  ;;  %v2630_v29 = vrot.slane %v5505_v25, 5  ;;  %1939 = vst [vmem:[#allocation2 + $0x3c0] sm:$0xf] %v5411_v12  ;;  %v2328_v25 = vsel %vm6850_vm3, %v2323_v3, %v2327_v63  ;;  %v5952_v12 = vor.u32 %v6502_v26, %v5951_v15 }
 0x211   : > { %v4832_v14 = vadd.f32 %v4831_v33, %v4743_v42  ;;  %v5526_v16 = vrot.slane %v5504_v57, 9  ;;  %v2633_v42 = vrot.slane %v5506_v9, 5  ;;  %v4656_v49 = vadd.f32 %v4655_v28, %v7411_v21  ;;  %2435 = vst [vmem:[#allocation2 + $0x3c4] sm:$0xf] %v2318_v17  ;;  %v5365_v24 = vld [vmem:[%s6703_s26 + $0xbc] sm:$0x1] }
 0x212   : > { %v4922_v30 = vpop.f32.mrf.mxu0  ;;  %2436 = vst [vmem:[#allocation2 + $0x3e8] sm:$0xf] %v2328_v25  ;;  %v5383_v25 = vrot.slane %v5363_v1, 9 }
 0x213   : > { %v4921_v39 = vadd.f32 %v4920_v54, %v4832_v14  ;;  %v2632_v54 = vrot.slane %v2630_v29, 4  ;;  %v5948_v14 = vor.u32 %v6497_v40, %v5945_v10  ;;  %v2631_v43 = vsel %vm6864_vm5, %v5526_v16, %v2630_v29  ;;  %v5459_v40 = vld [vmem:[%s6703_s26 + $0xc0] sm:$0xf]  ;;  %v5460_v10 = vld [vmem:[%s6703_s26 + $0xc4] sm:$0xf] }
 0x214   : > { %2707 = vst [vmem:[#allocation2 + $0x3c8] sm:$0xf] %v2631_v43  ;;  %v2330_v57 = vshrl.u32 %v5459_v40, 16  ;;  %v2343_v15 = vshrl.u32 %v5460_v10, 16  ;;  %v5364_v29 = vld [vmem:[%s6703_s26 + $0xb8] sm:$0xf] }
 0x215   : > { %4994 = vst [vmem:[%s7829_s8 + $0x20] sm:$0xff] %v4921_v39  ;;  %v5025_v33 = vadd.f32 %v5024_v22, %v4921_v39  ;;  %v5064_v51 = vmul.f32 %v4921_v39, %v4921_v39  ;;  %v2634_v21 = vsel %vm6864_vm5, %v2632_v54, %v2633_v42  ;;  %v2339_v39 = vshll.u32 %v5460_v10, 16 }
 0x216   : > { %v4744_v47 = vpop.f32.mrf.mxu2  ;;  %2708 = vst [vmem:[#allocation2 + $0x3ec] sm:$0xf] %v2634_v21  ;;  %v2332_v37 = vrot.slane %v2330_v57, 4  ;;  %v2345_v17 = vrot.slane %v2343_v15, 4  ;;  %v5508_v21 = vld [vmem:[%s6703_s26 + $0xc4] sm:$0xf] }
 0x217   : > { %v5095_v11 = vadd.f32 %v5094_v61, %v5064_v51  ;;  %v4745_v38 = vadd.f32 %v4744_v47, %v4656_v49  ;;  %v4833_v22 = vpop.f32.mrf.mxu3  ;;  %v2333_v61 = vshll.u32 %v5459_v40, 16  ;;  %v2341_v27 = vrot.slane %v2339_v39, 5  ;;  %v5981_v40 = vld [vmem:[#allocation2 + $0x394] sm:$0xf0] }
 0x218   : > { %v4658_v28 = vpop.f32.mrf.mxu1  ;;  %v1804_v51 = vrot.slane %v5364_v29, 5  ;;  %v5987_v57 = vld [vmem:[#allocation2 + $0x378] sm:$0xf]  ;;  %v5509_v29 = vld [vmem:[%s6703_s26 + $0xc8] sm:$0x1] }
 0x219   : > { %v4834_v58 = vadd.f32 %v4833_v22, %v4745_v38  ;;  %v2335_v9 = vrot.slane %v2333_v61, 5  ;;  %v4659_v16 = vadd.f32 %v4658_v28, %v7435_v34  ;;  %v2346_v54 = vor.u32 %v2345_v17, %v2341_v27  ;;  %v5461_v38 = vld [vmem:[%s6703_s26 + $0xc8] sm:$0x1]  ;;  %v6511_v61 = vld [vmem:[#allocation2 + $0x398] sm:$0xf0] }
 0x21a   : > { %v4925_v3 = vpop.f32.mrf.mxu0  ;;  %v1806_v43 = vrot.slane %v1804_v51, 4  ;;  %v1805_v10 = vsel %vm6864_vm5, %v5383_v25, %v1804_v51  ;;  %v2640_v1 = vrot.slane %v5509_v29, 5  ;;  %v6512_v25 = vld [vmem:[#allocation2 + $0x3a0] sm:$0xf0] }
 0x21b   : > { %v4923_v26 = vadd.f32 %v4922_v30, %v4834_v58  ;;  %4697 = vmatmul.bf16.gmra.mxu1 %v5948_v14  ;;  %4786 = vmatmul.bf16.gmra.mxu2 %v5952_v12  ;;  %v2336_v30 = vor.u32 %v2335_v9, %v2332_v37  ;;  %v1807_v12 = vrot.slane %v5365_v24, 5  ;;  %v5414_v58 = vld [vmem:[%s6703_s26 + $0xc4] sm:$0xf]  ;;  %1876 = vst [vmem:[#allocation2 + $0x404] sm:$0xf] %v1805_v10  ;;  %v2347_v15 = vrot.slane %v2346_v54, 4 }
 0x21c   : > { %4875 = vmatmul.bf16.gmra.mxu3 %v5956_v23  ;;  %v5507_v37 = vld [vmem:[%s6703_s26 + $0xc0] sm:$0xe]  ;;  %1942 = vst [vmem:[#allocation2 + $0x42c] sm:$0xf] %v5414_v58  ;;  %v5367_v29 = vld [vmem:[%s6703_s26 + $0xc4] sm:$0xf] }
 0x21d   : > { %4964 = vmatmul.bf16.gmra.mxu0 %v5960_v20  ;;  %4995 = vst [vmem:[%s7829_s8 + $0x28] sm:$0xff] %v4923_v26  ;;  %v5026_v63 = vadd.f32 %v5025_v33, %v4923_v26  ;;  %v5065_v42 = vmul.f32 %v4923_v26, %v4923_v26  ;;  %v2337_v33 = vrot.slane %v2336_v30, 4  ;;  %v6506_v20 = vld [vmem:[#allocation2 + $0x374] sm:$0xf]  ;;  %v1808_v39 = vsel %vm6864_vm5, %v1806_v43, %v1807_v12  ;;  %v5989_v30 = vld [vmem:[#allocation2 + $0x39c] sm:$0xf0] }
 0x21e   : > { %v4747_v49 = vpop.f32.mrf.mxu2  ;;  %v2349_v26 = vshll.u32 %v5461_v38, 16  ;;  %1877 = vst [vmem:[#allocation2 + $0x428] sm:$0xf] %v1808_v39  ;;  %v5527_v17 = vrot.slane %v5507_v37, 9  ;;  %v5984_v38 = vor.u32 %v6506_v20, %v5981_v40  ;;  %v5462_v20 = vld [vmem:[%s6703_s26 + $0xcc] sm:$0xf] }
 0x21f   : > { %v5096_v47 = vadd.f32 %v5095_v11, %v5065_v42  ;;  %v4748_v34 = vadd.f32 %v4747_v49, %v4659_v16  ;;  %v4836_v14 = vpop.f32.mrf.mxu3  ;;  %v5413_v11 = vld [vmem:[%s6703_s26 + $0xc0] sm:$0xf]  ;;  %v6507_v16 = vld [vmem:[#allocation2 + $0x37c] sm:$0xf]  ;;  %v2637_v42 = vrot.slane %v5508_v21, 5  ;;  %v2342_v51 = vsel %vm6850_vm3, %v2337_v33, %v2341_v27 }
 0x220   : > { %v4660_v22 = vpop.f32.mrf.mxu1  ;;  %1941 = vst [vmem:[#allocation2 + $0x408] sm:$0xf] %v5413_v11  ;;  %v2351_v49 = vrot.slane %v2349_v26, 5  ;;  %v5992_v10 = vor.u32 %v6507_v16, %v5989_v30  ;;  %v5463_v40 = vld [vmem:[%s6703_s26 + $0xd0] sm:$0xf] }
 0x221   : > { %v4837_v28 = vadd.f32 %v4836_v14, %v4748_v34  ;;  %v4661_v54 = vadd.f32 %v4660_v22, %v7446_v18  ;;  %v5995_v14 = vld [vmem:[#allocation2 + $0x380] sm:$0xf]  ;;  %v2638_v27 = vsel %vm6864_vm5, %v5527_v17, %v2637_v42  ;;  %2437 = vst [vmem:[#allocation2 + $0x40c] sm:$0xf] %v2342_v51  ;;  %v2363_v26 = vshll.u32 %v5463_v40, 16 }
 0x222   : > { %v4927_v23 = vpop.f32.mrf.mxu0  ;;  %v2352_v12 = vsel %vm6850_vm3, %v2347_v15, %v2351_v49  ;;  %v5996_v11 = vor.u32 %v6512_v25, %v5995_v14  ;;  %2709 = vst [vmem:[#allocation2 + $0x410] sm:$0xf] %v2638_v27  ;;  %v2354_v15 = vshrl.u32 %v5462_v20, 16  ;;  %v1811_v49 = vrot.slane %v5367_v29, 5 }
 0x223   : > { %v4926_v9 = vadd.f32 %v4925_v3, %v4837_v28  ;;  %v2639_v3 = vrot.slane %v2637_v42, 4  ;;  %v5988_v28 = vor.u32 %v6511_v61, %v5987_v57  ;;  %2438 = vst [vmem:[#allocation2 + $0x430] sm:$0xf] %v2352_v12  ;;  %v2367_v57 = vshrl.u32 %v5463_v40, 16  ;;  %v5464_v12 = vld [vmem:[%s6703_s26 + $0xd4] sm:$0x1] }
 0x224   : > { %v2356_v37 = vrot.slane %v2354_v15, 4  ;;  %v2365_v17 = vrot.slane %v2363_v26, 5  ;;  %v6023_v40 = vld [vmem:[#allocation2 + $0x3c0] sm:$0xf]  ;;  %v2373_v26 = vshll.u32 %v5464_v12, 16 }
 0x225   : > { %4996 = vst [vmem:[%s7829_s8 + $0x30] sm:$0xff] %v4926_v9  ;;  %v5027_v24 = vadd.f32 %v5026_v63, %v4926_v9  ;;  %v5066_v34 = vmul.f32 %v4926_v9, %v4926_v9  ;;  %v2641_v18 = vsel %vm6864_vm5, %v2639_v3, %v2640_v1  ;;  %v2369_v42 = vrot.slane %v2367_v57, 4  ;;  %v5510_v57 = vld [vmem:[%s6703_s26 + $0xcc] sm:$0xe] }
 0x226   : > { %v4749_v43 = vpop.f32.mrf.mxu2  ;;  %2710 = vst [vmem:[#allocation2 + $0x434] sm:$0xf] %v2641_v18 }
 0x227   : > { %v5097_v33 = vadd.f32 %v5096_v47, %v5066_v34  ;;  %v4750_v21 = vadd.f32 %v4749_v43, %v4661_v54  ;;  %v4838_v63 = vpop.f32.mrf.mxu3  ;;  %v2357_v47 = vshll.u32 %v5462_v20, 16  ;;  %v5366_v34 = vld [vmem:[%s6703_s26 + $0xc0] sm:$0xe]  ;;  %v5368_v54 = vld [vmem:[%s6703_s26 + $0xc8] sm:$0x1]  ;;  %v2370_v14 = vor.u32 %v2369_v42, %v2365_v17 }
 0x228   : > { %v4663_v22 = vpop.f32.mrf.mxu1  ;;  %v5384_v43 = vrot.slane %v5366_v34, 9  ;;  %v5416_v20 = vld [vmem:[%s6703_s26 + $0xd0] sm:$0xf]  ;;  %v6025_v42 = vld [vmem:[#allocation2 + $0x3e4] sm:$0xf0] }
 0x229   : > { %v4839_v58 = vadd.f32 %v4838_v63, %v4750_v21  ;;  %v2359_v9 = vrot.slane %v2357_v47, 5  ;;  %v4664_v16 = vadd.f32 %v4663_v22, %v7477_v0  ;;  %v1814_v21 = vrot.slane %v5368_v54, 5  ;;  %v5511_v63 = vld [vmem:[%s6703_s26 + $0xd0] sm:$0xf]  ;;  %v6515_v22 = vld [vmem:[#allocation2 + $0x3bc] sm:$0xf] }
 0x22a   : > { %v4930_v39 = vpop.f32.mrf.mxu0  ;;  %v2371_v47 = vrot.slane %v2370_v14, 4  ;;  %v2644_v29 = vrot.slane %v5511_v63, 5  ;;  %v6031_v14 = vld [vmem:[#allocation2 + $0x3c8] sm:$0xf]  ;;  %1944 = vst [vmem:[#allocation2 + $0x474] sm:$0xf] %v5416_v20 }
 0x22b   : > { %v4928_v61 = vadd.f32 %v4927_v23, %v4839_v58  ;;  %4702 = vmatmul.bf16.gmra.mxu1 %v5984_v38  ;;  %4791 = vmatmul.bf16.gmra.mxu2 %v5988_v28  ;;  %v2360_v23 = vor.u32 %v2359_v9, %v2356_v37  ;;  %v1813_v38 = vrot.slane %v1811_v49, 4  ;;  %v6520_v58 = vld [vmem:[#allocation2 + $0x3e0] sm:$0xf0]  ;;  %v5512_v9 = vld [vmem:[%s6703_s26 + $0xd4] sm:$0x1] }
 0x22c   : > { %4880 = vmatmul.bf16.gmra.mxu3 %v5992_v10  ;;  %v6017_v10 = vld [vmem:[#allocation2 + $0x3dc] sm:$0xf0]  ;;  %v6516_v37 = vld [vmem:[#allocation2 + $0x3c4] sm:$0xf]  ;;  %v6024_v63 = vor.u32 %v6520_v58, %v6023_v40 }
 0x22d   : > { %4969 = vmatmul.bf16.gmra.mxu0 %v5996_v11  ;;  %4997 = vst [vmem:[%s7829_s8 + $0x38] sm:$0xff] %v4928_v61  ;;  %v5028_v30 = vadd.f32 %v5027_v24, %v4928_v61  ;;  %v5067_v51 = vmul.f32 %v4928_v61, %v4928_v61  ;;  %v2361_v24 = vrot.slane %v2360_v23, 4  ;;  %v1812_v11 = vsel %vm6864_vm5, %v5384_v43, %v1811_v49 }
 0x22e   : > { %v4752_v1 = vpop.f32.mrf.mxu2  ;;  %v1815_v15 = vsel %vm6864_vm5, %v1813_v38, %v1814_v21  ;;  %1878 = vst [vmem:[#allocation2 + $0x44c] sm:$0xf] %v1812_v11  ;;  %v2375_v49 = vrot.slane %v2373_v26, 5  ;;  %v2647_v23 = vrot.slane %v5512_v9, 5  ;;  %v6020_v43 = vor.u32 %v6515_v22, %v6017_v10  ;;  %v6529_v9 = vld [vmem:[#allocation2 + $0x428] sm:$0xf0] }
 0x22f   : > { %v5098_v25 = vadd.f32 %v5097_v33, %v5067_v51  ;;  %v4753_v0 = vadd.f32 %v4752_v1, %v4664_v16  ;;  %v4841_v3 = vpop.f32.mrf.mxu3  ;;  %v5415_v33 = vld [vmem:[%s6703_s26 + $0xcc] sm:$0xf]  ;;  %1879 = vst [vmem:[#allocation2 + $0x470] sm:$0xf] %v1815_v15  ;;  %v5528_v16 = vrot.slane %v5510_v57, 9  ;;  %v2366_v51 = vsel %vm6850_vm3, %v2361_v24, %v2365_v17  ;;  %s5224_s26 = sshll.u32 %s8024_s16, 1 }
 0x230   : > { %v4665_v27 = vpop.f32.mrf.mxu1  ;;  %1943 = vst [vmem:[#allocation2 + $0x450] sm:$0xf] %v5415_v33  ;;  %v2376_v38 = vsel %vm6850_vm3, %v2371_v47, %v2375_v49  ;;  %s208_s11 = scalar_lea.vmem %s8008_s4, %s5224_s26 }
 0x231   : > { %v4842_v28 = vadd.f32 %v4841_v3, %v4753_v0  ;;  %v4666_v54 = vadd.f32 %v4665_v27, %v7490_v45  ;;  %v6521_v0 = vld [vmem:[#allocation2 + $0x3e8] sm:$0xf0]  ;;  %v2645_v12 = vsel %vm6864_vm5, %v5528_v16, %v2644_v29  ;;  %2439 = vst [vmem:[#allocation2 + $0x454] sm:$0xf] %v2366_v51  ;;  %v6028_v27 = vor.u32 %v6516_v37, %v6025_v42  ;;  %v6059_v37 = vld [vmem:[#allocation2 + $0x408] sm:$0xf] }
 0x232   : > { %v4932_v18 = vpop.f32.mrf.mxu0  ;;  %2440 = vst [vmem:[#allocation2 + $0x478] sm:$0xf] %v2376_v38  ;;  %v6525_v16 = vld [vmem:[#allocation2 + $0x40c] sm:$0xf] }
 0x233   : > { %v4931_v61 = vadd.f32 %v4930_v39, %v4842_v28  ;;  %v2646_v39 = vrot.slane %v2644_v29, 4  ;;  %v6032_v28 = vor.u32 %v6521_v0, %v6031_v14  ;;  %2711 = vst [vmem:[#allocation2 + $0x458] sm:$0xf] %v2645_v12  ;;  %v6061_v29 = vld [vmem:[#allocation2 + $0x42c] sm:$0xf0] }
 0x235   : > { %4998 = vst [vmem:[%s7829_s8 + $0x40] sm:$0xff] %v4931_v61  ;;  %v5029_v1 = vadd.f32 %v5028_v30, %v4931_v61  ;;  %v5068_v34 = vmul.f32 %v4931_v61, %v4931_v61  ;;  %v2648_v45 = vsel %vm6864_vm5, %v2646_v39, %v2647_v23  ;;  %v6524_v61 = vld [vmem:[#allocation2 + $0x404] sm:$0xf]  ;;  %v6530_v23 = vld [vmem:[#allocation2 + $0x430] sm:$0xf0]  ;;  %v6060_v39 = vor.u32 %v6529_v9, %v6059_v37 }
 0x236   : > { %v4754_v3 = vpop.f32.mrf.mxu2  ;;  %2712 = vst [vmem:[#allocation2 + $0x47c] sm:$0xf] %v2648_v45 }
 0x237   : > { %v5099_v17 = vadd.f32 %v5098_v25, %v5068_v34  ;;  %v4755_v21 = vadd.f32 %v4754_v3, %v4666_v54  ;;  %v4843_v24 = vpop.f32.mrf.mxu3 }
 0x238   : > { %v4668_v30 = vpop.f32.mrf.mxu1 }
 0x239   : > { %v4844_v22 = vadd.f32 %v4843_v24, %v4755_v21  ;;  %v4669_v59 = vadd.f32 %v4668_v30, %v7510_v4  ;;  %v6067_v4 = vld [vmem:[#allocation2 + $0x410] sm:$0xf] }
 0x23a   : > { %v4935_v10 = vpop.f32.mrf.mxu0  ;;  %v6068_v38 = vor.u32 %v6530_v23, %v6067_v4 }
 0x23b   : > { %v4933_v44 = vadd.f32 %v4932_v18, %v4844_v22  ;;  %4707 = vmatmul.bf16.gmra.mxu1 %v6020_v43  ;;  %4796 = vmatmul.bf16.gmra.mxu2 %v6024_v63  ;;  %v6053_v18 = vld [vmem:[#allocation2 + $0x424] sm:$0xf0]  ;;  %v6064_v43 = vor.u32 %v6525_v16, %v6061_v29 }
 0x23c   : > { %4885 = vmatmul.bf16.gmra.mxu3 %v6028_v27  ;;  %v6056_v0 = vor.u32 %v6524_v61, %v6053_v18 }
 0x23d   : > { %4974 = vmatmul.bf16.gmra.mxu0 %v6032_v28  ;;  %4999 = vst [vmem:[%s7829_s8 + $0x48] sm:$0xff] %v4933_v44  ;;  %v5030_v25 = vadd.f32 %v5029_v1, %v4933_v44  ;;  %v5069_v11 = vmul.f32 %v4933_v44, %v4933_v44 }
 0x23e   : > { %v4757_v33 = vpop.f32.mrf.mxu2 }
 0x23f   : > { %v5100_v20 = vadd.f32 %v5099_v17, %v5069_v11  ;;  %v4758_v40 = vadd.f32 %v4757_v33, %v4669_v59  ;;  %v4846_v58 = vpop.f32.mrf.mxu3  ;;  %v6533_v11 = vld [vmem:[#allocation2 + $0x44c] sm:$0xf]  ;;  %v6089_v59 = vld [vmem:[#allocation2 + $0x46c] sm:$0xf0] }
 0x240   : > { %v4670_v15 = vpop.f32.mrf.mxu1  ;;  %v6095_v33 = vld [vmem:[#allocation2 + $0x450] sm:$0xf]  ;;  %v6092_v16 = vor.u32 %v6533_v11, %v6089_v59 }
 0x241   : > { %v4847_v47 = vadd.f32 %v4846_v58, %v4758_v40  ;;  %v4671_v49 = vadd.f32 %v4670_v15, %v7523_v55  ;;  %v6534_v40 = vld [vmem:[#allocation2 + $0x454] sm:$0xf]  ;;  %v6097_v58 = vld [vmem:[#allocation2 + $0x474] sm:$0xf0] }
 0x242   : > { %v4937_v26 = vpop.f32.mrf.mxu0 }
 0x243   : > { %v4936_v57 = vadd.f32 %v4935_v10, %v4847_v47 }
 0x245   : > { %5000 = vst [vmem:[%s7829_s8 + $0x50] sm:$0xff] %v4936_v57  ;;  %v5031_v42 = vadd.f32 %v5030_v25, %v4936_v57  ;;  %v5070_v51 = vmul.f32 %v4936_v57, %v4936_v57  ;;  %v6539_v57 = vld [vmem:[#allocation2 + $0x478] sm:$0xf0] }
 0x246   : > { %v4759_v1 = vpop.f32.mrf.mxu2 }
 0x247   : > { %v5101_v34 = vadd.f32 %v5100_v20, %v5070_v51  ;;  %v4760_v54 = vadd.f32 %v4759_v1, %v4671_v49  ;;  %v4848_v14 = vpop.f32.mrf.mxu3  ;;  %v6538_v20 = vld [vmem:[#allocation2 + $0x470] sm:$0xf0]  ;;  %v6100_v51 = vor.u32 %v6534_v40, %v6097_v58 }
 0x248   : > { %v4673_v3 = vpop.f32.mrf.mxu1  ;;  %v6096_v29 = vor.u32 %v6538_v20, %v6095_v33 }
 0x249   : > { %v4849_v12 = vadd.f32 %v4848_v14, %v4760_v54  ;;  %v4674_v63 = vadd.f32 %v4673_v3, %v7541_v53  ;;  %v6103_v53 = vld [vmem:[#allocation2 + $0x458] sm:$0xf] }
 0x24a   : > { %v4940_v17 = vpop.f32.mrf.mxu0  ;;  %v6104_v49 = vor.u32 %v6539_v57, %v6103_v53 }
 0x24b   : > { %v4938_v21 = vadd.f32 %v4937_v26, %v4849_v12  ;;  %4712 = vmatmul.bf16.gmra.mxu1 %v6056_v0  ;;  %4801 = vmatmul.bf16.gmra.mxu2 %v6060_v39 }
 0x24c   : > { %4890 = vmatmul.bf16.gmra.mxu3 %v6064_v43 }
 0x24d   : > { %4979 = vmatmul.bf16.gmra.mxu0 %v6068_v38  ;;  %5001 = vst [vmem:[%s7829_s8 + $0x58] sm:$0xff] %v4938_v21  ;;  %v5032_v55 = vadd.f32 %v5031_v42, %v4938_v21  ;;  %v5071_v24 = vmul.f32 %v4938_v21, %v4938_v21 }
 0x24e   : > { %v4762_v45 = vpop.f32.mrf.mxu2 }
 0x24f   : > { %v5102_v30 = vadd.f32 %v5101_v34, %v5071_v24  ;;  %v4763_v27 = vadd.f32 %v4762_v45, %v4674_v63  ;;  %v4851_v28 = vpop.f32.mrf.mxu3 }
 0x250   : > { %v4675_v22 = vpop.f32.mrf.mxu1 }
 0x251   : > { %v4852_v10 = vadd.f32 %v4851_v28, %v4763_v27  ;;  %v4676_v26 = vadd.f32 %v4675_v22, %v7552_v7 }
 0x252   : > { %v4942_v44 = vpop.f32.mrf.mxu0 }
 0x253   : > { %v4941_v25 = vadd.f32 %v4940_v17, %v4852_v10 }
 0x255   : > { %5002 = vst [vmem:[%s7829_s8 + $0x60] sm:$0xff] %v4941_v25  ;;  %v5033_v15 = vadd.f32 %v5032_v55, %v4941_v25  ;;  %v5072_v47 = vmul.f32 %v4941_v25, %v4941_v25 }
 0x256   : > { %v4764_v61 = vpop.f32.mrf.mxu2 }
 0x257   : > { %v5103_v18 = vadd.f32 %v5102_v30, %v5072_v47  ;;  %v4765_v37 = vadd.f32 %v4764_v61, %v4676_v26  ;;  %v4853_v9 = vpop.f32.mrf.mxu3 }
 0x258   : > { %v4678_v42 = vpop.f32.mrf.mxu1 }
 0x259   : > { %v4854_v4 = vadd.f32 %v4853_v9, %v4765_v37  ;;  %v4679_v54 = vadd.f32 %v4678_v42, %v7570_v60 }
 0x25a   : > { %v4945_v23 = vpop.f32.mrf.mxu0 }
 0x25b   : > { %v4943_v1 = vadd.f32 %v4942_v44, %v4854_v4  ;;  %4717 = vmatmul.bf16.gmra.mxu1 %v6092_v16  ;;  %4806 = vmatmul.bf16.gmra.mxu2 %v6096_v29 }
 0x25c   : > { %4895 = vmatmul.bf16.gmra.mxu3 %v6100_v51 }
 0x25d   : > { %4984 = vmatmul.bf16.gmra.mxu0 %v6104_v49  ;;  %5003 = vst [vmem:[%s7829_s8 + $0x68] sm:$0xff] %v4943_v1  ;;  %v5034_v7 = vadd.f32 %v5033_v15, %v4943_v1  ;;  %v5073_v34 = vmul.f32 %v4943_v1, %v4943_v1 }
 0x25e   : > { %v4767_v14 = vpop.f32.mrf.mxu2 }
 0x25f   : > { %v5104_v0 = vadd.f32 %v5103_v18, %v5073_v34  ;;  %v4768_v39 = vadd.f32 %v4767_v14, %v4679_v54  ;;  %v4856_v3 = vpop.f32.mrf.mxu3 }
 0x260   : > { %v4680_v43 = vpop.f32.mrf.mxu1 }
 0x261   : > { %v4857_v38 = vadd.f32 %v4856_v3, %v4768_v39  ;;  %v4681_v24 = vadd.f32 %v4680_v43, %v7581_v62 }
 0x262   : > { %v4947_v12 = vpop.f32.mrf.mxu0 }
 0x263   : > { %v4946_v17 = vadd.f32 %v4945_v23, %v4857_v38 }
 0x265   : > { %5004 = vst [vmem:[%s7829_s8 + $0x70] sm:$0xff] %v4946_v17  ;;  %v5035_v21 = vadd.f32 %v5034_v7, %v4946_v17  ;;  %v5074_v55 = vmul.f32 %v4946_v17, %v4946_v17 }
 0x266   : > { %v4769_v63 = vpop.f32.mrf.mxu2 }
 0x267   : > { %v5105_v45 = vadd.f32 %v5104_v0, %v5074_v55  ;;  %v4770_v30 = vadd.f32 %v4769_v63, %v4681_v24  ;;  %v4858_v27 = vpop.f32.mrf.mxu3 }
 0x268   : > { %v4683_v28 = vpop.f32.mrf.mxu1 }
 0x269   : > { %v4859_v60 = vadd.f32 %v4858_v27, %v4770_v30  ;;  %v4684_v11 = vadd.f32 %v4683_v28, %v7599_v48 }
 0x26a   : > { %v4950_v22 = vpop.f32.mrf.mxu0 }
 0x26b   : > { %v4948_v10 = vadd.f32 %v4947_v12, %v4859_v60 }
 0x26d   : > { %5005 = vst [vmem:[%s7829_s8 + $0x78] sm:$0xff] %v4948_v10  ;;  %v5036_v44 = vadd.f32 %v5035_v21, %v4948_v10  ;;  %v5075_v25 = vmul.f32 %v4948_v10, %v4948_v10 }
 0x26e   : > { %v4772_v59 = vpop.f32.mrf.mxu2 }
 0x26f   : > { %v5106_v33 = vadd.f32 %v5105_v45, %v5075_v25  ;;  %v4773_v20 = vadd.f32 %v4772_v59, %v4684_v11  ;;  %v4861_v40 = vpop.f32.mrf.mxu3 }
 0x270   : > { %v4685_v58 = vpop.f32.mrf.mxu1 }
 0x271   : > { %v4862_v62 = vadd.f32 %v4861_v40, %v4773_v20  ;;  %v4686_v57 = vadd.f32 %v4685_v58, %v7610_v5 }
 0x272   : > { %v4952_v15 = vpop.f32.mrf.mxu0 }
 0x273   : > { %v4951_v47 = vadd.f32 %v4950_v22, %v4862_v62 }
 0x275   : > { %5006 = vst [vmem:[%s7829_s8 + $0x80] sm:$0xff] %v4951_v47  ;;  %v5037_v26 = vadd.f32 %v5036_v44, %v4951_v47  ;;  %v5076_v53 = vmul.f32 %v4951_v47, %v4951_v47 }
 0x276   : > { %v4774_v61 = vpop.f32.mrf.mxu2 }
 0x277   : > { %v5107_v18 = vadd.f32 %v5106_v33, %v5076_v53  ;;  %v4775_v37 = vadd.f32 %v4774_v61, %v4686_v57  ;;  %v4863_v9 = vpop.f32.mrf.mxu3 }
 0x278   : > { %v4688_v16 = vpop.f32.mrf.mxu1 }
 0x279   : > { %v4864_v48 = vadd.f32 %v4863_v9, %v4775_v37  ;;  %v4689_v4 = vadd.f32 %v4688_v16, %v7628_v52 }
 0x27a   : > { %v4955_v29 = vpop.f32.mrf.mxu0 }
 0x27b   : > { %v4953_v42 = vadd.f32 %v4952_v15, %v4864_v48 }
 0x27d   : > { %5007 = vst [vmem:[%s7829_s8 + $0x88] sm:$0xff] %v4953_v42  ;;  %v5038_v51 = vadd.f32 %v5037_v26, %v4953_v42  ;;  %v5077_v49 = vmul.f32 %v4953_v42, %v4953_v42 }
 0x27e   : > { %v4777_v23 = vpop.f32.mrf.mxu2 }
 0x27f   : > { %v5108_v1 = vadd.f32 %v5107_v18, %v5077_v49  ;;  %v4778_v7 = vadd.f32 %v4777_v23, %v4689_v4  ;;  %v4866_v34 = vpop.f32.mrf.mxu3 }
 0x280   : > { %v4690_v54 = vpop.f32.mrf.mxu1 }
 0x281   : > { %v4867_v5 = vadd.f32 %v4866_v34, %v4778_v7  ;;  %v4691_v43 = vadd.f32 %v4690_v54, %v7639_v35 }
 0x282   : > { %v4957_v14 = vpop.f32.mrf.mxu0 }
 0x283   : > { %v4956_v0 = vadd.f32 %v4955_v29, %v4867_v5 }
 0x285   : > { %5008 = vst [vmem:[%s7829_s8 + $0x90] sm:$0xff] %v4956_v0  ;;  %v5039_v39 = vadd.f32 %v5038_v51, %v4956_v0  ;;  %v5078_v3 = vmul.f32 %v4956_v0, %v4956_v0 }
 0x286   : > { %v4779_v38 = vpop.f32.mrf.mxu2 }
 0x287   : > { %v5109_v12 = vadd.f32 %v5108_v1, %v5078_v3  ;;  %v4780_v17 = vadd.f32 %v4779_v38, %v4691_v43  ;;  %v4868_v21 = vpop.f32.mrf.mxu3 }
 0x288   : > { %v4693_v55 = vpop.f32.mrf.mxu1 }
 0x289   : > { %v4869_v52 = vadd.f32 %v4868_v21, %v4780_v17  ;;  %v4694_v27 = vadd.f32 %v4693_v55, %v7657_v2 }
 0x28a   : > { %v4960_v24 = vpop.f32.mrf.mxu0 }
 0x28b   : > { %v4958_v63 = vadd.f32 %v4957_v14, %v4869_v52 }
 0x28d   : > { %5009 = vst [vmem:[%s7829_s8 + $0x98] sm:$0xff] %v4958_v63  ;;  %v5040_v45 = vadd.f32 %v5039_v39, %v4958_v63  ;;  %v5079_v30 = vmul.f32 %v4958_v63, %v4958_v63 }
 0x28e   : > { %v4782_v28 = vpop.f32.mrf.mxu2 }
 0x28f   : > { %v5110_v60 = vadd.f32 %v5109_v12, %v5079_v30  ;;  %v4783_v22 = vadd.f32 %v4782_v28, %v4694_v27  ;;  %v4871_v10 = vpop.f32.mrf.mxu3 }
 0x290   : > { %v4695_v44 = vpop.f32.mrf.mxu1 }
 0x291   : > { %v4872_v35 = vadd.f32 %v4871_v10, %v4783_v22  ;;  %v4696_v20 = vadd.f32 %v4695_v44, %v7668_v36 }
 0x292   : > { %v4962_v25 = vpop.f32.mrf.mxu0 }
 0x293   : > { %v4961_v11 = vadd.f32 %v4960_v24, %v4872_v35 }
 0x295   : > { %5010 = vst [vmem:[%s7829_s8 + $0xa0] sm:$0xff] %v4961_v11  ;;  %v5041_v59 = vadd.f32 %v5040_v45, %v4961_v11  ;;  %v5080_v33 = vmul.f32 %v4961_v11, %v4961_v11 }
 0x296   : > { %v4784_v40 = vpop.f32.mrf.mxu2 }
 0x297   : > { %v5111_v58 = vadd.f32 %v5110_v60, %v5080_v33  ;;  %v4785_v62 = vadd.f32 %v4784_v40, %v4696_v20  ;;  %v4873_v15 = vpop.f32.mrf.mxu3 }
 0x298   : > { %v4698_v47 = vpop.f32.mrf.mxu1 }
 0x299   : > { %v4874_v2 = vadd.f32 %v4873_v15, %v4785_v62  ;;  %v4699_v18 = vadd.f32 %v4698_v47, %v7686_v32 }
 0x29a   : > { %v4965_v26 = vpop.f32.mrf.mxu0 }
 0x29b   : > { %v4963_v53 = vadd.f32 %v4962_v25, %v4874_v2 }
 0x29d   : > { %5011 = vst [vmem:[%s7829_s8 + $0xa8] sm:$0xff] %v4963_v53  ;;  %v5042_v57 = vadd.f32 %v5041_v59, %v4963_v53  ;;  %v5081_v61 = vmul.f32 %v4963_v53, %v4963_v53 }
 0x29e   : > { %v4787_v37 = vpop.f32.mrf.mxu2 }
 0x29f   : > { %v5112_v9 = vadd.f32 %v5111_v58, %v5081_v61  ;;  %v4788_v16 = vadd.f32 %v4787_v37, %v4699_v18  ;;  %v4876_v48 = vpop.f32.mrf.mxu3 }
 0x2a0   : > { %v4700_v29 = vpop.f32.mrf.mxu1 }
 0x2a1   : > { %v4877_v36 = vadd.f32 %v4876_v48, %v4788_v16  ;;  %v4701_v23 = vadd.f32 %v4700_v29, %v7697_v56 }
 0x2a2   : > { %v4967_v42 = vpop.f32.mrf.mxu0 }
 0x2a3   : > { %v4966_v51 = vadd.f32 %v4965_v26, %v4877_v36 }
 0x2a5   : > { %5012 = vst [vmem:[%s7829_s8 + $0xb0] sm:$0xff] %v4966_v51  ;;  %v5043_v49 = vadd.f32 %v5042_v57, %v4966_v51  ;;  %v5082_v4 = vmul.f32 %v4966_v51, %v4966_v51 }
 0x2a6   : > { %v4789_v1 = vpop.f32.mrf.mxu2 }
 0x2a7   : > { %v5113_v7 = vadd.f32 %v5112_v9, %v5082_v4  ;;  %v4790_v34 = vadd.f32 %v4789_v1, %v4701_v23  ;;  %v4878_v54 = vpop.f32.mrf.mxu3 }
 0x2a8   : > { %v4703_v5 = vpop.f32.mrf.mxu1 }
 0x2a9   : > { %v4879_v32 = vadd.f32 %v4878_v54, %v4790_v34  ;;  %v4704_v43 = vadd.f32 %v4703_v5, %v7715_v19 }
 0x2aa   : > { %v4970_v14 = vpop.f32.mrf.mxu0 }
 0x2ab   : > { %v4968_v0 = vadd.f32 %v4967_v42, %v4879_v32 }
 0x2ad   : > { %5013 = vst [vmem:[%s7829_s8 + $0xb8] sm:$0xff] %v4968_v0  ;;  %v5044_v39 = vadd.f32 %v5043_v49, %v4968_v0  ;;  %v5083_v3 = vmul.f32 %v4968_v0, %v4968_v0 }
 0x2ae   : > { %v4792_v38 = vpop.f32.mrf.mxu2 }
 0x2af   : > { %v5114_v12 = vadd.f32 %v5113_v7, %v5083_v3  ;;  %v4793_v17 = vadd.f32 %v4792_v38, %v4704_v43  ;;  %v4881_v21 = vpop.f32.mrf.mxu3 }
 0x2b0   : > { %v4705_v55 = vpop.f32.mrf.mxu1 }
 0x2b1   : > { %v4882_v56 = vadd.f32 %v4881_v21, %v4793_v17  ;;  %v4706_v30 = vadd.f32 %v4705_v55, %v7726_v41 }
 0x2b2   : > { %v4972_v52 = vpop.f32.mrf.mxu0 }
 0x2b3   : > { %v4971_v24 = vadd.f32 %v4970_v14, %v4882_v56 }
 0x2b5   : > { %5014 = vst [vmem:[%s7829_s8 + $0xc0] sm:$0xff] %v4971_v24  ;;  %v5045_v63 = vadd.f32 %v5044_v39, %v4971_v24  ;;  %v5084_v45 = vmul.f32 %v4971_v24, %v4971_v24 }
 0x2b6   : > { %v4794_v27 = vpop.f32.mrf.mxu2 }
 0x2b7   : > { %v5115_v28 = vadd.f32 %v5114_v12, %v5084_v45  ;;  %v4795_v60 = vadd.f32 %v4794_v27, %v4706_v30  ;;  %v4883_v22 = vpop.f32.mrf.mxu3 }
 0x2b8   : > { %v4708_v10 = vpop.f32.mrf.mxu1 }
 0x2b9   : > { %v4884_v19 = vadd.f32 %v4883_v22, %v4795_v60  ;;  %v4709_v59 = vadd.f32 %v4708_v10, %v7744_v46 }
 0x2ba   : > { %v4975_v44 = vpop.f32.mrf.mxu0 }
 0x2bb   : > { %v4973_v35 = vadd.f32 %v4972_v52, %v4884_v19 }
 0x2bd   : > { %5015 = vst [vmem:[%s7829_s8 + $0xc8] sm:$0xff] %v4973_v35  ;;  %v5046_v25 = vadd.f32 %v5045_v63, %v4973_v35  ;;  %v5085_v11 = vmul.f32 %v4973_v35, %v4973_v35 }
 0x2be   : > { %v4797_v33 = vpop.f32.mrf.mxu2 }
 0x2bf   : > { %v5116_v20 = vadd.f32 %v5115_v28, %v5085_v11  ;;  %v4798_v40 = vadd.f32 %v4797_v33, %v4709_v59  ;;  %v4886_v58 = vpop.f32.mrf.mxu3 }
 0x2c0   : > { %v4710_v62 = vpop.f32.mrf.mxu1 }
 0x2c1   : > { %v4887_v41 = vadd.f32 %v4886_v58, %v4798_v40  ;;  %v4711_v53 = vadd.f32 %v4710_v62, %v7755_v50 }
 0x2c2   : > { %v4977_v15 = vpop.f32.mrf.mxu0 }
 0x2c3   : > { %v4976_v47 = vadd.f32 %v4975_v44, %v4887_v41 }
 0x2c5   : > { %5016 = vst [vmem:[%s7829_s8 + $0xd0] sm:$0xff] %v4976_v47  ;;  %v5047_v2 = vadd.f32 %v5046_v25, %v4976_v47  ;;  %v5086_v26 = vmul.f32 %v4976_v47, %v4976_v47 }
 0x2c6   : > { %v4799_v57 = vpop.f32.mrf.mxu2 }
 0x2c7   : > { %v5117_v61 = vadd.f32 %v5116_v20, %v5086_v26  ;;  %v4800_v18 = vadd.f32 %v4799_v57, %v4711_v53  ;;  %v4888_v37 = vpop.f32.mrf.mxu3 }
 0x2c8   : > { %v4713_v46 = vpop.f32.mrf.mxu1 }
 0x2c9   : > { %v4889_v9 = vadd.f32 %v4888_v37, %v4800_v18  ;;  %v4714_v42 = vadd.f32 %v4713_v46, %v7773_v13 }
 0x2ca   : > { %v4980_v48 = vpop.f32.mrf.mxu0 }
 0x2cb   : > { %v4978_v16 = vadd.f32 %v4977_v15, %v4889_v9 }
 0x2cd   : > { %5017 = vst [vmem:[%s7829_s8 + $0xd8] sm:$0xff] %v4978_v16  ;;  %v5048_v29 = vadd.f32 %v5047_v2, %v4978_v16  ;;  %v5087_v36 = vmul.f32 %v4978_v16, %v4978_v16 }
 0x2ce   : > { %v4802_v51 = vpop.f32.mrf.mxu2 }
 0x2cf   : > { %v5118_v49 = vadd.f32 %v5117_v61, %v5087_v36  ;;  %v4803_v4 = vadd.f32 %v4802_v51, %v4714_v42  ;;  %v4891_v23 = vpop.f32.mrf.mxu3 }
 0x2d0   : > { %v4715_v50 = vpop.f32.mrf.mxu1 }
 0x2d1   : > { %v4892_v1 = vadd.f32 %v4891_v23, %v4803_v4  ;;  %v4716_v5 = vadd.f32 %v4715_v50, %v7784_v8 }
 0x2d2   : > { %v4982_v32 = vpop.f32.mrf.mxu0 }
 0x2d3   : > { %v4981_v7 = vadd.f32 %v4980_v48, %v4892_v1 }
 0x2d5   : > { %5018 = vst [vmem:[%s7829_s8 + $0xe0] sm:$0xff] %v4981_v7  ;;  %v5049_v34 = vadd.f32 %v5048_v29, %v4981_v7  ;;  %v5088_v54 = vmul.f32 %v4981_v7, %v4981_v7 }
 0x2d6   : > { %v4804_v14 = vpop.f32.mrf.mxu2 }
 0x2d7   : > { %v5119_v0 = vadd.f32 %v5118_v49, %v5088_v54  ;;  %v4805_v39 = vadd.f32 %v4804_v14, %v4716_v5  ;;  %v4893_v3 = vpop.f32.mrf.mxu3 }
 0x2d8   : > { %v4718_v13 = vpop.f32.mrf.mxu1 }
 0x2d9   : > { %v4894_v43 = vadd.f32 %v4893_v3, %v4805_v39  ;;  %v4719_v21 = vadd.f32 %v4718_v13, %v7802_v6 }
 0x2da   : > { %v4985_v8 = vpop.f32.mrf.mxu0 }
 0x2db   : > { %v4983_v38 = vadd.f32 %v4982_v32, %v4894_v43 }
 0x2dd   : > { %5019 = vst [vmem:[%s7829_s8 + $0xe8] sm:$0xff] %v4983_v38  ;;  %v5050_v12 = vadd.f32 %v5049_v34, %v4983_v38  ;;  %v5089_v17 = vmul.f32 %v4983_v38, %v4983_v38 }
 0x2de   : > { %v4807_v55 = vpop.f32.mrf.mxu2 }
 0x2df   : > { %v5120_v56 = vadd.f32 %v5119_v0, %v5089_v17  ;;  %v4808_v52 = vadd.f32 %v4807_v55, %v4719_v21  ;;  %v4896_v24 = vpop.f32.mrf.mxu3 }
 0x2e0   : > { %v4720_v45 = vpop.f32.mrf.mxu1 }
 0x2e1   : > { %v4897_v63 = vadd.f32 %v4896_v24, %v4808_v52  ;;  %v4721_v60 = vadd.f32 %v4720_v45, %v7812_v31 }
 0x2e2   : > { %v4987_v35 = vpop.f32.mrf.mxu0 }
 0x2e3   : > { %v4986_v30 = vadd.f32 %v4985_v8, %v4897_v63 }
 0x2e5   : > { %5020 = vst [vmem:[%s7829_s8 + $0xf0] sm:$0xff] %v4986_v30  ;;  %v5051_v27 = vadd.f32 %v5050_v12, %v4986_v30  ;;  %v5090_v28 = vmul.f32 %v4986_v30, %v4986_v30 }
 0x2e6   : > { %v4809_v22 = vpop.f32.mrf.mxu2 }
 0x2e7   : > { %v5121_v10 = vadd.f32 %v5120_v56, %v5090_v28  ;;  %v4810_v19 = vadd.f32 %v4809_v22, %v4721_v60  ;;  %v4898_v44 = vpop.f32.mrf.mxu3 }
 0x2e9   : > { %v4899_v6 = vadd.f32 %v4898_v44, %v4810_v19 }
 0x2eb   : > { %v4988_v25 = vadd.f32 %v4987_v35, %v4899_v6 }
 0x2ed   : > { %5021 = vst [vmem:[%s7829_s8 + $0xf8] sm:$0xff] %v4988_v25  ;;  %v5052_v11 = vadd.f32 %v5051_v27, %v4988_v25  ;;  %v5091_v59 = vmul.f32 %v4988_v25, %v4988_v25 }
 0x2ef   : > { %v5053_v33 = vrot.slane %v5052_v11, 4  ;;  %v5122_v20 = vadd.f32 %v5121_v10, %v5091_v59 }
 0x2f1   : > { %v5054_v40 = vadd.f32 %v5053_v33, %v5052_v11  ;;  %v5123_v58 = vrot.slane %v5122_v20, 4 }
 0x2f3   : > { %v5055_v62 = vrot.slane %v5054_v40, 2  ;;  %v5124_v41 = vadd.f32 %v5123_v58, %v5122_v20 }
 0x2f5   : > { %v5056_v15 = vadd.f32 %v5055_v62, %v5054_v40  ;;  %v5125_v31 = vrot.slane %v5124_v41, 2 }
 0x2f7   : > { %v5057_v47 = vrot.slane %v5056_v15, 1  ;;  %v5126_v2 = vadd.f32 %v5125_v31, %v5124_v41 }
 0x2f9   : > { %v5058_v26 = vadd.f32 %v5057_v47, %v5056_v15  ;;  %v5127_v53 = vrot.slane %v5126_v2, 1 }
 0x2fb   : > { %5059 = vst [vmem:[%s208_s11] sm:$0x1] %v5058_v26  ;;  %v5128_v57 = vadd.f32 %v5127_v53, %v5126_v2 }
 0x2fd   : > { %5129 = vst [vmem:[%s208_s11 + $0x1] sm:$0x1] %v5128_v57 }
 0x2fe PF: > { %s15_s15 = sadd.s32 1, %s6653_s15  }
 0x2ff   : > { %p12_p4 = scmp.ge.s32.totalorder %s15_s15, 4  }
 0x301   :  { %14 = sbr.rel (!%p12_p4) target bundleno = 1 (0x1), region = 76 }

// kernel: double_conv.4
= control target key start
LH: loop header
LB: loop body
LE: loop exit
PB: predicated region body
PF: predicated region fallthrough
CT: control target
= control target key end

     0   :  { %s7287_s21 = smov 0   ;;  %s8771_s0 = inlined_call_operand.vmem [shape: f32[2,16,16,128], index: 0, kind: input, shape index: {}]   ;;  %s8772_s1 = inlined_call_operand.vmem [shape: f32[1,128], index: 1, kind: input, shape index: {}]   ;;  %s8773_s2 = inlined_call_operand.vmem [shape: f32[1,128], index: 2, kind: input, shape index: {}]   ;;  %s8774_s3 = inlined_call_operand.vmem [shape: bf16[1152,128], index: 3, kind: input, shape index: {}]   ;;  %s8775_s4 = inlined_call_operand.vmem [shape: f32[1,128], index: 4, kind: input, shape index: {}]   ;;  %s8776_s5 = inlined_call_operand.vmem [shape: f32[2,16,16,128], index: 5, kind: output, shape index: {0}]   ;;  %s8777_s6 = inlined_call_operand.vmem [shape: f32[2,2,128], index: 6, kind: output, shape index: {1}]  }
   0x1 LB: > { %s6059_s22 = sadd.s32 4294967295, %s7249_s21   ;;  %p6063_p0 = scmp.ge.s32.totalorder %s7249_s21, 1  ;;  %s7249_s21 = sphi %s7287_s21, %s17_s21  }
   0x2   : > { %p215_p1 = scmp.lt.s32.totalorder %s7249_s21, 3 }
   0x4   : > { %p216_p2 = pnand %p6063_p0, %p215_p1 }
   0x6   : > { %219 = sbr.rel (%p216_p2) target bundleno = 829 (0x33d), region = 40 }
   0xb   : > { %v7136_v0 = vld [vmem:[%s8774_s3 + $0x38] sm:$0xff]  ;;  %p249_p3 = scmp.lt.s32.totalorder %s6059_s22, 1  ;;  %vm503_vm0 = vcmask 1040384   ;;  %vm504_vm1 = vsmask.f32 256  ;;  %v7135_v1 = vld [vmem:[%s8774_s3 + $0x30] sm:$0xff] }
   0xc   : > { %7201 = vmatpush.bf16.msra.mxu1 %v7136_v0  ;;  %7202 = vmatpush.bf16.msra.mxu2 %v7136_v0  ;;  %v7306_v2 = vld [vmem:[%s8772_s1] ss:$0 sm:$0xff]  ;;  %vm7311_vm2 = vmand %vm503_vm0, %vm504_vm1  ;;  %v518_v4 = vld [vmem:[#allocation2 + $0x30] sm:$0x1]  ;;  %vm560_vm3 = vsmask.f32 7938 }
   0xd   : > { %s8819_s22 = smov (!%p249_p3, %s6059_s22), 1  ;;  %7203 = vmatpush.bf16.msra.mxu3 %v7136_v0  ;;  %5032 = vmatpush.bf16.msra.mxu0 %v7136_v0  ;;  %v7325_v5 = vld [vmem:[%s8773_s2] ss:$0 sm:$0xff]  ;;  %v519_v6 = vsel %vm7311_vm2, 0, %v518_v4  ;;  %vm7331_vm4 = vmand %vm503_vm0, %vm560_vm3  ;;  %v7134_v9 = vld [vmem:[%s8774_s3 + $0x28] sm:$0xff]  ;;  %vm939_vm5 = vcmask 1043456  }
   0xe   : > { %s6983_s29 = sshll.u32 %s8819_s22, 8  ;;  %v530_v8 = vld [vmem:[#allocation2 + $0x60] sm:$0x1]  ;;  %520 = vst [vmem:[#allocation2 + $0x30] sm:$0x1] %v519_v6  ;;  %v7251_v22 = vmov 0   ;;  %vm7392_vm14 = vmand %vm939_vm5, %vm560_vm3 }
   0xf   : > { %s7320_s8 = scalar_lea.vmem %s8771_s0, %s6983_s29  ;;  %v531_v12 = vsel %vm7311_vm2, 0, %v530_v8  ;;  %v542_v21 = vld [vmem:[#allocation2 + $0x90] sm:$0x1]  ;;  %496 = vst [vmem:[#allocation2] sm:$0xf] %v7251_v22  ;;  %v7133_v28 = vld [vmem:[%s8774_s3 + $0x20] sm:$0xff]  ;;  %s8626_s28 = scalar_lea.vmem %s8776_s5, %s6983_s29 }
  0x10   : > { %7204 = vmatpush.bf16.msra.mxu1 %v7135_v1  ;;  %7205 = vmatpush.bf16.msra.mxu2 %v7135_v1  ;;  %v270_v10 = vld [vmem:[%s7320_s8 + $0x30] sm:$0xff]  ;;  %v271_v11 = vld [vmem:[%s7320_s8 + $0x38] sm:$0xff]  ;;  %532 = vst [vmem:[#allocation2 + $0x60] sm:$0x1] %v531_v12  ;;  %v543_v31 = vsel %vm7311_vm2, 0, %v542_v21  ;;  %s6068_s29 = sshll.u32 %s8819_s22, 1 }
  0x11   : > { %7206 = vmatpush.bf16.msra.mxu3 %v7135_v1  ;;  %5033 = vmatpush.bf16.msra.mxu0 %v7135_v1  ;;  %v306_v13 = vmul.f32 %v7306_v2, %v270_v10  ;;  %v307_v14 = vmul.f32 %v7306_v2, %v271_v11  ;;  %v278_v15 = vld [vmem:[%s7320_s8 + $0x70] sm:$0xff]  ;;  %v279_v16 = vld [vmem:[%s7320_s8 + $0x78] sm:$0xff]  ;;  %497 = vst [vmem:[#allocation2 + $0x4] sm:$0xf] %v7251_v22  ;;  %vm616_vm10 = vsmask.f32 4368  ;;  %s262_s9 = scalar_lea.vmem %s8777_s6, %s6068_s29 }
  0x12   : > { %v314_v17 = vmul.f32 %v7306_v2, %v278_v15  ;;  %v315_v18 = vmul.f32 %v7306_v2, %v279_v16  ;;  %v286_v19 = vld [vmem:[%s7320_s8 + $0xb0] sm:$0xff]  ;;  %v287_v20 = vld [vmem:[%s7320_s8 + $0xb8] sm:$0xff]  ;;  %498 = vst [vmem:[#allocation2 + $0x8] sm:$0x1] %v7251_v22  ;;  %vm7382_vm13 = vmor %vm504_vm1, %vm616_vm10 }
  0x13   : > { %v342_v23 = vadd.f32 %v7325_v5, %v306_v13  ;;  %v343_v24 = vadd.f32 %v7325_v5, %v307_v14  ;;  %v322_v25 = vmul.f32 %v7306_v2, %v286_v19  ;;  %v323_v26 = vmul.f32 %v7306_v2, %v287_v20  ;;  %v7356_v27 = vld [vmem:[#allocation2 + $0x3c] sm:$0x1]  ;;  %544 = vst [vmem:[#allocation2 + $0x90] sm:$0x1] %v543_v31  ;;  %v7131_v58 = vld [vmem:[%s8774_s3 + $0x10] sm:$0xff]  ;;  %v7130_v14 = vld [vmem:[%s8774_s3 + $0x8] sm:$0xff] }
  0x14   : > { %7207 = vmatpush.bf16.msra.mxu1 %v7134_v9  ;;  %7208 = vmatpush.bf16.msra.mxu2 %v7134_v9  ;;  %v350_v29 = vadd.f32 %v7325_v5, %v314_v17  ;;  %v351_v30 = vadd.f32 %v7325_v5, %v315_v18  ;;  %v522_v32 = vsel %vm7311_vm2, 0, %v7356_v27  ;;  %v7132_v41 = vld [vmem:[%s8774_s3 + $0x18] sm:$0xff]  ;;  %500 = vst [vmem:[#allocation2 + $0xcc] sm:$0xf] %v7251_v22  ;;  %v533_v0 = vld [vmem:[#allocation2 + $0x6c] sm:$0x1] }
  0x15   : > { %7209 = vmatpush.bf16.msra.mxu3 %v7134_v9  ;;  %5034 = vmatpush.bf16.msra.mxu0 %v7134_v9  ;;  %vm374_vm6 = vcmp.gt.f32.partialorder %v342_v23, 0.0  ;;  %vm375_vm7 = vcmp.gt.f32.partialorder %v343_v24, 0.0  ;;  %v406_v33 = vmul.f32 0.1, %v342_v23  ;;  %v407_v34 = vmul.f32 0.1, %v343_v24 }
  0x16   : > { %vm382_vm8 = vcmp.gt.f32.partialorder %v350_v29, 0.0  ;;  %vm383_vm9 = vcmp.gt.f32.partialorder %v351_v30, 0.0  ;;  %v414_v35 = vmul.f32 0.1, %v350_v29  ;;  %v415_v36 = vmul.f32 0.1, %v351_v30 }
  0x17   : > { %v438_v37 = vsel %vm374_vm6, %v342_v23, %v406_v33  ;;  %v439_v38 = vsel %vm375_vm7, %v343_v24, %v407_v34  ;;  %v358_v39 = vadd.f32 %v7325_v5, %v322_v25  ;;  %v359_v40 = vadd.f32 %v7325_v5, %v323_v26  ;;  %v506_v47 = vld [vmem:[#allocation2] sm:$0x1]  ;;  %501 = vst [vmem:[#allocation2 + $0xd0] sm:$0xf] %v7251_v22  ;;  %v962_v53 = vld [vmem:[#allocation2 + $0x30] sm:$0xf] }
  0x18   : > { %7210 = vmatpush.bf16.msra.mxu1 %v7133_v28  ;;  %7211 = vmatpush.bf16.msra.mxu2 %v7133_v28  ;;  %v470_v42 = vpack.c.bf16 %v438_v37, %v438_v37  ;;  %v471_v43 = vpack.c.bf16 %v439_v38, %v439_v38  ;;  %v446_v44 = vsel %vm382_vm8, %v350_v29, %v414_v35  ;;  %v1054_v52 = vld [vmem:[#allocation2 + $0x4] sm:$0xf]  ;;  %v507_v63 = vsel %vm7311_vm2, 0, %v506_v47  ;;  %v990_v13 = vld [vmem:[#allocation2 + $0x60] sm:$0xf]  ;;  %v273_v23 = vld [vmem:[%s7320_s8 + $0x48] sm:$0xff] }
  0x19   : > { %7212 = vmatpush.bf16.msra.mxu3 %v7133_v28  ;;  %5035 = vmatpush.bf16.msra.mxu0 %v7133_v28  ;;  %v447_v45 = vsel %vm383_vm9, %v351_v30, %v415_v36  ;;  %v478_v46 = vpack.c.bf16 %v446_v44, %v446_v44  ;;  %vm390_vm11 = vcmp.gt.f32.partialorder %v358_v39, 0.0  ;;  %vm391_vm12 = vcmp.gt.f32.partialorder %v359_v40, 0.0  ;;  %1086 = vst [vmem:[#allocation3 + $0x24] sm:$0xf] %v1054_v52  ;;  %v272_v19 = vld [vmem:[%s7320_s8 + $0x40] sm:$0xff]  ;;  %v281_v25 = vld [vmem:[%s7320_s8 + $0x88] sm:$0xff] }
  0x1a   : > { %v670_v48 = vshrl.u32 %v470_v42, 16  ;;  %v673_v49 = vshll.u32 %v470_v42, 16  ;;  %v678_v50 = vshrl.u32 %v471_v43, 16  ;;  %v681_v51 = vshll.u32 %v471_v43, 16  ;;  %508 = vst [vmem:[#allocation2] sm:$0x1] %v507_v63 }
  0x1b   : > { %v479_v54 = vpack.c.bf16 %v447_v45, %v447_v45  ;;  %v738_v55 = vshrl.u32 %v478_v46, 16  ;;  %v741_v56 = vshll.u32 %v478_v46, 16  ;;  %v422_v57 = vmul.f32 0.1, %v358_v39  ;;  %502 = vst [vmem:[#allocation2 + $0xd4] sm:$0x1] %v7251_v22 }
  0x1c   : > { %7213 = vmatpush.bf16.msra.mxu1 %v7132_v41  ;;  %7214 = vmatpush.bf16.msra.mxu2 %v7132_v41  ;;  %v672_v60 = vrot.slane %v670_v48, 7  ;;  %v7386_v61 = vrot.slane %v678_v50, 7  ;;  %v423_v62 = vmul.f32 0.1, %v359_v40  ;;  %523 = vst [vmem:[#allocation2 + $0x3c] sm:$0x1] %v522_v32  ;;  %v308_v32 = vmul.f32 %v7306_v2, %v272_v19 }
  0x1d   : > { %7215 = vmatpush.bf16.msra.mxu3 %v7132_v41  ;;  %5036 = vmatpush.bf16.msra.mxu0 %v7132_v41  ;;  %v740_v4 = vrot.slane %v738_v55, 7  ;;  %v746_v6 = vshrl.u32 %v479_v54, 16  ;;  %v749_v8 = vshll.u32 %v479_v54, 16  ;;  %v454_v9 = vsel %vm390_vm11, %v358_v39, %v422_v57  ;;  %v280_v24 = vld [vmem:[%s7320_s8 + $0x80] sm:$0xff]  ;;  %v7425_v34 = vld [vmem:[#allocation2 + $0x90] sm:$0xf] }
  0x1e   : > { %v675_v10 = vor.u32 %v673_v49, %v672_v60  ;;  %v676_v11 = vrot.slane %v672_v60, 4  ;;  %v683_v12 = vor.u32 %v681_v51, %v7386_v61  ;;  %v455_v18 = vsel %vm391_vm12, %v359_v40, %v423_v62  ;;  %v7129_v38 = vld [vmem:[%s8774_s3] sm:$0xff]  ;;  %v7152_v43 = vld [vmem:[%s8774_s3 + $0xb8] sm:$0xff]  ;;  %v7151_v62 = vld [vmem:[%s8774_s3 + $0xb0] sm:$0xff] }
  0x1f   : > { %v743_v15 = vor.u32 %v741_v56, %v740_v4  ;;  %v744_v16 = vrot.slane %v740_v4, 4  ;;  %v7402_v17 = vrot.slane %v746_v6, 7  ;;  %v486_v22 = vpack.c.bf16 %v454_v9, %v454_v9  ;;  %v7160_v45 = vld [vmem:[%s8774_s3 + $0xf8] sm:$0xff]  ;;  %v289_v63 = vld [vmem:[%s7320_s8 + $0xc8] sm:$0xff] }
  0x20   : > { %7216 = vmatpush.bf16.msra.mxu1 %v7131_v58  ;;  %7217 = vmatpush.bf16.msra.mxu2 %v7131_v58  ;;  %v684_v20 = vsel %vm7382_vm13, %v676_v11, %v683_v12  ;;  %v963_v21 = vsel %vm7392_vm14, %v675_v10, %v962_v53  ;;  %v534_v28 = vsel %vm7311_vm2, 0, %v533_v0  ;;  %v487_v29 = vpack.c.bf16 %v455_v18, %v455_v18  ;;  %v7144_v52 = vld [vmem:[%s8774_s3 + $0x78] sm:$0xff]  ;;  %v288_v53 = vld [vmem:[%s7320_s8 + $0xc0] sm:$0xff]  ;;  %v7159_v12 = vld [vmem:[%s8774_s3 + $0xf0] sm:$0xff] }
  0x21   : > { %7218 = vmatpush.bf16.msra.mxu3 %v7131_v58  ;;  %5037 = vmatpush.bf16.msra.mxu0 %v7131_v58  ;;  %964 = vst [vmem:[#allocation2 + $0x30] sm:$0xf] %v963_v21  ;;  %v751_v26 = vor.u32 %v749_v8, %v7402_v17  ;;  %v991_v27 = vsel %vm7392_vm14, %v743_v15, %v990_v13  ;;  %v806_v30 = vshrl.u32 %v486_v22, 16  ;;  %v809_v31 = vshll.u32 %v486_v22, 16  ;;  %v1053_v44 = vld [vmem:[#allocation2] sm:$0xf] }
  0x22   : > { %965 = vst [vmem:[#allocation2 + $0x34] sm:$0xf] %v684_v20  ;;  %v309_v35 = vmul.f32 %v7306_v2, %v273_v23  ;;  %v316_v36 = vmul.f32 %v7306_v2, %v280_v24  ;;  %v317_v37 = vmul.f32 %v7306_v2, %v281_v25  ;;  %v814_v40 = vshrl.u32 %v487_v29, 16  ;;  %v7168_v54 = vld [vmem:[%s8774_s3 + $0x138] sm:$0xff]  ;;  %v7143_v13 = vld [vmem:[%s8774_s3 + $0x70] sm:$0xff] }
  0x23   : > { %v752_v33 = vsel %vm7382_vm13, %v744_v16, %v751_v26  ;;  %992 = vst [vmem:[#allocation2 + $0x60] sm:$0xf] %v991_v27  ;;  %v808_v39 = vrot.slane %v806_v30, 7  ;;  %v817_v41 = vshll.u32 %v487_v29, 16  ;;  %v344_v42 = vadd.f32 %v7325_v5, %v308_v32  ;;  %v6989_v4 = vld [vmem:[#allocation3 + $0x20] sm:$0xf0] }
  0x24   : > { %7219 = vmatpush.bf16.msra.mxu1 %v7130_v14  ;;  %7220 = vmatpush.bf16.msra.mxu2 %v7130_v14  ;;  %993 = vst [vmem:[#allocation2 + $0x64] sm:$0xf] %v752_v33  ;;  %v345_v46 = vadd.f32 %v7325_v5, %v309_v35  ;;  %v352_v47 = vadd.f32 %v7325_v5, %v316_v36  ;;  %v7443_v51 = vrot.slane %v814_v40, 7 }
  0x25   : > { %7221 = vmatpush.bf16.msra.mxu3 %v7130_v14  ;;  %5038 = vmatpush.bf16.msra.mxu0 %v7130_v14  ;;  %v353_v48 = vadd.f32 %v7325_v5, %v317_v37  ;;  %535 = vst [vmem:[#allocation2 + $0x6c] sm:$0x1] %v534_v28  ;;  %v811_v49 = vor.u32 %v809_v31, %v808_v39  ;;  %v812_v50 = vrot.slane %v808_v39, 4  ;;  %vm376_vm15 = vcmp.gt.f32.partialorder %v344_v42, 0.0  ;;  %v265_v39 = vld [vmem:[%s7320_s8 + $0x8] sm:$0xff] }
  0x26   : > { %1085 = vst [vmem:[#allocation3] sm:$0xf] %v1053_v44  ;;  %vm377_vm0 = vcmp.gt.f32.partialorder %v345_v46, 0.0  ;;  %v408_v55 = vmul.f32 0.1, %v344_v42  ;;  %v819_v58 = vor.u32 %v817_v41, %v7443_v51  ;;  %vm384_vm1 = vcmp.gt.f32.partialorder %v352_v47, 0.0 }
  0x27   : > { %v409_v56 = vmul.f32 0.1, %v345_v46  ;;  %v1019_v60 = vsel %vm7392_vm14, %v811_v49, %v7425_v34  ;;  %vm385_vm3 = vcmp.gt.f32.partialorder %v353_v48, 0.0  ;;  %v416_v9 = vmul.f32 0.1, %v352_v47 }
  0x28   : > { %7222 = vmatpush.bf16.msra.mxu1 %v7129_v38  ;;  %7223 = vmatpush.bf16.msra.mxu2 %v7129_v38  ;;  %v1061_v57 = vld [vmem:[#allocation2 + $0x30] sm:$0xf]  ;;  %v440_v6 = vsel %vm376_vm15, %v344_v42, %v408_v55  ;;  %v820_v11 = vsel %vm7382_vm13, %v812_v50, %v819_v58  ;;  %v417_v18 = vmul.f32 0.1, %v353_v48  ;;  %v324_v20 = vmul.f32 %v7306_v2, %v288_v53  ;;  %v969_v34 = vld [vmem:[#allocation2 + $0x3c] sm:$0xf] }
  0x29   : > { %7224 = vmatpush.bf16.msra.mxu3 %v7129_v38  ;;  %5039 = vmatpush.bf16.msra.mxu0 %v7129_v38  ;;  %v1062_v0 = vld [vmem:[#allocation2 + $0x34] sm:$0xf]  ;;  %1093 = vst [vmem:[#allocation3 + $0x120] sm:$0xf] %v1061_v57  ;;  %v441_v8 = vsel %vm377_vm0, %v345_v46, %v409_v56  ;;  %v472_v14 = vpack.c.bf16 %v440_v6, %v440_v6  ;;  %v264_v38 = vld [vmem:[%s7320_s8] sm:$0xff] }
  0x2a   : > { %1094 = vst [vmem:[#allocation3 + $0x144] sm:$0xf] %v1062_v0  ;;  %v1069_v10 = vld [vmem:[#allocation2 + $0x60] sm:$0xf]  ;;  %v473_v15 = vpack.c.bf16 %v441_v8, %v441_v8  ;;  %v448_v19 = vsel %vm384_vm1, %v352_v47, %v416_v9  ;;  %v449_v26 = vsel %vm385_vm3, %v353_v48, %v417_v18  ;;  %v325_v28 = vmul.f32 %v7306_v2, %v289_v63  ;;  %v545_v49 = vld [vmem:[#allocation2 + $0x9c] sm:$0x1] }
  0x2b   : > { %v1070_v16 = vld [vmem:[#allocation2 + $0x64] sm:$0xf]  ;;  %1101 = vst [vmem:[#allocation3 + $0x240] sm:$0xf] %v1069_v10  ;;  %v687_v21 = vshrl.u32 %v472_v14, 16  ;;  %v690_v22 = vshll.u32 %v472_v14, 16  ;;  %v480_v27 = vpack.c.bf16 %v448_v19, %v448_v19  ;;  %v360_v29 = vadd.f32 %v7325_v5, %v324_v20 }
  0x2c   : > { %5210 = vmatpush.bf16.msrb.mxu2 %v7152_v43  ;;  %5121 = vmatpush.bf16.msrb.mxu1 %v7144_v52  ;;  %1102 = vst [vmem:[#allocation3 + $0x264] sm:$0xf] %v1070_v16  ;;  %v695_v23 = vshrl.u32 %v473_v15, 16  ;;  %v698_v24 = vshll.u32 %v473_v15, 16  ;;  %v481_v33 = vpack.c.bf16 %v449_v26, %v449_v26  ;;  %v361_v37 = vadd.f32 %v7325_v5, %v325_v28  ;;  %v997_v44 = vld [vmem:[#allocation2 + $0x6c] sm:$0xf] }
  0x2d   : > { %5299 = vmatpush.bf16.msrb.mxu3 %v7160_v45  ;;  %5388 = vmatpush.bf16.msrb.mxu0 %v7168_v54  ;;  %1020 = vst [vmem:[#allocation2 + $0x90] sm:$0xf] %v1019_v60  ;;  %v6119_v25 = vld [vmem:[#allocation3] sm:$0xf]  ;;  %v689_v31 = vrot.slane %v687_v21, 7  ;;  %v755_v35 = vshrl.u32 %v480_v27, 16  ;;  %v301_v8 = vmul.f32 %v7306_v2, %v265_v39 }
  0x2e   : > { %1021 = vst [vmem:[#allocation2 + $0x94] sm:$0xf] %v820_v11  ;;  %v6120_v30 = vor.u32 %v6989_v4, %v6119_v25  ;;  %v7475_v32 = vrot.slane %v695_v23, 7  ;;  %v758_v36 = vshll.u32 %v480_v27, 16  ;;  %vm392_vm5 = vcmp.gt.f32.partialorder %v360_v29, 0.0  ;;  %v274_v14 = vld [vmem:[%s7320_s8 + $0x50] sm:$0xff] }
  0x2f   : > { %v692_v41 = vor.u32 %v690_v22, %v689_v31  ;;  %v693_v42 = vrot.slane %v689_v31, 4  ;;  %v757_v46 = vrot.slane %v755_v35, 7  ;;  %v763_v47 = vshrl.u32 %v481_v33, 16  ;;  %v509_v20 = vld [vmem:[#allocation2 + $0xc] sm:$0x1]  ;;  %v275_v21 = vld [vmem:[%s7320_s8 + $0x58] sm:$0xff] }
  0x30   : > { %5211 = vmatpush.bf16.msrb.mxu2 %v7151_v62  ;;  %5122 = vmatpush.bf16.msrb.mxu1 %v7143_v13  ;;  %v6263_v40 = vld [vmem:[#allocation3 + $0x120] sm:$0xf]  ;;  %v700_v43 = vor.u32 %v698_v24, %v7475_v32  ;;  %v766_v48 = vshll.u32 %v481_v33, 16  ;;  %vm393_vm6 = vcmp.gt.f32.partialorder %v361_v37, 0.0  ;;  %v424_v55 = vmul.f32 0.1, %v360_v29 }
  0x31   : > { %5300 = vmatpush.bf16.msrb.mxu3 %v7159_v12  ;;  %5040 = vmatmul.bf16.vlgmr.msra.gmra.mxu0 %v6120_v30  ;;  %v7025_v45 = vld [vmem:[#allocation3 + $0x140] sm:$0xf0]  ;;  %v970_v54 = vsel %vm7392_vm14, %v692_v41, %v969_v34  ;;  %v760_v57 = vor.u32 %v758_v36, %v757_v46  ;;  %v761_v58 = vrot.slane %v757_v46, 4  ;;  %v7485_v60 = vrot.slane %v763_v47, 7  ;;  %v7150_v13 = vld [vmem:[%s8774_s3 + $0xa8] sm:$0xff]  ;;  %v282_v26 = vld [vmem:[%s7320_s8 + $0x90] sm:$0xff] }
  0x32   : > { %v6264_v50 = vor.u32 %v7025_v45, %v6263_v40  ;;  %v6407_v52 = vld [vmem:[#allocation3 + $0x240] sm:$0xf]  ;;  %v701_v53 = vsel %vm7382_vm13, %v693_v42, %v700_v43  ;;  %971 = vst [vmem:[#allocation2 + $0x3c] sm:$0xf] %v970_v54  ;;  %v300_v62 = vmul.f32 %v7306_v2, %v264_v38  ;;  %v425_v4 = vmul.f32 0.1, %v361_v37 }
  0x33   : > { %v7061_v56 = vld [vmem:[#allocation3 + $0x260] sm:$0xf0]  ;;  %972 = vst [vmem:[#allocation2 + $0x40] sm:$0xf] %v701_v53  ;;  %v456_v6 = vsel %vm392_vm5, %v360_v29, %v424_v55  ;;  %v768_v10 = vor.u32 %v766_v48, %v7485_v60  ;;  %v998_v11 = vsel %vm7392_vm14, %v760_v57, %v997_v44  ;;  %v546_v16 = vsel %vm7311_vm2, 0, %v545_v49  ;;  %v290_v44 = vld [vmem:[%s7320_s8 + $0xd0] sm:$0xff] }
  0x34   : > { %5060 = vmatmul.bf16.vlgmr.msra.gmra.mxu1 %v6264_v50  ;;  %v6408_v63 = vor.u32 %v7061_v56, %v6407_v52  ;;  %v1077_v0 = vld [vmem:[#allocation2 + $0x90] sm:$0xf]  ;;  %v488_v12 = vpack.c.bf16 %v456_v6, %v456_v6  ;;  %v457_v15 = vsel %vm393_vm6, %v361_v37, %v425_v4  ;;  %v336_v18 = vadd.f32 %v7325_v5, %v300_v62  ;;  %v283_v27 = vld [vmem:[%s7320_s8 + $0x98] sm:$0xff]  ;;  %v7158_v47 = vld [vmem:[%s8774_s3 + $0xe8] sm:$0xff] }
  0x35   : > { %v1078_v9 = vld [vmem:[#allocation2 + $0x94] sm:$0xf]  ;;  %1109 = vst [vmem:[#allocation3 + $0x360] sm:$0xf] %v1077_v0  ;;  %v337_v19 = vadd.f32 %v7325_v5, %v301_v8  ;;  %v769_v22 = vsel %vm7382_vm13, %v761_v58, %v768_v10  ;;  %v489_v23 = vpack.c.bf16 %v457_v15, %v457_v15  ;;  %5212 = vmatpush.bf16.msrb.mxu2 %v7150_v13  ;;  %v510_v34 = vsel %vm7311_vm2, 0, %v509_v20  ;;  %v7142_v57 = vld [vmem:[%s8774_s3 + $0x68] sm:$0xff] }
  0x36   : > { %5080 = vmatmul.bf16.vlgmr.msra.gmra.mxu2 %v6408_v63  ;;  %1110 = vst [vmem:[#allocation3 + $0x384] sm:$0xf] %v1078_v9  ;;  %v823_v24 = vshrl.u32 %v488_v12, 16  ;;  %v826_v25 = vshll.u32 %v488_v12, 16  ;;  %vm368_vm7 = vcmp.gt.f32.partialorder %v336_v18, 0.0  ;;  %v310_v29 = vmul.f32 %v7306_v2, %v274_v14  ;;  %v7167_v48 = vld [vmem:[%s8774_s3 + $0x130] sm:$0xff]  ;;  %5301 = vmatpush.bf16.msrb.mxu3 %v7158_v47 }
  0x37   : > { %999 = vst [vmem:[#allocation2 + $0x6c] sm:$0xf] %v998_v11  ;;  %vm369_vm8 = vcmp.gt.f32.partialorder %v337_v19, 0.0  ;;  %v400_v28 = vmul.f32 0.1, %v336_v18  ;;  %v831_v31 = vshrl.u32 %v489_v23, 16  ;;  %v311_v38 = vmul.f32 %v7306_v2, %v275_v21  ;;  %5389 = vmatpush.bf16.msrb.mxu0 %v7167_v48  ;;  %5123 = vmatpush.bf16.msrb.mxu1 %v7142_v57 }
  0x38   : > { %1000 = vst [vmem:[#allocation2 + $0x70] sm:$0xf] %v769_v22  ;;  %v825_v30 = vrot.slane %v823_v24, 7  ;;  %v834_v33 = vshll.u32 %v489_v23, 16  ;;  %v401_v36 = vmul.f32 0.1, %v337_v19  ;;  %v7512_v39 = vadd.f32 %v7325_v5, %v310_v29 }
  0x39   : > { %547 = vst [vmem:[#allocation2 + $0x9c] sm:$0x1] %v546_v16  ;;  %v1063_v35 = vld [vmem:[#allocation2 + $0x3c] sm:$0xf]  ;;  %v432_v37 = vsel %vm368_vm7, %v336_v18, %v400_v28  ;;  %v7514_v42 = vrot.slane %v831_v31, 7  ;;  %v318_v49 = vmul.f32 %v7306_v2, %v282_v26  ;;  %v319_v50 = vmul.f32 %v7306_v2, %v283_v27  ;;  %v7149_v58 = vld [vmem:[%s8774_s3 + $0xa0] sm:$0xff] }
  0x3a   : > { %511 = vst [vmem:[#allocation2 + $0xc] sm:$0x1] %v510_v34  ;;  %v1064_v40 = vld [vmem:[#allocation2 + $0x40] sm:$0xf]  ;;  %v829_v41 = vrot.slane %v825_v30, 4  ;;  %v464_v43 = vpack.c.bf16 %v432_v37, %v432_v37  ;;  %v433_v46 = vsel %vm369_vm8, %v337_v19, %v401_v36  ;;  %v828_v53 = vor.u32 %v826_v25, %v825_v30  ;;  %v291_v63 = vld [vmem:[%s7320_s8 + $0xd8] sm:$0xff]  ;;  %5213 = vmatpush.bf16.msrb.mxu2 %v7149_v58 }
  0x3b   : > { %1095 = vst [vmem:[#allocation3 + $0x168] sm:$0xf] %v1063_v35  ;;  %v836_v54 = vor.u32 %v834_v33, %v7514_v42  ;;  %v465_v55 = vpack.c.bf16 %v433_v46, %v433_v46  ;;  %v524_v62 = vld [vmem:[#allocation2 + $0x48] sm:$0x1]  ;;  %v266_v0 = vld [vmem:[%s7320_s8 + $0x10] sm:$0xff]  ;;  %v7157_v9 = vld [vmem:[%s8774_s3 + $0xe0] sm:$0xff]  ;;  %v347_v11 = vadd.f32 %v7325_v5, %v311_v38  ;;  %v354_v20 = vadd.f32 %v7325_v5, %v318_v49 }
  0x3c   : > { %v6551_v45 = vld [vmem:[#allocation3 + $0x360] sm:$0xf]  ;;  %1096 = vst [vmem:[#allocation3 + $0x18c] sm:$0xf] %v1064_v40  ;;  %v619_v56 = vshrl.u32 %v464_v43, 16  ;;  %v622_v8 = vshll.u32 %v464_v43, 16  ;;  %v355_v21 = vadd.f32 %v7325_v5, %v319_v50  ;;  %v326_v22 = vmul.f32 %v7306_v2, %v290_v44  ;;  %5302 = vmatpush.bf16.msrb.mxu3 %v7157_v9 }
  0x3d   : > { %v7097_v52 = vld [vmem:[#allocation3 + $0x380] sm:$0xf0]  ;;  %v7166_v10 = vld [vmem:[%s8774_s3 + $0x128] sm:$0xff]  ;;  %vm378_vm9 = vcmp.gt.f32.partialorder %v7512_v39, 0.0  ;;  %v837_v13 = vsel %vm7382_vm13, %v829_v41, %v836_v54  ;;  %v627_v15 = vshrl.u32 %v465_v55, 16  ;;  %v630_v18 = vshll.u32 %v465_v55, 16 }
  0x3e   : > { %v6552_v4 = vor.u32 %v7097_v52, %v6551_v45  ;;  %v1071_v6 = vld [vmem:[#allocation2 + $0x6c] sm:$0xf]  ;;  %v621_v14 = vrot.slane %v619_v56, 7  ;;  %v7141_v19 = vld [vmem:[%s8774_s3 + $0x60] sm:$0xff]  ;;  %1028 = vst [vmem:[#allocation2 + $0xa0] sm:$0xf] %v837_v13  ;;  %5390 = vmatpush.bf16.msrb.mxu0 %v7166_v10  ;;  %v327_v30 = vmul.f32 %v7306_v2, %v291_v63  ;;  %v302_v31 = vmul.f32 %v7306_v2, %v266_v0 }
  0x3f   : > { %v1072_v12 = vld [vmem:[#allocation2 + $0x70] sm:$0xf]  ;;  %1103 = vst [vmem:[#allocation3 + $0x288] sm:$0xf] %v1071_v6  ;;  %v7553_v26 = vrot.slane %v627_v15, 7  ;;  %vm379_vm10 = vcmp.gt.f32.partialorder %v347_v11, 0.0  ;;  %5124 = vmatpush.bf16.msrb.mxu1 %v7141_v19  ;;  %v7564_v38 = vadd.f32 %v7325_v5, %v326_v22 }
  0x40   : > { %5100 = vmatmul.bf16.vlgmr.msra.gmra.mxu3 %v6552_v4  ;;  %1104 = vst [vmem:[#allocation3 + $0x2ac] sm:$0xf] %v1072_v12  ;;  %v1025_v16 = vld [vmem:[#allocation2 + $0x9c] sm:$0xf]  ;;  %v624_v24 = vor.u32 %v622_v8, %v621_v14  ;;  %v625_v25 = vrot.slane %v621_v14, 4  ;;  %v525_v29 = vsel %vm7311_vm2, 0, %v524_v62  ;;  %v7575_v52 = vadd.f32 %v7325_v5, %v327_v30 }
  0x41   : > { %v1026_v23 = vsel %vm7392_vm14, %v828_v53, %v1025_v16  ;;  %v941_v27 = vld [vmem:[#allocation2 + $0xc] sm:$0xf]  ;;  %v632_v34 = vor.u32 %v630_v18, %v7553_v26  ;;  %v410_v36 = vmul.f32 0.1, %v7512_v39  ;;  %v536_v37 = vld [vmem:[#allocation2 + $0x78] sm:$0x1] }
  0x42   : > { %v6299_v28 = vld [vmem:[#allocation3 + $0x168] sm:$0xf]  ;;  %1027 = vst [vmem:[#allocation2 + $0x9c] sm:$0xf] %v1026_v23  ;;  %v942_v35 = vsel %vm7392_vm14, %v624_v24, %v941_v27  ;;  %v411_v41 = vmul.f32 0.1, %v347_v11 }
  0x43   : > { %v7034_v33 = vld [vmem:[#allocation3 + $0x188] sm:$0xf0]  ;;  %943 = vst [vmem:[#allocation2 + $0xc] sm:$0xf] %v942_v35  ;;  %vm386_vm11 = vcmp.gt.f32.partialorder %v354_v20, 0.0  ;;  %vm387_vm12 = vcmp.gt.f32.partialorder %v355_v21, 0.0  ;;  %v633_v43 = vsel %vm7382_vm13, %v625_v25, %v632_v34  ;;  %v442_v44 = vsel %vm378_vm9, %v7512_v39, %v410_v36 }
  0x44   : > { %v6300_v40 = vor.u32 %v7034_v33, %v6299_v28  ;;  %526 = vst [vmem:[#allocation2 + $0x48] sm:$0x1] %v525_v29  ;;  %v418_v45 = vmul.f32 0.1, %v354_v20  ;;  %v419_v46 = vmul.f32 0.1, %v355_v21  ;;  %v443_v48 = vsel %vm379_vm10, %v347_v11, %v411_v41 }
  0x45   : > { %944 = vst [vmem:[#allocation2 + $0x10] sm:$0xf] %v633_v43  ;;  %v474_v49 = vpack.c.bf16 %v442_v44, %v442_v44  ;;  %v537_v50 = vsel %vm7311_vm2, 0, %v536_v37  ;;  %v267_v53 = vld [vmem:[%s7320_s8 + $0x18] sm:$0xff]  ;;  %v475_v55 = vpack.c.bf16 %v443_v48, %v443_v48  ;;  %vm394_vm15 = vcmp.gt.f32.partialorder %v7564_v38, 0.0 }
  0x46   : > { %5065 = vmatmul.bf16.gmra.mxu1 %v6300_v40  ;;  %v6443_v47 = vld [vmem:[#allocation3 + $0x288] sm:$0xf]  ;;  %v450_v39 = vsel %vm386_vm11, %v354_v20, %v418_v45  ;;  %v451_v56 = vsel %vm387_vm12, %v355_v21, %v419_v46  ;;  %538 = vst [vmem:[#allocation2 + $0x78] sm:$0x1] %v537_v50  ;;  %v7581_v4 = vld [vmem:[#allocation2 + $0xa8] sm:$0x1]  ;;  %v303_v11 = vmul.f32 %v7306_v2, %v267_v53 }
  0x47   : > { %v7070_v54 = vld [vmem:[#allocation3 + $0x2a8] sm:$0xf0]  ;;  %v1080_v58 = vld [vmem:[#allocation2 + $0xa0] sm:$0xf]  ;;  %v704_v62 = vshrl.u32 %v474_v49, 16  ;;  %v707_v63 = vshll.u32 %v474_v49, 16  ;;  %v482_v0 = vpack.c.bf16 %v450_v39, %v450_v39  ;;  %v483_v10 = vpack.c.bf16 %v451_v56, %v451_v56 }
  0x48   : > { %v6444_v57 = vor.u32 %v7070_v54, %v6443_v47  ;;  %1112 = vst [vmem:[#allocation3 + $0x3cc] sm:$0xf] %v1080_v58  ;;  %v712_v8 = vshrl.u32 %v475_v55, 16  ;;  %v715_v9 = vshll.u32 %v475_v55, 16  ;;  %vm395_vm0 = vcmp.gt.f32.partialorder %v7575_v52, 0.0  ;;  %v276_v21 = vld [vmem:[%s7320_s8 + $0x60] sm:$0xff] }
  0x49   : > { %v1079_v6 = vld [vmem:[#allocation2 + $0x9c] sm:$0xf]  ;;  %v706_v12 = vrot.slane %v704_v62, 7  ;;  %v772_v13 = vshrl.u32 %v482_v0, 16  ;;  %v775_v14 = vshll.u32 %v482_v0, 16  ;;  %v780_v18 = vshrl.u32 %v483_v10, 16 }
  0x4a   : > { %5085 = vmatmul.bf16.gmra.mxu2 %v6444_v57  ;;  %1111 = vst [vmem:[#allocation3 + $0x3a8] sm:$0xf] %v1079_v6  ;;  %v1055_v15 = vld [vmem:[#allocation2 + $0xc] sm:$0xf]  ;;  %v7585_v16 = vrot.slane %v712_v8, 7  ;;  %v783_v19 = vshll.u32 %v483_v10, 16  ;;  %v338_v20 = vadd.f32 %v7325_v5, %v302_v31  ;;  %v339_v27 = vadd.f32 %v7325_v5, %v303_v11 }
  0x4b   : > { %1087 = vst [vmem:[#allocation3 + $0x48] sm:$0xf] %v1055_v15  ;;  %v709_v22 = vor.u32 %v707_v63, %v706_v12  ;;  %v710_v23 = vrot.slane %v706_v12, 4  ;;  %v976_v24 = vld [vmem:[#allocation2 + $0x48] sm:$0xf]  ;;  %v774_v25 = vrot.slane %v772_v13, 7  ;;  %v312_v47 = vmul.f32 %v7306_v2, %v276_v21 }
  0x4c   : > { %v1056_v28 = vld [vmem:[#allocation2 + $0x10] sm:$0xf]  ;;  %v717_v29 = vor.u32 %v715_v9, %v7585_v16  ;;  %v7591_v30 = vrot.slane %v780_v18, 7  ;;  %v426_v33 = vmul.f32 0.1, %v7564_v38  ;;  %v549_v31 = vsel %vm7311_vm2, 0, %v7581_v4 }
  0x4d   : > { %v512_v34 = vld [vmem:[#allocation2 + $0x18] sm:$0x1]  ;;  %1088 = vst [vmem:[#allocation3 + $0x6c] sm:$0xf] %v1056_v28  ;;  %v977_v35 = vsel %vm7392_vm14, %v709_v22, %v976_v24  ;;  %v777_v36 = vor.u32 %v775_v14, %v774_v25  ;;  %v778_v37 = vrot.slane %v774_v25, 4  ;;  %v277_v46 = vld [vmem:[%s7320_s8 + $0x68] sm:$0xff]  ;;  %v348_v24 = vadd.f32 %v7325_v5, %v312_v47 }
  0x4e   : > { %v1004_v40 = vld [vmem:[#allocation2 + $0x78] sm:$0xf]  ;;  %v718_v43 = vsel %vm7382_vm13, %v710_v23, %v717_v29  ;;  %978 = vst [vmem:[#allocation2 + $0x48] sm:$0xf] %v977_v35  ;;  %v785_v44 = vor.u32 %v783_v19, %v7591_v30  ;;  %v427_v45 = vmul.f32 0.1, %v7575_v52  ;;  %v458_v50 = vsel %vm394_vm15, %v7564_v38, %v426_v33 }
  0x4f   : > { %v7148_v41 = vld [vmem:[%s8774_s3 + $0x98] sm:$0xff]  ;;  %v7106_v48 = vld [vmem:[#allocation3 + $0x3c8] sm:$0xf0]  ;;  %979 = vst [vmem:[#allocation2 + $0x4c] sm:$0xf] %v718_v43  ;;  %v1005_v49 = vsel %vm7392_vm14, %v777_v36, %v1004_v40  ;;  %vm370_vm1 = vcmp.gt.f32.partialorder %v338_v20, 0.0  ;;  %v490_v39 = vpack.c.bf16 %v458_v50, %v458_v50  ;;  %v313_v9 = vmul.f32 %v7306_v2, %v277_v46 }
  0x50   : > { %5214 = vmatpush.bf16.msrb.mxu2 %v7148_v41  ;;  %vm371_vm3 = vcmp.gt.f32.partialorder %v339_v27, 0.0  ;;  %v786_v54 = vsel %vm7382_vm13, %v778_v37, %v785_v44  ;;  %1006 = vst [vmem:[#allocation2 + $0x78] sm:$0xf] %v1005_v49  ;;  %v459_v55 = vsel %vm395_vm0, %v7575_v52, %v427_v45  ;;  %v402_v56 = vmul.f32 0.1, %v338_v20  ;;  %v7156_v63 = vld [vmem:[%s8774_s3 + $0xd8] sm:$0xff] }
  0x51   : > { %v6587_v53 = vld [vmem:[#allocation3 + $0x3a8] sm:$0xf]  ;;  %1007 = vst [vmem:[#allocation2 + $0x7c] sm:$0xf] %v786_v54  ;;  %v491_v58 = vpack.c.bf16 %v459_v55, %v459_v55  ;;  %v403_v38 = vmul.f32 0.1, %v339_v27  ;;  %5303 = vmatpush.bf16.msrb.mxu3 %v7156_v63  ;;  %v349_v46 = vadd.f32 %v7325_v5, %v313_v9 }
  0x52   : > { %v6588_v57 = vor.u32 %v7106_v48, %v6587_v53  ;;  %v513_v62 = vsel %vm7311_vm2, 0, %v512_v34  ;;  %v284_v0 = vld [vmem:[%s7320_s8 + $0xa0] sm:$0xff]  ;;  %550 = vst [vmem:[#allocation2 + $0xa8] sm:$0x1] %v549_v31  ;;  %v840_v6 = vshrl.u32 %v490_v39, 16  ;;  %v843_v8 = vshll.u32 %v490_v39, 16 }
  0x53   : > { %v6155_v4 = vld [vmem:[#allocation3 + $0x48] sm:$0xf]  ;;  %v434_v52 = vsel %vm370_vm1, %v338_v20, %v402_v56  ;;  %v285_v10 = vld [vmem:[%s7320_s8 + $0xa8] sm:$0xff]  ;;  %v848_v11 = vshrl.u32 %v491_v58, 16  ;;  %v851_v12 = vshll.u32 %v491_v58, 16  ;;  %v435_v13 = vsel %vm371_vm3, %v339_v27, %v403_v38  ;;  %v7140_v18 = vld [vmem:[%s8774_s3 + $0x58] sm:$0xff] }
  0x54   : > { %5105 = vmatmul.bf16.gmra.mxu3 %v6588_v57  ;;  %v466_v14 = vpack.c.bf16 %v434_v52, %v434_v52  ;;  %514 = vst [vmem:[#allocation2 + $0x18] sm:$0x1] %v513_v62  ;;  %v7165_v15 = vld [vmem:[%s8774_s3 + $0x120] sm:$0xff]  ;;  %v842_v20 = vrot.slane %v840_v6, 7  ;;  %v467_v21 = vpack.c.bf16 %v435_v13, %v435_v13  ;;  %v7147_v22 = vld [vmem:[%s8774_s3 + $0x90] sm:$0xff]  ;;  %5125 = vmatpush.bf16.msrb.mxu1 %v7140_v18  ;;  %v7164_v31 = vld [vmem:[%s8774_s3 + $0x118] sm:$0xff] }
  0x55   : > { %v6998_v19 = vld [vmem:[#allocation3 + $0x68] sm:$0xf0]  ;;  %v7155_v23 = vld [vmem:[%s8774_s3 + $0xd0] sm:$0xff]  ;;  %v1065_v27 = vld [vmem:[#allocation2 + $0x48] sm:$0xf]  ;;  %v7641_v28 = vrot.slane %v848_v11, 7  ;;  %5391 = vmatpush.bf16.msrb.mxu0 %v7165_v15  ;;  %5215 = vmatpush.bf16.msrb.mxu2 %v7147_v22  ;;  %v320_v41 = vmul.f32 %v7306_v2, %v284_v0  ;;  %v321_v47 = vmul.f32 %v7306_v2, %v285_v10 }
  0x56   : > { %v6156_v25 = vor.u32 %v6998_v19, %v6155_v4  ;;  %v636_v29 = vshrl.u32 %v466_v14, 16  ;;  %v639_v33 = vshll.u32 %v466_v14, 16  ;;  %v1066_v34 = vld [vmem:[#allocation2 + $0x4c] sm:$0xf]  ;;  %1097 = vst [vmem:[#allocation3 + $0x1b0] sm:$0xf] %v1065_v27  ;;  %v845_v35 = vor.u32 %v843_v8, %v842_v20  ;;  %5304 = vmatpush.bf16.msrb.mxu3 %v7155_v23 }
  0x57   : > { %v846_v36 = vrot.slane %v842_v20, 4  ;;  %v644_v37 = vshrl.u32 %v467_v21, 16  ;;  %v527_v40 = vld [vmem:[#allocation2 + $0x54] sm:$0x1]  ;;  %1098 = vst [vmem:[#allocation3 + $0x1d4] sm:$0xf] %v1066_v34  ;;  %v853_v44 = vor.u32 %v851_v12, %v7641_v28  ;;  %v356_v53 = vadd.f32 %v7325_v5, %v320_v41 }
  0x58   : > { %5045 = vmatmul.bf16.gmra.mxu0 %v6156_v25  ;;  %v1073_v43 = vld [vmem:[#allocation2 + $0x78] sm:$0xf]  ;;  %v638_v45 = vrot.slane %v636_v29, 7  ;;  %v1074_v48 = vld [vmem:[#allocation2 + $0x7c] sm:$0xf]  ;;  %v647_v50 = vshll.u32 %v467_v21, 16  ;;  %v357_v57 = vadd.f32 %v7325_v5, %v321_v47 }
  0x59   : > { %1105 = vst [vmem:[#allocation3 + $0x2d0] sm:$0xf] %v1073_v43  ;;  %v7650_v49 = vrot.slane %v644_v37, 7  ;;  %v854_v54 = vsel %vm7382_vm13, %v846_v36, %v853_v44  ;;  %v1032_v55 = vld [vmem:[#allocation2 + $0xa8] sm:$0xf]  ;;  %5392 = vmatpush.bf16.msrb.mxu0 %v7164_v31  ;;  %v7139_v2 = vld [vmem:[%s8774_s3 + $0x50] sm:$0xff] }
  0x5a   : > { %1106 = vst [vmem:[#allocation3 + $0x2f4] sm:$0xf] %v1074_v48  ;;  %v641_v39 = vor.u32 %v639_v33, %v638_v45  ;;  %v642_v56 = vrot.slane %v638_v45, 4  ;;  %v1033_v58 = vsel %vm7392_vm14, %v845_v35, %v1032_v55  ;;  %vm380_vm5 = vcmp.gt.f32.partialorder %v348_v24, 0.0  ;;  %5126 = vmatpush.bf16.msrb.mxu1 %v7139_v2  ;;  %v539_v20 = vld [vmem:[#allocation2 + $0x84] sm:$0x1] }
  0x5b   : > { %1035 = vst [vmem:[#allocation2 + $0xac] sm:$0xf] %v854_v54  ;;  %v649_v38 = vor.u32 %v647_v50, %v7650_v49  ;;  %v948_v62 = vld [vmem:[#allocation2 + $0x18] sm:$0xf]  ;;  %vm381_vm6 = vcmp.gt.f32.partialorder %v349_v46, 0.0  ;;  %v528_v4 = vsel %vm7311_vm2, 0, %v527_v40 }
  0x5c   : > { %1034 = vst [vmem:[#allocation2 + $0xa8] sm:$0xf] %v1033_v58  ;;  %v949_v63 = vsel %vm7392_vm14, %v641_v39, %v948_v62  ;;  %v412_v0 = vmul.f32 0.1, %v348_v24  ;;  %v413_v6 = vmul.f32 0.1, %v349_v46 }
  0x5d   : > { %v650_v5 = vsel %vm7382_vm13, %v642_v56, %v649_v38  ;;  %950 = vst [vmem:[#allocation2 + $0x18] sm:$0xf] %v949_v63  ;;  %vm388_vm7 = vcmp.gt.f32.partialorder %v356_v53, 0.0  ;;  %vm389_vm8 = vcmp.gt.f32.partialorder %v357_v57, 0.0  ;;  %v6335_v8 = vld [vmem:[#allocation3 + $0x1b0] sm:$0xf] }
  0x5e   : > { %951 = vst [vmem:[#allocation2 + $0x1c] sm:$0xf] %v650_v5  ;;  %v444_v52 = vsel %vm380_vm5, %v348_v24, %v412_v0  ;;  %v420_v9 = vmul.f32 0.1, %v356_v53  ;;  %v7043_v10 = vld [vmem:[#allocation3 + $0x1d0] sm:$0xf0]  ;;  %v445_v11 = vsel %vm381_vm6, %v349_v46, %v413_v6 }
  0x5f   : > { %v476_v12 = vpack.c.bf16 %v444_v52, %v444_v52  ;;  %529 = vst [vmem:[#allocation2 + $0x54] sm:$0x1] %v528_v4  ;;  %v421_v13 = vmul.f32 0.1, %v357_v57  ;;  %v6336_v14 = vor.u32 %v7043_v10, %v6335_v8  ;;  %v477_v18 = vpack.c.bf16 %v445_v11, %v445_v11  ;;  %v292_v21 = vld [vmem:[%s7320_s8 + $0xe0] sm:$0xff]  ;;  %v293_v29 = vld [vmem:[%s7320_s8 + $0xe8] sm:$0xff] }
  0x60   : > { %v6479_v15 = vld [vmem:[#allocation3 + $0x2d0] sm:$0xf]  ;;  %v452_v19 = vsel %vm388_vm7, %v356_v53, %v420_v9  ;;  %v268_v37 = vld [vmem:[%s7320_s8 + $0x20] sm:$0xff]  ;;  %v540_v43 = vsel %vm7311_vm2, 0, %v539_v20  ;;  %v551_v53 = vld [vmem:[#allocation2 + $0xb4] sm:$0x1] }
  0x61   : > { %v7079_v22 = vld [vmem:[#allocation3 + $0x2f0] sm:$0xf0]  ;;  %v721_v23 = vshrl.u32 %v476_v12, 16  ;;  %v724_v25 = vshll.u32 %v476_v12, 16  ;;  %v453_v27 = vsel %vm389_vm8, %v357_v57, %v421_v13  ;;  %v484_v24 = vpack.c.bf16 %v452_v19, %v452_v19  ;;  %5070 = vmatmul.bf16.gmra.mxu1 %v6336_v14  ;;  %v7237_v44 = vld [vmem:[%s8772_s1] ss:$0 sm:$0xff] }
  0x62   : > { %v6480_v33 = vor.u32 %v7079_v22, %v6479_v15  ;;  %v1082_v31 = vld [vmem:[#allocation2 + $0xac] sm:$0xf]  ;;  %v729_v34 = vshrl.u32 %v477_v18, 16  ;;  %v732_v35 = vshll.u32 %v477_v18, 16  ;;  %v485_v36 = vpack.c.bf16 %v453_v27, %v453_v27  ;;  %v7238_v56 = vld [vmem:[%s8773_s2] ss:$0 sm:$0xff] }
  0x63   : > { %v1081_v40 = vld [vmem:[#allocation2 + $0xa8] sm:$0xf]  ;;  %1114 = vst [vmem:[#allocation3 + $0x414] sm:$0xf] %v1082_v31  ;;  %v723_v41 = vrot.slane %v721_v23, 7  ;;  %v328_v45 = vmul.f32 %v7237_v44, %v292_v21  ;;  %v329_v46 = vmul.f32 %v7237_v44, %v293_v29  ;;  %v789_v50 = vshrl.u32 %v484_v24, 16 }
  0x64   : > { %5090 = vmatmul.bf16.gmra.mxu2 %v6480_v33  ;;  %1113 = vst [vmem:[#allocation3 + $0x3f0] sm:$0xf] %v1081_v40  ;;  %v1057_v47 = vld [vmem:[#allocation2 + $0x18] sm:$0xf]  ;;  %v7677_v48 = vrot.slane %v729_v34, 7  ;;  %v304_v63 = vmul.f32 %v7237_v44, %v268_v37  ;;  %v792_v4 = vshll.u32 %v484_v24, 16 }
  0x65   : > { %v1058_v54 = vld [vmem:[#allocation2 + $0x1c] sm:$0xf]  ;;  %1089 = vst [vmem:[#allocation3 + $0x90] sm:$0xf] %v1057_v47  ;;  %v726_v55 = vor.u32 %v724_v25, %v723_v41  ;;  %v727_v39 = vrot.slane %v723_v41, 4  ;;  %v364_v2 = vadd.f32 %v7238_v56, %v328_v45  ;;  %v791_v38 = vrot.slane %v789_v50, 7 }
  0x66   : > { %1090 = vst [vmem:[#allocation3 + $0xb4] sm:$0xf] %v1058_v54  ;;  %v734_v57 = vor.u32 %v732_v35, %v7677_v48  ;;  %v983_v58 = vld [vmem:[#allocation2 + $0x54] sm:$0xf]  ;;  %v365_v62 = vadd.f32 %v7238_v56, %v329_v46  ;;  %v797_v5 = vshrl.u32 %v485_v36, 16  ;;  %v800_v6 = vshll.u32 %v485_v36, 16 }
  0x67   : > { %v984_v0 = vsel %vm7392_vm14, %v726_v55, %v983_v58  ;;  %541 = vst [vmem:[#allocation2 + $0x84] sm:$0x1] %v540_v43  ;;  %v269_v8 = vld [vmem:[%s7320_s8 + $0x28] sm:$0xff]  ;;  %v795_v9 = vrot.slane %v791_v38, 4  ;;  %vm396_vm9 = vcmp.gt.f32.partialorder %v364_v2, 0.0  ;;  %v552_v12 = vsel %vm7311_vm2, 0, %v551_v53 }
  0x68   : > { %v735_v52 = vsel %vm7382_vm13, %v727_v39, %v734_v57  ;;  %985 = vst [vmem:[#allocation2 + $0x54] sm:$0xf] %v984_v0  ;;  %vm397_vm10 = vcmp.gt.f32.partialorder %v365_v62, 0.0  ;;  %v7688_v10 = vrot.slane %v797_v5, 7  ;;  %v428_v11 = vmul.f32 0.1, %v364_v2 }
  0x69   : > { %986 = vst [vmem:[#allocation2 + $0x58] sm:$0xf] %v735_v52  ;;  %v305_v13 = vmul.f32 %v7237_v44, %v269_v8  ;;  %v429_v15 = vmul.f32 0.1, %v365_v62  ;;  %v340_v18 = vadd.f32 %v7238_v56, %v304_v63  ;;  %v794_v20 = vor.u32 %v792_v4, %v791_v38  ;;  %v7146_v23 = vld [vmem:[%s8774_s3 + $0x88] sm:$0xff]  ;;  %v7163_v8 = vld [vmem:[%s8774_s3 + $0x110] sm:$0xff] }
  0x6a   : > { %v7115_v14 = vld [vmem:[#allocation3 + $0x410] sm:$0xf0]  ;;  %553 = vst [vmem:[#allocation2 + $0xb4] sm:$0x1] %v552_v12  ;;  %v802_v21 = vor.u32 %v800_v6, %v7688_v10  ;;  %v460_v22 = vsel %vm396_vm9, %v364_v2, %v428_v11  ;;  %v515_v31 = vld [vmem:[#allocation2 + $0x24] sm:$0x1]  ;;  %5216 = vmatpush.bf16.msrb.mxu2 %v7146_v23  ;;  %5393 = vmatpush.bf16.msrb.mxu0 %v7163_v8 }
  0x6b   : > { %v6623_v19 = vld [vmem:[#allocation3 + $0x3f0] sm:$0xf]  ;;  %v341_v25 = vadd.f32 %v7238_v56, %v305_v13  ;;  %v461_v29 = vsel %vm397_vm10, %v365_v62, %v429_v15  ;;  %v492_v33 = vpack.c.bf16 %v460_v22, %v460_v22  ;;  %vm372_vm11 = vcmp.gt.f32.partialorder %v340_v18, 0.0  ;;  %v1117_v57 = vld [vmem:[#allocation2] sm:$0xf] }
  0x6c   : > { %v6624_v27 = vor.u32 %v7115_v14, %v6623_v19  ;;  %v6191_v24 = vld [vmem:[#allocation3 + $0x90] sm:$0xf]  ;;  %v803_v35 = vsel %vm7382_vm13, %v795_v9, %v802_v21  ;;  %v493_v36 = vpack.c.bf16 %v461_v29, %v461_v29  ;;  %v404_v37 = vmul.f32 0.1, %v340_v18  ;;  %v7145_v9 = vld [vmem:[%s8774_s3 + $0x80] sm:$0xff] }
  0x6d   : > { %v7007_v34 = vld [vmem:[#allocation3 + $0xb0] sm:$0xf0]  ;;  %vm373_vm12 = vcmp.gt.f32.partialorder %v341_v25, 0.0  ;;  %1014 = vst [vmem:[#allocation2 + $0x88] sm:$0xf] %v803_v35  ;;  %v857_v43 = vshrl.u32 %v492_v33, 16 }
  0x6e   : > { %5110 = vmatmul.bf16.gmra.mxu3 %v6624_v27  ;;  %v6192_v40 = vor.u32 %v7007_v34, %v6191_v24  ;;  %v1011_v41 = vld [vmem:[#allocation2 + $0x84] sm:$0xf]  ;;  %v860_v44 = vshll.u32 %v492_v33, 16  ;;  %v865_v47 = vshrl.u32 %v493_v36, 16  ;;  %v868_v50 = vshll.u32 %v493_v36, 16  ;;  %v7154_v0 = vld [vmem:[%s8774_s3 + $0xc8] sm:$0xff]  ;;  %5217 = vmatpush.bf16.msrb.mxu2 %v7145_v9 }
  0x6f   : > { %v1067_v45 = vld [vmem:[#allocation2 + $0x54] sm:$0xf]  ;;  %v1012_v46 = vsel %vm7392_vm14, %v794_v20, %v1011_v41  ;;  %v405_v53 = vmul.f32 0.1, %v341_v25  ;;  %v562_v54 = vld [vmem:[#allocation2 + $0x8] sm:$0x1]  ;;  %v436_v56 = vsel %vm372_vm11, %v340_v18, %v404_v37  ;;  %5305 = vmatpush.bf16.msrb.mxu3 %v7154_v0 }
  0x70   : > { %5050 = vmatmul.bf16.gmra.mxu0 %v6192_v40  ;;  %v1068_v55 = vld [vmem:[#allocation2 + $0x58] sm:$0xf]  ;;  %1099 = vst [vmem:[#allocation3 + $0x1f8] sm:$0xf] %v1067_v45  ;;  %v859_v39 = vrot.slane %v857_v43, 7  ;;  %v516_v2 = vsel %vm7311_vm2, 0, %v515_v31  ;;  %v468_v63 = vpack.c.bf16 %v436_v56, %v436_v56 }
  0x71   : > { %1100 = vst [vmem:[#allocation3 + $0x21c] sm:$0xf] %v1068_v55  ;;  %v7704_v58 = vrot.slane %v865_v47, 7  ;;  %v1039_v38 = vld [vmem:[#allocation2 + $0xb4] sm:$0xf]  ;;  %v437_v62 = vsel %vm373_vm12, %v341_v25, %v405_v53  ;;  %v7138_v52 = vld [vmem:[%s8774_s3 + $0x48] sm:$0xff] }
  0x72   : > { %1013 = vst [vmem:[#allocation2 + $0x84] sm:$0xf] %v1012_v46  ;;  %v862_v4 = vor.u32 %v860_v44, %v859_v39  ;;  %v863_v5 = vrot.slane %v859_v39, 4  ;;  %v469_v6 = vpack.c.bf16 %v437_v62, %v437_v62  ;;  %v653_v12 = vshrl.u32 %v468_v63, 16  ;;  %v7153_v14 = vld [vmem:[%s8774_s3 + $0xc0] sm:$0xff]  ;;  %5127 = vmatpush.bf16.msrb.mxu1 %v7138_v52  ;;  %v7162_v20 = vld [vmem:[%s8774_s3 + $0x108] sm:$0xff] }
  0x73   : > { %v870_v11 = vor.u32 %v868_v50, %v7704_v58  ;;  %517 = vst [vmem:[#allocation2 + $0x24] sm:$0x1] %v516_v2  ;;  %v656_v13 = vshll.u32 %v468_v63, 16  ;;  %v7137_v21 = vld [vmem:[%s8774_s3 + $0x40] sm:$0xff]  ;;  %v563_v22 = vsel %vm7331_vm4, 0, %v562_v54  ;;  %v1169_v24 = vshrl.u32 %v1117_v57, 16  ;;  %5306 = vmatpush.bf16.msrb.mxu3 %v7153_v14  ;;  %5394 = vmatpush.bf16.msrb.mxu0 %v7162_v20 }
  0x74   : > { %v1040_v15 = vsel %vm7392_vm14, %v862_v4, %v1039_v38  ;;  %v661_v18 = vshrl.u32 %v469_v6, 16  ;;  %v664_v19 = vshll.u32 %v469_v6, 16  ;;  %v1076_v23 = vld [vmem:[#allocation2 + $0x88] sm:$0xf]  ;;  %v655_v27 = vrot.slane %v653_v12, 7  ;;  %v7161_v43 = vld [vmem:[%s8774_s3 + $0x100] sm:$0xff] }
  0x75   : > { %v871_v25 = vsel %vm7382_vm13, %v863_v5, %v870_v11  ;;  %1041 = vst [vmem:[#allocation2 + $0xb4] sm:$0xf] %v1040_v15  ;;  %v1118_v33 = vld [vmem:[#allocation2 + $0x4] sm:$0xf]  ;;  %v1172_v31 = vshll.u32 %v1117_v57, 16  ;;  %v1171_v37 = vrot.slane %v1169_v24, 4 }
  0x76   : > { %1108 = vst [vmem:[#allocation3 + $0x33c] sm:$0xf] %v1076_v23  ;;  %v7735_v29 = vrot.slane %v661_v18, 7  ;;  %v658_v35 = vor.u32 %v656_v13, %v655_v27  ;;  %v659_v36 = vrot.slane %v655_v27, 4  ;;  %5128 = vmatpush.bf16.msrb.mxu1 %v7137_v21  ;;  %vm1165_vm15 = vsmask.f32 3328 }
  0x77   : > { %v6371_v34 = vld [vmem:[#allocation3 + $0x1f8] sm:$0xf]  ;;  %1042 = vst [vmem:[#allocation2 + $0xb8] sm:$0xf] %v871_v25  ;;  %v1174_v44 = vrot.slane %v1172_v31, 5  ;;  %v1178_v54 = vshll.u32 %v1118_v33, 16  ;;  %5395 = vmatpush.bf16.msrb.mxu0 %v7161_v43 }
  0x78   : > { %v7052_v40 = vld [vmem:[#allocation3 + $0x218] sm:$0xf0]  ;;  %v666_v41 = vor.u32 %v664_v19, %v7735_v29  ;;  %564 = vst [vmem:[#allocation2 + $0x8] sm:$0x1] %v563_v22  ;;  %vm1166_vm0 = vsmask.f32 7440 }
  0x79   : > { %v6372_v45 = vor.u32 %v7052_v40, %v6371_v34  ;;  %v1075_v46 = vld [vmem:[#allocation2 + $0x84] sm:$0xf]  ;;  %v1175_v53 = vor.u32 %v1174_v44, %v1171_v37  ;;  %v1182_v55 = vshrl.u32 %v1118_v33, 16  ;;  %vm7745_vm1 = vmor %vm1165_vm15, %vm1166_vm0  ;;  %v1616_v2 = vld [vmem:[#allocation2] sm:$0xe]  ;;  %v1180_v63 = vrot.slane %v1178_v54, 5 }
  0x7a   : > { %1107 = vst [vmem:[#allocation3 + $0x318] sm:$0xf] %v1075_v46  ;;  %v667_v47 = vsel %vm7382_vm13, %v659_v36, %v666_v41  ;;  %v955_v50 = vld [vmem:[#allocation2 + $0x24] sm:$0xf]  ;;  %vm1712_vm3 = vcmask 1042432   ;;  %vm1713_vm5 = vcmask 1046532  }
  0x7b   : > { %5075 = vmatmul.bf16.gmra.mxu1 %v6372_v45  ;;  %v956_v39 = vsel %vm7392_vm14, %v658_v35, %v955_v50  ;;  %958 = vst [vmem:[#allocation2 + $0x28] sm:$0xf] %v667_v47  ;;  %v1617_v57 = vld [vmem:[#allocation2 + $0x4] sm:$0xf]  ;;  %v1176_v62 = vrot.slane %v1175_v53, 4  ;;  %v1184_v4 = vrot.slane %v1182_v55, 4  ;;  %vm7754_vm6 = vmor %vm1712_vm3, %vm1713_vm5 }
  0x7c   : > { %v1083_v38 = vld [vmem:[#allocation2 + $0xb4] sm:$0xf]  ;;  %957 = vst [vmem:[#allocation2 + $0x24] sm:$0xf] %v956_v39  ;;  %v6069_v8 = vrot.slane %v1616_v2, 9  ;;  %v1717_v52 = vrot.slane %v1617_v57, 5 }
  0x7d   : > { %v7088_v0 = vld [vmem:[#allocation3 + $0x338] sm:$0xf0]  ;;  %1115 = vst [vmem:[#allocation3 + $0x438] sm:$0xf] %v1083_v38  ;;  %v1181_v6 = vsel %vm7745_vm1, %v1176_v62, %v1180_v63  ;;  %v7184_v9 = vld [vmem:[%s8774_s3 + $0x1b8] sm:$0xff]  ;;  %v1185_v12 = vor.u32 %v1184_v4, %v1180_v63  ;;  %v634_v38 = vrot.slane %v7553_v26, 4 }
  0x7e   : > { %v1084_v5 = vld [vmem:[#allocation2 + $0xb8] sm:$0xf]  ;;  %1584 = vst [vmem:[#allocation3 + $0x4] sm:$0xf] %v1181_v6  ;;  %v1718_v18 = vsel %vm7754_vm6, %v6069_v8, %v1717_v52  ;;  %v1719_v19 = vrot.slane %v1717_v52, 4  ;;  %5566 = vmatpush.bf16.msra.mxu2 %v7184_v9 }
  0x7f   : > { %1116 = vst [vmem:[#allocation3 + $0x45c] sm:$0xf] %v1084_v5  ;;  %v1119_v11 = vld [vmem:[#allocation2 + $0x8] sm:$0x1]  ;;  %v1186_v22 = vrot.slane %v1185_v12, 4  ;;  %v7192_v2 = vld [vmem:[%s8774_s3 + $0x1f8] sm:$0xff] }
  0x80   : > { %v1618_v13 = vld [vmem:[#allocation2 + $0x8] sm:$0x1]  ;;  %v1188_v15 = vshll.u32 %v1119_v11, 16  ;;  %1859 = vst [vmem:[#allocation3 + $0x8] sm:$0xf] %v1718_v18  ;;  %v7176_v57 = vld [vmem:[%s8774_s3 + $0x178] sm:$0xff]  ;;  %5655 = vmatpush.bf16.msra.mxu3 %v7192_v2 }
  0x81   : > { %v1720_v20 = vrot.slane %v1618_v13, 5  ;;  %v6515_v21 = vld [vmem:[#allocation3 + $0x318] sm:$0xf]  ;;  %v1891_v24 = vld [vmem:[#allocation2 + $0xc] sm:$0xf]  ;;  %v7200_v4 = vld [vmem:[%s8774_s3 + $0x238] sm:$0xff]  ;;  %5477 = vmatpush.bf16.msra.mxu1 %v7176_v57 }
  0x82   : > { %v6516_v23 = vor.u32 %v7088_v0, %v6515_v21  ;;  %v1060_v25 = vld [vmem:[#allocation2 + $0x28] sm:$0xf]  ;;  %v1190_v27 = vrot.slane %v1188_v15, 5  ;;  %v1892_v34 = vld [vmem:[#allocation2 + $0x10] sm:$0xf]  ;;  %5744 = vmatpush.bf16.msra.mxu0 %v7200_v4 }
  0x83   : > { %v1059_v33 = vld [vmem:[#allocation2 + $0x24] sm:$0xf]  ;;  %1092 = vst [vmem:[#allocation3 + $0xfc] sm:$0xf] %v1060_v25  ;;  %v1721_v31 = vsel %vm7754_vm6, %v1719_v19, %v1720_v20  ;;  %v565_v37 = vld [vmem:[#allocation2 + $0x14] sm:$0x1] }
  0x84   : > { %5095 = vmatmul.bf16.gmra.mxu2 %v6516_v23  ;;  %v6659_v35 = vld [vmem:[#allocation3 + $0x438] sm:$0xf]  ;;  %1091 = vst [vmem:[#allocation3 + $0xd8] sm:$0xf] %v1059_v33  ;;  %v1191_v36 = vsel %vm7745_vm1, %v1186_v22, %v1190_v27  ;;  %v566_v40 = vsel %vm7331_vm4, 0, %v565_v37 }
  0x85   : > { %1585 = vst [vmem:[#allocation3 + $0x28] sm:$0xf] %v1191_v36  ;;  %v1955_v41 = vld [vmem:[#allocation2 + $0xc] sm:$0xf]  ;;  %v1956_v44 = vld [vmem:[#allocation2 + $0x10] sm:$0xf] }
  0x86   : > { %v7124_v43 = vld [vmem:[#allocation3 + $0x458] sm:$0xf0]  ;;  %1860 = vst [vmem:[#allocation3 + $0x2c] sm:$0xf] %v1721_v31  ;;  %v2004_v46 = vshrl.u32 %v1955_v41, 16  ;;  %v2007_v47 = vshll.u32 %v1955_v41, 16 }
  0x87   : > { %v6660_v45 = vor.u32 %v7124_v43, %v6659_v35  ;;  %1923 = vst [vmem:[#allocation3 + $0xc] sm:$0xf] %v1891_v24  ;;  %v6985_v50 = vld [vmem:[#allocation3 + $0x4] sm:$0xf]  ;;  %v2013_v53 = vshll.u32 %v1956_v44, 16  ;;  %v2017_v54 = vshrl.u32 %v1956_v44, 16 }
  0x88   : > { %1924 = vst [vmem:[#allocation3 + $0x30] sm:$0xf] %v1892_v34  ;;  %v2006_v55 = vrot.slane %v2004_v46, 4  ;;  %v2009_v39 = vrot.slane %v2007_v47, 5  ;;  %v6127_v6 = vld [vmem:[#allocation3 + $0x8] sm:$0xf] }
  0x89   : > { %5115 = vmatmul.bf16.gmra.mxu3 %v6660_v45  ;;  %567 = vst [vmem:[#allocation2 + $0x14] sm:$0x1] %v566_v40  ;;  %v2015_v63 = vrot.slane %v2013_v53, 5  ;;  %v2019_v0 = vrot.slane %v2017_v54, 4  ;;  %v1120_v52 = vld [vmem:[#allocation2 + $0xc] sm:$0xf] }
  0x8a   : > { %v7016_v62 = vld [vmem:[#allocation3 + $0xf8] sm:$0xf0]  ;;  %v2010_v8 = vor.u32 %v2009_v39, %v2006_v55  ;;  %v1121_v9 = vld [vmem:[#allocation2 + $0x10] sm:$0xf]  ;;  %v1193_v13 = vshrl.u32 %v1120_v52, 16  ;;  %v1196_v15 = vshll.u32 %v1120_v52, 16 }
  0x8b   : > { %v6227_v5 = vld [vmem:[#allocation3 + $0xd8] sm:$0xf]  ;;  %v1619_v26 = vld [vmem:[#allocation2 + $0xc] sm:$0xe]  ;;  %v1202_v21 = vshll.u32 %v1121_v9, 16  ;;  %v1206_v22 = vshrl.u32 %v1121_v9, 16  ;;  %v2020_v45 = vor.u32 %v2019_v0, %v2015_v63 }
  0x8c   : > { %v6228_v11 = vor.u32 %v7016_v62, %v6227_v5  ;;  %v6121_v12 = vld [vmem:[#allocation3 + $0x24] sm:$0xf0]  ;;  %v2011_v20 = vrot.slane %v2010_v8, 4  ;;  %v1195_v23 = vrot.slane %v1193_v13, 4  ;;  %v1198_v25 = vrot.slane %v1196_v15, 5 }
  0x8d   : > { %v6124_v18 = vor.u32 %v6985_v50, %v6121_v12  ;;  %v6990_v19 = vld [vmem:[#allocation3 + $0x28] sm:$0xf0]  ;;  %v1204_v24 = vrot.slane %v1202_v21, 5  ;;  %v1208_v33 = vrot.slane %v1206_v22, 4  ;;  %v1620_v31 = vld [vmem:[#allocation2 + $0x10] sm:$0xf] }
  0x8e   : > { %5055 = vmatmul.bf16.gmra.mxu0 %v6228_v11  ;;  %v2016_v27 = vsel %vm7745_vm1, %v2011_v20, %v2015_v63  ;;  %v6128_v34 = vor.u32 %v6990_v19, %v6127_v6  ;;  %v6986_v35 = vld [vmem:[#allocation3 + $0xc] sm:$0xf]  ;;  %v1199_v37 = vor.u32 %v1198_v25, %v1195_v23  ;;  %v6070_v40 = vrot.slane %v1619_v26, 9  ;;  %v1893_v46 = vld [vmem:[#allocation2 + $0x18] sm:$0xf] }
  0x8f   : > { %5129 = vmatmul.bf16.vlgmr.msrb.gmra.mxu1 %v6124_v18  ;;  %2419 = vst [vmem:[#allocation3 + $0x10] sm:$0xf] %v2016_v27  ;;  %v1724_v41 = vrot.slane %v1620_v31, 5  ;;  %v6129_v43 = vld [vmem:[#allocation3 + $0x2c] sm:$0xf0]  ;;  %v1209_v55 = vor.u32 %v1208_v33, %v1204_v24  ;;  %v2021_v4 = vrot.slane %v2020_v45, 4 }
  0x90   : > { %v945_v36 = vld [vmem:[#allocation2 + $0x14] sm:$0x1]  ;;  %v568_v47 = vld [vmem:[#allocation2 + $0x20] sm:$0x1]  ;;  %v1200_v50 = vrot.slane %v1199_v37, 4  ;;  %v6132_v0 = vor.u32 %v6986_v35, %v6129_v43  ;;  %v651_v31 = vrot.slane %v7650_v49, 4 }
  0x91   : > { %v946_v44 = vsel %vm7311_vm2, %v634_v38, %v945_v36  ;;  %v1725_v53 = vsel %vm7754_vm6, %v6070_v40, %v1724_v41  ;;  %v1894_v54 = vld [vmem:[#allocation2 + $0x1c] sm:$0xf]  ;;  %v569_v39 = vsel %vm7331_vm4, 0, %v568_v47  ;;  %v1958_v2 = vld [vmem:[#allocation2 + $0x18] sm:$0xf]  ;;  %v1210_v11 = vrot.slane %v1209_v55, 4 }
  0x92   : > { %947 = vst [vmem:[#allocation2 + $0x14] sm:$0x1] %v946_v44  ;;  %v1205_v57 = vsel %vm7745_vm1, %v1200_v50, %v1204_v24  ;;  %v1959_v38 = vld [vmem:[#allocation2 + $0x1c] sm:$0xf]  ;;  %v2028_v62 = vshrl.u32 %v1958_v2, 16  ;;  %v2031_v63 = vshll.u32 %v1958_v2, 16 }
  0x93   : > { %1861 = vst [vmem:[#allocation3 + $0x50] sm:$0xf] %v1725_v53  ;;  %v2037_v5 = vshll.u32 %v1959_v38, 16  ;;  %v1123_v6 = vld [vmem:[#allocation2 + $0x18] sm:$0xf]  ;;  %v1726_v12 = vrot.slane %v1724_v41, 4 }
  0x94   : > { %5218 = vmatmul.bf16.vlgmr.msrb.gmra.mxu2 %v6128_v34  ;;  %1925 = vst [vmem:[#allocation3 + $0x54] sm:$0xf] %v1893_v46  ;;  %v2030_v8 = vrot.slane %v2028_v62, 4  ;;  %v2033_v52 = vrot.slane %v2031_v63, 5  ;;  %v1124_v9 = vld [vmem:[#allocation2 + $0x1c] sm:$0xf] }
  0x95   : > { %1586 = vst [vmem:[#allocation3 + $0x4c] sm:$0xf] %v1205_v57  ;;  %v7786_v13 = vrot.slane %v2037_v5, 5  ;;  %v2041_v15 = vshrl.u32 %v1959_v38, 16  ;;  %v1217_v18 = vshrl.u32 %v1123_v6, 16  ;;  %v1220_v19 = vshll.u32 %v1123_v6, 16 }
  0x96   : > { %1926 = vst [vmem:[#allocation3 + $0x78] sm:$0xf] %v1894_v54  ;;  %v2034_v26 = vor.u32 %v2033_v52, %v2030_v8  ;;  %v1226_v20 = vshll.u32 %v1124_v9, 16  ;;  %v1623_v37 = vld [vmem:[#allocation2 + $0x1c] sm:$0xf]  ;;  %v1230_v50 = vshrl.u32 %v1124_v9, 16 }
  0x97   : > { %570 = vst [vmem:[#allocation2 + $0x20] sm:$0x1] %v569_v39  ;;  %v2043_v34 = vrot.slane %v2041_v15, 4  ;;  %v1219_v35 = vrot.slane %v1217_v18, 4  ;;  %v1222_v36 = vrot.slane %v1220_v19, 5  ;;  %v1731_v39 = vrot.slane %v1623_v37, 5 }
  0x98   : > { %v2035_v33 = vrot.slane %v2034_v26, 4  ;;  %v1622_v45 = vld [vmem:[#allocation2 + $0x18] sm:$0xe]  ;;  %v1228_v47 = vrot.slane %v1226_v20, 5  ;;  %v7183_v2 = vld [vmem:[%s8774_s3 + $0x1b0] sm:$0xff]  ;;  %v1232_v62 = vrot.slane %v1230_v50, 4 }
  0x99   : > { %5307 = vmatmul.bf16.vlgmr.msrb.gmra.mxu3 %v6132_v0  ;;  %v1957_v21 = vld [vmem:[#allocation2 + $0x14] sm:$0x1]  ;;  %v1223_v46 = vor.u32 %v1222_v36, %v1219_v35  ;;  %v6071_v53 = vrot.slane %v1622_v45, 9  ;;  %v1895_v6 = vld [vmem:[#allocation2 + $0x24] sm:$0xf]  ;;  %5567 = vmatpush.bf16.msra.mxu2 %v7183_v2  ;;  %v2044_v15 = vor.u32 %v2043_v34, %v7786_v13 }
  0x9a   : > { %v1122_v22 = vld [vmem:[#allocation2 + $0x14] sm:$0x1]  ;;  %v2023_v25 = vshll.u32 %v1957_v21, 16  ;;  %v2040_v44 = vsel %vm7745_vm1, %v2035_v33, %v7786_v13  ;;  %v6163_v63 = vld [vmem:[#allocation3 + $0x50] sm:$0xf]  ;;  %v1233_v26 = vor.u32 %v1232_v62, %v1228_v47  ;;  %v668_v62 = vrot.slane %v7735_v29, 4 }
  0x9b   : > { %v1621_v23 = vld [vmem:[#allocation2 + $0x14] sm:$0x1]  ;;  %v1212_v27 = vshll.u32 %v1122_v22, 16  ;;  %2421 = vst [vmem:[#allocation3 + $0x58] sm:$0xf] %v2040_v44  ;;  %v1224_v38 = vrot.slane %v1223_v46, 4  ;;  %v1732_v5 = vsel %vm7754_vm6, %v6071_v53, %v1731_v39 }
  0x9c   : > { %v1727_v24 = vrot.slane %v1621_v23, 5  ;;  %v2025_v40 = vrot.slane %v2023_v25, 5  ;;  %v6995_v0 = vld [vmem:[#allocation3 + $0x54] sm:$0xf]  ;;  %v1896_v8 = vld [vmem:[#allocation2 + $0x28] sm:$0xf] }
  0x9d   : > { %v1214_v41 = vrot.slane %v1212_v27, 5  ;;  %v1229_v52 = vsel %vm7745_vm1, %v1224_v38, %v1228_v47  ;;  %v571_v9 = vld [vmem:[#allocation2 + $0x2c] sm:$0x1]  ;;  %v1962_v18 = vld [vmem:[#allocation2 + $0x28] sm:$0xf]  ;;  %v2045_v36 = vrot.slane %v2044_v15, 4 }
  0x9e   : > { %v1728_v43 = vsel %vm7754_vm6, %v1726_v12, %v1727_v24  ;;  %v2026_v49 = vsel %vm7745_vm1, %v2021_v4, %v2025_v40  ;;  %v952_v55 = vld [vmem:[#allocation2 + $0x20] sm:$0x1]  ;;  %v6165_v4 = vld [vmem:[#allocation3 + $0x74] sm:$0xf0]  ;;  %v6135_v12 = vld [vmem:[#allocation3 + $0x10] sm:$0xf] }
  0x9f   : > { %1862 = vst [vmem:[#allocation3 + $0x74] sm:$0xf] %v1728_v43  ;;  %v1215_v54 = vsel %vm7745_vm1, %v1210_v11, %v1214_v41  ;;  %v953_v57 = vsel %vm7311_vm2, %v651_v31, %v952_v55  ;;  %v1961_v11 = vld [vmem:[#allocation2 + $0x24] sm:$0xf]  ;;  %v572_v20 = vsel %vm7331_vm4, 0, %v571_v9  ;;  %v2061_v22 = vshll.u32 %v1962_v18, 16 }
  0xa0   : > { %2420 = vst [vmem:[#allocation3 + $0x34] sm:$0xf] %v2026_v49  ;;  %v2052_v19 = vshrl.u32 %v1961_v11, 16  ;;  %v2055_v21 = vshll.u32 %v1961_v11, 16  ;;  %v2065_v23 = vshrl.u32 %v1962_v18, 16  ;;  %v6168_v31 = vor.u32 %v6995_v0, %v6165_v4  ;;  %v7199_v29 = vld [vmem:[%s8774_s3 + $0x230] sm:$0xff] }
  0xa1   : > { %1587 = vst [vmem:[#allocation3 + $0x70] sm:$0xf] %v1215_v54  ;;  %v6994_v24 = vld [vmem:[#allocation3 + $0x4c] sm:$0xf]  ;;  %v2063_v13 = vrot.slane %v2061_v22, 5  ;;  %v1234_v43 = vrot.slane %v1233_v26, 4  ;;  %5745 = vmatpush.bf16.msra.mxu0 %v7199_v29 }
  0xa2   : > { %954 = vst [vmem:[#allocation2 + $0x20] sm:$0x1] %v953_v57  ;;  %v2054_v27 = vrot.slane %v2052_v19, 4  ;;  %v2057_v35 = vrot.slane %v2055_v21, 5  ;;  %v2067_v37 = vrot.slane %v2065_v23, 4  ;;  %v1733_v44 = vrot.slane %v1731_v39, 4 }
  0xa3   : > { %1588 = vst [vmem:[#allocation3 + $0x94] sm:$0xf] %v1229_v52  ;;  %v1126_v46 = vld [vmem:[#allocation2 + $0x24] sm:$0xf]  ;;  %v7191_v39 = vld [vmem:[%s8774_s3 + $0x1f0] sm:$0xff]  ;;  %v685_v9 = vrot.slane %v7386_v61, 4 }
  0xa4   : > { %1863 = vst [vmem:[#allocation3 + $0x98] sm:$0xf] %v1732_v5  ;;  %v2058_v45 = vor.u32 %v2057_v35, %v2054_v27  ;;  %v2068_v54 = vor.u32 %v2067_v37, %v2063_v13  ;;  %v1127_v0 = vld [vmem:[#allocation2 + $0x28] sm:$0xf]  ;;  %v1241_v4 = vshrl.u32 %v1126_v46, 16  ;;  %5656 = vmatpush.bf16.msra.mxu3 %v7191_v39 }
  0xa5   : > { %1927 = vst [vmem:[#allocation3 + $0x9c] sm:$0xf] %v1895_v6  ;;  %v1254_v23 = vshrl.u32 %v1127_v0, 16 }
  0xa6   : > { %v6999_v25 = vld [vmem:[#allocation3 + $0x70] sm:$0xf0]  ;;  %1928 = vst [vmem:[#allocation3 + $0xc0] sm:$0xf] %v1896_v8  ;;  %v2059_v38 = vrot.slane %v2058_v45, 4  ;;  %v1243_v11 = vrot.slane %v1241_v4, 4 }
  0xa7   : > { %v6164_v33 = vor.u32 %v6999_v25, %v6163_v63  ;;  %v6991_v34 = vld [vmem:[#allocation3 + $0x30] sm:$0xf0]  ;;  %573 = vst [vmem:[#allocation2 + $0x2c] sm:$0x1] %v572_v20  ;;  %v7175_v63 = vld [vmem:[%s8774_s3 + $0x170] sm:$0xff]  ;;  %v7829_v19 = vrot.slane %v2068_v54, 4 }
  0xa8   : > { %v6136_v40 = vor.u32 %v6991_v34, %v6135_v12  ;;  %v6157_v41 = vld [vmem:[#allocation3 + $0x6c] sm:$0xf0]  ;;  %v2064_v52 = vsel %vm7745_vm1, %v2059_v38, %v2063_v13  ;;  %5478 = vmatpush.bf16.msra.mxu1 %v7175_v63  ;;  %v1244_v12 = vshll.u32 %v1126_v46, 16  ;;  %v1250_v20 = vshll.u32 %v1127_v0, 16  ;;  %v1625_v25 = vld [vmem:[#allocation2 + $0x24] sm:$0xe] }
  0xa9   : > { %5223 = vmatmul.bf16.gmra.mxu2 %v6164_v33  ;;  %v6160_v47 = vor.u32 %v6994_v24, %v6157_v41  ;;  %v1960_v50 = vld [vmem:[#allocation2 + $0x20] sm:$0x1]  ;;  %5312 = vmatmul.bf16.gmra.mxu3 %v6168_v31  ;;  %2423 = vst [vmem:[#allocation3 + $0xa0] sm:$0xf] %v2064_v52  ;;  %v1626_v33 = vld [vmem:[#allocation2 + $0x28] sm:$0xf] }
  0xaa   : > { %v1125_v53 = vld [vmem:[#allocation2 + $0x20] sm:$0x1]  ;;  %5396 = vmatmul.bf16.vlgmr.msrb.gmra.mxu0 %v6136_v40  ;;  %v2047_v55 = vshll.u32 %v1960_v50, 16  ;;  %v1246_v22 = vrot.slane %v1244_v12, 5  ;;  %v1252_v24 = vrot.slane %v1250_v20, 5  ;;  %v6072_v31 = vrot.slane %v1625_v25, 9 }
  0xab   : > { %v1624_v49 = vld [vmem:[#allocation2 + $0x20] sm:$0x1]  ;;  %v1236_v2 = vshll.u32 %v1125_v53, 16  ;;  %5134 = vmatmul.bf16.gmra.mxu1 %v6160_v47  ;;  %v6199_v27 = vld [vmem:[#allocation3 + $0x98] sm:$0xf]  ;;  %v1738_v37 = vrot.slane %v1626_v33, 5 }
  0xac   : > { %v1734_v57 = vrot.slane %v1624_v49, 5  ;;  %v2049_v5 = vrot.slane %v2047_v55, 5  ;;  %v7004_v35 = vld [vmem:[#allocation3 + $0x9c] sm:$0xf]  ;;  %v1247_v34 = vor.u32 %v1246_v22, %v1243_v11  ;;  %v1897_v40 = vld [vmem:[#allocation2 + $0x30] sm:$0xf] }
  0xad   : > { %v1238_v6 = vrot.slane %v1236_v2, 5  ;;  %v6201_v13 = vld [vmem:[#allocation3 + $0xbc] sm:$0xf0]  ;;  %v6171_v41 = vld [vmem:[#allocation3 + $0x58] sm:$0xf]  ;;  %v1739_v47 = vsel %vm7754_vm6, %v6072_v31, %v1738_v37  ;;  %v1740_v50 = vrot.slane %v1738_v37, 4 }
  0xae   : > { %v1735_v8 = vsel %vm7754_vm6, %v1733_v44, %v1734_v57  ;;  %v2050_v15 = vsel %vm7745_vm1, %v2045_v36, %v2049_v5  ;;  %v959_v18 = vld [vmem:[#allocation2 + $0x2c] sm:$0x1]  ;;  %v1256_v36 = vrot.slane %v1254_v23, 4  ;;  %1929 = vst [vmem:[#allocation3 + $0xe4] sm:$0xf] %v1897_v40  ;;  %v1248_v45 = vrot.slane %v1247_v34, 4 }
  0xaf   : > { %1864 = vst [vmem:[#allocation3 + $0xbc] sm:$0xf] %v1735_v8  ;;  %v1239_v26 = vsel %vm7745_vm1, %v1234_v43, %v1238_v6  ;;  %v960_v21 = vsel %vm7311_vm2, %v668_v62, %v959_v18  ;;  %v1898_v43 = vld [vmem:[#allocation2 + $0x34] sm:$0xf]  ;;  %v574_v44 = vld [vmem:[#allocation2 + $0x38] sm:$0x1]  ;;  %v6204_v0 = vor.u32 %v7004_v35, %v6201_v13 }
  0xb0   : > { %2422 = vst [vmem:[#allocation3 + $0x7c] sm:$0xf] %v2050_v15  ;;  %v1257_v46 = vor.u32 %v1256_v36, %v1252_v24  ;;  %v1964_v53 = vld [vmem:[#allocation2 + $0x30] sm:$0xf]  ;;  %v575_v54 = vsel %vm7331_vm4, 0, %v574_v44  ;;  %v1253_v38 = vsel %vm7745_vm1, %v1248_v45, %v1252_v24 }
  0xb1   : > { %1589 = vst [vmem:[#allocation3 + $0xb8] sm:$0xf] %v1239_v26  ;;  %v2076_v55 = vshrl.u32 %v1964_v53, 16  ;;  %v7003_v2 = vld [vmem:[#allocation3 + $0x94] sm:$0xf]  ;;  %v2079_v39 = vshll.u32 %v1964_v53, 16 }
  0xb2   : > { %961 = vst [vmem:[#allocation2 + $0x2c] sm:$0x1] %v960_v21  ;;  %v1258_v62 = vrot.slane %v1257_v46, 4  ;;  %v1965_v4 = vld [vmem:[#allocation2 + $0x34] sm:$0xf] }
  0xb3   : > { %1930 = vst [vmem:[#allocation3 + $0x108] sm:$0xf] %v1898_v43  ;;  %v2078_v8 = vrot.slane %v2076_v55, 4  ;;  %v2081_v52 = vrot.slane %v2079_v39, 5  ;;  %v2085_v29 = vshll.u32 %v1965_v4, 16  ;;  %v2089_v13 = vshrl.u32 %v1965_v4, 16 }
  0xb4   : > { %1865 = vst [vmem:[#allocation3 + $0xe0] sm:$0xf] %v1739_v47  ;;  %v1129_v33 = vld [vmem:[#allocation2 + $0x30] sm:$0xf]  ;;  %v1130_v40 = vld [vmem:[#allocation2 + $0x34] sm:$0xf] }
  0xb5   : > { %576 = vst [vmem:[#allocation2 + $0x38] sm:$0x1] %v575_v54  ;;  %v2082_v22 = vor.u32 %v2081_v52, %v2078_v8  ;;  %v7841_v24 = vrot.slane %v2085_v29, 5  ;;  %v7182_v43 = vld [vmem:[%s8774_s3 + $0x1a8] sm:$0xff]  ;;  %v1274_v45 = vshll.u32 %v1130_v40, 16  ;;  %v2091_v54 = vrot.slane %v2089_v13, 4 }
  0xb6   : > { %v7008_v49 = vld [vmem:[#allocation3 + $0xb8] sm:$0xf0]  ;;  %1590 = vst [vmem:[#allocation3 + $0xdc] sm:$0xf] %v1253_v38  ;;  %v1628_v46 = vld [vmem:[#allocation2 + $0x30] sm:$0xe]  ;;  %5568 = vmatpush.bf16.msra.mxu2 %v7182_v43 }
  0xb7   : > { %v6200_v57 = vor.u32 %v7008_v49, %v6199_v27  ;;  %v7000_v63 = vld [vmem:[#allocation3 + $0x78] sm:$0xf0]  ;;  %v2083_v35 = vrot.slane %v2082_v22, 4  ;;  %v6207_v38 = vld [vmem:[#allocation3 + $0xa0] sm:$0xf] }
  0xb8   : > { %v6172_v5 = vor.u32 %v7000_v63, %v6171_v41  ;;  %v6193_v6 = vld [vmem:[#allocation3 + $0xb4] sm:$0xf0]  ;;  %v1265_v41 = vshrl.u32 %v1129_v33, 16  ;;  %v1629_v53 = vld [vmem:[#allocation2 + $0x34] sm:$0xf] }
  0xb9   : > { %v6196_v11 = vor.u32 %v7003_v2, %v6193_v6  ;;  %5228 = vmatmul.bf16.gmra.mxu2 %v6200_v57  ;;  %v1963_v12 = vld [vmem:[#allocation2 + $0x2c] sm:$0x1]  ;;  %5317 = vmatmul.bf16.gmra.mxu3 %v6204_v0  ;;  %v2088_v44 = vsel %vm7745_vm1, %v2083_v35, %v7841_v24  ;;  %v1276_v2 = vrot.slane %v1274_v45, 5  ;;  %v6073_v57 = vrot.slane %v1628_v46, 9  ;;  %v1899_v0 = vld [vmem:[#allocation2 + $0x3c] sm:$0xf] }
  0xba   : > { %v1128_v15 = vld [vmem:[#allocation2 + $0x2c] sm:$0x1]  ;;  %v2071_v18 = vshll.u32 %v1963_v12, 16  ;;  %5401 = vmatmul.bf16.gmra.mxu0 %v6172_v5  ;;  %v1267_v61 = vrot.slane %v1265_v41, 4  ;;  %v6237_v49 = vld [vmem:[#allocation3 + $0x104] sm:$0xf0] }
  0xbb   : > { %v1627_v26 = vld [vmem:[#allocation2 + $0x2c] sm:$0x1]  ;;  %v1260_v20 = vshll.u32 %v1128_v15, 16  ;;  %5139 = vmatmul.bf16.gmra.mxu1 %v6196_v11  ;;  %v6235_v47 = vld [vmem:[#allocation3 + $0xe0] sm:$0xf]  ;;  %v1745_v63 = vrot.slane %v1629_v53, 5  ;;  %v2092_v15 = vor.u32 %v2091_v54, %v7841_v24 }
  0xbc   : > { %v1741_v21 = vrot.slane %v1627_v26, 5  ;;  %v2073_v23 = vrot.slane %v2071_v18, 5  ;;  %v966_v31 = vld [vmem:[#allocation2 + $0x38] sm:$0x1]  ;;  %2425 = vst [vmem:[#allocation3 + $0xe8] sm:$0xf] %v2088_v44 }
  0xbd   : > { %v1262_v25 = vrot.slane %v1260_v20, 5  ;;  %v967_v37 = vsel %vm7311_vm2, %v685_v9, %v966_v31  ;;  %v7013_v9 = vld [vmem:[#allocation3 + $0xe4] sm:$0xf]  ;;  %v7012_v4 = vld [vmem:[#allocation3 + $0xdc] sm:$0xf]  ;;  %v1746_v29 = vsel %vm7754_vm6, %v6073_v57, %v1745_v63  ;;  %v1747_v35 = vrot.slane %v1745_v63, 4 }
  0xbe   : > { %v1742_v27 = vsel %vm7754_vm6, %v1740_v50, %v1741_v21  ;;  %v2074_v34 = vsel %vm7745_vm1, %v7829_v19, %v2073_v23  ;;  %v1268_v19 = vshll.u32 %v1129_v33, 16  ;;  %v1278_v50 = vshrl.u32 %v1130_v40, 16  ;;  %968 = vst [vmem:[#allocation2 + $0x38] sm:$0x1] %v967_v37  ;;  %v1900_v6 = vld [vmem:[#allocation2 + $0x40] sm:$0xf] }
  0xbf   : > { %1866 = vst [vmem:[#allocation3 + $0x104] sm:$0xf] %v1742_v27  ;;  %v1263_v36 = vsel %vm7745_vm1, %v1258_v62, %v1262_v25  ;;  %v7858_v62 = vpop.f32.mrf.mxu1  ;;  %v577_v8 = vld [vmem:[#allocation2 + $0x44] sm:$0x1]  ;;  %v1967_v20 = vld [vmem:[#allocation2 + $0x3c] sm:$0xf]  ;;  %v6240_v23 = vor.u32 %v7013_v9, %v6237_v49 }
  0xc0   : > { %2424 = vst [vmem:[#allocation3 + $0xc4] sm:$0xf] %v2074_v34  ;;  %v1270_v55 = vrot.slane %v1268_v19, 5  ;;  %v1280_v39 = vrot.slane %v1278_v50, 4  ;;  %v578_v11 = vsel %vm7331_vm4, 0, %v577_v8  ;;  %v702_v21 = vrot.slane %v7475_v32, 4 }
  0xc1   : > { %1591 = vst [vmem:[#allocation3 + $0x100] sm:$0xf] %v1263_v36  ;;  %v2100_v25 = vshrl.u32 %v1967_v20, 16  ;;  %v1968_v13 = vld [vmem:[#allocation2 + $0x40] sm:$0xf]  ;;  %v2103_v34 = vshll.u32 %v1967_v20, 16 }
  0xc2   : > { %v1271_v5 = vor.u32 %v1270_v55, %v1267_v61  ;;  %1931 = vst [vmem:[#allocation3 + $0x12c] sm:$0xf] %v1899_v0  ;;  %v1281_v18 = vor.u32 %v1280_v39, %v1276_v2  ;;  %v2093_v40 = vrot.slane %v2092_v15, 4  ;;  %v2113_v53 = vshrl.u32 %v1968_v13, 16  ;;  %v7190_v9 = vld [vmem:[%s8774_s3 + $0x1e8] sm:$0xff] }
  0xc3   : > { %1932 = vst [vmem:[#allocation3 + $0x150] sm:$0xf] %v1900_v6  ;;  %v2102_v45 = vrot.slane %v2100_v25, 4  ;;  %v2105_v46 = vrot.slane %v2103_v34, 5  ;;  %v7174_v55 = vld [vmem:[%s8774_s3 + $0x168] sm:$0xff]  ;;  %5657 = vmatpush.bf16.msra.mxu3 %v7190_v9 }
  0xc4   : > { %v1272_v26 = vrot.slane %v1271_v5, 4  ;;  %1867 = vst [vmem:[#allocation3 + $0x128] sm:$0xf] %v1746_v29  ;;  %v1282_v32 = vrot.slane %v1281_v18, 4  ;;  %v7198_v57 = vld [vmem:[%s8774_s3 + $0x228] sm:$0xff]  ;;  %v7885_v5 = vpop.f32.mrf.mxu2  ;;  %5479 = vmatpush.bf16.msra.mxu1 %v7174_v55 }
  0xc5   : > { %579 = vst [vmem:[#allocation2 + $0x44] sm:$0x1] %v578_v11  ;;  %v1966_v24 = vld [vmem:[#allocation2 + $0x38] sm:$0x1]  ;;  %v2106_v54 = vor.u32 %v2105_v46, %v2102_v45  ;;  %5746 = vmatpush.bf16.msra.mxu0 %v7198_v57  ;;  %v1133_v29 = vld [vmem:[#allocation2 + $0x40] sm:$0xf] }
  0xc6   : > { %v7017_v52 = vld [vmem:[#allocation3 + $0x100] sm:$0xf0]  ;;  %v1277_v31 = vsel %vm7745_vm1, %v1272_v26, %v1276_v2  ;;  %v1131_v37 = vld [vmem:[#allocation2 + $0x38] sm:$0x1]  ;;  %v2095_v41 = vshll.u32 %v1966_v24, 16  ;;  %v1298_v18 = vshll.u32 %v1133_v29, 16 }
  0xc7   : > { %v6236_v12 = vor.u32 %v7017_v52, %v6235_v47  ;;  %v7009_v22 = vld [vmem:[#allocation3 + $0xc0] sm:$0xf0]  ;;  %1592 = vst [vmem:[#allocation3 + $0x124] sm:$0xf] %v1277_v31  ;;  %v1284_v43 = vshll.u32 %v1131_v37, 16  ;;  %v2109_v47 = vshll.u32 %v1968_v13, 16  ;;  %v7876_v2 = vpop.f32.mrf.mxu1  ;;  %v7891_v31 = vpop.f32.mrf.mxu3 }
  0xc8   : > { %v6208_v27 = vor.u32 %v7009_v22, %v6207_v38  ;;  %v6229_v33 = vld [vmem:[#allocation3 + $0xfc] sm:$0xf0]  ;;  %v2097_v61 = vrot.slane %v2095_v41, 5  ;;  %v2107_v8 = vrot.slane %v2106_v54, 4  ;;  %v1132_v52 = vld [vmem:[#allocation2 + $0x3c] sm:$0xf] }
  0xc9   : > { %v6232_v36 = vor.u32 %v7012_v4, %v6229_v33  ;;  %5233 = vmatmul.bf16.gmra.mxu2 %v6236_v12  ;;  %v1630_v44 = vld [vmem:[#allocation2 + $0x38] sm:$0x1]  ;;  %5322 = vmatmul.bf16.gmra.mxu3 %v6240_v23  ;;  %v1286_v50 = vrot.slane %v1284_v43, 5  ;;  %v2111_v0 = vrot.slane %v2109_v47, 5  ;;  %v2115_v4 = vrot.slane %v2113_v53, 4  ;;  %8790 = vst [vmem:[#allocation4_spill] sm:$0xff] %v7891_v31 }
  0xca   : > { %v1748_v19 = vrot.slane %v1630_v44, 5  ;;  %5406 = vmatmul.bf16.gmra.mxu0 %v6208_v27  ;;  %v2098_v38 = vsel %vm7745_vm1, %v2093_v40, %v2097_v61  ;;  %v1289_v15 = vshrl.u32 %v1132_v52, 16  ;;  %v1292_v26 = vshll.u32 %v1132_v52, 16  ;;  %v7022_v20 = vld [vmem:[#allocation3 + $0x12c] sm:$0xf] }
  0xcb   : > { %5144 = vmatmul.bf16.gmra.mxu1 %v6232_v36  ;;  %v1287_v39 = vsel %vm7745_vm1, %v1282_v32, %v1286_v50  ;;  %2426 = vst [vmem:[#allocation3 + $0x10c] sm:$0xf] %v2098_v38  ;;  %v6271_v11 = vld [vmem:[#allocation3 + $0x128] sm:$0xf]  ;;  %v2112_v12 = vsel %vm7745_vm1, %v2107_v8, %v2111_v0  ;;  %v6273_v22 = vld [vmem:[#allocation3 + $0x14c] sm:$0xf0]  ;;  %v2116_v23 = vor.u32 %v2115_v4, %v2111_v0  ;;  %v7901_v8 = vpop.f32.mrf.mxu0 }
  0xcc   : > { %v1749_v49 = vsel %vm7754_vm6, %v1747_v35, %v1748_v19  ;;  %v973_v63 = vld [vmem:[#allocation2 + $0x44] sm:$0x1]  ;;  %1593 = vst [vmem:[#allocation3 + $0x148] sm:$0xf] %v1287_v39  ;;  %v1302_v25 = vshrl.u32 %v1133_v29, 16  ;;  %v1291_v35 = vrot.slane %v1289_v15, 4 }
  0xcd   : > { %1868 = vst [vmem:[#allocation3 + $0x14c] sm:$0xf] %v1749_v49  ;;  %v974_v6 = vsel %vm7311_vm2, %v702_v21, %v973_v63  ;;  %v1631_v21 = vld [vmem:[#allocation2 + $0x3c] sm:$0xe]  ;;  %v6243_v27 = vld [vmem:[#allocation3 + $0xe8] sm:$0xf]  ;;  %v6276_v49 = vor.u32 %v7022_v20, %v6273_v22  ;;  %v7897_v63 = vpop.f32.mrf.mxu2 }
  0xce   : > { %975 = vst [vmem:[#allocation2 + $0x44] sm:$0x1] %v974_v6  ;;  %v7021_v33 = vld [vmem:[#allocation3 + $0x124] sm:$0xf]  ;;  %v1294_v13 = vrot.slane %v1292_v26, 5  ;;  %v1300_v34 = vrot.slane %v1298_v18, 5 }
  0xcf   : > { %2427 = vst [vmem:[#allocation3 + $0x130] sm:$0xf] %v2112_v12  ;;  %v1632_v36 = vld [vmem:[#allocation2 + $0x40] sm:$0xf]  ;;  %v6074_v24 = vrot.slane %v1631_v21, 9  ;;  %v1304_v37 = vrot.slane %v1302_v25, 4  ;;  %v7893_v44 = vpop.f32.mrf.mxu1 }
  0xd0   : > { %v1752_v40 = vrot.slane %v1632_v36, 5  ;;  %v1901_v41 = vld [vmem:[#allocation2 + $0x48] sm:$0xf]  ;;  %v1902_v32 = vld [vmem:[#allocation2 + $0x4c] sm:$0xf]  ;;  %v1295_v19 = vor.u32 %v1294_v13, %v1291_v35  ;;  %v2117_v54 = vrot.slane %v2116_v23, 4 }
  0xd1   : > { %1933 = vst [vmem:[#allocation3 + $0x174] sm:$0xf] %v1901_v41  ;;  %v580_v45 = vld [vmem:[#allocation2 + $0x50] sm:$0x1]  ;;  %v1305_v61 = vor.u32 %v1304_v37, %v1300_v34  ;;  %v1970_v53 = vld [vmem:[#allocation2 + $0x48] sm:$0xf] }
  0xd2   : > { %v7018_v46 = vld [vmem:[#allocation3 + $0x108] sm:$0xf0]  ;;  %v1753_v50 = vsel %vm7754_vm6, %v6074_v24, %v1752_v40  ;;  %1934 = vst [vmem:[#allocation3 + $0x198] sm:$0xf] %v1902_v32  ;;  %v1296_v55 = vrot.slane %v1295_v19, 4  ;;  %v1754_v4 = vrot.slane %v1752_v40, 4 }
  0xd3   : > { %v6265_v9 = vld [vmem:[#allocation3 + $0x144] sm:$0xf0]  ;;  %1869 = vst [vmem:[#allocation3 + $0x170] sm:$0xf] %v1753_v50  ;;  %v6244_v57 = vor.u32 %v7018_v46, %v6243_v27  ;;  %v581_v6 = vsel %vm7331_vm4, 0, %v580_v45  ;;  %v2124_v20 = vshrl.u32 %v1970_v53, 16 }
  0xd4   : > { %v7026_v43 = vld [vmem:[#allocation3 + $0x148] sm:$0xf0]  ;;  %v6268_v38 = vor.u32 %v7021_v33, %v6265_v9  ;;  %v1301_v29 = vsel %vm7745_vm1, %v1296_v55, %v1300_v34  ;;  %v1971_v18 = vld [vmem:[#allocation2 + $0x4c] sm:$0xf]  ;;  %582 = vst [vmem:[#allocation2 + $0x50] sm:$0x1] %v581_v6  ;;  %v7909_v34 = vpop.f32.mrf.mxu3 }
  0xd5   : > { %v6272_v47 = vor.u32 %v7026_v43, %v6271_v11  ;;  %v1969_v39 = vld [vmem:[#allocation2 + $0x44] sm:$0x1]  ;;  %v1306_v11 = vrot.slane %v1305_v61, 4  ;;  %1594 = vst [vmem:[#allocation3 + $0x16c] sm:$0xf] %v1301_v29  ;;  %v2127_v25 = vshll.u32 %v1970_v53, 16 }
  0xd6   : > { %v1134_v0 = vld [vmem:[#allocation2 + $0x44] sm:$0x1]  ;;  %v2119_v52 = vshll.u32 %v1969_v39, 16  ;;  %v2133_v21 = vshll.u32 %v1971_v18, 16  ;;  %v2126_v33 = vrot.slane %v2124_v20, 4  ;;  %8791 = vst [vmem:[#allocation5_spill] sm:$0xff] %v7909_v34 }
  0xd7   : > { %v1308_v12 = vshll.u32 %v1134_v0, 16  ;;  %v1633_v15 = vld [vmem:[#allocation2 + $0x44] sm:$0x1]  ;;  %v1135_v35 = vld [vmem:[#allocation2 + $0x48] sm:$0xf]  ;;  %v2129_v24 = vrot.slane %v2127_v25, 5  ;;  %v7913_v40 = vpop.f32.mrf.mxu1 }
  0xd8   : > { %v1755_v26 = vrot.slane %v1633_v15, 5  ;;  %v2121_v22 = vrot.slane %v2119_v52, 5  ;;  %v2137_v37 = vshrl.u32 %v1971_v18, 16  ;;  %v719_v41 = vrot.slane %v7585_v16, 4  ;;  %v7181_v43 = vld [vmem:[%s8774_s3 + $0x1a0] sm:$0xff]  ;;  %v7921_v52 = vpop.f32.mrf.mxu0 }
  0xd9   : > { %5238 = vmatmul.bf16.gmra.mxu2 %v6272_v47  ;;  %v1310_v23 = vrot.slane %v1308_v12, 5  ;;  %5327 = vmatmul.bf16.gmra.mxu3 %v6276_v49  ;;  %v2135_v32 = vrot.slane %v2133_v21, 5  ;;  %v2130_v19 = vor.u32 %v2129_v24, %v2126_v33  ;;  %v1136_v45 = vld [vmem:[#allocation2 + $0x4c] sm:$0xf]  ;;  %v1313_v46 = vshrl.u32 %v1135_v35, 16 }
  0xda   : > { %5411 = vmatmul.bf16.gmra.mxu0 %v6244_v57  ;;  %v1756_v27 = vsel %vm7754_vm6, %v1754_v4, %v1755_v26  ;;  %v2122_v13 = vsel %vm7745_vm1, %v2117_v54, %v2121_v22  ;;  %v1316_v47 = vshll.u32 %v1135_v35, 16  ;;  %v1322_v61 = vshll.u32 %v1136_v45, 16  ;;  %v1634_v53 = vld [vmem:[#allocation2 + $0x48] sm:$0xe]  ;;  %v1635_v9 = vld [vmem:[#allocation2 + $0x4c] sm:$0xf]  ;;  %5569 = vmatpush.bf16.msra.mxu2 %v7181_v43 }
  0xdb   : > { %5149 = vmatmul.bf16.gmra.mxu1 %v6268_v38  ;;  %v1311_v36 = vsel %vm7745_vm1, %v1306_v11, %v1310_v23  ;;  %1870 = vst [vmem:[#allocation3 + $0x194] sm:$0xf] %v1756_v27  ;;  %v1326_v50 = vshrl.u32 %v1136_v45, 16  ;;  %v2131_v49 = vrot.slane %v2130_v19, 4  ;;  %v2139_v54 = vrot.slane %v2137_v37, 4  ;;  %v7919_v38 = vpop.f32.mrf.mxu2 }
  0xdc   : > { %2428 = vst [vmem:[#allocation3 + $0x154] sm:$0xf] %v2122_v13  ;;  %v1315_v55 = vrot.slane %v1313_v46, 4  ;;  %v1318_v16 = vrot.slane %v1316_v47, 5  ;;  %v980_v57 = vld [vmem:[#allocation2 + $0x50] sm:$0x1]  ;;  %v7929_v43 = vpop.f32.mrf.mxu3 }
  0xdd   : > { %1595 = vst [vmem:[#allocation3 + $0x190] sm:$0xf] %v1311_v36  ;;  %v1324_v39 = vrot.slane %v1322_v61, 5  ;;  %v1328_v0 = vrot.slane %v1326_v50, 4  ;;  %v6075_v4 = vrot.slane %v1634_v53, 9  ;;  %v981_v15 = vsel %vm7311_vm2, %v719_v41, %v980_v57 }
  0xde   : > { %v6279_v6 = vld [vmem:[#allocation3 + $0x130] sm:$0xf]  ;;  %v7031_v11 = vld [vmem:[#allocation3 + $0x174] sm:$0xf]  ;;  %v6309_v12 = vld [vmem:[#allocation3 + $0x194] sm:$0xf0]  ;;  %v2136_v26 = vsel %vm7745_vm1, %v2131_v49, %v2135_v32  ;;  %v1319_v18 = vor.u32 %v1318_v16, %v1315_v55  ;;  %v2140_v33 = vor.u32 %v2139_v54, %v2135_v32 }
  0xdf   : > { %v6307_v29 = vld [vmem:[#allocation3 + $0x170] sm:$0xf]  ;;  %v1759_v20 = vrot.slane %v1635_v9, 5  ;;  %v1903_v22 = vld [vmem:[#allocation2 + $0x54] sm:$0xf]  ;;  %v1329_v13 = vor.u32 %v1328_v0, %v1324_v39  ;;  %8792 = vst [vmem:[#allocation6_spill] sm:$0xff] %v7929_v43  ;;  %v7931_v19 = vpop.f32.mrf.mxu1  ;;  %v6312_v61 = vor.u32 %v7031_v11, %v6309_v12 }
  0xe0   : > { %v7030_v23 = vld [vmem:[#allocation3 + $0x16c] sm:$0xf]  ;;  %982 = vst [vmem:[#allocation2 + $0x50] sm:$0x1] %v981_v15  ;;  %v583_v21 = vld [vmem:[#allocation2 + $0x5c] sm:$0x1] }
  0xe1   : > { %2429 = vst [vmem:[#allocation3 + $0x178] sm:$0xf] %v2136_v26  ;;  %v1320_v35 = vrot.slane %v1319_v18, 4  ;;  %v1760_v37 = vsel %vm7754_vm6, %v6075_v4, %v1759_v20  ;;  %v1904_v41 = vld [vmem:[#allocation2 + $0x58] sm:$0xf]  ;;  %v584_v32 = vsel %vm7331_vm4, 0, %v583_v21  ;;  %v7943_v21 = vpop.f32.mrf.mxu0 }
  0xe2   : > { %v7035_v25 = vld [vmem:[#allocation3 + $0x190] sm:$0xf0]  ;;  %1935 = vst [vmem:[#allocation3 + $0x1bc] sm:$0xf] %v1903_v22  ;;  %v1973_v46 = vld [vmem:[#allocation2 + $0x54] sm:$0xf] }
  0xe3   : > { %v7027_v27 = vld [vmem:[#allocation3 + $0x150] sm:$0xf0]  ;;  %v6308_v24 = vor.u32 %v7035_v25, %v6307_v29  ;;  %v1325_v45 = vsel %vm7745_vm1, %v1320_v35, %v1324_v39  ;;  %1871 = vst [vmem:[#allocation3 + $0x1b8] sm:$0xf] %v1760_v37  ;;  %v1974_v50 = vld [vmem:[#allocation2 + $0x58] sm:$0xf]  ;;  %v7937_v11 = vpop.f32.mrf.mxu2 }
  0xe4   : > { %v6301_v36 = vld [vmem:[#allocation3 + $0x18c] sm:$0xf0]  ;;  %v6280_v47 = vor.u32 %v7027_v27, %v6279_v6  ;;  %1596 = vst [vmem:[#allocation3 + $0x1b4] sm:$0xf] %v1325_v45  ;;  %v2148_v53 = vshrl.u32 %v1973_v46, 16  ;;  %v2151_v9 = vshll.u32 %v1973_v46, 16 }
  0xe5   : > { %v6304_v49 = vor.u32 %v7030_v23, %v6301_v36  ;;  %v2141_v54 = vrot.slane %v2140_v33, 4  ;;  %v1330_v55 = vrot.slane %v1329_v13, 4  ;;  %v1761_v16 = vrot.slane %v1759_v20, 4  ;;  %1936 = vst [vmem:[#allocation3 + $0x1e0] sm:$0xf] %v1904_v41  ;;  %v7189_v20 = vld [vmem:[%s8774_s3 + $0x1e0] sm:$0xff] }
  0xe6   : > { %585 = vst [vmem:[#allocation2 + $0x5c] sm:$0x1] %v584_v32  ;;  %v2150_v57 = vrot.slane %v2148_v53, 4  ;;  %v2153_v39 = vrot.slane %v2151_v9, 5  ;;  %v2157_v0 = vshll.u32 %v1974_v50, 16  ;;  %v2161_v4 = vshrl.u32 %v1974_v50, 16  ;;  %5658 = vmatpush.bf16.msra.mxu3 %v7189_v20  ;;  %v7957_v53 = vpop.f32.mrf.mxu3 }
  0xe7   : > { %v1972_v29 = vld [vmem:[#allocation2 + $0x50] sm:$0x1]  ;;  %v1138_v23 = vld [vmem:[#allocation2 + $0x54] sm:$0xf]  ;;  %v736_v25 = vrot.slane %v7677_v48, 4  ;;  %v7173_v27 = vld [vmem:[%s8774_s3 + $0x160] sm:$0xff] }
  0xe8   : > { %v1137_v15 = vld [vmem:[#allocation2 + $0x50] sm:$0x1]  ;;  %v2143_v6 = vshll.u32 %v1972_v29, 16  ;;  %v2154_v22 = vor.u32 %v2153_v39, %v2150_v57  ;;  %v7197_v33 = vld [vmem:[%s8774_s3 + $0x220] sm:$0xff]  ;;  %v1139_v35 = vld [vmem:[#allocation2 + $0x58] sm:$0xf]  ;;  %5480 = vmatpush.bf16.msra.mxu1 %v7173_v27 }
  0xe9   : > { %5243 = vmatmul.bf16.gmra.mxu2 %v6308_v24  ;;  %v1636_v26 = vld [vmem:[#allocation2 + $0x50] sm:$0x1]  ;;  %5332 = vmatmul.bf16.gmra.mxu3 %v6312_v61  ;;  %v1332_v12 = vshll.u32 %v1137_v15, 16  ;;  %v2159_v48 = vrot.slane %v2157_v0, 5  ;;  %v2163_v41 = vrot.slane %v2161_v4, 4  ;;  %v1337_v45 = vshrl.u32 %v1138_v23, 16 }
  0xea   : > { %5416 = vmatmul.bf16.gmra.mxu0 %v6280_v47  ;;  %v1762_v18 = vrot.slane %v1636_v26, 5  ;;  %v2145_v13 = vrot.slane %v2143_v6, 5  ;;  %v2155_v37 = vrot.slane %v2154_v22, 4  ;;  %v1340_v32 = vshll.u32 %v1138_v23, 16  ;;  %v1637_v50 = vld [vmem:[#allocation2 + $0x54] sm:$0xe] }
  0xeb   : > { %5154 = vmatmul.bf16.gmra.mxu1 %v6304_v49  ;;  %v1334_v36 = vrot.slane %v1332_v12, 5  ;;  %5747 = vmatpush.bf16.msra.mxu0 %v7197_v33  ;;  %v1346_v61 = vshll.u32 %v1139_v35, 16  ;;  %8793 = vst [vmem:[#allocation7_spill] sm:$0xff] %v7957_v53  ;;  %v1339_v57 = vrot.slane %v1337_v45, 4  ;;  %v6343_v39 = vld [vmem:[#allocation3 + $0x1b8] sm:$0xf]  ;;  %v2164_v15 = vor.u32 %v2163_v41, %v2159_v48  ;;  %v7970_v41 = vpop.f32.mrf.mxu0 }
  0xec   : > { %v1763_v24 = vsel %vm7754_vm6, %v1761_v16, %v1762_v18  ;;  %v2146_v46 = vsel %vm7745_vm1, %v2141_v54, %v2145_v13  ;;  %v2160_v49 = vsel %vm7745_vm1, %v2155_v37, %v2159_v48  ;;  %v7961_v16 = vpop.f32.mrf.mxu1  ;;  %v1342_v0 = vrot.slane %v1340_v32, 5  ;;  %v6345_v29 = vld [vmem:[#allocation3 + $0x1dc] sm:$0xf0]  ;;  %v6315_v18 = vld [vmem:[#allocation3 + $0x178] sm:$0xf] }
  0xed   : > { %1872 = vst [vmem:[#allocation3 + $0x1dc] sm:$0xf] %v1763_v24  ;;  %v1335_v47 = vsel %vm7745_vm1, %v1330_v55, %v1334_v36  ;;  %v987_v9 = vld [vmem:[#allocation2 + $0x5c] sm:$0x1]  ;;  %v1350_v4 = vshrl.u32 %v1139_v35, 16  ;;  %v1348_v26 = vrot.slane %v1346_v61, 5  ;;  %v7966_v24 = vpop.f32.mrf.mxu2 }
  0xee   : > { %2430 = vst [vmem:[#allocation3 + $0x19c] sm:$0xf] %v2146_v46  ;;  %v988_v54 = vsel %vm7311_vm2, %v736_v25, %v987_v9  ;;  %v7040_v55 = vld [vmem:[#allocation3 + $0x1bc] sm:$0xf]  ;;  %v1638_v6 = vld [vmem:[#allocation2 + $0x58] sm:$0xf]  ;;  %v1343_v22 = vor.u32 %v1342_v0, %v1339_v57 }
  0xef   : > { %1597 = vst [vmem:[#allocation3 + $0x1d8] sm:$0xf] %v1335_v47  ;;  %v6076_v12 = vrot.slane %v1637_v50, 9  ;;  %v1352_v20 = vrot.slane %v1350_v4, 4  ;;  %v1766_v23 = vrot.slane %v1638_v6, 5  ;;  %v753_v25 = vrot.slane %v7402_v17, 4 }
  0xf0   : > { %989 = vst [vmem:[#allocation2 + $0x5c] sm:$0x1] %v988_v54  ;;  %v1905_v27 = vld [vmem:[#allocation2 + $0x60] sm:$0xf]  ;;  %v7039_v33 = vld [vmem:[#allocation3 + $0x1b4] sm:$0xf]  ;;  %v6348_v17 = vor.u32 %v7040_v55, %v6345_v29 }
  0xf1   : > { %2431 = vst [vmem:[#allocation3 + $0x1c0] sm:$0xf] %v2160_v49  ;;  %v1906_v13 = vld [vmem:[#allocation2 + $0x64] sm:$0xf]  ;;  %v586_v36 = vld [vmem:[#allocation2 + $0x68] sm:$0x1]  ;;  %v1767_v48 = vsel %vm7754_vm6, %v6076_v12, %v1766_v23  ;;  %v1353_v46 = vor.u32 %v1352_v20, %v1348_v26  ;;  %v7976_v20 = vpop.f32.mrf.mxu3 }
  0xf2   : > { %1937 = vst [vmem:[#allocation3 + $0x204] sm:$0xf] %v1905_v27  ;;  %v1344_v37 = vrot.slane %v1343_v22, 4  ;;  %v2165_v32 = vrot.slane %v2164_v15, 4  ;;  %v587_v47 = vsel %vm7331_vm4, 0, %v586_v36  ;;  %v1768_v49 = vrot.slane %v1766_v23, 4 }
  0xf3   : > { %1938 = vst [vmem:[#allocation3 + $0x228] sm:$0xf] %v1906_v13  ;;  %v1976_v61 = vld [vmem:[#allocation2 + $0x60] sm:$0xf]  ;;  %v1977_v4 = vld [vmem:[#allocation2 + $0x64] sm:$0xf] }
  0xf4   : > { %v7044_v35 = vld [vmem:[#allocation3 + $0x1d8] sm:$0xf0]  ;;  %1873 = vst [vmem:[#allocation3 + $0x200] sm:$0xf] %v1767_v48  ;;  %v1349_v9 = vsel %vm7745_vm1, %v1344_v37, %v1348_v26  ;;  %v2172_v57 = vshrl.u32 %v1976_v61, 16  ;;  %v1354_v55 = vrot.slane %v1353_v46, 4 }
  0xf5   : > { %v6344_v45 = vor.u32 %v7044_v35, %v6343_v39  ;;  %v7036_v50 = vld [vmem:[#allocation3 + $0x198] sm:$0xf0]  ;;  %588 = vst [vmem:[#allocation2 + $0x68] sm:$0x1] %v587_v47  ;;  %v2181_v13 = vshll.u32 %v1977_v4, 16  ;;  %v2185_v36 = vshrl.u32 %v1977_v4, 16 }
  0xf6   : > { %v6316_v54 = vor.u32 %v7036_v50, %v6315_v18  ;;  %v6337_v0 = vld [vmem:[#allocation3 + $0x1d4] sm:$0xf0]  ;;  %1598 = vst [vmem:[#allocation3 + $0x1fc] sm:$0xf] %v1349_v9  ;;  %v2174_v23 = vrot.slane %v2172_v57, 4  ;;  %v2175_v18 = vshll.u32 %v1976_v61, 16 }
  0xf7   : > { %v6340_v39 = vor.u32 %v7039_v33, %v6337_v0  ;;  %v1975_v15 = vld [vmem:[#allocation2 + $0x5c] sm:$0x1]  ;;  %8794 = vst [vmem:[#allocation8_spill] sm:$0xff] %v7976_v20  ;;  %v1141_v48 = vld [vmem:[#allocation2 + $0x60] sm:$0xf]  ;;  %v2183_v47 = vrot.slane %v2181_v13, 5 }
  0xf8   : > { %v1140_v6 = vld [vmem:[#allocation2 + $0x5c] sm:$0x1]  ;;  %v2167_v22 = vshll.u32 %v1975_v15, 16  ;;  %v7978_v27 = vpop.f32.mrf.mxu1  ;;  %v2187_v61 = vrot.slane %v2185_v36, 4  ;;  %v1142_v9 = vld [vmem:[#allocation2 + $0x64] sm:$0xf]  ;;  %v7990_v15 = vpop.f32.mrf.mxu0 }
  0xf9   : > { %5248 = vmatmul.bf16.gmra.mxu2 %v6344_v45  ;;  %v1639_v12 = vld [vmem:[#allocation2 + $0x5c] sm:$0x1]  ;;  %v1356_v29 = vshll.u32 %v1140_v6, 16  ;;  %5337 = vmatmul.bf16.gmra.mxu3 %v6348_v17  ;;  %v2177_v45 = vrot.slane %v2175_v18, 5  ;;  %v1361_v57 = vshrl.u32 %v1141_v48, 16  ;;  %v1364_v4 = vshll.u32 %v1141_v48, 16 }
  0xfa   : > { %v1769_v26 = vrot.slane %v1639_v12, 5  ;;  %5421 = vmatmul.bf16.gmra.mxu0 %v6316_v54  ;;  %v2169_v33 = vrot.slane %v2167_v22, 5  ;;  %v7986_v54 = vpop.f32.mrf.mxu2  ;;  %v2188_v6 = vor.u32 %v2187_v61, %v2183_v47  ;;  %v1374_v22 = vshrl.u32 %v1142_v9, 16  ;;  %v6351_v36 = vld [vmem:[#allocation3 + $0x1c0] sm:$0xf] }
  0xfb   : > { %5159 = vmatmul.bf16.gmra.mxu1 %v6340_v39  ;;  %v1358_v35 = vrot.slane %v1356_v29, 5  ;;  %8795 = vst [vmem:[#allocation9_spill] sm:$0xff] %v7986_v54  ;;  %v2178_v0 = vor.u32 %v2177_v45, %v2174_v23  ;;  %v1370_v39 = vshll.u32 %v1142_v9, 16  ;;  %v1363_v12 = vrot.slane %v1361_v57, 4  ;;  %v1641_v23 = vld [vmem:[#allocation2 + $0x64] sm:$0xf]  ;;  %v7994_v9 = vpop.f32.mrf.mxu3 }
  0xfc   : > { %v1770_v37 = vsel %vm7754_vm6, %v1768_v49, %v1769_v26  ;;  %v2170_v46 = vsel %vm7745_vm1, %v2165_v32, %v2169_v33  ;;  %v994_v17 = vld [vmem:[#allocation2 + $0x68] sm:$0x1]  ;;  %v6379_v32 = vld [vmem:[#allocation3 + $0x200] sm:$0xf]  ;;  %v1366_v26 = vrot.slane %v1364_v4, 5  ;;  %8796 = vst [vmem:[#allocation10_spill] sm:$0xff] %v7994_v9 }
  0xfd   : > { %1874 = vst [vmem:[#allocation3 + $0x224] sm:$0xf] %v1770_v37  ;;  %v1359_v50 = vsel %vm7745_vm1, %v1354_v55, %v1358_v35  ;;  %v995_v49 = vsel %vm7311_vm2, %v753_v25, %v994_v17  ;;  %v1640_v55 = vld [vmem:[#allocation2 + $0x60] sm:$0xe]  ;;  %v2179_v29 = vrot.slane %v2178_v0, 4  ;;  %v1372_v18 = vrot.slane %v1370_v39, 5 }
  0xfe   : > { %2432 = vst [vmem:[#allocation3 + $0x1e4] sm:$0xf] %v2170_v46  ;;  %v6077_v13 = vrot.slane %v1640_v55, 9  ;;  %v7049_v33 = vld [vmem:[#allocation3 + $0x204] sm:$0xf]  ;;  %v1376_v25 = vrot.slane %v1374_v22, 4 }
  0xff   : > { %1599 = vst [vmem:[#allocation3 + $0x220] sm:$0xf] %v1359_v50  ;;  %v6381_v35 = vld [vmem:[#allocation3 + $0x224] sm:$0xf0]  ;;  %v1907_v37 = vld [vmem:[#allocation2 + $0x6c] sm:$0xf]  ;;  %v2184_v45 = vsel %vm7745_vm1, %v2179_v29, %v2183_v47  ;;  %v1367_v50 = vor.u32 %v1366_v26, %v1363_v12 }
 0x100   : > { %996 = vst [vmem:[#allocation2 + $0x68] sm:$0x1] %v995_v49  ;;  %v7048_v48 = vld [vmem:[#allocation3 + $0x1fc] sm:$0xf]  ;;  %v2189_v46 = vrot.slane %v2188_v6, 4  ;;  %v1773_v17 = vrot.slane %v1641_v23, 5  ;;  %v7996_v49 = vpop.f32.mrf.mxu1  ;;  %v1377_v0 = vor.u32 %v1376_v25, %v1372_v18 }
 0x101   : > { %v1908_v61 = vld [vmem:[#allocation2 + $0x70] sm:$0xf]  ;;  %1939 = vst [vmem:[#allocation3 + $0x24c] sm:$0xf] %v1907_v37  ;;  %v589_v4 = vld [vmem:[#allocation2 + $0x74] sm:$0x1]  ;;  %v6384_v37 = vor.u32 %v7049_v33, %v6381_v35 }
 0x102   : > { %2433 = vst [vmem:[#allocation3 + $0x208] sm:$0xf] %v2184_v45  ;;  %v1368_v22 = vrot.slane %v1367_v50, 4  ;;  %v1774_v55 = vsel %vm7754_vm6, %v6077_v13, %v1773_v17  ;;  %v1775_v20 = vrot.slane %v1773_v17, 4  ;;  %v1979_v47 = vld [vmem:[#allocation2 + $0x6c] sm:$0xf] }
 0x103   : > { %1940 = vst [vmem:[#allocation3 + $0x270] sm:$0xf] %v1908_v61  ;;  %v1378_v12 = vrot.slane %v1377_v0, 4  ;;  %v590_v29 = vsel %vm7331_vm4, 0, %v589_v4  ;;  %v2196_v33 = vshrl.u32 %v1979_v47, 16  ;;  %v770_v35 = vrot.slane %v7485_v60, 4 }
 0x104   : > { %v7053_v57 = vld [vmem:[#allocation3 + $0x220] sm:$0xf0]  ;;  %1875 = vst [vmem:[#allocation3 + $0x248] sm:$0xf] %v1774_v55  ;;  %v1373_v25 = vsel %vm7745_vm1, %v1368_v22, %v1372_v18  ;;  %v8013_v18 = vld [vmem:[%s8775_s4] ss:$0 sm:$0xff] }
 0x105   : > { %v6380_v39 = vor.u32 %v7053_v57, %v6379_v32  ;;  %v7045_v6 = vld [vmem:[#allocation3 + $0x1e0] sm:$0xf0]  ;;  %591 = vst [vmem:[#allocation2 + $0x74] sm:$0x1] %v590_v29  ;;  %v1980_v32 = vld [vmem:[#allocation2 + $0x70] sm:$0xf] }
 0x106   : > { %v6352_v26 = vor.u32 %v7045_v6, %v6351_v36  ;;  %v6373_v23 = vld [vmem:[#allocation3 + $0x21c] sm:$0xf0]  ;;  %1600 = vst [vmem:[#allocation3 + $0x244] sm:$0xf] %v1373_v25  ;;  %v2205_v22 = vshll.u32 %v1980_v32, 16  ;;  %v2198_v29 = vrot.slane %v2196_v33, 4  ;;  %v5042_v25 = vadd.f32 %v8013_v18, %v7901_v8 }
 0x107   : > { %v6376_v45 = vor.u32 %v7048_v48, %v6373_v23  ;;  %v1978_v50 = vld [vmem:[#allocation2 + $0x68] sm:$0x1]  ;;  %v8004_v61 = vpop.f32.mrf.mxu2  ;;  %v7180_v36 = vld [vmem:[%s8774_s3 + $0x198] sm:$0xff]  ;;  %v8015_v48 = vpop.f32.mrf.mxu0  ;;  %v2209_v23 = vshrl.u32 %v1980_v32, 16  ;;  %v1145_v33 = vld [vmem:[#allocation2 + $0x70] sm:$0xf] }
 0x108   : > { %v1143_v13 = vld [vmem:[#allocation2 + $0x68] sm:$0x1]  ;;  %v2191_v17 = vshll.u32 %v1978_v50, 16  ;;  %8797 = vst [vmem:[#allocation11_spill] sm:$0xff] %v8004_v61  ;;  %5570 = vmatpush.bf16.msra.mxu2 %v7180_v36  ;;  %v2207_v32 = vrot.slane %v2205_v22, 5 }
 0x109   : > { %5253 = vmatmul.bf16.gmra.mxu2 %v6380_v39  ;;  %v1380_v57 = vshll.u32 %v1143_v13, 16  ;;  %v1642_v0 = vld [vmem:[#allocation2 + $0x68] sm:$0x1]  ;;  %v2199_v39 = vshll.u32 %v1979_v47, 16  ;;  %5342 = vmatmul.bf16.gmra.mxu3 %v6384_v37  ;;  %v7188_v47 = vld [vmem:[%s8774_s3 + $0x1d8] sm:$0xff] }
 0x10a   : > { %v1776_v4 = vrot.slane %v1642_v0, 5  ;;  %5426 = vmatmul.bf16.gmra.mxu0 %v6352_v26  ;;  %v2193_v55 = vrot.slane %v2191_v17, 5  ;;  %v7172_v26 = vld [vmem:[%s8774_s3 + $0x158] sm:$0xff]  ;;  %5659 = vmatpush.bf16.msra.mxu3 %v7188_v47  ;;  %v1144_v0 = vld [vmem:[#allocation2 + $0x6c] sm:$0xf] }
 0x10b   : > { %v1382_v6 = vrot.slane %v1380_v57, 5  ;;  %5164 = vmatmul.bf16.gmra.mxu1 %v6376_v45  ;;  %v2201_v50 = vrot.slane %v2199_v39, 5  ;;  %v2211_v45 = vrot.slane %v2209_v23, 4  ;;  %v1385_v39 = vshrl.u32 %v1144_v0, 16  ;;  %v6417_v47 = vld [vmem:[#allocation3 + $0x26c] sm:$0xf0] }
 0x10c   : > { %v1777_v60 = vsel %vm7754_vm6, %v1775_v20, %v1776_v4  ;;  %v2194_v37 = vsel %vm7745_vm1, %v2189_v46, %v2193_v55  ;;  %v8031_v20 = vpop.f32.mrf.mxu3  ;;  %v5130_v13 = vpop.f32.mrf.mxu1  ;;  %v1001_v17 = vld [vmem:[#allocation2 + $0x74] sm:$0x1]  ;;  %5481 = vmatpush.bf16.msra.mxu1 %v7172_v26  ;;  %v7196_v4 = vld [vmem:[%s8774_s3 + $0x218] sm:$0xff]  ;;  %v1388_v22 = vshll.u32 %v1144_v0, 16  ;;  %v1398_v23 = vshrl.u32 %v1145_v33, 16 }
 0x10d   : > { %v1383_v8 = vsel %vm7745_vm1, %v1378_v12, %v1382_v6  ;;  %1876 = vst [vmem:[#allocation3 + $0x26c] sm:$0xf] %v1777_v60  ;;  %v2202_v57 = vor.u32 %v2201_v50, %v2198_v29  ;;  %v8033_v36 = vadd.f32 %v5130_v13, %v5042_v25  ;;  %v1002_v46 = vsel %vm7311_vm2, %v770_v35, %v1001_v17  ;;  %v6415_v6 = vld [vmem:[#allocation3 + $0x248] sm:$0xf]  ;;  %v1643_v25 = vld [vmem:[#allocation2 + $0x6c] sm:$0xe] }
 0x10e   : > { %2434 = vst [vmem:[#allocation3 + $0x22c] sm:$0xf] %v2194_v37  ;;  %v1394_v29 = vshll.u32 %v1145_v33, 16  ;;  %v6387_v60 = vld [vmem:[#allocation3 + $0x208] sm:$0xf]  ;;  %v2212_v26 = vor.u32 %v2211_v45, %v2207_v32  ;;  %5748 = vmatpush.bf16.msra.mxu0 %v7196_v4  ;;  %v1387_v37 = vrot.slane %v1385_v39, 4 }
 0x10f   : > { %8798 = vst [vmem:[#allocation12_spill] sm:$0xff] %v8031_v20  ;;  %v2203_v12 = vrot.slane %v2202_v57, 4  ;;  %v8040_v55 = vpop.f32.mrf.mxu2  ;;  %v7058_v50 = vld [vmem:[#allocation3 + $0x24c] sm:$0xf]  ;;  %v1644_v13 = vld [vmem:[#allocation2 + $0x70] sm:$0xf]  ;;  %v8044_v9 = vpop.f32.mrf.mxu0 }
 0x110   : > { %1601 = vst [vmem:[#allocation3 + $0x268] sm:$0xf] %v1383_v8  ;;  %v1390_v8 = vrot.slane %v1388_v22, 5  ;;  %v1909_v17 = vld [vmem:[#allocation2 + $0x78] sm:$0xf]  ;;  %v1396_v57 = vrot.slane %v1394_v29, 5 }
 0x111   : > { %1003 = vst [vmem:[#allocation2 + $0x74] sm:$0x1] %v1002_v46  ;;  %v2208_v35 = vsel %vm7745_vm1, %v2203_v12, %v2207_v32  ;;  %v1400_v0 = vrot.slane %v1398_v23, 4  ;;  %v6078_v46 = vrot.slane %v1643_v25, 9  ;;  %v1780_v20 = vrot.slane %v1644_v13, 5 }
 0x112   : > { %8799 = vst [vmem:[#allocation13_spill] sm:$0xff] %v8040_v55  ;;  %v1391_v53 = vor.u32 %v1390_v8, %v1387_v37  ;;  %v1910_v43 = vld [vmem:[#allocation2 + $0x7c] sm:$0xf]  ;;  %v2213_v22 = vrot.slane %v2212_v26, 4  ;;  %v6420_v25 = vor.u32 %v7058_v50, %v6417_v47 }
 0x113   : > { %2435 = vst [vmem:[#allocation3 + $0x250] sm:$0xf] %v2208_v35  ;;  %v7057_v31 = vld [vmem:[#allocation3 + $0x244] sm:$0xf]  ;;  %v1401_v32 = vor.u32 %v1400_v0, %v1396_v57  ;;  %v1781_v45 = vsel %vm7754_vm6, %v6078_v46, %v1780_v20  ;;  %v1782_v13 = vrot.slane %v1780_v20, 4 }
 0x114   : > { %v7062_v33 = vld [vmem:[#allocation3 + $0x268] sm:$0xf0]  ;;  %1941 = vst [vmem:[#allocation3 + $0x294] sm:$0xf] %v1909_v17  ;;  %v8048_v4 = vpop.f32.mrf.mxu3  ;;  %v1392_v29 = vrot.slane %v1391_v53, 4 }
 0x115   : > { %v7054_v34 = vld [vmem:[#allocation3 + $0x228] sm:$0xf0]  ;;  %v6416_v12 = vor.u32 %v7062_v33, %v6415_v6  ;;  %1942 = vst [vmem:[#allocation3 + $0x2b8] sm:$0xf] %v1910_v43  ;;  %v1402_v8 = vrot.slane %v1401_v32, 4 }
 0x116   : > { %8800 = vst [vmem:[#allocation14_spill] sm:$0xff] %v8048_v4  ;;  %v6388_v23 = vor.u32 %v7054_v34, %v6387_v60  ;;  %v1397_v6 = vsel %vm7745_vm1, %v1392_v29, %v1396_v57  ;;  %v592_v43 = vld [vmem:[#allocation2 + $0x80] sm:$0x1]  ;;  %v1982_v53 = vld [vmem:[#allocation2 + $0x78] sm:$0xf]  ;;  %v5132_v29 = vpop.f32.mrf.mxu1 }
 0x117   : > { %v6409_v39 = vld [vmem:[#allocation3 + $0x264] sm:$0xf0]  ;;  %1877 = vst [vmem:[#allocation3 + $0x290] sm:$0xf] %v1781_v45  ;;  %v5219_v33 = vpop.f32.mrf.mxu2  ;;  %v593_v34 = vsel %vm7331_vm4, 0, %v592_v43  ;;  %v2220_v57 = vshrl.u32 %v1982_v53, 16 }
 0x118   : > { %v1981_v35 = vld [vmem:[#allocation2 + $0x74] sm:$0x1]  ;;  %v6412_v17 = vor.u32 %v7057_v31, %v6409_v39  ;;  %1602 = vst [vmem:[#allocation3 + $0x28c] sm:$0xf] %v1397_v6  ;;  %v5220_v50 = vadd.f32 %v5219_v33, %v8033_v36  ;;  %v1983_v47 = vld [vmem:[#allocation2 + $0x7c] sm:$0xf] }
 0x119   : > { %v1146_v37 = vld [vmem:[#allocation2 + $0x74] sm:$0x1]  ;;  %v2215_v55 = vshll.u32 %v1981_v35, 16  ;;  %5258 = vmatmul.bf16.gmra.mxu2 %v6416_v12  ;;  %594 = vst [vmem:[#allocation2 + $0x80] sm:$0x1] %v593_v34  ;;  %5347 = vmatmul.bf16.gmra.mxu3 %v6420_v25  ;;  %v2223_v12 = vshll.u32 %v1982_v53, 16  ;;  %v5044_v35 = vadd.f32 %v8013_v18, %v7921_v52 }
 0x11a   : > { %v1404_v0 = vshll.u32 %v1146_v37, 16  ;;  %v1645_v46 = vld [vmem:[#allocation2 + $0x74] sm:$0x1]  ;;  %5431 = vmatmul.bf16.gmra.mxu0 %v6388_v23  ;;  %v2233_v36 = vshrl.u32 %v1983_v47, 16  ;;  %v787_v39 = vrot.slane %v7591_v30, 4  ;;  %v2222_v23 = vrot.slane %v2220_v57, 4  ;;  %v8064_v37 = vpop.f32.mrf.mxu0 }
 0x11b   : > { %v1783_v26 = vrot.slane %v1645_v46, 5  ;;  %v2217_v60 = vrot.slane %v2215_v55, 5  ;;  %5169 = vmatmul.bf16.gmra.mxu1 %v6412_v17  ;;  %v2229_v55 = vshll.u32 %v1983_v47, 16  ;;  %v2225_v25 = vrot.slane %v2223_v12, 5  ;;  %v1147_v6 = vld [vmem:[#allocation2 + $0x78] sm:$0xf] }
 0x11c   : > { %v1406_v20 = vrot.slane %v1404_v0, 5  ;;  %v2235_v17 = vrot.slane %v2233_v36, 4  ;;  %v1148_v46 = vld [vmem:[#allocation2 + $0x7c] sm:$0xf]  ;;  %v1409_v43 = vshrl.u32 %v1147_v6, 16  ;;  %v1412_v30 = vshll.u32 %v1147_v6, 16 }
 0x11d   : > { %v1784_v31 = vsel %vm7754_vm6, %v1782_v13, %v1783_v26  ;;  %v2218_v32 = vsel %vm7745_vm1, %v2213_v22, %v2217_v60  ;;  %v5308_v13 = vpop.f32.mrf.mxu3  ;;  %v2231_v22 = vrot.slane %v2229_v55, 5  ;;  %v2226_v0 = vor.u32 %v2225_v25, %v2222_v23  ;;  %v1646_v33 = vld [vmem:[#allocation2 + $0x78] sm:$0xe]  ;;  %v6453_v47 = vld [vmem:[#allocation3 + $0x2b4] sm:$0xf0] }
 0x11e   : > { %v1407_v45 = vsel %vm7745_vm1, %v1402_v8, %v1406_v20  ;;  %1878 = vst [vmem:[#allocation3 + $0x2b4] sm:$0xf] %v1784_v31  ;;  %v8066_v8 = vadd.f32 %v5308_v13, %v5220_v50  ;;  %v5133_v26 = vadd.f32 %v5132_v29, %v5044_v35  ;;  %v6451_v34 = vld [vmem:[#allocation3 + $0x290] sm:$0xf]  ;;  %v1418_v53 = vshll.u32 %v1148_v46, 16 }
 0x11f   : > { %2436 = vst [vmem:[#allocation3 + $0x274] sm:$0xf] %v2218_v32  ;;  %v1422_v60 = vshrl.u32 %v1148_v46, 16  ;;  %v1647_v20 = vld [vmem:[#allocation2 + $0x7c] sm:$0xf]  ;;  %v5221_v52 = vpop.f32.mrf.mxu2  ;;  %v2227_v12 = vrot.slane %v2226_v0, 4  ;;  %v2236_v25 = vor.u32 %v2235_v17, %v2231_v22 }
 0x120   : > { %1603 = vst [vmem:[#allocation3 + $0x2b0] sm:$0xf] %v1407_v45  ;;  %v8068_v31 = vld [vmem:[#allocation3 + $0x294] sm:$0xf]  ;;  %v1008_v57 = vld [vmem:[#allocation2 + $0x80] sm:$0x1]  ;;  %v5222_v36 = vadd.f32 %v5221_v52, %v5133_v26 }
 0x121   : > { %v1411_v32 = vrot.slane %v1409_v43, 4  ;;  %v1414_v45 = vrot.slane %v1412_v30, 5  ;;  %v6079_v50 = vrot.slane %v1646_v33, 9  ;;  %v6423_v55 = vld [vmem:[#allocation3 + $0x250] sm:$0xf]  ;;  %v1009_v23 = vsel %vm7311_vm2, %v787_v39, %v1008_v57 }
 0x122   : > { %v1420_v29 = vrot.slane %v1418_v53, 5  ;;  %v1911_v35 = vld [vmem:[#allocation2 + $0x84] sm:$0xf]  ;;  %v1912_v13 = vld [vmem:[#allocation2 + $0x88] sm:$0xf]  ;;  %v2232_v4 = vsel %vm7745_vm1, %v2227_v12, %v2231_v22  ;;  %v1424_v0 = vrot.slane %v1422_v60, 4  ;;  %v5047_v53 = vadd.f32 %v8013_v18, %v7943_v21 }
 0x123   : > { %v7066_v6 = vld [vmem:[#allocation3 + $0x28c] sm:$0xf]  ;;  %1010 = vst [vmem:[#allocation2 + $0x80] sm:$0x1] %v1009_v23  ;;  %v1415_v61 = vor.u32 %v1414_v45, %v1411_v32  ;;  %v1787_v43 = vrot.slane %v1647_v20, 5  ;;  %v6456_v22 = vor.u32 %v8068_v31, %v6453_v47  ;;  %v2237_v12 = vrot.slane %v2236_v25, 4 }
 0x124   : > { %2437 = vst [vmem:[#allocation3 + $0x298] sm:$0xf] %v2232_v4  ;;  %v595_v33 = vld [vmem:[#allocation2 + $0x8c] sm:$0x1]  ;;  %v1425_v39 = vor.u32 %v1424_v0, %v1420_v29  ;;  %v1985_v60 = vld [vmem:[#allocation2 + $0x84] sm:$0xf] }
 0x125   : > { %v7071_v46 = vld [vmem:[#allocation3 + $0x2b0] sm:$0xf0]  ;;  %v1416_v54 = vrot.slane %v1415_v61, 4  ;;  %v1788_v17 = vsel %vm7754_vm6, %v6079_v50, %v1787_v43  ;;  %1943 = vst [vmem:[#allocation3 + $0x2dc] sm:$0xf] %v1911_v35  ;;  %v5310_v57 = vpop.f32.mrf.mxu3  ;;  %v596_v4 = vsel %vm7331_vm4, 0, %v595_v33 }
 0x126   : > { %v7063_v30 = vld [vmem:[#allocation3 + $0x270] sm:$0xf0]  ;;  %v6452_v52 = vor.u32 %v7071_v46, %v6451_v34  ;;  %1879 = vst [vmem:[#allocation3 + $0x2d8] sm:$0xf] %v1788_v17  ;;  %v8081_v34 = vadd.f32 %v5310_v57, %v5222_v36  ;;  %v1986_v32 = vld [vmem:[#allocation2 + $0x88] sm:$0xf] }
 0x127   : > { %v6445_v26 = vld [vmem:[#allocation3 + $0x2ac] sm:$0xf0]  ;;  %v6424_v20 = vor.u32 %v7063_v30, %v6423_v55  ;;  %v1421_v61 = vsel %vm7745_vm1, %v1416_v54, %v1420_v29  ;;  %1944 = vst [vmem:[#allocation3 + $0x300] sm:$0xf] %v1912_v13  ;;  %v2244_v45 = vshrl.u32 %v1985_v60, 16  ;;  %v5397_v50 = vpop.f32.mrf.mxu0  ;;  %v7179_v31 = vld [vmem:[%s8774_s3 + $0x190] sm:$0xff] }
 0x128   : > { %v6448_v21 = vor.u32 %v7066_v6, %v6445_v26  ;;  %1604 = vst [vmem:[#allocation3 + $0x2d4] sm:$0xf] %v1421_v61  ;;  %v2247_v47 = vshll.u32 %v1985_v60, 16  ;;  %v2253_v23 = vshll.u32 %v1986_v32, 16  ;;  %v2257_v25 = vshrl.u32 %v1986_v32, 16  ;;  %v5135_v35 = vpop.f32.mrf.mxu1  ;;  %5571 = vmatpush.bf16.msra.mxu2 %v7179_v31 }
 0x129   : > { %5263 = vmatmul.bf16.gmra.mxu2 %v6452_v52  ;;  %v1426_v55 = vrot.slane %v1425_v39, 4  ;;  %v1789_v36 = vrot.slane %v1787_v43, 4  ;;  %597 = vst [vmem:[#allocation2 + $0x8c] sm:$0x1] %v596_v4  ;;  %v2246_v46 = vrot.slane %v2244_v45, 4  ;;  %v8089_v54 = vadd.f32 %v5397_v50, %v8066_v8  ;;  %5352 = vmatmul.bf16.gmra.mxu3 %v6456_v22  ;;  %v7187_v8 = vld [vmem:[%s8774_s3 + $0x1d0] sm:$0xff] }
 0x12a   : > { %v5136_v29 = vadd.f32 %v5135_v35, %v5047_v53  ;;  %v1984_v13 = vld [vmem:[#allocation2 + $0x80] sm:$0x1]  ;;  %5436 = vmatmul.bf16.gmra.mxu0 %v6424_v20  ;;  %v2249_v17 = vrot.slane %v2247_v47, 5  ;;  %v1150_v57 = vld [vmem:[#allocation2 + $0x84] sm:$0xf]  ;;  %v804_v52 = vrot.slane %v7688_v10, 4  ;;  %5660 = vmatpush.bf16.msra.mxu3 %v7187_v8 }
 0x12b   : > { %v1149_v6 = vld [vmem:[#allocation2 + $0x80] sm:$0x1]  ;;  %v2239_v30 = vshll.u32 %v1984_v13, 16  ;;  %5174 = vmatmul.bf16.gmra.mxu1 %v6448_v21  ;;  %v2255_v39 = vrot.slane %v2253_v23, 5  ;;  %v2259_v4 = vrot.slane %v2257_v25, 4  ;;  %v7171_v53 = vld [vmem:[%s8774_s3 + $0x150] sm:$0xff] }
 0x12c   : > { %v1648_v0 = vld [vmem:[#allocation2 + $0x80] sm:$0x1]  ;;  %v1428_v33 = vshll.u32 %v1149_v6, 16  ;;  %v5224_v43 = vpop.f32.mrf.mxu2  ;;  %v2250_v10 = vor.u32 %v2249_v17, %v2246_v46  ;;  %5482 = vmatpush.bf16.msra.mxu1 %v7171_v53  ;;  %v1151_v45 = vld [vmem:[#allocation2 + $0x88] sm:$0xf]  ;;  %v1433_v50 = vshrl.u32 %v1150_v57, 16 }
 0x12d   : > { %v1790_v26 = vrot.slane %v1648_v0, 5  ;;  %v2241_v22 = vrot.slane %v2239_v30, 5  ;;  %v5225_v60 = vadd.f32 %v5224_v43, %v5136_v29  ;;  %v5313_v32 = vpop.f32.mrf.mxu3  ;;  %v1436_v21 = vshll.u32 %v1150_v57, 16  ;;  %v1649_v25 = vld [vmem:[#allocation2 + $0x84] sm:$0xe] }
 0x12e   : > { %v1430_v20 = vrot.slane %v1428_v33, 5  ;;  %v1650_v35 = vld [vmem:[#allocation2 + $0x88] sm:$0xf]  ;;  %v2251_v13 = vrot.slane %v2250_v10, 4  ;;  %v2260_v6 = vor.u32 %v2259_v4, %v2255_v39  ;;  %v6487_v30 = vld [vmem:[#allocation3 + $0x2d8] sm:$0xf] }
 0x12f   : > { %v1791_v61 = vsel %vm7754_vm6, %v1789_v36, %v1790_v26  ;;  %v2242_v31 = vsel %vm7745_vm1, %v2237_v12, %v2241_v22  ;;  %v8102_v47 = vadd.f32 %v5313_v32, %v5225_v60  ;;  %v5049_v36 = vadd.f32 %v8013_v18, %v7970_v41  ;;  %v5399_v29 = vpop.f32.mrf.mxu0  ;;  %v7076_v41 = vld [vmem:[#allocation3 + $0x2dc] sm:$0xf]  ;;  %v6489_v43 = vld [vmem:[#allocation3 + $0x2fc] sm:$0xf0]  ;;  %v1913_v22 = vld [vmem:[#allocation2 + $0x90] sm:$0xf] }
 0x130   : > { %1880 = vst [vmem:[#allocation3 + $0x2fc] sm:$0xf] %v1791_v61  ;;  %v1431_v23 = vsel %vm7745_vm1, %v1426_v55, %v1430_v20  ;;  %v1015_v46 = vld [vmem:[#allocation2 + $0x8c] sm:$0x1]  ;;  %v5137_v0 = vpop.f32.mrf.mxu1  ;;  %v7195_v55 = vld [vmem:[%s8774_s3 + $0x210] sm:$0xff]  ;;  %v1435_v33 = vrot.slane %v1433_v50, 4  ;;  %v2256_v4 = vsel %vm7745_vm1, %v2251_v13, %v2255_v39  ;;  %v8116_v10 = vadd.f32 %v5399_v29, %v8081_v34 }
 0x131   : > { %2438 = vst [vmem:[#allocation3 + $0x2bc] sm:$0xf] %v2242_v31  ;;  %v1016_v12 = vsel %vm7311_vm2, %v804_v52, %v1015_v46  ;;  %v1438_v26 = vrot.slane %v1436_v21, 5  ;;  %v1442_v17 = vshll.u32 %v1151_v45, 16  ;;  %v5138_v57 = vadd.f32 %v5137_v0, %v5049_v36  ;;  %v6459_v60 = vld [vmem:[#allocation3 + $0x298] sm:$0xf]  ;;  %5749 = vmatpush.bf16.msra.mxu0 %v7195_v55 }
 0x132   : > { %1605 = vst [vmem:[#allocation3 + $0x2f8] sm:$0xf] %v1431_v23  ;;  %v1446_v8 = vshrl.u32 %v1151_v45, 16  ;;  %v6080_v53 = vrot.slane %v1649_v25, 9  ;;  %v1794_v61 = vrot.slane %v1650_v35, 5  ;;  %v821_v50 = vrot.slane %v7443_v51, 4 }
 0x133   : > { %1017 = vst [vmem:[#allocation2 + $0x8c] sm:$0x1] %v1016_v12  ;;  %v1439_v52 = vor.u32 %v1438_v26, %v1435_v33  ;;  %v1444_v20 = vrot.slane %v1442_v17, 5  ;;  %v1914_v32 = vld [vmem:[#allocation2 + $0x94] sm:$0xf]  ;;  %v2261_v36 = vrot.slane %v2260_v6, 4  ;;  %v6492_v17 = vor.u32 %v7076_v41, %v6489_v43 }
 0x134   : > { %2439 = vst [vmem:[#allocation3 + $0x2e0] sm:$0xf] %v2256_v4  ;;  %v5226_v21 = vpop.f32.mrf.mxu2  ;;  %v7075_v31 = vld [vmem:[#allocation3 + $0x2d4] sm:$0xf]  ;;  %v1448_v23 = vrot.slane %v1446_v8, 4  ;;  %v1795_v13 = vsel %vm7754_vm6, %v6080_v53, %v1794_v61  ;;  %v1796_v34 = vrot.slane %v1794_v61, 4  ;;  %v5052_v4 = vadd.f32 %v8013_v18, %v7990_v15 }
 0x135   : > { %1945 = vst [vmem:[#allocation3 + $0x324] sm:$0xf] %v1913_v22  ;;  %v598_v39 = vld [vmem:[#allocation2 + $0x98] sm:$0x1]  ;;  %v5227_v45 = vadd.f32 %v5226_v21, %v5138_v57  ;;  %v1440_v46 = vrot.slane %v1439_v52, 4  ;;  %v5315_v35 = vpop.f32.mrf.mxu3 }
 0x136   : > { %1946 = vst [vmem:[#allocation3 + $0x348] sm:$0xf] %v1914_v32  ;;  %v1449_v12 = vor.u32 %v1448_v23, %v1444_v20  ;;  %v599_v29 = vsel %vm7331_vm4, 0, %v598_v39  ;;  %v1988_v55 = vld [vmem:[#allocation2 + $0x90] sm:$0xf] }
 0x137   : > { %v7080_v25 = vld [vmem:[#allocation3 + $0x2f8] sm:$0xf0]  ;;  %1881 = vst [vmem:[#allocation3 + $0x320] sm:$0xf] %v1795_v13  ;;  %v8123_v26 = vadd.f32 %v5315_v35, %v5227_v45  ;;  %v1445_v6 = vsel %vm7745_vm1, %v1440_v46, %v1444_v20  ;;  %v2268_v52 = vshrl.u32 %v1988_v55, 16 }
 0x138   : > { %v6488_v0 = vor.u32 %v7080_v25, %v6487_v30  ;;  %v7072_v33 = vld [vmem:[#allocation3 + $0x2b8] sm:$0xf0]  ;;  %600 = vst [vmem:[#allocation2 + $0x98] sm:$0x1] %v599_v29  ;;  %v5402_v30 = vpop.f32.mrf.mxu0  ;;  %v1450_v22 = vrot.slane %v1449_v12, 4  ;;  %v5140_v61 = vpop.f32.mrf.mxu1 }
 0x139   : > { %v1989_v57 = vld [vmem:[#allocation2 + $0x94] sm:$0xf]  ;;  %v6460_v8 = vor.u32 %v7072_v33, %v6459_v60  ;;  %v6481_v53 = vld [vmem:[#allocation3 + $0x2f4] sm:$0xf0]  ;;  %1606 = vst [vmem:[#allocation3 + $0x31c] sm:$0xf] %v1445_v6  ;;  %v8130_v43 = vadd.f32 %v5402_v30, %v8102_v47  ;;  %v5141_v20 = vadd.f32 %v5140_v61, %v5052_v4  ;;  %5357 = vmatmul.bf16.gmra.mxu3 %v6492_v17 }
 0x13a   : > { %v6484_v32 = vor.u32 %v7075_v31, %v6481_v53  ;;  %5268 = vmatmul.bf16.gmra.mxu2 %v6488_v0  ;;  %v1987_v21 = vld [vmem:[#allocation2 + $0x8c] sm:$0x1]  ;;  %v2270_v15 = vrot.slane %v2268_v52, 4  ;;  %v2271_v60 = vshll.u32 %v1988_v55, 16  ;;  %v2277_v46 = vshll.u32 %v1989_v57, 16 }
 0x13b   : > { %v1152_v23 = vld [vmem:[#allocation2 + $0x8c] sm:$0x1]  ;;  %v2263_v39 = vshll.u32 %v1987_v21, 16  ;;  %5441 = vmatmul.bf16.gmra.mxu0 %v6460_v8  ;;  %v2281_v13 = vshrl.u32 %v1989_v57, 16  ;;  %v1153_v29 = vld [vmem:[#allocation2 + $0x90] sm:$0xf]  ;;  %v5054_v47 = vadd.f32 %v8013_v18, %v8015_v48 }
 0x13c   : > { %v1651_v41 = vld [vmem:[#allocation2 + $0x8c] sm:$0x1]  ;;  %v1452_v45 = vshll.u32 %v1152_v23, 16  ;;  %5179 = vmatmul.bf16.gmra.mxu1 %v6484_v32  ;;  %v5229_v31 = vpop.f32.mrf.mxu2  ;;  %v2273_v6 = vrot.slane %v2271_v60, 5  ;;  %v2279_v4 = vrot.slane %v2277_v46, 5  ;;  %v1457_v52 = vshrl.u32 %v1153_v29, 16 }
 0x13d   : > { %v1797_v25 = vrot.slane %v1651_v41, 5  ;;  %v2265_v35 = vrot.slane %v2263_v39, 5  ;;  %v5230_v33 = vadd.f32 %v5229_v31, %v5141_v20  ;;  %v5318_v17 = vpop.f32.mrf.mxu3  ;;  %v2283_v8 = vrot.slane %v2281_v13, 4  ;;  %v1154_v53 = vld [vmem:[#allocation2 + $0x94] sm:$0xf] }
 0x13e   : > { %v1454_v0 = vrot.slane %v1452_v45, 5  ;;  %v2274_v61 = vor.u32 %v2273_v6, %v2270_v15  ;;  %v1460_v32 = vshll.u32 %v1153_v29, 16  ;;  %v1459_v41 = vrot.slane %v1457_v52, 4  ;;  %v8146_v45 = vld [vmem:[#allocation3 + $0x324] sm:$0xf] }
 0x13f   : > { %v1798_v12 = vsel %vm7754_vm6, %v1796_v34, %v1797_v25  ;;  %v2266_v55 = vsel %vm7745_vm1, %v2261_v36, %v2265_v35  ;;  %v1022_v30 = vld [vmem:[#allocation2 + $0x98] sm:$0x1]  ;;  %v8140_v34 = vadd.f32 %v5318_v17, %v5230_v33  ;;  %v2284_v23 = vor.u32 %v2283_v8, %v2279_v4  ;;  %v6525_v25 = vld [vmem:[#allocation3 + $0x344] sm:$0xf0]  ;;  %v1652_v51 = vld [vmem:[#allocation2 + $0x90] sm:$0xe] }
 0x140   : > { %1882 = vst [vmem:[#allocation3 + $0x344] sm:$0xf] %v1798_v12  ;;  %v1455_v57 = vsel %vm7745_vm1, %v1450_v22, %v1454_v0  ;;  %v1023_v48 = vsel %vm7311_vm2, %v821_v50, %v1022_v30  ;;  %v5404_v21 = vpop.f32.mrf.mxu0  ;;  %v6523_v36 = vld [vmem:[#allocation3 + $0x320] sm:$0xf]  ;;  %v1466_v22 = vshll.u32 %v1154_v53, 16  ;;  %v1470_v20 = vshrl.u32 %v1154_v53, 16  ;;  %v5142_v39 = vpop.f32.mrf.mxu1 }
 0x141   : > { %2440 = vst [vmem:[#allocation3 + $0x304] sm:$0xf] %v2266_v55  ;;  %v2275_v60 = vrot.slane %v2274_v61, 4  ;;  %v1462_v46 = vrot.slane %v1460_v32, 5  ;;  %v8149_v13 = vadd.f32 %v5404_v21, %v8123_v26  ;;  %v6495_v50 = vld [vmem:[#allocation3 + $0x2e0] sm:$0xf]  ;;  %v5143_v15 = vadd.f32 %v5142_v39, %v5054_v47 }
 0x142   : > { %1607 = vst [vmem:[#allocation3 + $0x340] sm:$0xf] %v1455_v57  ;;  %v8151_v35 = vrot.slane %v2284_v23, 4  ;;  %v1468_v31 = vrot.slane %v1466_v22, 5  ;;  %v1472_v0 = vrot.slane %v1470_v20, 4  ;;  %v6081_v55 = vrot.slane %v1652_v51, 9 }
 0x143   : > { %1024 = vst [vmem:[#allocation2 + $0x98] sm:$0x1] %v1023_v48  ;;  %v1653_v12 = vld [vmem:[#allocation2 + $0x94] sm:$0xf]  ;;  %v2280_v33 = vsel %vm7745_vm1, %v2275_v60, %v2279_v4  ;;  %v1463_v6 = vor.u32 %v1462_v46, %v1459_v41  ;;  %v1915_v57 = vld [vmem:[#allocation2 + $0x9c] sm:$0xf]  ;;  %v6528_v41 = vor.u32 %v8146_v45, %v6525_v25 }
 0x144   : > { %v7084_v29 = vld [vmem:[#allocation3 + $0x31c] sm:$0xf]  ;;  %v1801_v17 = vrot.slane %v1653_v12, 5  ;;  %v1916_v30 = vld [vmem:[#allocation2 + $0xa0] sm:$0xf]  ;;  %v5231_v8 = vpop.f32.mrf.mxu2  ;;  %v1473_v26 = vor.u32 %v1472_v0, %v1468_v31 }
 0x145   : > { %2441 = vst [vmem:[#allocation3 + $0x328] sm:$0xf] %v2280_v33  ;;  %v601_v52 = vld [vmem:[#allocation2 + $0xa4] sm:$0x1]  ;;  %v5232_v47 = vadd.f32 %v5231_v8, %v5143_v15  ;;  %v1464_v61 = vrot.slane %v1463_v6, 4  ;;  %v5320_v4 = vpop.f32.mrf.mxu3  ;;  %v5057_v15 = vadd.f32 %v8013_v18, %v8044_v9 }
 0x146   : > { %v1802_v32 = vsel %vm7754_vm6, %v6081_v55, %v1801_v17  ;;  %1947 = vst [vmem:[#allocation3 + $0x36c] sm:$0xf] %v1915_v57  ;;  %v1991_v21 = vld [vmem:[#allocation2 + $0x9c] sm:$0xf]  ;;  %v1474_v22 = vrot.slane %v1473_v26, 4  ;;  %v1803_v20 = vrot.slane %v1801_v17, 4 }
 0x147   : > { %v7089_v53 = vld [vmem:[#allocation3 + $0x340] sm:$0xf0]  ;;  %1883 = vst [vmem:[#allocation3 + $0x368] sm:$0xf] %v1802_v32  ;;  %v8158_v60 = vadd.f32 %v5320_v4, %v5232_v47  ;;  %v602_v51 = vsel %vm7331_vm4, 0, %v601_v52  ;;  %v2292_v17 = vshrl.u32 %v1991_v21, 16 }
 0x148   : > { %v6524_v48 = vor.u32 %v7089_v53, %v6523_v36  ;;  %v7081_v23 = vld [vmem:[#allocation3 + $0x300] sm:$0xf0]  ;;  %v1469_v36 = vsel %vm7745_vm1, %v1464_v61, %v1468_v31  ;;  %1948 = vst [vmem:[#allocation3 + $0x390] sm:$0xf] %v1916_v30  ;;  %v5407_v0 = vpop.f32.mrf.mxu0  ;;  %v5145_v33 = vpop.f32.mrf.mxu1  ;;  %v7178_v31 = vld [vmem:[%s8774_s3 + $0x188] sm:$0xff]  ;;  %v2295_v8 = vshll.u32 %v1991_v21, 16 }
 0x149   : > { %v6496_v39 = vor.u32 %v7081_v23, %v6495_v50  ;;  %v6517_v46 = vld [vmem:[#allocation3 + $0x33c] sm:$0xf0]  ;;  %1608 = vst [vmem:[#allocation3 + $0x364] sm:$0xf] %v1469_v36  ;;  %v8170_v57 = vadd.f32 %v5407_v0, %v8140_v34  ;;  %v5146_v30 = vadd.f32 %v5145_v33, %v5057_v15  ;;  %5362 = vmatmul.bf16.gmra.mxu3 %v6528_v41  ;;  %v2294_v52 = vrot.slane %v2292_v17, 4  ;;  %v7186_v34 = vld [vmem:[%s8774_s3 + $0x1c8] sm:$0xff] }
 0x14a   : > { %v6520_v12 = vor.u32 %v7084_v29, %v6517_v46  ;;  %v1990_v45 = vld [vmem:[#allocation2 + $0x98] sm:$0x1]  ;;  %5273 = vmatmul.bf16.gmra.mxu2 %v6524_v48  ;;  %603 = vst [vmem:[#allocation2 + $0xa4] sm:$0x1] %v602_v51  ;;  %v1992_v29 = vld [vmem:[#allocation2 + $0xa0] sm:$0xf]  ;;  %5661 = vmatpush.bf16.msra.mxu3 %v7186_v34 }
 0x14b   : > { %v1155_v25 = vld [vmem:[#allocation2 + $0x98] sm:$0x1]  ;;  %v2287_v50 = vshll.u32 %v1990_v45, 16  ;;  %5446 = vmatmul.bf16.gmra.mxu0 %v6496_v39  ;;  %v2301_v47 = vshll.u32 %v1992_v29, 16  ;;  %5572 = vmatpush.bf16.msra.mxu2 %v7178_v31  ;;  %v2297_v32 = vrot.slane %v2295_v8, 5  ;;  %v7170_v21 = vld [vmem:[%s8774_s3 + $0x148] sm:$0xff] }
 0x14c   : > { %v1476_v6 = vshll.u32 %v1155_v25, 16  ;;  %v1654_v55 = vld [vmem:[#allocation2 + $0x98] sm:$0x1]  ;;  %5184 = vmatmul.bf16.gmra.mxu1 %v6520_v12  ;;  %v5234_v48 = vpop.f32.mrf.mxu2  ;;  %v2305_v36 = vshrl.u32 %v1992_v29, 16  ;;  %v1156_v0 = vld [vmem:[#allocation2 + $0x9c] sm:$0xf] }
 0x14d   : > { %v1804_v9 = vrot.slane %v1654_v55, 5  ;;  %v2289_v53 = vrot.slane %v2287_v50, 5  ;;  %v5235_v4 = vadd.f32 %v5234_v48, %v5146_v30  ;;  %v5323_v39 = vpop.f32.mrf.mxu3  ;;  %v2298_v46 = vor.u32 %v2297_v32, %v2294_v52  ;;  %5483 = vmatpush.bf16.msra.mxu1 %v7170_v21  ;;  %v1157_v25 = vld [vmem:[#allocation2 + $0xa0] sm:$0xf]  ;;  %v8195_v55 = vld [vmem:[#allocation3 + $0x36c] sm:$0xf] }
 0x14e   : > { %v1478_v26 = vrot.slane %v1476_v6, 5  ;;  %v8188_v15 = vrot.slane %v2301_v47, 5  ;;  %v1481_v33 = vshrl.u32 %v1156_v0, 16  ;;  %v1484_v50 = vshll.u32 %v1156_v0, 16  ;;  %v1655_v29 = vld [vmem:[#allocation2 + $0x9c] sm:$0xe] }
 0x14f   : > { %v1805_v61 = vsel %vm7754_vm6, %v1803_v20, %v1804_v9  ;;  %v2290_v23 = vsel %vm7745_vm1, %v8151_v35, %v2289_v53  ;;  %v838_v20 = vrot.slane %v7514_v42, 4  ;;  %v8186_v51 = vadd.f32 %v5323_v39, %v5235_v4  ;;  %v7194_v42 = vld [vmem:[%s8774_s3 + $0x208] sm:$0xff]  ;;  %v6531_v8 = vld [vmem:[#allocation3 + $0x328] sm:$0xf] }
 0x150   : > { %v1479_v41 = vsel %vm7745_vm1, %v1474_v22, %v1478_v26  ;;  %1884 = vst [vmem:[#allocation3 + $0x38c] sm:$0xf] %v1805_v61  ;;  %v5059_v35 = vadd.f32 %v8013_v18, %v8064_v37  ;;  %v5409_v12 = vpop.f32.mrf.mxu0  ;;  %v6559_v22 = vld [vmem:[#allocation3 + $0x368] sm:$0xf]  ;;  %v2299_v45 = vrot.slane %v2298_v46, 4  ;;  %v5147_v6 = vpop.f32.mrf.mxu1  ;;  %v1490_v30 = vshll.u32 %v1157_v25, 16  ;;  %5750 = vmatpush.bf16.msra.mxu0 %v7194_v42 }
 0x151   : > { %2442 = vst [vmem:[#allocation3 + $0x34c] sm:$0xf] %v2290_v23  ;;  %v8197_v31 = vld [vmem:[#allocation3 + $0x38c] sm:$0xf0]  ;;  %v1029_v17 = vld [vmem:[#allocation2 + $0xa4] sm:$0x1]  ;;  %v8200_v37 = vadd.f32 %v5409_v12, %v8158_v60 }
 0x152   : > { %1609 = vst [vmem:[#allocation3 + $0x388] sm:$0xf] %v1479_v41  ;;  %v1494_v9 = vshrl.u32 %v1157_v25, 16  ;;  %v5148_v53 = vadd.f32 %v5147_v6, %v5059_v35  ;;  %v1030_v26 = vsel %vm7311_vm2, %v838_v20, %v1029_v17  ;;  %v2304_v52 = vsel %vm7745_vm1, %v2299_v45, %v8188_v15  ;;  %v1656_v48 = vld [vmem:[#allocation2 + $0xa0] sm:$0xf] }
 0x153   : > { %v2307_v47 = vrot.slane %v2305_v36, 4  ;;  %v1917_v61 = vld [vmem:[#allocation2 + $0xa8] sm:$0xf]  ;;  %v7093_v32 = vld [vmem:[#allocation3 + $0x364] sm:$0xf]  ;;  %v1483_v34 = vrot.slane %v1481_v33, 4  ;;  %v6564_v25 = vor.u32 %v8195_v55, %v8197_v31 }
 0x154   : > { %1031 = vst [vmem:[#allocation2 + $0xa4] sm:$0x1] %v1030_v26  ;;  %v1486_v21 = vrot.slane %v1484_v50, 5  ;;  %v1492_v23 = vrot.slane %v1490_v30, 5  ;;  %v1496_v60 = vrot.slane %v1494_v9, 4  ;;  %v5236_v4 = vpop.f32.mrf.mxu2  ;;  %v6082_v39 = vrot.slane %v1655_v29, 9 }
 0x155   : > { %2443 = vst [vmem:[#allocation3 + $0x370] sm:$0xf] %v2304_v52  ;;  %v1808_v46 = vrot.slane %v1656_v48, 5  ;;  %v5237_v0 = vadd.f32 %v5236_v4, %v5148_v53  ;;  %v1918_v45 = vld [vmem:[#allocation2 + $0xac] sm:$0xf]  ;;  %v5325_v36 = vpop.f32.mrf.mxu3  ;;  %v2308_v33 = vor.u32 %v2307_v47, %v8188_v15  ;;  %v5062_v29 = vadd.f32 %v8013_v18, %v7858_v62 }
 0x156   : > { %v1487_v12 = vor.u32 %v1486_v21, %v1483_v34  ;;  %1949 = vst [vmem:[#allocation3 + $0x3b4] sm:$0xf] %v1917_v61  ;;  %v1497_v9 = vor.u32 %v1496_v60, %v1492_v23  ;;  %v1994_v55 = vld [vmem:[#allocation2 + $0xa8] sm:$0xf]  ;;  %v1995_v31 = vld [vmem:[#allocation2 + $0xac] sm:$0xf] }
 0x157   : > { %v7098_v41 = vld [vmem:[#allocation3 + $0x388] sm:$0xf0]  ;;  %v1809_v50 = vsel %vm7754_vm6, %v6082_v39, %v1808_v46  ;;  %1950 = vst [vmem:[#allocation3 + $0x3d8] sm:$0xf] %v1918_v45  ;;  %v8212_v17 = vadd.f32 %v5325_v36, %v5237_v0  ;;  %v1810_v52 = vrot.slane %v1808_v46, 4  ;;  %v2316_v48 = vshrl.u32 %v1994_v55, 16 }
 0x158   : > { %v7090_v20 = vld [vmem:[#allocation3 + $0x348] sm:$0xf0]  ;;  %v6560_v35 = vor.u32 %v7098_v41, %v6559_v22  ;;  %v1488_v30 = vrot.slane %v1487_v12, 4  ;;  %1885 = vst [vmem:[#allocation3 + $0x3b0] sm:$0xf] %v1809_v50  ;;  %v5412_v53 = vpop.f32.mrf.mxu0  ;;  %v5150_v47 = vpop.f32.mrf.mxu1  ;;  %v2319_v61 = vshll.u32 %v1994_v55, 16 }
 0x159   : > { %v6553_v42 = vld [vmem:[#allocation3 + $0x384] sm:$0xf0]  ;;  %v6532_v6 = vor.u32 %v7090_v20, %v6531_v8  ;;  %v604_v22 = vld [vmem:[#allocation2 + $0xb0] sm:$0x1]  ;;  %v2325_v34 = vshll.u32 %v1995_v31, 16  ;;  %v5151_v21 = vadd.f32 %v5150_v47, %v5062_v29  ;;  %v8221_v18 = vadd.f32 %v5412_v53, %v8186_v51  ;;  %5367 = vmatmul.bf16.gmra.mxu3 %v6564_v25 }
 0x15a   : > { %v6556_v26 = vor.u32 %v7093_v32, %v6553_v42  ;;  %v605_v15 = vsel %vm7331_vm4, 0, %v604_v22  ;;  %5278 = vmatmul.bf16.gmra.mxu2 %v6560_v35  ;;  %v1493_v8 = vsel %vm7745_vm1, %v1488_v30, %v1492_v23  ;;  %v2309_v32 = vrot.slane %v2308_v33, 4  ;;  %v294_v55 = vld [vmem:[%s7320_s8 + $0xf0] sm:$0xff] }
 0x15b   : > { %606 = vst [vmem:[#allocation2 + $0xb0] sm:$0x1] %v605_v15  ;;  %v1993_v60 = vld [vmem:[#allocation2 + $0xa4] sm:$0x1]  ;;  %5451 = vmatmul.bf16.gmra.mxu0 %v6532_v6  ;;  %v1498_v41 = vrot.slane %v1497_v9, 4  ;;  %v855_v23 = vrot.slane %v7641_v28, 4 }
 0x15c   : > { %v1158_v62 = vld [vmem:[#allocation2 + $0xa4] sm:$0x1]  ;;  %1610 = vst [vmem:[#allocation3 + $0x3ac] sm:$0xf] %v1493_v8  ;;  %v2311_v4 = vshll.u32 %v1993_v60, 16  ;;  %5189 = vmatmul.bf16.gmra.mxu1 %v6556_v26  ;;  %v5239_v20 = vpop.f32.mrf.mxu2  ;;  %v2318_v35 = vrot.slane %v2316_v48, 4 }
 0x15d   : > { %v1500_v39 = vshll.u32 %v1158_v62, 16  ;;  %v1657_v46 = vld [vmem:[#allocation2 + $0xa4] sm:$0x1]  ;;  %v2321_v12 = vrot.slane %v2319_v61, 5  ;;  %v5240_v36 = vadd.f32 %v5239_v20, %v5151_v21  ;;  %v2329_v51 = vshrl.u32 %v1995_v31, 16  ;;  %v5328_v25 = vpop.f32.mrf.mxu3 }
 0x15e   : > { %v1811_v0 = vrot.slane %v1657_v46, 5  ;;  %v2313_v45 = vrot.slane %v2311_v4, 5  ;;  %v872_v50 = vrot.slane %v7704_v58, 4  ;;  %v2327_v30 = vrot.slane %v2325_v34, 5  ;;  %v1159_v9 = vld [vmem:[#allocation2 + $0xa8] sm:$0xf] }
 0x15f   : > { %v1502_v42 = vrot.slane %v1500_v39, 5  ;;  %v2322_v6 = vor.u32 %v2321_v12, %v2318_v35  ;;  %v1160_v28 = vld [vmem:[#allocation2 + $0xac] sm:$0xf]  ;;  %v8229_v29 = vadd.f32 %v5328_v25, %v5240_v36  ;;  %v2331_v26 = vrot.slane %v2329_v51, 4  ;;  %v1658_v15 = vld [vmem:[#allocation2 + $0xa8] sm:$0xe] }
 0x160   : > { %v1812_v33 = vsel %vm7754_vm6, %v1810_v52, %v1811_v0  ;;  %v2314_v22 = vsel %vm7745_vm1, %v2309_v32, %v2313_v45  ;;  %v5414_v31 = vpop.f32.mrf.mxu0  ;;  %v8234_v47 = vld [vmem:[#allocation3 + $0x3b4] sm:$0xf]  ;;  %v1505_v48 = vshrl.u32 %v1159_v9, 16  ;;  %v8239_v61 = vld [vmem:[%s8775_s4] ss:$0 sm:$0xff]  ;;  %v5152_v21 = vpop.f32.mrf.mxu1  ;;  %v1508_v32 = vshll.u32 %v1159_v9, 16 }
 0x161   : > { %v1503_v53 = vsel %vm7745_vm1, %v1498_v41, %v1502_v42  ;;  %1886 = vst [vmem:[#allocation3 + $0x3d4] sm:$0xf] %v1812_v33  ;;  %v2323_v8 = vrot.slane %v2322_v6, 4  ;;  %v5064_v34 = vadd.f32 %v8239_v61, %v7876_v2  ;;  %v8243_v60 = vld [vmem:[#allocation3 + $0x3d4] sm:$0xf0]  ;;  %v1514_v4 = vshll.u32 %v1160_v28, 16 }
 0x162   : > { %2444 = vst [vmem:[#allocation3 + $0x394] sm:$0xf] %v2314_v22  ;;  %v1036_v52 = vld [vmem:[#allocation2 + $0xb0] sm:$0x1]  ;;  %v6595_v41 = vld [vmem:[#allocation3 + $0x3b0] sm:$0xf]  ;;  %v2332_v46 = vor.u32 %v2331_v26, %v2327_v30 }
 0x163   : > { %1611 = vst [vmem:[#allocation3 + $0x3d0] sm:$0xf] %v1503_v53  ;;  %v1037_v62 = vsel %vm7311_vm2, %v855_v23, %v1036_v52  ;;  %v2328_v39 = vsel %vm7745_vm1, %v2323_v8, %v2327_v30  ;;  %v1507_v20 = vrot.slane %v1505_v48, 4  ;;  %v1518_v0 = vshrl.u32 %v1160_v28, 16  ;;  %v1659_v35 = vld [vmem:[#allocation2 + $0xac] sm:$0xf] }
 0x164   : > { %1038 = vst [vmem:[#allocation2 + $0xb0] sm:$0x1] %v1037_v62  ;;  %v6567_v2 = vld [vmem:[#allocation3 + $0x370] sm:$0xf]  ;;  %v5153_v12 = vadd.f32 %v5152_v21, %v5064_v34  ;;  %v1510_v45 = vrot.slane %v1508_v32, 5  ;;  %v1516_v36 = vrot.slane %v1514_v4, 5  ;;  %v5241_v51 = vpop.f32.mrf.mxu2  ;;  %v8254_v28 = vadd.f32 %v5414_v31, %v8212_v17 }
 0x165   : > { %2445 = vst [vmem:[#allocation3 + $0x3b8] sm:$0xf] %v2328_v39  ;;  %v6083_v42 = vrot.slane %v1658_v15, 9  ;;  %v7102_v23 = vld [vmem:[#allocation3 + $0x3ac] sm:$0xf]  ;;  %v1520_v25 = vrot.slane %v1518_v0, 4  ;;  %v6600_v52 = vor.u32 %v8234_v47, %v8243_v60  ;;  %v5330_v34 = vpop.f32.mrf.mxu3 }
 0x166   : > { %v1815_v33 = vrot.slane %v1659_v35, 5  ;;  %v1919_v6 = vld [vmem:[#allocation2 + $0xb4] sm:$0xf]  ;;  %v1920_v9 = vld [vmem:[#allocation2 + $0xb8] sm:$0xf]  ;;  %v5242_v26 = vadd.f32 %v5241_v51, %v5153_v12  ;;  %v1511_v15 = vor.u32 %v1510_v45, %v1507_v20  ;;  %v2333_v62 = vrot.slane %v2332_v46, 4 }
 0x167   : > { %v295_v22 = vld [vmem:[%s7320_s8 + $0xf8] sm:$0xff]  ;;  %v7240_v30 = vld [vmem:[%s8772_s1] ss:$0 sm:$0xff]  ;;  %1951 = vst [vmem:[#allocation3 + $0x3fc] sm:$0xf] %v1919_v6  ;;  %v1521_v32 = vor.u32 %v1520_v25, %v1516_v36  ;;  %v5067_v20 = vadd.f32 %v8239_v61, %v7893_v44 }
 0x168   : > { %v330_v53 = vmul.f32 %v7240_v30, %v294_v55  ;;  %v607_v8 = vld [vmem:[#allocation2 + $0xbc] sm:$0x1]  ;;  %v1997_v48 = vld [vmem:[#allocation2 + $0xb4] sm:$0xf]  ;;  %v7107_v21 = vld [vmem:[#allocation3 + $0x3d0] sm:$0xf0]  ;;  %v1816_v4 = vsel %vm7754_vm6, %v6083_v42, %v1815_v33  ;;  %v8262_v31 = vadd.f32 %v5330_v34, %v5242_v26  ;;  %v5417_v0 = vpop.f32.mrf.mxu0  ;;  %v5155_v51 = vpop.f32.mrf.mxu1 }
 0x169   : > { %1952 = vst [vmem:[#allocation3 + $0x420] sm:$0xf] %v1920_v9  ;;  %v608_v17 = vsel %vm7331_vm4, 0, %v607_v8  ;;  %v7099_v55 = vld [vmem:[#allocation3 + $0x390] sm:$0xf0]  ;;  %v6596_v39 = vor.u32 %v7107_v21, %v6595_v41  ;;  %v1512_v47 = vrot.slane %v1511_v15, 4  ;;  %v331_v9 = vmul.f32 %v7240_v30, %v295_v22  ;;  %5372 = vmatmul.bf16.gmra.mxu3 %v6600_v52 }
 0x16a   : > { %1887 = vst [vmem:[#allocation3 + $0x3f8] sm:$0xf] %v1816_v4  ;;  %v2340_v60 = vshrl.u32 %v1997_v48, 16  ;;  %v6568_v46 = vor.u32 %v7099_v55, %v6567_v2  ;;  %v6589_v35 = vld [vmem:[#allocation3 + $0x3cc] sm:$0xf0]  ;;  %v1817_v12 = vrot.slane %v1815_v33, 4  ;;  %v8277_v26 = vadd.f32 %v5417_v0, %v8229_v29 }
 0x16b   : > { %v7177_v45 = vld [vmem:[%s8774_s3 + $0x180] sm:$0xff]  ;;  %609 = vst [vmem:[#allocation2 + $0xbc] sm:$0x1] %v608_v17  ;;  %v6592_v25 = vor.u32 %v7102_v23, %v6589_v35  ;;  %5283 = vmatmul.bf16.gmra.mxu2 %v6596_v39  ;;  %v1996_v6 = vld [vmem:[#allocation2 + $0xb0] sm:$0x1]  ;;  %v1517_v2 = vsel %vm7745_vm1, %v1512_v47, %v1516_v36  ;;  %v5156_v15 = vadd.f32 %v5155_v51, %v5067_v20  ;;  %v1522_v34 = vrot.slane %v1521_v32, 4 }
 0x16c   : > { %v7241_v42 = vld [vmem:[%s8773_s2] ss:$0 sm:$0xff]  ;;  %v1161_v44 = vld [vmem:[#allocation2 + $0xb0] sm:$0x1]  ;;  %v2335_v8 = vshll.u32 %v1996_v6, 16  ;;  %5573 = vmatpush.bf16.msra.mxu2 %v7177_v45  ;;  %5456 = vmatmul.bf16.gmra.mxu0 %v6568_v46  ;;  %v2342_v4 = vrot.slane %v2340_v60, 4  ;;  %v5244_v29 = vpop.f32.mrf.mxu2 }
 0x16d   : > { %v8272_v41 = vadd.f32 %v7241_v42, %v330_v53  ;;  %v1660_v33 = vld [vmem:[#allocation2 + $0xb0] sm:$0x1]  ;;  %v1524_v21 = vshll.u32 %v1161_v44, 16  ;;  %1612 = vst [vmem:[#allocation3 + $0x3f4] sm:$0xf] %v1517_v2  ;;  %v2343_v17 = vshll.u32 %v1997_v48, 16  ;;  %5194 = vmatmul.bf16.gmra.mxu1 %v6592_v25  ;;  %v5245_v32 = vadd.f32 %v5244_v29, %v5156_v15  ;;  %v5333_v0 = vpop.f32.mrf.mxu3 }
 0x16e   : > { %v1818_v23 = vrot.slane %v1660_v33, 5  ;;  %v1998_v53 = vld [vmem:[#allocation2 + $0xb8] sm:$0xf]  ;;  %v7185_v36 = vld [vmem:[%s8774_s3 + $0x1c0] sm:$0xff]  ;;  %v2337_v22 = vrot.slane %v2335_v8, 5  ;;  %v8292_v45 = vadd.f32 %v7241_v42, %v331_v9  ;;  %v5069_v2 = vadd.f32 %v8239_v61, %v7913_v40 }
 0x16f   : > { %v1526_v30 = vrot.slane %v1524_v21, 5  ;;  %v2349_v55 = vshll.u32 %v1998_v53, 16  ;;  %v2353_v39 = vshrl.u32 %v1998_v53, 16  ;;  %v2345_v20 = vrot.slane %v2343_v17, 5  ;;  %5662 = vmatpush.bf16.msra.mxu3 %v7185_v36  ;;  %v7169_v52 = vld [vmem:[%s8774_s3 + $0x140] sm:$0xff] }
 0x170   : > { %v1819_v47 = vsel %vm7754_vm6, %v1817_v12, %v1818_v23  ;;  %v1162_v48 = vld [vmem:[#allocation2 + $0xb4] sm:$0xf]  ;;  %vm398_vm7 = vcmp.gt.f32.partialorder %v8272_v41, 0.0  ;;  %v2338_v60 = vsel %vm7745_vm1, %v2333_v62, %v2337_v22  ;;  %v8294_v12 = vadd.f32 %v5333_v0, %v5245_v32  ;;  %5484 = vmatpush.bf16.msra.mxu1 %v7169_v52  ;;  %v5419_v33 = vpop.f32.mrf.mxu0  ;;  %v8304_v42 = vld [vmem:[#allocation3 + $0x41c] sm:$0xf0]  ;;  %v7193_v8 = vld [vmem:[%s8774_s3 + $0x200] sm:$0xff]  ;;  %v5157_v21 = vpop.f32.mrf.mxu1 }
 0x171   : > { %v1527_v46 = vsel %vm7745_vm1, %v1522_v34, %v1526_v30  ;;  %1888 = vst [vmem:[#allocation3 + $0x41c] sm:$0xf] %v1819_v47  ;;  %v2351_v35 = vrot.slane %v2349_v55, 5  ;;  %v2346_v25 = vor.u32 %v2345_v20, %v2342_v4  ;;  %v2355_v6 = vrot.slane %v2353_v39, 4  ;;  %v8302_v15 = vld [vmem:[#allocation3 + $0x3fc] sm:$0xf]  ;;  %5751 = vmatpush.bf16.msra.mxu0 %v7193_v8 }
 0x172   : > { %2446 = vst [vmem:[#allocation3 + $0x3dc] sm:$0xf] %v2338_v60  ;;  %v1043_v51 = vld [vmem:[#allocation2 + $0xbc] sm:$0x1]  ;;  %v1529_v44 = vshrl.u32 %v1162_v48, 16  ;;  %v8300_v62 = vadd.f32 %v8239_v61, %v7931_v19  ;;  %v1532_v34 = vshll.u32 %v1162_v48, 16  ;;  %v8314_v17 = vadd.f32 %v5419_v33, %v8262_v31 }
 0x173   : > { %1613 = vst [vmem:[#allocation3 + $0x418] sm:$0xf] %v1527_v46  ;;  %v1044_v9 = vsel %vm7311_vm2, %v872_v50, %v1043_v51  ;;  %v1163_v40 = vld [vmem:[#allocation2 + $0xb8] sm:$0xf]  ;;  %v6631_v19 = vld [vmem:[#allocation3 + $0x3f8] sm:$0xf]  ;;  %v2356_v53 = vor.u32 %v2355_v6, %v2351_v35  ;;  %v5158_v58 = vadd.f32 %v5157_v21, %v5069_v2 }
 0x174   : > { %1045 = vst [vmem:[#allocation2 + $0xbc] sm:$0x1] %v1044_v9  ;;  %v2347_v23 = vrot.slane %v2346_v25, 4  ;;  %v1531_v4 = vrot.slane %v1529_v44, 4  ;;  %v6603_v36 = vld [vmem:[#allocation3 + $0x3b8] sm:$0xf]  ;;  %v5246_v52 = vpop.f32.mrf.mxu2  ;;  %v6636_v25 = vor.u32 %v8302_v15, %v8304_v42 }
 0x175   : > { %v1534_v22 = vrot.slane %v1532_v34, 5  ;;  %v1538_v50 = vshll.u32 %v1163_v40, 16  ;;  %v1542_v29 = vshrl.u32 %v1163_v40, 16  ;;  %v1661_v30 = vld [vmem:[#allocation2 + $0xb4] sm:$0xe]  ;;  %v8318_v32 = vrot.slane %v2356_v53, 4  ;;  %v5335_v2 = vpop.f32.mrf.mxu3 }
 0x176   : > { %v7111_v55 = vld [vmem:[#allocation3 + $0x3f4] sm:$0xf]  ;;  %v2352_v39 = vsel %vm7745_vm1, %v2347_v23, %v2351_v35  ;;  %v1662_v47 = vld [vmem:[#allocation2 + $0xb8] sm:$0xf]  ;;  %v6084_v20 = vrot.slane %v1661_v30, 9  ;;  %vm399_vm8 = vcmp.gt.f32.partialorder %v8292_v45, 0.0  ;;  %v5247_v46 = vadd.f32 %v5246_v52, %v5158_v58 }
 0x177   : > { %2447 = vst [vmem:[#allocation3 + $0x400] sm:$0xf] %v2352_v39  ;;  %v1535_v31 = vor.u32 %v1534_v22, %v1531_v4  ;;  %v1540_v48 = vrot.slane %v1538_v50, 5  ;;  %v1544_v60 = vrot.slane %v1542_v29, 4  ;;  %v1822_v0 = vrot.slane %v1662_v47, 5 }
 0x178   : > { %v7116_v51 = vld [vmem:[#allocation3 + $0x418] sm:$0xf0]  ;;  %v430_v6 = vmul.f32 0.1, %v8272_v41  ;;  %v431_v35 = vmul.f32 0.1, %v8292_v45  ;;  %v8327_v23 = vadd.f32 %v5335_v2, %v5247_v46  ;;  %v5422_v42 = vpop.f32.mrf.mxu0  ;;  %v5160_v30 = vpop.f32.mrf.mxu1 }
 0x179   : > { %v7108_v44 = vld [vmem:[#allocation3 + $0x3d8] sm:$0xf0]  ;;  %v6632_v33 = vor.u32 %v7116_v51, %v6631_v19  ;;  %v1536_v9 = vrot.slane %v1535_v31, 4  ;;  %v1545_v8 = vor.u32 %v1544_v60, %v1540_v48  ;;  %v1823_v40 = vsel %vm7754_vm6, %v6084_v20, %v1822_v0  ;;  %v554_v34 = vld [vmem:[#allocation2 + $0xc0] sm:$0x1]  ;;  %5377 = vmatmul.bf16.gmra.mxu3 %v6636_v25 }
 0x17a   : > { %v6604_v21 = vor.u32 %v7108_v44, %v6603_v36  ;;  %v6625_v53 = vld [vmem:[#allocation3 + $0x414] sm:$0xf0]  ;;  %v1824_v4 = vrot.slane %v1822_v0, 4  ;;  %1889 = vst [vmem:[#allocation3 + $0x440] sm:$0xf] %v1823_v40  ;;  %v462_v15 = vsel %vm398_vm7, %v8272_v41, %v430_v6  ;;  %v463_v36 = vsel %vm399_vm8, %v8292_v45, %v431_v35 }
 0x17b   : > { %v6628_v58 = vor.u32 %v7111_v55, %v6625_v53  ;;  %v1999_v22 = vld [vmem:[#allocation2 + $0xbc] sm:$0x1]  ;;  %v1541_v50 = vsel %vm7745_vm1, %v1536_v9, %v1540_v48  ;;  %v1546_v29 = vrot.slane %v1545_v8, 4  ;;  %5288 = vmatmul.bf16.gmra.mxu2 %v6632_v33  ;;  %v494_v52 = vpack.c.bf16 %v462_v15, %v462_v15  ;;  %v610_v46 = vld [vmem:[#allocation2 + $0xc8] sm:$0x1] }
 0x17c   : > { %v1164_v19 = vld [vmem:[#allocation2 + $0xbc] sm:$0x1]  ;;  %v2359_v39 = vshll.u32 %v1999_v22, 16  ;;  %1614 = vst [vmem:[#allocation3 + $0x43c] sm:$0xf] %v1541_v50  ;;  %v495_v41 = vpack.c.bf16 %v463_v36, %v463_v36  ;;  %v5161_v55 = vadd.f32 %v5160_v30, %v8300_v62  ;;  %v555_v60 = vsel %vm7311_vm2, 0, %v554_v34  ;;  %5461 = vmatmul.bf16.gmra.mxu0 %v6604_v21  ;;  %v5249_v51 = vpop.f32.mrf.mxu2 }
 0x17d   : > { %v1548_v47 = vshll.u32 %v1164_v19, 16  ;;  %v1663_v20 = vld [vmem:[#allocation2 + $0xbc] sm:$0x1]  ;;  %v8341_v48 = vadd.f32 %v5422_v42, %v8294_v12  ;;  %556 = vst [vmem:[#allocation2 + $0xc0] sm:$0x1] %v555_v60  ;;  %5199 = vmatmul.bf16.gmra.mxu1 %v6628_v58  ;;  %v874_v35 = vshrl.u32 %v494_v52, 16  ;;  %v5338_v8 = vpop.f32.mrf.mxu3 }
 0x17e   : > { %v1825_v31 = vrot.slane %v1663_v20, 5  ;;  %v2361_v45 = vrot.slane %v2359_v39, 5  ;;  %v877_v62 = vshll.u32 %v494_v52, 16  ;;  %v882_v44 = vshrl.u32 %v495_v41, 16  ;;  %v2788_v2 = vld [vmem:[#allocation2 + $0x18] sm:$0xf] }
 0x17f   : > { %v1550_v0 = vrot.slane %v1548_v47, 5  ;;  %v5250_v33 = vadd.f32 %v5249_v51, %v5161_v55  ;;  %v885_v9 = vshll.u32 %v495_v41, 16  ;;  %v876_v40 = vrot.slane %v874_v35, 7  ;;  %v2451_v30 = vld [vmem:[#allocation2 + $0xc] sm:$0xe] }
 0x180   : > { %v1826_v6 = vsel %vm7754_vm6, %v1824_v4, %v1825_v31  ;;  %v2362_v12 = vsel %vm7745_vm1, %v8318_v32, %v2361_v45  ;;  %v884_v34 = vrot.slane %v882_v44, 7  ;;  %v611_v53 = vsel %vm7331_vm4, 0, %v610_v46  ;;  %v2452_v4 = vld [vmem:[#allocation2 + $0x10] sm:$0xf]  ;;  %v5424_v42 = vpop.f32.mrf.mxu0  ;;  %v5162_v36 = vpop.f32.mrf.mxu1  ;;  %v2453_v39 = vld [vmem:[#allocation2 + $0x14] sm:$0x1] }
 0x181   : > { %v1551_v25 = vsel %vm7745_vm1, %v1546_v29, %v1550_v0  ;;  %1890 = vst [vmem:[#allocation3 + $0x464] sm:$0xf] %v1826_v6  ;;  %v8350_v21 = vadd.f32 %v5338_v8, %v5250_v33  ;;  %v2837_v15 = vshrl.u32 %v2788_v2, 16  ;;  %v6667_v32 = vld [vmem:[#allocation3 + $0x440] sm:$0xf]  ;;  %v879_v58 = vor.u32 %v877_v62, %v876_v40 }
 0x182   : > { %2448 = vst [vmem:[#allocation3 + $0x424] sm:$0xf] %v2362_v12  ;;  %v880_v22 = vrot.slane %v876_v40, 4  ;;  %v887_v19 = vor.u32 %v885_v9, %v884_v34  ;;  %v889_v50 = vrot.slane %v884_v34, 4  ;;  %v5074_v29 = vadd.f32 %v8239_v61, %v7961_v16  ;;  %v2789_v20 = vld [vmem:[#allocation2 + $0x1c] sm:$0xf] }
 0x183   : > { %1615 = vst [vmem:[#allocation3 + $0x460] sm:$0xf] %v1551_v25  ;;  %v2549_v47 = vrot.slane %v2452_v4, 5  ;;  %v2839_v52 = vrot.slane %v2837_v15, 4  ;;  %v8357_v41 = vadd.f32 %v5424_v42, %v8327_v23  ;;  %v6639_v55 = vld [vmem:[#allocation3 + $0x400] sm:$0xf]  ;;  %v5077_v34 = vadd.f32 %v8239_v61, %v7978_v27 }
 0x184   : > { %612 = vst [vmem:[#allocation2 + $0xc8] sm:$0x1] %v611_v53  ;;  %v888_v31 = vsel %vm7382_vm13, %v880_v22, %v887_v19  ;;  %v1046_v60 = vld [vmem:[#allocation2 + $0xc0] sm:$0xf]  ;;  %v6085_v45 = vrot.slane %v2451_v30, 9  ;;  %v2552_v0 = vrot.slane %v2453_v39, 5  ;;  %v5163_v51 = vadd.f32 %v5162_v36, %v5074_v29  ;;  %v5251_v12 = vpop.f32.mrf.mxu2 }
 0x185   : > { %v2790_v46 = vld [vmem:[#allocation2 + $0x20] sm:$0x1]  ;;  %v7120_v6 = vld [vmem:[#allocation3 + $0x43c] sm:$0xf]  ;;  %v1047_v16 = vsel %vm7392_vm14, %v879_v58, %v1046_v60  ;;  %1049 = vst [vmem:[#allocation2 + $0xc4] sm:$0xf] %v888_v31  ;;  %v5340_v53 = vpop.f32.mrf.mxu3 }
 0x186   : > { %v2551_v35 = vrot.slane %v2549_v47, 4  ;;  %v2724_v62 = vld [vmem:[#allocation2 + $0x18] sm:$0xf]  ;;  %v2840_v44 = vshll.u32 %v2788_v2, 16  ;;  %1048 = vst [vmem:[#allocation2 + $0xc0] sm:$0xf] %v1047_v16  ;;  %v2550_v59 = vsel %vm7754_vm6, %v6085_v45, %v2549_v47  ;;  %v5252_v9 = vadd.f32 %v5251_v12, %v5163_v51 }
 0x187   : > { %v2725_v33 = vld [vmem:[#allocation2 + $0x1c] sm:$0xf]  ;;  %2691 = vst [vmem:[#allocation3 + $0x14] sm:$0xf] %v2550_v59  ;;  %v2846_v4 = vshll.u32 %v2789_v20, 16  ;;  %v2850_v15 = vshrl.u32 %v2789_v20, 16 }
 0x188   : > { %v7125_v23 = vld [vmem:[#allocation3 + $0x460] sm:$0xf0]  ;;  %v2553_v40 = vsel %vm7754_vm6, %v2551_v35, %v2552_v0  ;;  %v2842_v1 = vrot.slane %v2840_v44, 5  ;;  %v8369_v58 = vadd.f32 %v5340_v53, %v5252_v9  ;;  %2756 = vst [vmem:[#allocation3 + $0x18] sm:$0xf] %v2724_v62  ;;  %v5427_v29 = vpop.f32.mrf.mxu0  ;;  %v5165_v47 = vpop.f32.mrf.mxu1 }
 0x189   : > { %v7117_v25 = vld [vmem:[#allocation3 + $0x420] sm:$0xf0]  ;;  %v6668_v8 = vor.u32 %v7125_v23, %v6667_v32  ;;  %2692 = vst [vmem:[#allocation3 + $0x38] sm:$0xf] %v2553_v40  ;;  %v2856_v32 = vshll.u32 %v2790_v46, 16  ;;  %v2848_v39 = vrot.slane %v2846_v4, 5  ;;  %v8374_v60 = vadd.f32 %v5427_v29, %v8350_v21 }
 0x18a   : > { %v6661_v2 = vld [vmem:[#allocation3 + $0x45c] sm:$0xf0]  ;;  %v6640_v42 = vor.u32 %v7117_v25, %v6639_v55  ;;  %v2843_v19 = vor.u32 %v2842_v1, %v2839_v52  ;;  %2757 = vst [vmem:[#allocation3 + $0x3c] sm:$0xf] %v2725_v33  ;;  %v2852_v27 = vrot.slane %v2850_v15, 4  ;;  %v5166_v45 = vadd.f32 %v5165_v47, %v5077_v34 }
 0x18b   : > { %v1050_v22 = vld [vmem:[#allocation2 + $0xc8] sm:$0x1]  ;;  %v6664_v36 = vor.u32 %v7120_v6, %v6661_v2  ;;  %5293 = vmatmul.bf16.gmra.mxu2 %v6668_v8  ;;  %v2858_v20 = vrot.slane %v2856_v32, 5  ;;  %v3284_v55 = vld [vmem:[#allocation2 + $0x18] sm:$0xe]  ;;  %v5079_v15 = vadd.f32 %v8239_v61, %v7996_v49 }
 0x18c   : > { %v1051_v30 = vsel %vm7311_vm2, %v889_v50, %v1050_v22  ;;  %v2844_v31 = vrot.slane %v2843_v19, 4  ;;  %v1922_v52 = vld [vmem:[#allocation2 + $0xc4] sm:$0xf]  ;;  %v2853_v46 = vor.u32 %v2852_v27, %v2848_v39  ;;  %v3285_v51 = vld [vmem:[#allocation2 + $0x1c] sm:$0xf]  ;;  %5466 = vmatmul.bf16.gmra.mxu0 %v6640_v42  ;;  %v5254_v21 = vpop.f32.mrf.mxu2  ;;  %v6101_v25 = vrot.slane %v3284_v55, 9 }
 0x18d   : > { %1052 = vst [vmem:[#allocation2 + $0xc8] sm:$0x1] %v1051_v30  ;;  %v2001_v0 = vld [vmem:[#allocation2 + $0xc4] sm:$0xf]  ;;  %v1921_v6 = vld [vmem:[#allocation2 + $0xc0] sm:$0xf]  ;;  %5204 = vmatmul.bf16.gmra.mxu1 %v6664_v36  ;;  %v5255_v23 = vadd.f32 %v5254_v21, %v5166_v45  ;;  %v5343_v34 = vpop.f32.mrf.mxu3 }
 0x18e   : > { %1954 = vst [vmem:[#allocation3 + $0x468] sm:$0xf] %v1922_v52  ;;  %v2000_v50 = vld [vmem:[#allocation2 + $0xc0] sm:$0xf]  ;;  %v2849_v16 = vsel %vm7745_vm1, %v2844_v31, %v2848_v39  ;;  %v2373_v44 = vshll.u32 %v2001_v0, 16  ;;  %v2377_v12 = vshrl.u32 %v2001_v0, 16 }
 0x18f   : > { %1953 = vst [vmem:[#allocation3 + $0x444] sm:$0xf] %v1921_v6  ;;  %v2364_v35 = vshrl.u32 %v2000_v50, 16  ;;  %v2367_v62 = vshll.u32 %v2000_v50, 16  ;;  %v2854_v59 = vrot.slane %v2853_v46, 4  ;;  %v8378_v53 = vadd.f32 %v5343_v34, %v5255_v23 }
 0x190   : > { %v3286_v33 = vld [vmem:[#allocation2 + $0x20] sm:$0x1]  ;;  %v2375_v40 = vrot.slane %v2373_v44, 5  ;;  %v2379_v1 = vrot.slane %v2377_v12, 4  ;;  %3252 = vst [vmem:[#allocation3 + $0x1c] sm:$0xf] %v2849_v16  ;;  %v5429_v42 = vpop.f32.mrf.mxu0  ;;  %v5167_v27 = vpop.f32.mrf.mxu1 }
 0x191   : > { %v2366_v9 = vrot.slane %v2364_v35, 4  ;;  %v2369_v8 = vrot.slane %v2367_v62, 5  ;;  %v2859_v2 = vsel %vm7745_vm1, %v2854_v59, %v2858_v20  ;;  %v3382_v4 = vrot.slane %v3285_v51, 5  ;;  %v6143_v29 = vld [vmem:[#allocation3 + $0x18] sm:$0xf] }
 0x192   : > { %v2380_v32 = vor.u32 %v2379_v1, %v2375_v40  ;;  %v6992_v36 = vld [vmem:[#allocation3 + $0x38] sm:$0xf0]  ;;  %3253 = vst [vmem:[#allocation3 + $0x40] sm:$0xf] %v2859_v2  ;;  %v3385_v30 = vrot.slane %v3286_v33, 5  ;;  %v8387_v45 = vadd.f32 %v5429_v42, %v8369_v58  ;;  %v5168_v6 = vadd.f32 %v5167_v27, %v5079_v15 }
 0x193   : > { %v2370_v19 = vor.u32 %v2369_v8, %v2366_v9  ;;  %v3383_v47 = vsel %vm7754_vm6, %v6101_v25, %v3382_v4  ;;  %v3384_v31 = vrot.slane %v3382_v4, 4  ;;  %v2454_v20 = vld [vmem:[#allocation2 + $0x18] sm:$0xe]  ;;  %v2455_v55 = vld [vmem:[#allocation2 + $0x1c] sm:$0xf]  ;;  %v6144_v9 = vor.u32 %v6992_v36, %v6143_v29 }
 0x194   : > { %v2002_v22 = vld [vmem:[#allocation2 + $0xc8] sm:$0x1]  ;;  %v2381_v0 = vrot.slane %v2380_v32, 4  ;;  %3524 = vst [vmem:[#allocation3 + $0x20] sm:$0xf] %v3383_v47  ;;  %v6086_v62 = vrot.slane %v2454_v20, 9  ;;  %v5256_v21 = vpop.f32.mrf.mxu2  ;;  %v5082_v15 = vadd.f32 %v8239_v61, %v7885_v5 }
 0x195   : > { %v2383_v39 = vshll.u32 %v2002_v22, 16  ;;  %v6669_v49 = vld [vmem:[#allocation3 + $0x464] sm:$0xf0]  ;;  %v2371_v52 = vrot.slane %v2370_v19, 4  ;;  %v6987_v50 = vld [vmem:[#allocation3 + $0x14] sm:$0xf]  ;;  %v3386_v16 = vsel %vm7754_vm6, %v3384_v31, %v3385_v30  ;;  %v5257_v25 = vadd.f32 %v5256_v21, %v5168_v6  ;;  %v5345_v34 = vpop.f32.mrf.mxu3 }
 0x196   : > { %v7121_v46 = vld [vmem:[#allocation3 + $0x444] sm:$0xf]  ;;  %v2456_v35 = vld [vmem:[#allocation2 + $0x20] sm:$0x1]  ;;  %v6137_v58 = vld [vmem:[#allocation3 + $0x34] sm:$0xf0] }
 0x197   : > { %v2385_v51 = vrot.slane %v2383_v39, 5  ;;  %v6672_v44 = vor.u32 %v7121_v46, %v6669_v49  ;;  %v2376_v12 = vsel %vm7745_vm1, %v2371_v52, %v2375_v40  ;;  %3525 = vst [vmem:[#allocation3 + $0x44] sm:$0xf] %v3386_v16  ;;  %v2556_v23 = vrot.slane %v2455_v55, 5  ;;  %v2726_v8 = vld [vmem:[#allocation2 + $0x24] sm:$0xf] }
 0x198   : > { %v2559_v59 = vrot.slane %v2456_v35, 5  ;;  %2449 = vst [vmem:[#allocation3 + $0x448] sm:$0xf] %v2376_v12  ;;  %v2791_v1 = vld [vmem:[#allocation2 + $0x24] sm:$0xf]  ;;  %v8399_v42 = vadd.f32 %v5345_v34, %v5257_v25  ;;  %v5432_v32 = vpop.f32.mrf.mxu0  ;;  %v6140_v29 = vor.u32 %v6987_v50, %v6137_v58  ;;  %v5170_v47 = vpop.f32.mrf.mxu1 }
 0x199   : > { %v2386_v33 = vsel %vm7745_vm1, %v2381_v0, %v2385_v51  ;;  %5382 = vmatmul.bf16.gmra.mxu3 %v6672_v44  ;;  %v2557_v2 = vsel %vm7754_vm6, %v6086_v62, %v2556_v23  ;;  %v2558_v40 = vrot.slane %v2556_v23, 4  ;;  %v2861_v4 = vshrl.u32 %v2791_v1, 16  ;;  %v2727_v22 = vld [vmem:[#allocation2 + $0x28] sm:$0xf]  ;;  %2758 = vst [vmem:[#allocation3 + $0x60] sm:$0xf] %v2726_v8 }
 0x19a   : > { %2450 = vst [vmem:[#allocation3 + $0x46c] sm:$0xf] %v2386_v33  ;;  %v2792_v19 = vld [vmem:[#allocation2 + $0x28] sm:$0xf]  ;;  %v2793_v30 = vld [vmem:[#allocation2 + $0x2c] sm:$0x1]  ;;  %v8404_v5 = vadd.f32 %v5432_v32, %v8378_v53  ;;  %v5171_v55 = vadd.f32 %v5170_v47, %v5082_v15 }
 0x19b   : > { %2693 = vst [vmem:[#allocation3 + $0x5c] sm:$0xf] %v2557_v2  ;;  %v2560_v36 = vsel %vm7754_vm6, %v2558_v40, %v2559_v59  ;;  %v2863_v39 = vrot.slane %v2861_v4, 4  ;;  %v2864_v27 = vshll.u32 %v2791_v1, 16  ;;  %5574 = vmatmul.bf16.vlgmr.msra.gmra.mxu2 %v6144_v9  ;;  %v2870_v31 = vshll.u32 %v2792_v19, 16 }
 0x19c   : > { %2694 = vst [vmem:[#allocation3 + $0x80] sm:$0xf] %v2560_v36  ;;  %v2874_v20 = vshrl.u32 %v2792_v19, 16  ;;  %v2880_v52 = vshll.u32 %v2793_v30, 16  ;;  %v3287_v0 = vld [vmem:[#allocation2 + $0x24] sm:$0xe]  ;;  %v5259_v16 = vpop.f32.mrf.mxu2 }
 0x19d   : > { %2759 = vst [vmem:[#allocation3 + $0x84] sm:$0xf] %v2727_v22  ;;  %v2866_v49 = vrot.slane %v2864_v27, 5  ;;  %v2872_v46 = vrot.slane %v2870_v31, 5  ;;  %v3288_v6 = vld [vmem:[#allocation2 + $0x28] sm:$0xf]  ;;  %5485 = vmatmul.bf16.vlgmr.msra.gmra.mxu1 %v6140_v29  ;;  %v5260_v58 = vadd.f32 %v5259_v16, %v5171_v55  ;;  %v5348_v1 = vpop.f32.mrf.mxu3  ;;  %v5084_v27 = vadd.f32 %v8239_v61, %v7897_v63 }
 0x19e   : > { %v2876_v51 = vrot.slane %v2874_v20, 4  ;;  %v2882_v62 = vrot.slane %v2880_v52, 5  ;;  %v3289_v44 = vld [vmem:[#allocation2 + $0x2c] sm:$0x1]  ;;  %v6102_v12 = vrot.slane %v3287_v0, 9  ;;  %v3389_v53 = vrot.slane %v3288_v6, 5 }
 0x19f   : > { %v6675_v50 = vld [vmem:[#allocation3 + $0x448] sm:$0xf]  ;;  %v2867_v35 = vor.u32 %v2866_v49, %v2863_v39  ;;  %v3392_v59 = vrot.slane %v3289_v44, 5  ;;  %v2794_v33 = vld [vmem:[#allocation2 + $0x30] sm:$0xf]  ;;  %v8406_v40 = vadd.f32 %v5348_v1, %v5260_v58 }
 0x1a0   : > { %v2877_v23 = vor.u32 %v2876_v51, %v2872_v46  ;;  %v6988_v9 = vld [vmem:[#allocation3 + $0x1c] sm:$0xf]  ;;  %v6145_v8 = vld [vmem:[#allocation3 + $0x3c] sm:$0xf0]  ;;  %v2885_v2 = vshrl.u32 %v2794_v33, 16  ;;  %v3390_v22 = vsel %vm7754_vm6, %v6102_v12, %v3389_v53  ;;  %v3391_v19 = vrot.slane %v3389_v53, 4  ;;  %v5434_v29 = vpop.f32.mrf.mxu0  ;;  %v5172_v47 = vpop.f32.mrf.mxu1 }
 0x1a1   : > { %v7126_v21 = vld [vmem:[#allocation3 + $0x468] sm:$0xf0]  ;;  %v2868_v34 = vrot.slane %v2867_v35, 4  ;;  %v6179_v4 = vld [vmem:[#allocation3 + $0x60] sm:$0xf]  ;;  %v8419_v52 = vadd.f32 %v5434_v29, %v8399_v42  ;;  %v6148_v0 = vor.u32 %v6988_v9, %v6145_v8  ;;  %v2888_v53 = vshll.u32 %v2794_v33, 16 }
 0x1a2   : > { %v6676_v25 = vor.u32 %v7126_v21, %v6675_v50  ;;  %v2878_v15 = vrot.slane %v2877_v23, 4  ;;  %v2458_v32 = vld [vmem:[#allocation2 + $0x28] sm:$0xf]  ;;  %3526 = vst [vmem:[#allocation3 + $0x68] sm:$0xf] %v3390_v22  ;;  %v3393_v55 = vsel %vm7754_vm6, %v3391_v19, %v3392_v59  ;;  %v5173_v50 = vadd.f32 %v5172_v47, %v5084_v27 }
 0x1a3   : > { %v2873_v36 = vsel %vm7745_vm1, %v2868_v34, %v2872_v46  ;;  %v2457_v30 = vld [vmem:[#allocation2 + $0x24] sm:$0xe]  ;;  %v2795_v39 = vld [vmem:[#allocation2 + $0x34] sm:$0xf]  ;;  %v2459_v49 = vld [vmem:[#allocation2 + $0x2c] sm:$0x1]  ;;  %v5087_v33 = vadd.f32 %v8239_v61, %v7919_v38 }
 0x1a4   : > { %5471 = vmatmul.bf16.gmra.mxu0 %v6676_v25  ;;  %v7001_v31 = vld [vmem:[#allocation3 + $0x80] sm:$0xf0]  ;;  %v2883_v20 = vsel %vm7745_vm1, %v2878_v15, %v2882_v62  ;;  %3254 = vst [vmem:[#allocation3 + $0x64] sm:$0xf] %v2873_v36  ;;  %v6087_v46 = vrot.slane %v2457_v30, 9  ;;  %v2563_v51 = vrot.slane %v2458_v32, 5  ;;  %v5261_v12 = vpop.f32.mrf.mxu2 }
 0x1a5   : > { %3255 = vst [vmem:[#allocation3 + $0x88] sm:$0xf] %v2883_v20  ;;  %v2796_v6 = vld [vmem:[#allocation2 + $0x38] sm:$0x1]  ;;  %v6996_v63 = vld [vmem:[#allocation3 + $0x5c] sm:$0xf]  ;;  %v6180_v21 = vor.u32 %v7001_v31, %v6179_v4  ;;  %v5262_v59 = vadd.f32 %v5261_v12, %v5173_v50  ;;  %v5350_v1 = vpop.f32.mrf.mxu3 }
 0x1a6   : > { %v6173_v16 = vld [vmem:[#allocation3 + $0x7c] sm:$0xf0]  ;;  %3527 = vst [vmem:[#allocation3 + $0x8c] sm:$0xf] %v3393_v55  ;;  %v2566_v35 = vrot.slane %v2459_v49, 5  ;;  %v2887_v62 = vrot.slane %v2885_v2, 4  ;;  %v2564_v58 = vsel %vm7754_vm6, %v6087_v46, %v2563_v51 }
 0x1a7   : > { %v2728_v44 = vld [vmem:[#allocation2 + $0x30] sm:$0xf]  ;;  %v2565_v23 = vrot.slane %v2563_v51, 4  ;;  %v2729_v42 = vld [vmem:[#allocation2 + $0x34] sm:$0xf]  ;;  %v2894_v25 = vshll.u32 %v2795_v39, 16  ;;  %v8425_v15 = vadd.f32 %v5350_v1, %v5262_v59  ;;  %v6176_v36 = vor.u32 %v6996_v63, %v6173_v16 }
 0x1a8   : > { %2760 = vst [vmem:[#allocation3 + $0xa8] sm:$0xf] %v2728_v44  ;;  %v2898_v9 = vshrl.u32 %v2795_v39, 16  ;;  %v2904_v8 = vshll.u32 %v2796_v6, 16  ;;  %v2890_v2 = vrot.slane %v2888_v53, 5  ;;  %v5437_v32 = vpop.f32.mrf.mxu0  ;;  %v5175_v31 = vpop.f32.mrf.mxu1 }
 0x1a9   : > { %2695 = vst [vmem:[#allocation3 + $0xa4] sm:$0xf] %v2564_v58  ;;  %5663 = vmatmul.bf16.vlgmr.msra.gmra.mxu3 %v6148_v0  ;;  %v2567_v34 = vsel %vm7754_vm6, %v2565_v23, %v2566_v35  ;;  %v3290_v4 = vld [vmem:[#allocation2 + $0x30] sm:$0xe]  ;;  %v2896_v22 = vrot.slane %v2894_v25, 5  ;;  %v8430_v46 = vadd.f32 %v5437_v32, %v8406_v40  ;;  %v5176_v51 = vadd.f32 %v5175_v31, %v5087_v33 }
 0x1aa   : > { %2761 = vst [vmem:[#allocation3 + $0xcc] sm:$0xf] %v2729_v42  ;;  %v2900_v19 = vrot.slane %v2898_v9, 4  ;;  %v6151_v29 = vld [vmem:[#allocation3 + $0x20] sm:$0xf]  ;;  %v2891_v30 = vor.u32 %v2890_v2, %v2887_v62  ;;  %v6103_v27 = vrot.slane %v3290_v4, 9 }
 0x1ab   : > { %2696 = vst [vmem:[#allocation3 + $0xc8] sm:$0xf] %v2567_v34  ;;  %v3291_v39 = vld [vmem:[#allocation2 + $0x34] sm:$0xf]  ;;  %v6993_v47 = vld [vmem:[#allocation3 + $0x40] sm:$0xf0]  ;;  %5579 = vmatmul.bf16.gmra.mxu2 %v6180_v21 }
 0x1ac   : > { %v2901_v20 = vor.u32 %v2900_v19, %v2896_v22  ;;  %v2906_v55 = vrot.slane %v2904_v8, 5  ;;  %v3292_v49 = vld [vmem:[#allocation2 + $0x38] sm:$0x1]  ;;  %v3396_v0 = vrot.slane %v3291_v39, 5  ;;  %v2892_v6 = vrot.slane %v2891_v30, 4  ;;  %v5264_v12 = vpop.f32.mrf.mxu2 }
 0x1ad   : > { %v3399_v50 = vrot.slane %v3292_v49, 5  ;;  %v2797_v38 = vld [vmem:[#allocation2 + $0x3c] sm:$0xf]  ;;  %v2798_v44 = vld [vmem:[#allocation2 + $0x40] sm:$0xf]  ;;  %v6152_v62 = vor.u32 %v6993_v47, %v6151_v29  ;;  %5490 = vmatmul.bf16.gmra.mxu1 %v6176_v36  ;;  %v5265_v53 = vadd.f32 %v5264_v12, %v5176_v51  ;;  %v5353_v9 = vpop.f32.mrf.mxu3  ;;  %v5089_v19 = vadd.f32 %v8239_v61, %v7937_v11 }
 0x1ae   : > { %v2902_v35 = vrot.slane %v2901_v20, 4  ;;  %v3397_v63 = vsel %vm7754_vm6, %v6103_v27, %v3396_v0  ;;  %v3398_v16 = vrot.slane %v3396_v0, 4  ;;  %v2897_v21 = vsel %vm7745_vm1, %v2892_v6, %v2896_v22  ;;  %v6997_v23 = vld [vmem:[#allocation3 + $0x64] sm:$0xf]  ;;  %v6181_v42 = vld [vmem:[#allocation3 + $0x84] sm:$0xf0] }
 0x1af   : > { %3528 = vst [vmem:[#allocation3 + $0xb0] sm:$0xf] %v3397_v63  ;;  %v2909_v58 = vshrl.u32 %v2797_v38, 16  ;;  %v2912_v40 = vshll.u32 %v2797_v38, 16  ;;  %v2461_v8 = vld [vmem:[#allocation2 + $0x34] sm:$0xf]  ;;  %v8440_v34 = vadd.f32 %v5353_v9, %v5265_v53  ;;  %v6184_v32 = vor.u32 %v6997_v23, %v6181_v42 }
 0x1b0   : > { %v2907_v59 = vsel %vm7745_vm1, %v2902_v35, %v2906_v55  ;;  %3256 = vst [vmem:[#allocation3 + $0xac] sm:$0xf] %v2897_v21  ;;  %v3400_v25 = vsel %vm7754_vm6, %v3398_v16, %v3399_v50  ;;  %v2918_v1 = vshll.u32 %v2798_v44, 16  ;;  %v2570_v2 = vrot.slane %v2461_v8, 5  ;;  %v2799_v4 = vld [vmem:[#allocation2 + $0x44] sm:$0x1]  ;;  %v5439_v33 = vpop.f32.mrf.mxu0  ;;  %v5177_v47 = vpop.f32.mrf.mxu1 }
 0x1b1   : > { %3257 = vst [vmem:[#allocation3 + $0xd0] sm:$0xf] %v2907_v59  ;;  %v2911_v22 = vrot.slane %v2909_v58, 4  ;;  %v6215_v29 = vld [vmem:[#allocation3 + $0xa8] sm:$0xf]  ;;  %v2914_v27 = vrot.slane %v2912_v40, 5  ;;  %v5178_v11 = vadd.f32 %v5177_v47, %v5089_v19  ;;  %v8449_v21 = vadd.f32 %v5439_v33, %v8425_v15 }
 0x1b2   : > { %3529 = vst [vmem:[#allocation3 + $0xd4] sm:$0xf] %v3400_v25  ;;  %v7010_v36 = vld [vmem:[#allocation3 + $0xc8] sm:$0xf0]  ;;  %v2460_v30 = vld [vmem:[#allocation2 + $0x30] sm:$0xe] }
 0x1b3   : > { %v2462_v39 = vld [vmem:[#allocation2 + $0x38] sm:$0x1]  ;;  %v6088_v31 = vrot.slane %v2460_v30, 9  ;;  %v2572_v20 = vrot.slane %v2570_v2, 4  ;;  %v2922_v49 = vshrl.u32 %v2798_v44, 16  ;;  %v2915_v51 = vor.u32 %v2914_v27, %v2911_v22 }
 0x1b4   : > { %5752 = vmatmul.bf16.vlgmr.msra.gmra.mxu0 %v6152_v62  ;;  %v2573_v55 = vrot.slane %v2462_v39, 5  ;;  %v3294_v0 = vld [vmem:[#allocation2 + $0x40] sm:$0xf]  ;;  %v2920_v6 = vrot.slane %v2918_v1, 5  ;;  %v2928_v50 = vshll.u32 %v2799_v4, 16  ;;  %v5266_v44 = vpop.f32.mrf.mxu2  ;;  %v6216_v59 = vor.u32 %v7010_v36, %v6215_v29 }
 0x1b5   : > { %v3293_v38 = vld [vmem:[#allocation2 + $0x3c] sm:$0xe]  ;;  %v3403_v35 = vrot.slane %v3294_v0, 5  ;;  %v2571_v63 = vsel %vm7754_vm6, %v6088_v31, %v2570_v2  ;;  %v3295_v12 = vld [vmem:[#allocation2 + $0x44] sm:$0x1]  ;;  %v2916_v40 = vrot.slane %v2915_v51, 4  ;;  %v5267_v42 = vadd.f32 %v5266_v44, %v5178_v11  ;;  %v5355_v9 = vpop.f32.mrf.mxu3 }
 0x1b6   : > { %v7005_v61 = vld [vmem:[#allocation3 + $0xa4] sm:$0xf]  ;;  %v2574_v16 = vsel %vm7754_vm6, %v2572_v20, %v2573_v55  ;;  %2697 = vst [vmem:[#allocation3 + $0xec] sm:$0xf] %v2571_v63  ;;  %v2731_v58 = vld [vmem:[#allocation2 + $0x40] sm:$0xf] }
 0x1b7   : > { %v2730_v62 = vld [vmem:[#allocation2 + $0x3c] sm:$0xf]  ;;  %v2924_v23 = vrot.slane %v2922_v49, 4  ;;  %v6209_v53 = vld [vmem:[#allocation3 + $0xc4] sm:$0xf0]  ;;  %v6104_v25 = vrot.slane %v3293_v38, 9  ;;  %v2921_v8 = vsel %vm7745_vm1, %v2916_v40, %v2920_v6  ;;  %v8453_v4 = vadd.f32 %v5355_v9, %v5267_v42 }
 0x1b8   : > { %2698 = vst [vmem:[#allocation3 + $0x110] sm:$0xf] %v2574_v16  ;;  %v2930_v2 = vrot.slane %v2928_v50, 5  ;;  %v3405_v15 = vrot.slane %v3403_v35, 4  ;;  %v3406_v19 = vrot.slane %v3295_v12, 5  ;;  %v5442_v29 = vpop.f32.mrf.mxu0  ;;  %v6212_v36 = vor.u32 %v7005_v61, %v6209_v53  ;;  %v8801_v53 = vld [vmem:[#allocation9_spill] sm:$0xff] }
 0x1b9   : > { %5668 = vmatmul.bf16.gmra.mxu3 %v6184_v32  ;;  %2762 = vst [vmem:[#allocation3 + $0xf0] sm:$0xf] %v2730_v62  ;;  %v2925_v1 = vor.u32 %v2924_v23, %v2920_v6  ;;  %v3404_v22 = vsel %vm7754_vm6, %v6104_v25, %v3403_v35  ;;  %v8460_v33 = vld [vmem:[%s8775_s4] ss:$0 sm:$0xff]  ;;  %v7002_v27 = vld [vmem:[#allocation3 + $0x88] sm:$0xf0]  ;;  %v5180_v47 = vpop.f32.mrf.mxu1  ;;  %v8467_v20 = vadd.f32 %v5442_v29, %v8440_v34 }
 0x1ba   : > { %2763 = vst [vmem:[#allocation3 + $0x114] sm:$0xf] %v2731_v58  ;;  %v5092_v32 = vadd.f32 %v8460_v33, %v7966_v24  ;;  %v6187_v39 = vld [vmem:[#allocation3 + $0x68] sm:$0xf]  ;;  %v3407_v31 = vsel %vm7754_vm6, %v3405_v15, %v3406_v19  ;;  %v2800_v24 = vld [vmem:[#allocation2 + $0x48] sm:$0xf] }
 0x1bb   : > { %v2926_v30 = vrot.slane %v2925_v1, 4  ;;  %3258 = vst [vmem:[#allocation3 + $0xf4] sm:$0xf] %v2921_v8  ;;  %5584 = vmatmul.bf16.gmra.mxu2 %v6216_v59  ;;  %v2801_v0 = vld [vmem:[#allocation2 + $0x4c] sm:$0xf]  ;;  %v2933_v51 = vshrl.u32 %v2800_v24, 16  ;;  %v6188_v50 = vor.u32 %v7002_v27, %v6187_v39  ;;  %v5094_v59 = vadd.f32 %v8460_v33, %v8801_v53 }
 0x1bc   : > { %3530 = vst [vmem:[#allocation3 + $0xf8] sm:$0xf] %v3404_v22  ;;  %v5181_v55 = vadd.f32 %v5180_v47, %v5092_v32  ;;  %v2936_v6 = vshll.u32 %v2800_v24, 16  ;;  %v7006_v63 = vld [vmem:[#allocation3 + $0xac] sm:$0xf]  ;;  %v2942_v62 = vshll.u32 %v2801_v0, 16 }
 0x1bd   : > { %v2931_v49 = vsel %vm7745_vm1, %v2926_v30, %v2930_v2  ;;  %3531 = vst [vmem:[#allocation3 + $0x11c] sm:$0xf] %v3407_v31  ;;  %5495 = vmatmul.bf16.gmra.mxu1 %v6212_v36  ;;  %v5269_v38 = vpop.f32.mrf.mxu2  ;;  %v2935_v11 = vrot.slane %v2933_v51, 4  ;;  %v5358_v16 = vpop.f32.mrf.mxu3  ;;  %v2464_v34 = vld [vmem:[#allocation2 + $0x40] sm:$0xf]  ;;  %v2946_v12 = vshrl.u32 %v2801_v0, 16 }
 0x1be   : > { %3259 = vst [vmem:[#allocation3 + $0x118] sm:$0xf] %v2931_v49  ;;  %v5270_v35 = vadd.f32 %v5269_v38, %v5181_v55  ;;  %v2938_v61 = vrot.slane %v2936_v6, 5  ;;  %v6217_v44 = vld [vmem:[#allocation3 + $0xcc] sm:$0xf0]  ;;  %v2577_v23 = vrot.slane %v2464_v34, 5 }
 0x1bf   : > { %v2463_v9 = vld [vmem:[#allocation2 + $0x3c] sm:$0xe]  ;;  %v2465_v8 = vld [vmem:[#allocation2 + $0x44] sm:$0x1]  ;;  %v2802_v1 = vld [vmem:[#allocation2 + $0x50] sm:$0x1]  ;;  %v6220_v36 = vor.u32 %v7006_v63, %v6217_v44 }
 0x1c0   : > { %v5359_v58 = vadd.f32 %v5358_v16, %v5270_v35  ;;  %v6251_v40 = vld [vmem:[#allocation3 + $0xf0] sm:$0xf]  ;;  %v2939_v42 = vor.u32 %v2938_v61, %v2935_v11  ;;  %v5444_v25 = vpop.f32.mrf.mxu0  ;;  %v6089_v22 = vrot.slane %v2463_v9, 9  ;;  %v2579_v19 = vrot.slane %v2577_v23, 4  ;;  %v7014_v31 = vld [vmem:[#allocation3 + $0xec] sm:$0xf] }
 0x1c1   : > { %v5182_v2 = vpop.f32.mrf.mxu1  ;;  %v7019_v15 = vld [vmem:[#allocation3 + $0x110] sm:$0xf0]  ;;  %v2580_v32 = vrot.slane %v2465_v8, 5  ;;  %v2944_v30 = vrot.slane %v2942_v62, 5  ;;  %v2948_v39 = vrot.slane %v2946_v12, 4  ;;  %v2952_v6 = vshll.u32 %v2802_v1, 16 }
 0x1c2   : > { %v2940_v29 = vrot.slane %v2939_v42, 4  ;;  %v3296_v27 = vld [vmem:[#allocation2 + $0x48] sm:$0xe]  ;;  %v5183_v47 = vadd.f32 %v5182_v2, %v5094_v59  ;;  %v2578_v49 = vsel %vm7754_vm6, %v6089_v22, %v2577_v23  ;;  %v2733_v51 = vld [vmem:[#allocation2 + $0x4c] sm:$0xf]  ;;  %v6252_v38 = vor.u32 %v7019_v15, %v6251_v40  ;;  %v8802_v8 = vld [vmem:[#allocation11_spill] sm:$0xff] }
 0x1c3   : > { %v6245_v55 = vld [vmem:[#allocation3 + $0x10c] sm:$0xf0]  ;;  %v2581_v24 = vsel %vm7754_vm6, %v2579_v19, %v2580_v32  ;;  %2699 = vst [vmem:[#allocation3 + $0x134] sm:$0xf] %v2578_v49  ;;  %v2949_v11 = vor.u32 %v2948_v39, %v2944_v30  ;;  %v3297_v61 = vld [vmem:[#allocation2 + $0x4c] sm:$0xf]  ;;  %v8480_v16 = vadd.f32 %v5444_v25, %v8453_v4  ;;  %v5097_v4 = vadd.f32 %v8460_v33, %v8802_v8 }
 0x1c4   : > { %5757 = vmatmul.bf16.gmra.mxu0 %v6188_v50  ;;  %v2732_v0 = vld [vmem:[#allocation2 + $0x48] sm:$0xf]  ;;  %v2945_v35 = vsel %vm7745_vm1, %v2940_v29, %v2944_v30  ;;  %v3298_v63 = vld [vmem:[#allocation2 + $0x50] sm:$0x1]  ;;  %2700 = vst [vmem:[#allocation3 + $0x158] sm:$0xf] %v2581_v24  ;;  %v6248_v1 = vor.u32 %v7014_v31, %v6245_v55 }
 0x1c5   : > { %v5271_v50 = vpop.f32.mrf.mxu2  ;;  %v2954_v62 = vrot.slane %v2952_v6, 5  ;;  %v6105_v12 = vrot.slane %v3296_v27, 9  ;;  %v3410_v44 = vrot.slane %v3297_v61, 5  ;;  %v5360_v23 = vpop.f32.mrf.mxu3  ;;  %2764 = vst [vmem:[#allocation3 + $0x138] sm:$0xf] %v2732_v0  ;;  %v2950_v42 = vrot.slane %v2949_v11, 4 }
 0x1c6   : > { %v5272_v34 = vadd.f32 %v5271_v50, %v5183_v47  ;;  %v3413_v40 = vrot.slane %v3298_v63, 5  ;;  %2765 = vst [vmem:[#allocation3 + $0x15c] sm:$0xf] %v2733_v51  ;;  %v6223_v15 = vld [vmem:[#allocation3 + $0xb0] sm:$0xf] }
 0x1c7   : > { %v3411_v59 = vsel %vm7754_vm6, %v6105_v12, %v3410_v44  ;;  %v3412_v9 = vrot.slane %v3410_v44, 4  ;;  %v2955_v2 = vsel %vm7745_vm1, %v2950_v42, %v2954_v62  ;;  %3260 = vst [vmem:[#allocation3 + $0x13c] sm:$0xf] %v2945_v35  ;;  %v7011_v22 = vld [vmem:[#allocation3 + $0xd0] sm:$0xf0]  ;;  %v8803_v62 = vld [vmem:[#allocation13_spill] sm:$0xff] }
 0x1c8   : > { %v8482_v53 = vadd.f32 %v5360_v23, %v5272_v34  ;;  %v5447_v25 = vpop.f32.mrf.mxu0  ;;  %3261 = vst [vmem:[#allocation3 + $0x160] sm:$0xf] %v2955_v2  ;;  %v2803_v30 = vld [vmem:[#allocation2 + $0x54] sm:$0xf]  ;;  %v2804_v39 = vld [vmem:[#allocation2 + $0x58] sm:$0xf]  ;;  %v6224_v31 = vor.u32 %v7011_v22, %v6223_v15  ;;  %v5099_v12 = vadd.f32 %v8460_v33, %v8803_v62 }
 0x1c9   : > { %5673 = vmatmul.bf16.gmra.mxu3 %v6220_v36  ;;  %v5185_v19 = vpop.f32.mrf.mxu1  ;;  %v3414_v32 = vsel %vm7754_vm6, %v3412_v9, %v3413_v40  ;;  %v8492_v29 = vadd.f32 %v5447_v25, %v5359_v58  ;;  %3532 = vst [vmem:[#allocation3 + $0x140] sm:$0xf] %v3411_v59  ;;  %v2957_v27 = vshrl.u32 %v2803_v30, 16  ;;  %v2960_v47 = vshll.u32 %v2803_v30, 16  ;;  %v7015_v49 = vld [vmem:[#allocation3 + $0xf4] sm:$0xf] }
 0x1ca   : > { %v5186_v36 = vadd.f32 %v5185_v19, %v5097_v4  ;;  %3533 = vst [vmem:[#allocation3 + $0x164] sm:$0xf] %v3414_v32  ;;  %v6253_v6 = vld [vmem:[#allocation3 + $0x114] sm:$0xf0]  ;;  %v2966_v35 = vshll.u32 %v2804_v39, 16  ;;  %v2970_v58 = vshrl.u32 %v2804_v39, 16 }
 0x1cb   : > { %5589 = vmatmul.bf16.gmra.mxu2 %v6252_v38  ;;  %v2959_v0 = vrot.slane %v2957_v27, 4  ;;  %v2962_v51 = vrot.slane %v2960_v47, 5  ;;  %v2467_v38 = vld [vmem:[#allocation2 + $0x4c] sm:$0xf]  ;;  %v2466_v23 = vld [vmem:[#allocation2 + $0x48] sm:$0xe]  ;;  %v6256_v59 = vor.u32 %v7015_v49, %v6253_v6 }
 0x1cc   : > { %v6287_v61 = vld [vmem:[#allocation3 + $0x138] sm:$0xf]  ;;  %v2584_v63 = vrot.slane %v2467_v38, 5  ;;  %v2805_v40 = vld [vmem:[#allocation2 + $0x5c] sm:$0x1]  ;;  %v6090_v4 = vrot.slane %v2466_v23, 9 }
 0x1cd   : > { %5500 = vmatmul.bf16.gmra.mxu1 %v6248_v1  ;;  %v5274_v55 = vpop.f32.mrf.mxu2  ;;  %v5363_v50 = vpop.f32.mrf.mxu3  ;;  %v2963_v34 = vor.u32 %v2962_v51, %v2959_v0  ;;  %v2468_v42 = vld [vmem:[#allocation2 + $0x50] sm:$0x1]  ;;  %v7028_v8 = vld [vmem:[#allocation3 + $0x158] sm:$0xf0]  ;;  %v2968_v22 = vrot.slane %v2966_v35, 5  ;;  %v2972_v19 = vrot.slane %v2970_v58, 4 }
 0x1ce   : > { %v5275_v24 = vadd.f32 %v5274_v55, %v5186_v36  ;;  %v2586_v25 = vrot.slane %v2584_v63, 4  ;;  %v2587_v1 = vrot.slane %v2468_v42, 5  ;;  %v7023_v32 = vld [vmem:[#allocation3 + $0x134] sm:$0xf]  ;;  %v6281_v36 = vld [vmem:[#allocation3 + $0x154] sm:$0xf0]  ;;  %v2585_v30 = vsel %vm7754_vm6, %v6090_v4, %v2584_v63 }
 0x1cf   : > { %v2964_v15 = vrot.slane %v2963_v34, 4  ;;  %v2734_v27 = vld [vmem:[#allocation2 + $0x54] sm:$0xf]  ;;  %v2735_v47 = vld [vmem:[#allocation2 + $0x58] sm:$0xf]  ;;  %v6288_v49 = vor.u32 %v7028_v8, %v6287_v61 }
 0x1d0   : > { %v5364_v11 = vadd.f32 %v5363_v50, %v5275_v24  ;;  %v5449_v44 = vpop.f32.mrf.mxu0  ;;  %v2588_v39 = vsel %vm7754_vm6, %v2586_v25, %v2587_v1  ;;  %2701 = vst [vmem:[#allocation3 + $0x17c] sm:$0xf] %v2585_v30  ;;  %v2973_v24 = vor.u32 %v2972_v19, %v2968_v22  ;;  %v3299_v0 = vld [vmem:[#allocation2 + $0x54] sm:$0xe]  ;;  %v3300_v51 = vld [vmem:[#allocation2 + $0x58] sm:$0xf] }
 0x1d1   : > { %v5187_v9 = vpop.f32.mrf.mxu1  ;;  %v8501_v6 = vadd.f32 %v5449_v44, %v8482_v53  ;;  %2702 = vst [vmem:[#allocation3 + $0x1a0] sm:$0xf] %v2588_v39  ;;  %v2969_v38 = vsel %vm7745_vm1, %v2964_v15, %v2968_v22  ;;  %v3301_v58 = vld [vmem:[#allocation2 + $0x5c] sm:$0x1]  ;;  %v6106_v63 = vrot.slane %v3299_v0, 9  ;;  %v3417_v61 = vrot.slane %v3300_v51, 5 }
 0x1d2   : > { %v5188_v2 = vadd.f32 %v5187_v9, %v5099_v12  ;;  %2766 = vst [vmem:[#allocation3 + $0x180] sm:$0xf] %v2734_v27  ;;  %v2974_v62 = vrot.slane %v2973_v24, 4  ;;  %v3420_v12 = vrot.slane %v3301_v58, 5  ;;  %v8804_v23 = vld [vmem:[#allocation4_spill] sm:$0xff]  ;;  %v6284_v44 = vor.u32 %v7023_v32, %v6281_v36 }
 0x1d3   : > { %v5102_v42 = vadd.f32 %v8460_v33, %v8804_v23  ;;  %2767 = vst [vmem:[#allocation3 + $0x1a4] sm:$0xf] %v2735_v47  ;;  %v3419_v8 = vrot.slane %v3417_v61, 4  ;;  %v6259_v4 = vld [vmem:[#allocation3 + $0xf8] sm:$0xf]  ;;  %v8805_v23 = vld [vmem:[#allocation5_spill] sm:$0xff] }
 0x1d4   : > { %5762 = vmatmul.bf16.gmra.mxu0 %v6224_v31  ;;  %v2976_v31 = vshll.u32 %v2805_v40, 16  ;;  %3262 = vst [vmem:[#allocation3 + $0x184] sm:$0xf] %v2969_v38  ;;  %v7020_v25 = vld [vmem:[#allocation3 + $0x118] sm:$0xf0] }
 0x1d5   : > { %v5276_v55 = vpop.f32.mrf.mxu2  ;;  %v5365_v34 = vpop.f32.mrf.mxu3  ;;  %v3421_v22 = vsel %vm7754_vm6, %v3419_v8, %v3420_v12  ;;  %v2806_v19 = vld [vmem:[#allocation2 + $0x60] sm:$0xf]  ;;  %v2807_v32 = vld [vmem:[#allocation2 + $0x64] sm:$0xf]  ;;  %v6260_v39 = vor.u32 %v7020_v25, %v6259_v4  ;;  %v2808_v12 = vld [vmem:[#allocation2 + $0x68] sm:$0x1] }
 0x1d6   : > { %v5277_v50 = vadd.f32 %v5276_v55, %v5188_v2  ;;  %v2978_v35 = vrot.slane %v2976_v31, 5  ;;  %3535 = vst [vmem:[#allocation3 + $0x1ac] sm:$0xf] %v3421_v22  ;;  %v2981_v36 = vshrl.u32 %v2806_v19, 16  ;;  %v2984_v30 = vshll.u32 %v2806_v19, 16 }
 0x1d7   : > { %v2990_v0 = vshll.u32 %v2807_v32, 16  ;;  %v2994_v51 = vshrl.u32 %v2807_v32, 16  ;;  %v7032_v19 = vld [vmem:[#allocation3 + $0x17c] sm:$0xf] }
 0x1d8   : > { %v8507_v40 = vadd.f32 %v5365_v34, %v5277_v50  ;;  %v5452_v53 = vpop.f32.mrf.mxu0  ;;  %v2979_v9 = vsel %vm7745_vm1, %v2974_v62, %v2978_v35  ;;  %v2983_v31 = vrot.slane %v2981_v36, 4  ;;  %v2986_v55 = vrot.slane %v2984_v30, 5  ;;  %v6289_v50 = vld [vmem:[#allocation3 + $0x15c] sm:$0xf0]  ;;  %v2469_v62 = vld [vmem:[#allocation2 + $0x54] sm:$0xe] }
 0x1d9   : > { %5678 = vmatmul.bf16.gmra.mxu3 %v6256_v59  ;;  %v3418_v59 = vsel %vm7754_vm6, %v6106_v63, %v3417_v61  ;;  %v5190_v1 = vpop.f32.mrf.mxu1  ;;  %3263 = vst [vmem:[#allocation3 + $0x1a8] sm:$0xf] %v2979_v9  ;;  %v8513_v2 = vadd.f32 %v5452_v53, %v5364_v11  ;;  %v2470_v11 = vld [vmem:[#allocation2 + $0x58] sm:$0xf]  ;;  %v2471_v61 = vld [vmem:[#allocation2 + $0x5c] sm:$0x1] }
 0x1da   : > { %v5191_v15 = vadd.f32 %v5190_v1, %v5102_v42  ;;  %3534 = vst [vmem:[#allocation3 + $0x188] sm:$0xf] %v3418_v59  ;;  %v6323_v35 = vld [vmem:[#allocation3 + $0x180] sm:$0xf]  ;;  %v2591_v58 = vrot.slane %v2470_v11, 5  ;;  %v2987_v63 = vor.u32 %v2986_v55, %v2983_v31  ;;  %v5104_v42 = vadd.f32 %v8460_v33, %v8805_v23 }
 0x1db   : > { %5594 = vmatmul.bf16.gmra.mxu2 %v6288_v49  ;;  %v7024_v49 = vld [vmem:[#allocation3 + $0x13c] sm:$0xf]  ;;  %v6091_v9 = vrot.slane %v2469_v62, 9  ;;  %v2594_v8 = vrot.slane %v2471_v61, 5  ;;  %v2992_v1 = vrot.slane %v2990_v0, 5 }
 0x1dc   : > { %v2593_v59 = vrot.slane %v2591_v58, 4  ;;  %v6292_v4 = vor.u32 %v7024_v49, %v6289_v50  ;;  %v2988_v25 = vrot.slane %v2987_v63, 4  ;;  %v6317_v32 = vld [vmem:[#allocation3 + $0x19c] sm:$0xf0]  ;;  %v3302_v49 = vld [vmem:[#allocation2 + $0x60] sm:$0xe] }
 0x1dd   : > { %5505 = vmatmul.bf16.gmra.mxu1 %v6284_v44  ;;  %v5279_v27 = vpop.f32.mrf.mxu2  ;;  %v5368_v24 = vpop.f32.mrf.mxu3  ;;  %v7037_v44 = vld [vmem:[#allocation3 + $0x1a0] sm:$0xf0]  ;;  %v2592_v36 = vsel %vm7754_vm6, %v6091_v9, %v2591_v58  ;;  %v3303_v11 = vld [vmem:[#allocation2 + $0x64] sm:$0xf]  ;;  %v3304_v63 = vld [vmem:[#allocation2 + $0x68] sm:$0x1] }
 0x1de   : > { %v5280_v47 = vadd.f32 %v5279_v27, %v5191_v15  ;;  %v2996_v15 = vrot.slane %v2994_v51, 4  ;;  %v2595_v30 = vsel %vm7754_vm6, %v2593_v59, %v2594_v8  ;;  %v2737_v27 = vld [vmem:[#allocation2 + $0x64] sm:$0xf]  ;;  %v6324_v55 = vor.u32 %v7037_v44, %v6323_v35  ;;  %2703 = vst [vmem:[#allocation3 + $0x1c4] sm:$0xf] %v2592_v36 }
 0x1df   : > { %2704 = vst [vmem:[#allocation3 + $0x1e8] sm:$0xf] %v2595_v30  ;;  %v2993_v50 = vsel %vm7745_vm1, %v2988_v25, %v2992_v1  ;;  %v6107_v62 = vrot.slane %v3302_v49, 9  ;;  %v3424_v35 = vrot.slane %v3303_v11, 5  ;;  %v3427_v23 = vrot.slane %v3304_v63, 5 }
 0x1e0   : > { %v5369_v38 = vadd.f32 %v5368_v24, %v5280_v47  ;;  %v5454_v34 = vpop.f32.mrf.mxu0  ;;  %v3000_v47 = vshll.u32 %v2808_v12, 16  ;;  %v2997_v24 = vor.u32 %v2996_v15, %v2992_v1  ;;  %2769 = vst [vmem:[#allocation3 + $0x1ec] sm:$0xf] %v2737_v27  ;;  %v7029_v25 = vld [vmem:[#allocation3 + $0x160] sm:$0xf0] }
 0x1e1   : > { %v5192_v53 = vpop.f32.mrf.mxu1  ;;  %v8524_v0 = vadd.f32 %v5454_v34, %v8507_v40  ;;  %v6320_v34 = vor.u32 %v7032_v19, %v6317_v32  ;;  %3264 = vst [vmem:[#allocation3 + $0x1cc] sm:$0xf] %v2993_v50  ;;  %v3425_v59 = vsel %vm7754_vm6, %v6107_v62, %v3424_v35  ;;  %v3426_v8 = vrot.slane %v3424_v35, 4  ;;  %v2809_v19 = vld [vmem:[#allocation2 + $0x6c] sm:$0xf] }
 0x1e2   : > { %v5193_v22 = vadd.f32 %v5192_v53, %v5104_v42  ;;  %v3002_v58 = vrot.slane %v3000_v47, 5  ;;  %v2998_v12 = vrot.slane %v2997_v24, 4  ;;  %v8806_v42 = vld [vmem:[#allocation6_spill] sm:$0xff]  ;;  %3536 = vst [vmem:[#allocation3 + $0x1d0] sm:$0xf] %v3425_v59  ;;  %v3005_v30 = vshrl.u32 %v2809_v19, 16 }
 0x1e3   : > { %v5107_v53 = vadd.f32 %v8460_v33, %v8806_v42  ;;  %v3428_v36 = vsel %vm7754_vm6, %v3426_v8, %v3427_v23  ;;  %v2810_v32 = vld [vmem:[#allocation2 + $0x70] sm:$0xf]  ;;  %v2472_v23 = vld [vmem:[#allocation2 + $0x60] sm:$0xe]  ;;  %v2474_v42 = vld [vmem:[#allocation2 + $0x68] sm:$0x1] }
 0x1e4   : > { %5767 = vmatmul.bf16.gmra.mxu0 %v6260_v39  ;;  %v2736_v39 = vld [vmem:[#allocation2 + $0x60] sm:$0xf]  ;;  %v3003_v9 = vsel %vm7745_vm1, %v2998_v12, %v3002_v58  ;;  %3537 = vst [vmem:[#allocation3 + $0x1f4] sm:$0xf] %v3428_v36  ;;  %v3007_v24 = vrot.slane %v3005_v30, 4  ;;  %v3018_v50 = vshrl.u32 %v2810_v32, 16 }
 0x1e5   : > { %v5281_v31 = vpop.f32.mrf.mxu2  ;;  %v5370_v61 = vpop.f32.mrf.mxu3  ;;  %2768 = vst [vmem:[#allocation3 + $0x1c8] sm:$0xf] %v2736_v39  ;;  %v3008_v39 = vshll.u32 %v2809_v19, 16  ;;  %v6325_v58 = vld [vmem:[#allocation3 + $0x1a4] sm:$0xf0]  ;;  %v6092_v8 = vrot.slane %v2472_v23, 9 }
 0x1e6   : > { %v5282_v51 = vadd.f32 %v5281_v31, %v5193_v22  ;;  %3265 = vst [vmem:[#allocation3 + $0x1f0] sm:$0xf] %v3003_v9  ;;  %v3020_v19 = vrot.slane %v3018_v50, 4  ;;  %v7041_v30 = vld [vmem:[#allocation3 + $0x1c4] sm:$0xf] }
 0x1e7   : > { %v3010_v49 = vrot.slane %v3008_v39, 5  ;;  %v7046_v59 = vld [vmem:[#allocation3 + $0x1e8] sm:$0xf0]  ;;  %v6353_v39 = vld [vmem:[#allocation3 + $0x1e4] sm:$0xf0] }
 0x1e8   : > { %v8530_v44 = vadd.f32 %v5370_v61, %v5282_v51  ;;  %v3014_v51 = vshll.u32 %v2810_v32, 16 }
 0x1e9   : > { %5683 = vmatmul.bf16.gmra.mxu3 %v6292_v4  ;;  %v5457_v40 = vpop.f32.mrf.mxu0  ;;  %v6295_v4 = vld [vmem:[#allocation3 + $0x140] sm:$0xf]  ;;  %v3011_v12 = vor.u32 %v3010_v49, %v3007_v24  ;;  %v2739_v24 = vld [vmem:[#allocation2 + $0x70] sm:$0xf] }
 0x1ea   : > { %v5195_v1 = vpop.f32.mrf.mxu1  ;;  %v8536_v15 = vadd.f32 %v5457_v40, %v5369_v38  ;;  %v6296_v27 = vor.u32 %v7029_v25, %v6295_v4  ;;  %v2473_v38 = vld [vmem:[#allocation2 + $0x64] sm:$0xf]  ;;  %v8807_v40 = vld [vmem:[#allocation7_spill] sm:$0xff]  ;;  %v2601_v25 = vrot.slane %v2474_v42, 5  ;;  %v3016_v36 = vrot.slane %v3014_v51, 5 }
 0x1eb   : > { %5599 = vmatmul.bf16.gmra.mxu2 %v6324_v55  ;;  %v5196_v22 = vadd.f32 %v5195_v1, %v5107_v53  ;;  %v7033_v55 = vld [vmem:[#allocation3 + $0x184] sm:$0xf]  ;;  %v2598_v61 = vrot.slane %v2473_v38, 5  ;;  %v2811_v53 = vld [vmem:[#allocation2 + $0x74] sm:$0x1] }
 0x1ec   : > { %v6359_v62 = vld [vmem:[#allocation3 + $0x1c8] sm:$0xf]  ;;  %v6328_v1 = vor.u32 %v7033_v55, %v6325_v58  ;;  %v3024_v49 = vshll.u32 %v2811_v53, 16  ;;  %v3021_v23 = vor.u32 %v3020_v19, %v3016_v36  ;;  %v3305_v55 = vld [vmem:[#allocation2 + $0x6c] sm:$0xe] }
 0x1ed   : > { %5510 = vmatmul.bf16.gmra.mxu1 %v6320_v34  ;;  %v5373_v11 = vpop.f32.mrf.mxu3  ;;  %v5109_v34 = vadd.f32 %v8460_v33, %v8807_v40  ;;  %v2600_v4 = vrot.slane %v2598_v61, 4  ;;  %v6360_v38 = vor.u32 %v7046_v59, %v6359_v62  ;;  %v3306_v58 = vld [vmem:[#allocation2 + $0x70] sm:$0xf]  ;;  %v3307_v42 = vld [vmem:[#allocation2 + $0x74] sm:$0x1]  ;;  %v6108_v40 = vrot.slane %v3305_v55, 9 }
 0x1ee   : > { %v5284_v47 = vpop.f32.mrf.mxu2  ;;  %v3022_v53 = vrot.slane %v3021_v23, 4  ;;  %v3431_v62 = vrot.slane %v3306_v58, 5  ;;  %v8808_v59 = vld [vmem:[#allocation8_spill] sm:$0xff]  ;;  %2771 = vst [vmem:[#allocation3 + $0x234] sm:$0xf] %v2739_v24 }
 0x1ef   : > { %v5285_v31 = vadd.f32 %v5284_v47, %v5196_v22  ;;  %v3012_v22 = vrot.slane %v3011_v12, 4  ;;  %v2602_v47 = vsel %vm7754_vm6, %v2600_v4, %v2601_v25  ;;  %v3026_v12 = vrot.slane %v3024_v49, 5  ;;  %v7038_v19 = vld [vmem:[#allocation3 + $0x1a8] sm:$0xf0] }
 0x1f0   : > { %2706 = vst [vmem:[#allocation3 + $0x230] sm:$0xf] %v2602_v47  ;;  %v7042_v55 = vld [vmem:[#allocation3 + $0x1cc] sm:$0xf] }
 0x1f1   : > { %v5374_v63 = vadd.f32 %v5373_v11, %v5285_v31  ;;  %v5459_v35 = vpop.f32.mrf.mxu0  ;;  %v2738_v31 = vld [vmem:[#allocation2 + $0x6c] sm:$0xf]  ;;  %v3027_v25 = vsel %vm7745_vm1, %v3022_v53, %v3026_v12  ;;  %v2476_v12 = vld [vmem:[#allocation2 + $0x70] sm:$0xf] }
 0x1f2   : > { %v5197_v9 = vpop.f32.mrf.mxu1  ;;  %v8547_v51 = vadd.f32 %v5459_v35, %v8530_v44  ;;  %2770 = vst [vmem:[#allocation3 + $0x210] sm:$0xf] %v2738_v31  ;;  %v6356_v35 = vor.u32 %v7041_v30, %v6353_v39  ;;  %v2812_v30 = vld [vmem:[#allocation2 + $0x78] sm:$0xf]  ;;  %v2813_v39 = vld [vmem:[#allocation2 + $0x7c] sm:$0xf] }
 0x1f3   : > { %v5198_v32 = vadd.f32 %v5197_v9, %v5109_v34  ;;  %v3434_v9 = vrot.slane %v3307_v42, 5  ;;  %3267 = vst [vmem:[#allocation3 + $0x238] sm:$0xf] %v3027_v25  ;;  %v3029_v24 = vshrl.u32 %v2812_v30, 16  ;;  %v3032_v49 = vshll.u32 %v2812_v30, 16 }
 0x1f4   : > { %5772 = vmatmul.bf16.gmra.mxu0 %v6296_v27  ;;  %v2599_v27 = vsel %vm7754_vm6, %v6092_v8, %v2598_v61  ;;  %v3017_v61 = vsel %vm7745_vm1, %v3012_v22, %v3016_v36  ;;  %v5112_v8 = vadd.f32 %v8460_v33, %v8808_v59  ;;  %v3433_v22 = vrot.slane %v3431_v62, 4  ;;  %v6331_v36 = vld [vmem:[#allocation3 + $0x188] sm:$0xf]  ;;  %v8809_v59 = vld [vmem:[#allocation10_spill] sm:$0xff]  ;;  %v2477_v25 = vld [vmem:[#allocation2 + $0x74] sm:$0x1] }
 0x1f5   : > { %2705 = vst [vmem:[#allocation3 + $0x20c] sm:$0xf] %v2599_v27  ;;  %v5375_v34 = vpop.f32.mrf.mxu3  ;;  %v3038_v42 = vshll.u32 %v2813_v39, 16 }
 0x1f6   : > { %v5286_v11 = vpop.f32.mrf.mxu2  ;;  %3266 = vst [vmem:[#allocation3 + $0x214] sm:$0xf] %v3017_v61  ;;  %v3435_v31 = vsel %vm7754_vm6, %v3433_v22, %v3434_v9  ;;  %v6361_v61 = vld [vmem:[#allocation3 + $0x1ec] sm:$0xf0] }
 0x1f7   : > { %v5287_v50 = vadd.f32 %v5286_v11, %v5198_v32  ;;  %3539 = vst [vmem:[#allocation3 + $0x23c] sm:$0xf] %v3435_v31  ;;  %v6332_v11 = vor.u32 %v7038_v19, %v6331_v36  ;;  %v6364_v22 = vor.u32 %v7042_v55, %v6361_v61  ;;  %v7055_v19 = vld [vmem:[#allocation3 + $0x230] sm:$0xf0]  ;;  %v2608_v31 = vrot.slane %v2477_v25, 5 }
 0x1f8   : > { %v3310_v25 = vld [vmem:[#allocation2 + $0x80] sm:$0x1] }
 0x1f9   : > { %5688 = vmatmul.bf16.gmra.mxu3 %v6328_v1  ;;  %v8553_v4 = vadd.f32 %v5375_v34, %v5287_v50  ;;  %v5462_v44 = vpop.f32.mrf.mxu0  ;;  %v3432_v1 = vsel %vm7754_vm6, %v6108_v40, %v3431_v62  ;;  %v3031_v50 = vrot.slane %v3029_v24, 4  ;;  %v3042_v40 = vshrl.u32 %v2813_v39, 16  ;;  %v6395_v53 = vld [vmem:[#allocation3 + $0x210] sm:$0xf] }
 0x1fa   : > { %v5200_v32 = vpop.f32.mrf.mxu1  ;;  %v8559_v27 = vadd.f32 %v5462_v44, %v5374_v63  ;;  %3538 = vst [vmem:[#allocation3 + $0x218] sm:$0xf] %v3432_v1  ;;  %v2605_v62 = vrot.slane %v2476_v12, 5  ;;  %v2814_v1 = vld [vmem:[#allocation2 + $0x80] sm:$0x1]  ;;  %v3040_v24 = vrot.slane %v3038_v42, 5  ;;  %v6396_v12 = vor.u32 %v7055_v19, %v6395_v53 }
 0x1fb   : > { %5604 = vmatmul.bf16.gmra.mxu2 %v6360_v38  ;;  %v5201_v47 = vadd.f32 %v5200_v32, %v5112_v8  ;;  %v3034_v38 = vrot.slane %v3032_v49, 5  ;;  %v5114_v8 = vadd.f32 %v8460_v33, %v8809_v59  ;;  %v3044_v49 = vrot.slane %v3042_v40, 4 }
 0x1fc   : > { %v3048_v55 = vshll.u32 %v2814_v1, 16  ;;  %v3441_v19 = vrot.slane %v3310_v25, 5  ;;  %v6397_v25 = vld [vmem:[#allocation3 + $0x234] sm:$0xf0] }
 0x1fd   : > { %5515 = vmatmul.bf16.gmra.mxu1 %v6356_v35  ;;  %v5378_v63 = vpop.f32.mrf.mxu3  ;;  %v3035_v9 = vor.u32 %v3034_v38, %v3031_v50  ;;  %v2475_v35 = vld [vmem:[#allocation2 + $0x6c] sm:$0xe]  ;;  %v2740_v38 = vld [vmem:[#allocation2 + $0x78] sm:$0xf]  ;;  %v3045_v59 = vor.u32 %v3044_v49, %v3040_v24 }
 0x1fe   : > { %v5289_v23 = vpop.f32.mrf.mxu2  ;;  %v6093_v32 = vrot.slane %v2475_v35, 9  ;;  %v3308_v35 = vld [vmem:[#allocation2 + $0x78] sm:$0xe]  ;;  %2772 = vst [vmem:[#allocation3 + $0x258] sm:$0xf] %v2740_v38 }
 0x1ff   : > { %v5290_v58 = vadd.f32 %v5289_v23, %v5201_v47  ;;  %v2607_v47 = vrot.slane %v2605_v62, 4  ;;  %v3036_v39 = vrot.slane %v3035_v9, 4  ;;  %v7050_v23 = vld [vmem:[#allocation3 + $0x20c] sm:$0xf]  ;;  %v3050_v9 = vrot.slane %v3048_v55, 5 }
 0x200   : > { %v2606_v50 = vsel %vm7754_vm6, %v6093_v32, %v2605_v62  ;;  %v3046_v1 = vrot.slane %v3045_v59, 4 }
 0x201   : > { %v5379_v34 = vadd.f32 %v5378_v63, %v5290_v58  ;;  %v5464_v44 = vpop.f32.mrf.mxu0  ;;  %v6389_v58 = vld [vmem:[#allocation3 + $0x22c] sm:$0xf0]  ;;  %v2741_v63 = vld [vmem:[#allocation2 + $0x7c] sm:$0xf]  ;;  %2707 = vst [vmem:[#allocation3 + $0x254] sm:$0xf] %v2606_v50  ;;  %v3041_v62 = vsel %vm7745_vm1, %v3036_v39, %v3040_v24 }
 0x202   : > { %v5202_v36 = vpop.f32.mrf.mxu1  ;;  %v8570_v42 = vadd.f32 %v5464_v44, %v8553_v4  ;;  %2773 = vst [vmem:[#allocation3 + $0x27c] sm:$0xf] %v2741_v63  ;;  %v6392_v44 = vor.u32 %v7050_v23, %v6389_v58  ;;  %v6367_v24 = vld [vmem:[#allocation3 + $0x1d0] sm:$0xf]  ;;  %v7047_v50 = vld [vmem:[#allocation3 + $0x1f0] sm:$0xf0] }
 0x203   : > { %v5203_v30 = vadd.f32 %v5202_v36, %v5114_v8  ;;  %v3309_v8 = vld [vmem:[#allocation2 + $0x7c] sm:$0xf]  ;;  %v6109_v36 = vrot.slane %v3308_v35, 9  ;;  %3268 = vst [vmem:[#allocation3 + $0x25c] sm:$0xf] %v3041_v62  ;;  %v6368_v35 = vor.u32 %v7047_v50, %v6367_v24 }
 0x204   : > { %5777 = vmatmul.bf16.gmra.mxu0 %v6332_v11  ;;  %v2609_v11 = vsel %vm7754_vm6, %v2607_v47, %v2608_v31  ;;  %v3438_v53 = vrot.slane %v3309_v8, 5  ;;  %v8810_v47 = vld [vmem:[#allocation12_spill] sm:$0xff]  ;;  %v2815_v23 = vld [vmem:[#allocation2 + $0x84] sm:$0xf]  ;;  %v2816_v58 = vld [vmem:[#allocation2 + $0x88] sm:$0xf] }
 0x205   : > { %2708 = vst [vmem:[#allocation3 + $0x278] sm:$0xf] %v2609_v11  ;;  %v5380_v32 = vpop.f32.mrf.mxu3  ;;  %v5117_v31 = vadd.f32 %v8460_v33, %v8810_v47  ;;  %v3056_v59 = vshll.u32 %v2815_v23, 16  ;;  %v7051_v62 = vld [vmem:[#allocation3 + $0x214] sm:$0xf] }
 0x206   : > { %v5291_v61 = vpop.f32.mrf.mxu2  ;;  %v3439_v39 = vsel %vm7754_vm6, %v6109_v36, %v3438_v53  ;;  %v2479_v36 = vld [vmem:[#allocation2 + $0x7c] sm:$0xf]  ;;  %v8812_v47 = vld [vmem:[#allocation14_spill] sm:$0xff]  ;;  %v6431_v24 = vld [vmem:[#allocation3 + $0x258] sm:$0xf] }
 0x207   : > { %v5292_v40 = vadd.f32 %v5291_v61, %v5203_v30  ;;  %v3051_v30 = vsel %vm7745_vm1, %v3046_v1, %v3050_v9  ;;  %3540 = vst [vmem:[#allocation3 + $0x260] sm:$0xf] %v3439_v39  ;;  %v3053_v61 = vshrl.u32 %v2815_v23, 16  ;;  %v2612_v1 = vrot.slane %v2479_v36, 5 }
 0x208   : > { %3269 = vst [vmem:[#allocation3 + $0x280] sm:$0xf] %v3051_v30  ;;  %v2480_v30 = vld [vmem:[#allocation2 + $0x80] sm:$0x1]  ;;  %v6400_v39 = vor.u32 %v7051_v62, %v6397_v25  ;;  %v2743_v62 = vld [vmem:[#allocation2 + $0x88] sm:$0xf] }
 0x209   : > { %5693 = vmatmul.bf16.gmra.mxu3 %v6364_v22  ;;  %v5381_v49 = vadd.f32 %v5380_v32, %v5292_v40  ;;  %v5467_v4 = vpop.f32.mrf.mxu0  ;;  %v3440_v22 = vrot.slane %v3438_v53, 4  ;;  %v3062_v40 = vshll.u32 %v2816_v58, 16  ;;  %v3066_v32 = vshrl.u32 %v2816_v58, 16  ;;  %v2817_v53 = vld [vmem:[#allocation2 + $0x8c] sm:$0x1] }
 0x20a   : > { %v5205_v11 = vpop.f32.mrf.mxu1  ;;  %v8580_v38 = vadd.f32 %v5467_v4, %v5379_v34  ;;  %v3058_v34 = vrot.slane %v3056_v59, 5  ;;  %v2478_v4 = vld [vmem:[#allocation2 + $0x78] sm:$0xe]  ;;  %v3311_v25 = vld [vmem:[#allocation2 + $0x84] sm:$0xe] }
 0x20b   : > { %5609 = vmatmul.bf16.gmra.mxu2 %v6396_v12  ;;  %v5206_v55 = vadd.f32 %v5205_v11, %v5117_v31  ;;  %v3442_v63 = vsel %vm7754_vm6, %v3440_v22, %v3441_v19  ;;  %v3055_v12 = vrot.slane %v3053_v61, 4  ;;  %v5119_v31 = vadd.f32 %v8460_v33, %v8812_v47  ;;  %v7064_v61 = vld [vmem:[#allocation3 + $0x278] sm:$0xf0]  ;;  %2775 = vst [vmem:[#allocation3 + $0x2c4] sm:$0xf] %v2743_v62 }
 0x20c   : > { %8811 = vst [vmem:[#allocation9_spill] sm:$0xff] %v8580_v38  ;;  %v6094_v50 = vrot.slane %v2478_v4, 9  ;;  %v2614_v11 = vrot.slane %v2612_v1, 4  ;;  %v3068_v59 = vrot.slane %v3066_v32, 4  ;;  %v6110_v32 = vrot.slane %v3311_v25, 9 }
 0x20d   : > { %3541 = vst [vmem:[#allocation3 + $0x284] sm:$0xf] %v3442_v63  ;;  %5520 = vmatmul.bf16.gmra.mxu1 %v6392_v44  ;;  %v3059_v19 = vor.u32 %v3058_v34, %v3055_v12  ;;  %v3064_v44 = vrot.slane %v3062_v40, 5  ;;  %v7059_v12 = vld [vmem:[#allocation3 + $0x254] sm:$0xf] }
 0x20e   : > { %v5294_v8 = vpop.f32.mrf.mxu2  ;;  %v6425_v34 = vld [vmem:[#allocation3 + $0x274] sm:$0xf0]  ;;  %v2613_v33 = vsel %vm7754_vm6, %v6094_v50, %v2612_v1  ;;  %v2742_v40 = vld [vmem:[#allocation2 + $0x84] sm:$0xf] }
 0x20f   : > { %v8584_v9 = vadd.f32 %v5294_v8, %v5206_v55  ;;  %v2615_v55 = vrot.slane %v2480_v30, 5  ;;  %v3060_v58 = vrot.slane %v3059_v19, 4  ;;  %v3072_v8 = vshll.u32 %v2817_v53, 16  ;;  %2709 = vst [vmem:[#allocation3 + $0x29c] sm:$0xf] %v2613_v33 }
 0x210   : > { %v3312_v19 = vld [vmem:[#allocation2 + $0x88] sm:$0xf]  ;;  %v6432_v30 = vor.u32 %v7064_v61, %v6431_v24  ;;  %2774 = vst [vmem:[#allocation3 + $0x2a0] sm:$0xf] %v2742_v40  ;;  %v6403_v24 = vld [vmem:[#allocation3 + $0x218] sm:$0xf] }
 0x211   : > { %v5469_v63 = vpop.f32.mrf.mxu0  ;;  %v3074_v4 = vrot.slane %v3072_v8, 5  ;;  %v3065_v1 = vsel %vm7745_vm1, %v3060_v58, %v3064_v44  ;;  %v3445_v50 = vrot.slane %v3312_v19, 5  ;;  %v7056_v61 = vld [vmem:[#allocation3 + $0x238] sm:$0xf0]  ;;  %v2818_v33 = vld [vmem:[#allocation2 + $0x90] sm:$0xf] }
 0x212   : > { %v5207_v22 = vpop.f32.mrf.mxu1  ;;  %v8592_v36 = vadd.f32 %v5469_v63, %v5381_v49  ;;  %3270 = vst [vmem:[#allocation3 + $0x2a4] sm:$0xf] %v3065_v1  ;;  %v6404_v40 = vor.u32 %v7056_v61, %v6403_v24  ;;  %v7073_v61 = vld [vmem:[#allocation3 + $0x2c0] sm:$0xf0] }
 0x213   : > { %v5208_v23 = vadd.f32 %v5207_v22, %v5119_v31  ;;  %v3069_v31 = vor.u32 %v3068_v59, %v3064_v44  ;;  %v3313_v22 = vld [vmem:[#allocation2 + $0x8c] sm:$0x1]  ;;  %v3446_v49 = vsel %vm7754_vm6, %v6110_v32, %v3445_v50  ;;  %v3447_v63 = vrot.slane %v3445_v50, 4  ;;  %v6433_v32 = vld [vmem:[#allocation3 + $0x27c] sm:$0xf0] }
 0x214   : > { %5782 = vmatmul.bf16.gmra.mxu0 %v6368_v35  ;;  %v2616_v35 = vsel %vm7754_vm6, %v2614_v11, %v2615_v55  ;;  %8813 = vst [vmem:[#allocation11_spill] sm:$0xff] %v8592_v36  ;;  %v3448_v55 = vrot.slane %v3313_v22, 5  ;;  %v6428_v59 = vor.u32 %v7059_v12, %v6425_v34  ;;  %v3077_v12 = vshrl.u32 %v2818_v33, 16 }
 0x215   : > { %2710 = vst [vmem:[#allocation3 + $0x2c0] sm:$0xf] %v2616_v35  ;;  %v3070_v11 = vrot.slane %v3069_v31, 4  ;;  %v2819_v35 = vld [vmem:[#allocation2 + $0x94] sm:$0xf]  ;;  %v3080_v34 = vshll.u32 %v2818_v33, 16 }
 0x216   : > { %v5296_v47 = vpop.f32.mrf.mxu2  ;;  %3542 = vst [vmem:[#allocation3 + $0x2a8] sm:$0xf] %v3446_v49  ;;  %v3086_v25 = vshll.u32 %v2819_v35, 16  ;;  %v7060_v31 = vld [vmem:[#allocation3 + $0x25c] sm:$0xf]  ;;  %v3090_v1 = vshrl.u32 %v2819_v35, 16 }
 0x217   : > { %v5297_v53 = vadd.f32 %v5296_v47, %v5208_v23  ;;  %v3075_v23 = vsel %vm7745_vm1, %v3070_v11, %v3074_v4  ;;  %v3079_v4 = vrot.slane %v3077_v12, 4  ;;  %v3082_v19 = vrot.slane %v3080_v34, 5  ;;  %v2820_v11 = vld [vmem:[#allocation2 + $0x98] sm:$0x1]  ;;  %v2481_v49 = vld [vmem:[#allocation2 + $0x84] sm:$0xe] }
 0x218   : > { %3271 = vst [vmem:[#allocation3 + $0x2c8] sm:$0xf] %v3075_v23  ;;  %v3088_v23 = vrot.slane %v3086_v25, 5  ;;  %v6436_v34 = vor.u32 %v7060_v31, %v6433_v32  ;;  %v3092_v35 = vrot.slane %v3090_v1, 4  ;;  %v2744_v25 = vld [vmem:[#allocation2 + $0x90] sm:$0xf] }
 0x219   : > { %5698 = vmatmul.bf16.gmra.mxu3 %v6400_v39  ;;  %v3449_v39 = vsel %vm7754_vm6, %v3447_v63, %v3448_v55  ;;  %v3083_v55 = vor.u32 %v3082_v19, %v3079_v4  ;;  %v2483_v63 = vld [vmem:[#allocation2 + $0x8c] sm:$0x1]  ;;  %v2745_v19 = vld [vmem:[#allocation2 + $0x94] sm:$0xf]  ;;  %v3316_v32 = vld [vmem:[#allocation2 + $0x98] sm:$0x1] }
 0x21a   : > { %v5486_v44 = vpop.f32.mrf.mxu1  ;;  %3543 = vst [vmem:[#allocation3 + $0x2cc] sm:$0xf] %v3449_v39  ;;  %v2622_v33 = vrot.slane %v2483_v63, 5  ;;  %v3315_v31 = vld [vmem:[#allocation2 + $0x94] sm:$0xf] }
 0x21b   : > { %5614 = vmatmul.bf16.gmra.mxu2 %v6432_v30  ;;  %v2482_v30 = vld [vmem:[#allocation2 + $0x88] sm:$0xf]  ;;  %v3084_v36 = vrot.slane %v3083_v55, 4  ;;  %2776 = vst [vmem:[#allocation3 + $0x2e8] sm:$0xf] %v2744_v25 }
 0x21c   : > { %v5383_v8 = vpop.f32.mrf.mxu3  ;;  %v2619_v50 = vrot.slane %v2482_v30, 5  ;;  %v3096_v30 = vshll.u32 %v2820_v11, 16  ;;  %2777 = vst [vmem:[#allocation3 + $0x30c] sm:$0xf] %v2745_v19 }
 0x21d   : > { %v5384_v58 = vadd.f32 %v5383_v8, %v8584_v9  ;;  %5525 = vmatmul.bf16.gmra.mxu1 %v6428_v59  ;;  %v6467_v9 = vld [vmem:[#allocation3 + $0x2a0] sm:$0xf]  ;;  %v6095_v8 = vrot.slane %v2481_v49, 9  ;;  %v5487_v49 = vadd.f32 %v5486_v44, %v8089_v54  ;;  %v3089_v55 = vsel %vm7745_vm1, %v3084_v36, %v3088_v23 }
 0x21e   : > { %v5575_v62 = vpop.f32.mrf.mxu2  ;;  %v2621_v39 = vrot.slane %v2619_v50, 4  ;;  %v6468_v63 = vor.u32 %v7073_v61, %v6467_v9  ;;  %3272 = vst [vmem:[#allocation3 + $0x2ec] sm:$0xf] %v3089_v55  ;;  %v6439_v36 = vld [vmem:[#allocation3 + $0x260] sm:$0xf] }
 0x21f   : > { %v2620_v4 = vsel %vm7754_vm6, %v6095_v8, %v2619_v50  ;;  %v3098_v50 = vrot.slane %v3096_v30, 5  ;;  %v3452_v8 = vrot.slane %v3315_v31, 5 }
 0x220   : > { %2711 = vst [vmem:[#allocation3 + $0x2e4] sm:$0xf] %v2620_v4  ;;  %v2821_v4 = vld [vmem:[#allocation2 + $0x9c] sm:$0xf] }
 0x221   : > { %v5472_v47 = vpop.f32.mrf.mxu0  ;;  %v3454_v9 = vrot.slane %v3452_v8, 4 }
 0x222   : > { %v8603_v22 = vadd.f32 %v5472_v47, %v5384_v58  ;;  %v5488_v24 = vpop.f32.mrf.mxu1  ;;  %v3314_v58 = vld [vmem:[#allocation2 + $0x90] sm:$0xe]  ;;  %v7068_v47 = vld [vmem:[#allocation3 + $0x29c] sm:$0xf] }
 0x223   : > { %v5489_v19 = vadd.f32 %v5488_v24, %v8116_v10  ;;  %v2823_v24 = vld [vmem:[#allocation2 + $0xa4] sm:$0x1] }
 0x224   : > { %8814 = vst [vmem:[#allocation13_spill] sm:$0xff] %v8603_v22  ;;  %5787 = vmatmul.bf16.gmra.mxu0 %v6404_v40  ;;  %v5385_v59 = vpop.f32.mrf.mxu3  ;;  %v6461_v22 = vld [vmem:[#allocation3 + $0x2bc] sm:$0xf0]  ;;  %v2623_v40 = vsel %vm7754_vm6, %v2621_v39, %v2622_v33  ;;  %v5576_v39 = vadd.f32 %v5575_v62, %v5487_v49  ;;  %v3455_v33 = vrot.slane %v3316_v32, 5 }
 0x225   : > { %v5386_v12 = vadd.f32 %v5385_v59, %v5297_v53  ;;  %v3093_v53 = vor.u32 %v3092_v35, %v3088_v23  ;;  %2712 = vst [vmem:[#allocation3 + $0x308] sm:$0xf] %v2623_v40  ;;  %v6111_v59 = vrot.slane %v3314_v58, 9  ;;  %v6464_v61 = vor.u32 %v7068_v47, %v6461_v22  ;;  %v7065_v23 = vld [vmem:[#allocation3 + $0x280] sm:$0xf0] }
 0x226   : > { %v5577_v38 = vpop.f32.mrf.mxu2  ;;  %v3456_v62 = vsel %vm7754_vm6, %v3454_v9, %v3455_v33  ;;  %v2822_v40 = vld [vmem:[#allocation2 + $0xa0] sm:$0xf]  ;;  %v3101_v22 = vshrl.u32 %v2821_v4, 16  ;;  %v3104_v47 = vshll.u32 %v2821_v4, 16  ;;  %v6440_v25 = vor.u32 %v7065_v23, %v6439_v36  ;;  %v2486_v33 = vld [vmem:[#allocation2 + $0x98] sm:$0x1] }
 0x227   : > { %v3094_v11 = vrot.slane %v3093_v53, 4  ;;  %v3453_v44 = vsel %vm7754_vm6, %v6111_v59, %v3452_v8  ;;  %3545 = vst [vmem:[#allocation3 + $0x314] sm:$0xf] %v3456_v62  ;;  %v3110_v49 = vshll.u32 %v2822_v40, 16  ;;  %v5578_v55 = vadd.f32 %v5577_v38, %v5489_v19  ;;  %v2485_v59 = vld [vmem:[#allocation2 + $0x94] sm:$0xf] }
 0x228   : > { %3544 = vst [vmem:[#allocation3 + $0x2f0] sm:$0xf] %v3453_v44  ;;  %v3103_v31 = vrot.slane %v3101_v22, 4  ;;  %v3106_v32 = vrot.slane %v3104_v47, 5  ;;  %v3114_v8 = vshrl.u32 %v2822_v40, 16  ;;  %v2626_v10 = vrot.slane %v2485_v59, 5 }
 0x229   : > { %v5474_v1 = vpop.f32.mrf.mxu0  ;;  %5703 = vmatmul.bf16.gmra.mxu3 %v6436_v34  ;;  %v3099_v35 = vsel %vm7745_vm1, %v3094_v11, %v3098_v50  ;;  %v6469_v50 = vld [vmem:[#allocation3 + $0x2c4] sm:$0xf0]  ;;  %v2484_v11 = vld [vmem:[#allocation2 + $0x90] sm:$0xe]  ;;  %v3112_v44 = vrot.slane %v3110_v49, 5  ;;  %v2629_v62 = vrot.slane %v2486_v33, 5 }
 0x22a   : > { %v8612_v54 = vadd.f32 %v5474_v1, %v5386_v12  ;;  %v5491_v34 = vpop.f32.mrf.mxu1  ;;  %3273 = vst [vmem:[#allocation3 + $0x310] sm:$0xf] %v3099_v35  ;;  %v6503_v36 = vld [vmem:[#allocation3 + $0x2e8] sm:$0xf]  ;;  %v6096_v23 = vrot.slane %v2484_v11, 9  ;;  %v3116_v19 = vrot.slane %v3114_v8, 4 }
 0x22b   : > { %5619 = vmatmul.bf16.gmra.mxu2 %v6468_v63  ;;  %v7069_v63 = vld [vmem:[#allocation3 + $0x2a4] sm:$0xf]  ;;  %v5492_v38 = vadd.f32 %v5491_v34, %v8130_v43  ;;  %v7082_v22 = vld [vmem:[#allocation3 + $0x308] sm:$0xf0]  ;;  %v3318_v43 = vld [vmem:[#allocation2 + $0xa0] sm:$0xf] }
 0x22c   : > { %v5664_v58 = vpop.f32.mrf.mxu3  ;;  %v7077_v4 = vld [vmem:[#allocation3 + $0x2e4] sm:$0xf]  ;;  %v6497_v40 = vld [vmem:[#allocation3 + $0x304] sm:$0xf0]  ;;  %v3319_v34 = vld [vmem:[#allocation2 + $0xa4] sm:$0x1] }
 0x22d   : > { %v5665_v12 = vadd.f32 %v5664_v58, %v5576_v39  ;;  %5530 = vmatmul.bf16.gmra.mxu1 %v6464_v61  ;;  %v3107_v39 = vor.u32 %v3106_v32, %v3103_v31  ;;  %v6472_v61 = vor.u32 %v7069_v63, %v6469_v50  ;;  %v2628_v58 = vrot.slane %v2626_v10, 4  ;;  %v2746_v63 = vld [vmem:[#allocation2 + $0x9c] sm:$0xf]  ;;  %v2747_v31 = vld [vmem:[#allocation2 + $0xa0] sm:$0xf] }
 0x22e   : > { %v5580_v30 = vpop.f32.mrf.mxu2  ;;  %v3120_v32 = vshll.u32 %v2823_v24, 16  ;;  %2778 = vst [vmem:[#allocation3 + $0x330] sm:$0xf] %v2746_v63 }
 0x22f   : > { %v3108_v47 = vrot.slane %v3107_v39, 4  ;;  %v2630_v49 = vsel %vm7754_vm6, %v2628_v58, %v2629_v62  ;;  %v5581_v50 = vadd.f32 %v5580_v30, %v5492_v38  ;;  %v6504_v39 = vor.u32 %v7082_v22, %v6503_v36  ;;  %2779 = vst [vmem:[#allocation3 + $0x354] sm:$0xf] %v2747_v31  ;;  %v7074_v22 = vld [vmem:[#allocation3 + $0x2c8] sm:$0xf0] }
 0x230   : > { %2714 = vst [vmem:[#allocation3 + $0x350] sm:$0xf] %v2630_v49  ;;  %v3122_v8 = vrot.slane %v3120_v32, 5  ;;  %v3462_v30 = vrot.slane %v3319_v34, 5  ;;  %v6500_v62 = vor.u32 %v7077_v4, %v6497_v40 }
 0x231   : > { %v5753_v53 = vpop.f32.mrf.mxu0 }
 0x232   : > { %v5754_v1 = vadd.f32 %v5753_v53, %v5665_v12  ;;  %v5493_v35 = vpop.f32.mrf.mxu1  ;;  %v2627_v53 = vsel %vm7754_vm6, %v6096_v23, %v2626_v10  ;;  %v3113_v23 = vsel %vm7745_vm1, %v3108_v47, %v3112_v44  ;;  %v2825_v47 = vld [vmem:[#allocation2 + $0xac] sm:$0xf] }
 0x233   : > { %2713 = vst [vmem:[#allocation3 + $0x32c] sm:$0xf] %v2627_v53  ;;  %v3134_v34 = vshll.u32 %v2825_v47, 16 }
 0x234   : > { %5792 = vmatmul.bf16.gmra.mxu0 %v6440_v25  ;;  %5833 = vst [vmem:[%s8626_s28] sm:$0xff] %v5754_v1  ;;  %v5666_v9 = vpop.f32.mrf.mxu3  ;;  %v3317_v25 = vld [vmem:[#allocation2 + $0x9c] sm:$0xe]  ;;  %v5903_v58 = vmul.f32 %v5754_v1, %v5754_v1 }
 0x235   : > { %v5667_v12 = vadd.f32 %v5666_v9, %v5578_v55  ;;  %v3117_v55 = vor.u32 %v3116_v19, %v3112_v44  ;;  %v6112_v33 = vrot.slane %v3317_v25, 9  ;;  %v3459_v9 = vrot.slane %v3318_v43, 5  ;;  %3274 = vst [vmem:[#allocation3 + $0x334] sm:$0xf] %v3113_v23  ;;  %v7078_v23 = vld [vmem:[#allocation3 + $0x2ec] sm:$0xf] }
 0x236   : > { %v5582_v59 = vpop.f32.mrf.mxu2 }
 0x237   : > { %v3118_v24 = vrot.slane %v3117_v55, 4  ;;  %v3461_v38 = vrot.slane %v3459_v9, 4  ;;  %v5494_v55 = vadd.f32 %v5493_v35, %v8149_v13 }
 0x239   : > { %v5755_v11 = vpop.f32.mrf.mxu0  ;;  %5708 = vmatmul.bf16.gmra.mxu3 %v6472_v61  ;;  %v3123_v36 = vsel %vm7745_vm1, %v3118_v24, %v3122_v8  ;;  %v6475_v61 = vld [vmem:[#allocation3 + $0x2a8] sm:$0xf]  ;;  %v3463_v44 = vsel %vm7754_vm6, %v3461_v38, %v3462_v30  ;;  %v6505_v24 = vld [vmem:[#allocation3 + $0x30c] sm:$0xf0]  ;;  %v3136_v38 = vrot.slane %v3134_v34, 5 }
 0x23a   : > { %v5756_v10 = vadd.f32 %v5755_v11, %v5667_v12  ;;  %v3460_v12 = vsel %vm7754_vm6, %v6112_v33, %v3459_v9  ;;  %v5496_v49 = vpop.f32.mrf.mxu1  ;;  %3275 = vst [vmem:[#allocation3 + $0x358] sm:$0xf] %v3123_v36  ;;  %v6476_v32 = vor.u32 %v7074_v22, %v6475_v61  ;;  %v3138_v11 = vshrl.u32 %v2825_v47, 16  ;;  %v2489_v61 = vld [vmem:[#allocation2 + $0xa4] sm:$0x1] }
 0x23b   : > { %5624 = vmatmul.bf16.gmra.mxu2 %v6504_v39  ;;  %3546 = vst [vmem:[#allocation3 + $0x338] sm:$0xf] %v3460_v12  ;;  %v6508_v47 = vor.u32 %v7078_v23, %v6505_v24 }
 0x23c   : > { %5834 = vst [vmem:[%s8626_s28 + $0x8] sm:$0xff] %v5756_v10  ;;  %v5865_v19 = vadd.f32 %v5756_v10, %v5754_v1  ;;  %v5904_v53 = vmul.f32 %v5756_v10, %v5756_v10  ;;  %v5669_v25 = vpop.f32.mrf.mxu3  ;;  %v2824_v1 = vld [vmem:[#allocation2 + $0xa8] sm:$0xf]  ;;  %v2488_v10 = vld [vmem:[#allocation2 + $0xa0] sm:$0xf] }
 0x23d   : > { %v5670_v40 = vadd.f32 %v5669_v25, %v5581_v50  ;;  %v3125_v63 = vshrl.u32 %v2824_v1, 16  ;;  %v3128_v31 = vshll.u32 %v2824_v1, 16  ;;  %5535 = vmatmul.bf16.gmra.mxu1 %v6500_v62  ;;  %3547 = vst [vmem:[#allocation3 + $0x35c] sm:$0xf] %v3463_v44  ;;  %v5583_v50 = vadd.f32 %v5582_v59, %v5494_v55  ;;  %v2487_v62 = vld [vmem:[#allocation2 + $0x9c] sm:$0xe] }
 0x23e   : > { %v5935_v4 = vadd.f32 %v5904_v53, %v5903_v58  ;;  %v5585_v43 = vpop.f32.mrf.mxu2  ;;  %v2633_v30 = vrot.slane %v2488_v10, 5  ;;  %v3140_v53 = vrot.slane %v3138_v11, 4  ;;  %v6097_v22 = vrot.slane %v2487_v62, 9  ;;  %v2826_v44 = vld [vmem:[#allocation2 + $0xb0] sm:$0x1] }
 0x23f   : > { %v3127_v8 = vrot.slane %v3125_v63, 4  ;;  %v3130_v33 = vrot.slane %v3128_v31, 5  ;;  %v5497_v1 = vadd.f32 %v5496_v49, %v8170_v57  ;;  %v7086_v63 = vld [vmem:[#allocation3 + $0x32c] sm:$0xf]  ;;  %v6533_v31 = vld [vmem:[#allocation3 + $0x34c] sm:$0xf0] }
 0x240   : > { %v2635_v25 = vrot.slane %v2633_v30, 4  ;;  %v7091_v55 = vld [vmem:[#allocation3 + $0x350] sm:$0xf0]  ;;  %v2634_v34 = vsel %vm7754_vm6, %v6097_v22, %v2633_v30  ;;  %v2636_v11 = vrot.slane %v2489_v61, 5  ;;  %v3322_v30 = vld [vmem:[#allocation2 + $0xb0] sm:$0x1]  ;;  %v6536_v22 = vor.u32 %v7086_v63, %v6533_v31 }
 0x241   : > { %v5758_v39 = vpop.f32.mrf.mxu0  ;;  %v3131_v58 = vor.u32 %v3130_v33, %v3127_v8  ;;  %v3141_v33 = vor.u32 %v3140_v53, %v3136_v38  ;;  %2715 = vst [vmem:[#allocation3 + $0x374] sm:$0xf] %v2634_v34  ;;  %v5586_v49 = vadd.f32 %v5585_v43, %v5497_v1  ;;  %v2827_v31 = vld [vmem:[#allocation2 + $0xb4] sm:$0xf] }
 0x242   : > { %v5759_v9 = vadd.f32 %v5758_v39, %v5670_v40  ;;  %v8645_v12 = vpop.f32.mrf.mxu1  ;;  %v2748_v39 = vld [vmem:[#allocation2 + $0xa8] sm:$0xf]  ;;  %v2637_v24 = vsel %vm7754_vm6, %v2635_v25, %v2636_v11  ;;  %v2828_v11 = vld [vmem:[#allocation2 + $0xb8] sm:$0xf] }
 0x243   : > { %v3132_v8 = vrot.slane %v3131_v58, 4  ;;  %2780 = vst [vmem:[#allocation3 + $0x378] sm:$0xf] %v2748_v39  ;;  %v3142_v62 = vrot.slane %v3141_v33, 4  ;;  %v3149_v39 = vshrl.u32 %v2827_v31, 16 }
 0x244   : > { %5797 = vmatmul.bf16.gmra.mxu0 %v6476_v32  ;;  %5835 = vst [vmem:[%s8626_s28 + $0x10] sm:$0xff] %v5759_v9  ;;  %v5866_v13 = vadd.f32 %v5865_v19, %v5759_v9  ;;  %v5905_v35 = vmul.f32 %v5759_v9, %v5759_v9  ;;  %v5671_v36 = vpop.f32.mrf.mxu3  ;;  %v6539_v32 = vld [vmem:[#allocation3 + $0x330] sm:$0xf]  ;;  %v3321_v9 = vld [vmem:[#allocation2 + $0xac] sm:$0xf] }
 0x245   : > { %v5672_v40 = vadd.f32 %v5671_v36, %v5583_v50  ;;  %v3320_v19 = vld [vmem:[#allocation2 + $0xa8] sm:$0xe]  ;;  %v3144_v50 = vshll.u32 %v2826_v44, 16  ;;  %v6540_v23 = vor.u32 %v7091_v55, %v6539_v32  ;;  %2716 = vst [vmem:[#allocation3 + $0x398] sm:$0xf] %v2637_v24  ;;  %v3137_v58 = vsel %vm7745_vm1, %v3132_v8, %v3136_v38 }
 0x246   : > { %v5936_v59 = vadd.f32 %v5935_v4, %v5905_v35  ;;  %v5587_v10 = vpop.f32.mrf.mxu2  ;;  %v2749_v4 = vld [vmem:[#allocation2 + $0xac] sm:$0xf]  ;;  %v6113_v35 = vrot.slane %v3320_v19, 9  ;;  %v3466_v61 = vrot.slane %v3321_v9, 5  ;;  %v3469_v44 = vrot.slane %v3322_v30, 5 }
 0x247   : > { %v3146_v53 = vrot.slane %v3144_v50, 5  ;;  %2781 = vst [vmem:[#allocation3 + $0x39c] sm:$0xf] %v2749_v4  ;;  %v6511_v32 = vld [vmem:[#allocation3 + $0x2f0] sm:$0xf]  ;;  %v3152_v8 = vshll.u32 %v2827_v31, 16  ;;  %v5499_v9 = vadd.f32 %v8645_v12, %v8200_v37 }
 0x248   : > { %3276 = vst [vmem:[#allocation3 + $0x37c] sm:$0xf] %v3137_v58  ;;  %v3468_v38 = vrot.slane %v3466_v61, 4  ;;  %v3158_v50 = vshll.u32 %v2828_v11, 16  ;;  %v7087_v30 = vld [vmem:[#allocation3 + $0x334] sm:$0xf] }
 0x249   : > { %v5760_v57 = vpop.f32.mrf.mxu0  ;;  %5713 = vmatmul.bf16.gmra.mxu3 %v6508_v47  ;;  %v3147_v25 = vsel %vm7745_vm1, %v3142_v62, %v3146_v53  ;;  %v7083_v47 = vld [vmem:[#allocation3 + $0x310] sm:$0xf0]  ;;  %v5588_v24 = vadd.f32 %v5587_v10, %v5499_v9 }
 0x24a   : > { %v5761_v36 = vadd.f32 %v5760_v57, %v5672_v40  ;;  %v3467_v40 = vsel %vm7754_vm6, %v6113_v35, %v3466_v61  ;;  %v5501_v19 = vpop.f32.mrf.mxu1  ;;  %3277 = vst [vmem:[#allocation3 + $0x3a0] sm:$0xf] %v3147_v25  ;;  %v6512_v33 = vor.u32 %v7083_v47, %v6511_v32  ;;  %v3151_v57 = vrot.slane %v3149_v39, 4  ;;  %v2491_v62 = vld [vmem:[#allocation2 + $0xac] sm:$0xf] }
 0x24b   : > { %5629 = vmatmul.bf16.gmra.mxu2 %v6540_v23  ;;  %3548 = vst [vmem:[#allocation3 + $0x380] sm:$0xf] %v3467_v40  ;;  %v2640_v58 = vrot.slane %v2491_v62, 5  ;;  %v3160_v61 = vrot.slane %v3158_v50, 5  ;;  %v2492_v40 = vld [vmem:[#allocation2 + $0xb0] sm:$0x1]  ;;  %v5502_v31 = vadd.f32 %v5501_v19, %v8221_v18 }
 0x24c   : > { %5836 = vst [vmem:[%s8626_s28 + $0x18] sm:$0xff] %v5761_v36  ;;  %v5867_v43 = vadd.f32 %v5866_v13, %v5761_v36  ;;  %v5906_v1 = vmul.f32 %v5761_v36, %v5761_v36  ;;  %v5674_v55 = vpop.f32.mrf.mxu3  ;;  %v3470_v13 = vsel %vm7754_vm6, %v3468_v38, %v3469_v44  ;;  %v6541_v36 = vld [vmem:[#allocation3 + $0x354] sm:$0xf0]  ;;  %v2490_v44 = vld [vmem:[#allocation2 + $0xa8] sm:$0xe]  ;;  %v2643_v9 = vrot.slane %v2492_v40, 5 }
 0x24d   : > { %v5675_v63 = vadd.f32 %v5674_v55, %v5586_v49  ;;  %5540 = vmatmul.bf16.gmra.mxu1 %v6536_v22  ;;  %3549 = vst [vmem:[#allocation3 + $0x3a4] sm:$0xf] %v3470_v13  ;;  %v3154_v49 = vrot.slane %v3152_v8, 5  ;;  %v6575_v22 = vld [vmem:[#allocation3 + $0x378] sm:$0xf]  ;;  %v6098_v47 = vrot.slane %v2490_v44, 9 }
 0x24e   : > { %v5937_v34 = vadd.f32 %v5936_v59, %v5906_v1  ;;  %v5590_v4 = vpop.f32.mrf.mxu2  ;;  %v3162_v59 = vshrl.u32 %v2828_v11, 16  ;;  %v2642_v55 = vrot.slane %v2640_v58, 4  ;;  %v2829_v38 = vld [vmem:[#allocation2 + $0xbc] sm:$0x1]  ;;  %v6544_v11 = vor.u32 %v7087_v30, %v6541_v36  ;;  %v7095_v13 = vld [vmem:[#allocation3 + $0x374] sm:$0xf] }
 0x24f   : > { %v3155_v53 = vor.u32 %v3154_v49, %v3151_v57  ;;  %v6569_v39 = vld [vmem:[#allocation3 + $0x394] sm:$0xf0]  ;;  %v7100_v8 = vld [vmem:[#allocation3 + $0x398] sm:$0xf0]  ;;  %v3324_v57 = vld [vmem:[#allocation2 + $0xb8] sm:$0xf]  ;;  %v5591_v18 = vadd.f32 %v5590_v4, %v5502_v31 }
 0x250   : > { %v3164_v1 = vrot.slane %v3162_v59, 4  ;;  %v2750_v50 = vld [vmem:[#allocation2 + $0xb4] sm:$0xf]  ;;  %v6576_v19 = vor.u32 %v7100_v8, %v6575_v22  ;;  %v2644_v30 = vsel %vm7754_vm6, %v2642_v55, %v2643_v9 }
 0x251   : > { %v5763_v35 = vpop.f32.mrf.mxu0  ;;  %v3156_v59 = vrot.slane %v3155_v53, 4  ;;  %2782 = vst [vmem:[#allocation3 + $0x3c0] sm:$0xf] %v2750_v50 }
 0x252   : > { %v5764_v23 = vadd.f32 %v5763_v35, %v5675_v63  ;;  %v5503_v25 = vpop.f32.mrf.mxu1  ;;  %v3165_v35 = vor.u32 %v3164_v1, %v3160_v61  ;;  %2718 = vst [vmem:[#allocation3 + $0x3e0] sm:$0xf] %v2644_v30  ;;  %v3473_v1 = vrot.slane %v3324_v57, 5  ;;  %v7096_v30 = vld [vmem:[#allocation3 + $0x37c] sm:$0xf] }
 0x253   : > { %v3161_v53 = vsel %vm7745_vm1, %v3156_v59, %v3160_v61  ;;  %v5504_v59 = vadd.f32 %v5503_v25, %v8254_v28 }
 0x254   : > { %5802 = vmatmul.bf16.gmra.mxu0 %v6512_v33  ;;  %5837 = vst [vmem:[%s8626_s28 + $0x20] sm:$0xff] %v5764_v23  ;;  %v5868_v37 = vadd.f32 %v5867_v43, %v5764_v23  ;;  %v5907_v12 = vmul.f32 %v5764_v23, %v5764_v23  ;;  %v5676_v32 = vpop.f32.mrf.mxu3  ;;  %v3323_v33 = vld [vmem:[#allocation2 + $0xb4] sm:$0xe]  ;;  %v2641_v43 = vsel %vm7754_vm6, %v6098_v47, %v2640_v58  ;;  %v2751_v23 = vld [vmem:[#allocation2 + $0xb8] sm:$0xf]  ;;  %v3166_v36 = vrot.slane %v3165_v35, 4 }
 0x255   : > { %v5677_v63 = vadd.f32 %v5676_v32, %v5588_v24  ;;  %2717 = vst [vmem:[#allocation3 + $0x3bc] sm:$0xf] %v2641_v43  ;;  %v6114_v24 = vrot.slane %v3323_v33, 9  ;;  %v3325_v58 = vld [vmem:[#allocation2 + $0xbc] sm:$0x1]  ;;  %v6572_v32 = vor.u32 %v7095_v13, %v6569_v39  ;;  %v3475_v61 = vrot.slane %v3473_v1, 4 }
 0x256   : > { %v5938_v10 = vadd.f32 %v5937_v34, %v5907_v12  ;;  %v5592_v49 = vpop.f32.mrf.mxu2  ;;  %v3168_v34 = vshll.u32 %v2829_v38, 16  ;;  %2783 = vst [vmem:[#allocation3 + $0x3e4] sm:$0xf] %v2751_v23  ;;  %v3476_v40 = vrot.slane %v3325_v58, 5  ;;  %v6547_v47 = vld [vmem:[#allocation3 + $0x338] sm:$0xf] }
 0x257   : > { %v3474_v38 = vsel %vm7754_vm6, %v6114_v24, %v3473_v1  ;;  %3278 = vst [vmem:[#allocation3 + $0x3c4] sm:$0xf] %v3161_v53  ;;  %v2830_v39 = vld [vmem:[#allocation2 + $0xc0] sm:$0xf]  ;;  %v2831_v33 = vld [vmem:[#allocation2 + $0xc4] sm:$0xf] }
 0x258   : > { %v3170_v44 = vrot.slane %v3168_v34, 5  ;;  %3550 = vst [vmem:[#allocation3 + $0x3c8] sm:$0xf] %v3474_v38  ;;  %v3173_v43 = vshrl.u32 %v2830_v39, 16  ;;  %v3176_v9 = vshll.u32 %v2830_v39, 16  ;;  %v3182_v57 = vshll.u32 %v2831_v33, 16 }
 0x259   : > { %v5765_v62 = vpop.f32.mrf.mxu0  ;;  %5718 = vmatmul.bf16.gmra.mxu3 %v6544_v11  ;;  %v3186_v23 = vshrl.u32 %v2831_v33, 16  ;;  %v2493_v1 = vld [vmem:[#allocation2 + $0xb4] sm:$0xe]  ;;  %v6605_v33 = vld [vmem:[#allocation3 + $0x3dc] sm:$0xf0] }
 0x25a   : > { %v5766_v12 = vadd.f32 %v5765_v62, %v5677_v63  ;;  %v3171_v55 = vsel %vm7745_vm1, %v3166_v36, %v3170_v44  ;;  %v7092_v63 = vld [vmem:[#allocation3 + $0x358] sm:$0xf0]  ;;  %v5506_v11 = vpop.f32.mrf.mxu1  ;;  %v3175_v34 = vrot.slane %v3173_v43, 4  ;;  %v3178_v24 = vrot.slane %v3176_v9, 5  ;;  %v6577_v36 = vld [vmem:[#allocation3 + $0x39c] sm:$0xf0] }
 0x25b   : > { %5634 = vmatmul.bf16.gmra.mxu2 %v6576_v19  ;;  %3279 = vst [vmem:[#allocation3 + $0x3e8] sm:$0xf] %v3171_v55  ;;  %v6548_v50 = vor.u32 %v7092_v63, %v6547_v47  ;;  %v2494_v19 = vld [vmem:[#allocation2 + $0xb8] sm:$0xf]  ;;  %v3184_v53 = vrot.slane %v3182_v57, 5  ;;  %v6099_v55 = vrot.slane %v2493_v1, 9 }
 0x25c   : > { %5838 = vst [vmem:[%s8626_s28 + $0x28] sm:$0xff] %v5766_v12  ;;  %v5869_v4 = vadd.f32 %v5868_v37, %v5766_v12  ;;  %v5908_v22 = vmul.f32 %v5766_v12, %v5766_v12  ;;  %v5679_v31 = vpop.f32.mrf.mxu3  ;;  %v3477_v37 = vsel %vm7754_vm6, %v3475_v61, %v3476_v40  ;;  %v2647_v58 = vrot.slane %v2494_v19, 5  ;;  %v6611_v44 = vld [vmem:[#allocation3 + $0x3c0] sm:$0xf]  ;;  %v2495_v47 = vld [vmem:[#allocation2 + $0xbc] sm:$0x1] }
 0x25d   : > { %v5680_v13 = vadd.f32 %v5679_v31, %v5591_v18  ;;  %5545 = vmatmul.bf16.gmra.mxu1 %v6572_v32  ;;  %3551 = vst [vmem:[#allocation3 + $0x3ec] sm:$0xf] %v3477_v37  ;;  %v5593_v18 = vadd.f32 %v5592_v49, %v5504_v59  ;;  %v3179_v12 = vor.u32 %v3178_v24, %v3175_v34  ;;  %v3188_v32 = vrot.slane %v3186_v23, 4  ;;  %v2832_v49 = vld [vmem:[#allocation2 + $0xc8] sm:$0x1] }
 0x25e   : > { %v5939_v8 = vadd.f32 %v5938_v10, %v5908_v22  ;;  %v5595_v35 = vpop.f32.mrf.mxu2  ;;  %v2649_v38 = vrot.slane %v2647_v58, 4  ;;  %v5507_v61 = vadd.f32 %v5506_v11, %v8277_v26  ;;  %v7104_v39 = vld [vmem:[#allocation3 + $0x3bc] sm:$0xf]  ;;  %v7109_v37 = vld [vmem:[#allocation3 + $0x3e0] sm:$0xf0]  ;;  %v2648_v43 = vsel %vm7754_vm6, %v6099_v55, %v2647_v58 }
 0x25f   : > { %v2650_v9 = vrot.slane %v2495_v47, 5  ;;  %v3180_v59 = vrot.slane %v3179_v12, 4  ;;  %v3189_v57 = vor.u32 %v3188_v32, %v3184_v53  ;;  %v3327_v23 = vld [vmem:[#allocation2 + $0xc4] sm:$0xf]  ;;  %2719 = vst [vmem:[#allocation3 + $0x404] sm:$0xf] %v2648_v43  ;;  %v6612_v11 = vor.u32 %v7109_v37, %v6611_v44 }
 0x260   : > { %v2753_v34 = vld [vmem:[#allocation2 + $0xc4] sm:$0xf]  ;;  %v5596_v26 = vadd.f32 %v5595_v35, %v5507_v61  ;;  %v6608_v1 = vor.u32 %v7104_v39, %v6605_v33  ;;  %v557_v35 = vld [vmem:[#allocation2 + $0xcc] sm:$0x1]  ;;  %v6583_v47 = vld [vmem:[#allocation3 + $0x380] sm:$0xf] }
 0x261   : > { %v5768_v10 = vpop.f32.mrf.mxu0  ;;  %v3190_v19 = vrot.slane %v3189_v57, 4  ;;  %v3185_v58 = vsel %vm7745_vm1, %v3180_v59, %v3184_v53  ;;  %2785 = vst [vmem:[#allocation3 + $0x42c] sm:$0xf] %v2753_v34  ;;  %v2834_v37 = vld [vmem:[#allocation2 + $0xd0] sm:$0xf] }
 0x262   : > { %v5769_v62 = vadd.f32 %v5768_v10, %v5680_v13  ;;  %v8680_v22 = vpop.f32.mrf.mxu1  ;;  %v6580_v13 = vor.u32 %v7096_v30, %v6577_v36  ;;  %v3328_v30 = vld [vmem:[#allocation2 + $0xc8] sm:$0x1]  ;;  %3280 = vst [vmem:[#allocation3 + $0x40c] sm:$0xf] %v3185_v58  ;;  %v7105_v7 = vld [vmem:[#allocation3 + $0x3c4] sm:$0xf] }
 0x263   : > { %v3483_v32 = vrot.slane %v3328_v30, 5  ;;  %v5509_v57 = vadd.f32 %v8680_v22, %v8314_v17  ;;  %v2498_v58 = vld [vmem:[#allocation2 + $0xc8] sm:$0x1] }
 0x264   : > { %5807 = vmatmul.bf16.gmra.mxu0 %v6548_v50  ;;  %5839 = vst [vmem:[%s8626_s28 + $0x30] sm:$0xff] %v5769_v62  ;;  %v5870_v28 = vadd.f32 %v5869_v4, %v5769_v62  ;;  %v5909_v25 = vmul.f32 %v5769_v62, %v5769_v62  ;;  %v5681_v40 = vpop.f32.mrf.mxu3  ;;  %v3326_v4 = vld [vmem:[#allocation2 + $0xc0] sm:$0xe] }
 0x265   : > { %v5682_v31 = vadd.f32 %v5681_v40, %v5593_v18  ;;  %v2752_v50 = vld [vmem:[#allocation2 + $0xc0] sm:$0xf]  ;;  %v6115_v24 = vrot.slane %v3326_v4, 9  ;;  %v2651_v18 = vsel %vm7754_vm6, %v2649_v38, %v2650_v9  ;;  %v3206_v9 = vshll.u32 %v2834_v37, 16 }
 0x266   : > { %v5940_v63 = vadd.f32 %v5939_v8, %v5909_v25  ;;  %v5597_v10 = vpop.f32.mrf.mxu2  ;;  %v3192_v8 = vshll.u32 %v2832_v49, 16  ;;  %2784 = vst [vmem:[#allocation3 + $0x408] sm:$0xf] %v2752_v50  ;;  %v3480_v25 = vrot.slane %v3327_v23, 5  ;;  %v613_v49 = vld [vmem:[#allocation2 + $0xd4] sm:$0x1] }
 0x267   : > { %2720 = vst [vmem:[#allocation3 + $0x428] sm:$0xf] %v2651_v18  ;;  %v614_v43 = vsel %vm7331_vm4, 0, %v613_v49  ;;  %v3210_v50 = vshrl.u32 %v2834_v37, 16  ;;  %v8702_v23 = vrot.slane %v3206_v9, 5 }
 0x268   : > { %v3194_v12 = vrot.slane %v3192_v8, 5  ;;  %v3481_v38 = vsel %vm7754_vm6, %v6115_v24, %v3480_v25  ;;  %v5598_v24 = vadd.f32 %v5597_v10, %v5509_v57  ;;  %615 = vst [vmem:[#allocation2 + $0xd4] sm:$0x1] %v614_v43 }
 0x269   : > { %v5770_v62 = vpop.f32.mrf.mxu0  ;;  %5723 = vmatmul.bf16.gmra.mxu3 %v6580_v13  ;;  %v3482_v13 = vrot.slane %v3480_v25, 4  ;;  %3552 = vst [vmem:[#allocation3 + $0x410] sm:$0xf] %v3481_v38  ;;  %v3212_v34 = vrot.slane %v3210_v50, 4 }
 0x26a   : > { %v5771_v36 = vadd.f32 %v5770_v62, %v5682_v31  ;;  %v3195_v55 = vsel %vm7745_vm1, %v3190_v19, %v3194_v12  ;;  %v7101_v31 = vld [vmem:[#allocation3 + $0x3a0] sm:$0xf0]  ;;  %v5511_v53 = vpop.f32.mrf.mxu1  ;;  %v2497_v62 = vld [vmem:[#allocation2 + $0xc4] sm:$0xf]  ;;  %v2496_v19 = vld [vmem:[#allocation2 + $0xc0] sm:$0xe] }
 0x26b   : > { %5639 = vmatmul.bf16.gmra.mxu2 %v6612_v11  ;;  %3281 = vst [vmem:[#allocation3 + $0x430] sm:$0xf] %v3195_v55  ;;  %v3484_v4 = vsel %vm7754_vm6, %v3482_v13, %v3483_v32  ;;  %v6584_v59 = vor.u32 %v7101_v31, %v6583_v47  ;;  %v2654_v11 = vrot.slane %v2497_v62, 5  ;;  %v3213_v18 = vor.u32 %v3212_v34, %v8702_v23  ;;  %v3329_v47 = vld [vmem:[#allocation2 + $0xcc] sm:$0xe] }
 0x26c   : > { %5840 = vst [vmem:[%s8626_s28 + $0x38] sm:$0xff] %v5771_v36  ;;  %v5871_v44 = vadd.f32 %v5870_v28, %v5771_v36  ;;  %v5910_v40 = vmul.f32 %v5771_v36, %v5771_v36  ;;  %v5684_v61 = vpop.f32.mrf.mxu3  ;;  %v558_v28 = vsel %vm7311_vm2, 0, %v557_v35  ;;  %v6100_v12 = vrot.slane %v2496_v19, 9  ;;  %v7113_v55 = vld [vmem:[#allocation3 + $0x404] sm:$0xf] }
 0x26d   : > { %v5685_v33 = vadd.f32 %v5684_v61, %v5596_v26  ;;  %5550 = vmatmul.bf16.gmra.mxu1 %v6608_v1  ;;  %3553 = vst [vmem:[#allocation3 + $0x434] sm:$0xf] %v3484_v4  ;;  %v6613_v26 = vld [vmem:[#allocation3 + $0x3e4] sm:$0xf0]  ;;  %v2656_v25 = vrot.slane %v2654_v11, 4  ;;  %v2657_v31 = vrot.slane %v2498_v58, 5 }
 0x26e   : > { %v5941_v39 = vadd.f32 %v5940_v63, %v5910_v40  ;;  %v5600_v63 = vpop.f32.mrf.mxu2  ;;  %559 = vst [vmem:[#allocation2 + $0xcc] sm:$0x1] %v558_v28  ;;  %v6616_v10 = vor.u32 %v7105_v7, %v6613_v26  ;;  %v6647_v35 = vld [vmem:[#allocation3 + $0x408] sm:$0xf]  ;;  %v7118_v40 = vld [vmem:[#allocation3 + $0x428] sm:$0xf0]  ;;  %v2655_v49 = vsel %vm7754_vm6, %v6100_v12, %v2654_v11 }
 0x26f   : > { %v6641_v38 = vld [vmem:[#allocation3 + $0x424] sm:$0xf0]  ;;  %v3214_v61 = vrot.slane %v3213_v18, 4  ;;  %v3330_v13 = vld [vmem:[#allocation2 + $0xd0] sm:$0xf]  ;;  %v6648_v43 = vor.u32 %v7118_v40, %v6647_v35  ;;  %v2658_v9 = vsel %vm7754_vm6, %v2656_v25, %v2657_v31 }
 0x270   : > { %2721 = vst [vmem:[#allocation3 + $0x44c] sm:$0xf] %v2655_v49  ;;  %v2835_v50 = vld [vmem:[#allocation2 + $0xd4] sm:$0x1]  ;;  %v3487_v7 = vrot.slane %v3330_v13, 5 }
 0x271   : > { %v5773_v3 = vpop.f32.mrf.mxu0  ;;  %2722 = vst [vmem:[#allocation3 + $0x470] sm:$0xf] %v2658_v9  ;;  %v7110_v58 = vld [vmem:[#allocation3 + $0x3e8] sm:$0xf0] }
 0x272   : > { %v5774_v8 = vadd.f32 %v5773_v3, %v5685_v33  ;;  %v5513_v36 = vpop.f32.mrf.mxu1  ;;  %v5512_v33 = vadd.f32 %v5511_v53, %v8341_v48  ;;  %v3331_v48 = vld [vmem:[#allocation2 + $0xd4] sm:$0x1]  ;;  %v6116_v53 = vrot.slane %v3329_v47, 9 }
 0x273   : > { %v3490_v26 = vrot.slane %v3331_v48, 5  ;;  %v5514_v49 = vadd.f32 %v5513_v36, %v8357_v41 }
 0x274   : > { %5812 = vmatmul.bf16.gmra.mxu0 %v6584_v59  ;;  %5841 = vst [vmem:[%s8626_s28 + $0x40] sm:$0xff] %v5774_v8  ;;  %v5872_v17 = vadd.f32 %v5871_v44, %v5774_v8  ;;  %v5911_v22 = vmul.f32 %v5774_v8, %v5774_v8  ;;  %v5686_v30 = vpop.f32.mrf.mxu3  ;;  %v2755_v44 = vld [vmem:[#allocation2 + $0xd0] sm:$0xf]  ;;  %v5601_v34 = vadd.f32 %v5600_v63, %v5512_v33  ;;  %v3216_v8 = vshll.u32 %v2835_v50, 16  ;;  %v7114_v33 = vld [vmem:[#allocation3 + $0x40c] sm:$0xf] }
 0x275   : > { %v5687_v32 = vadd.f32 %v5686_v30, %v5598_v24  ;;  %v2754_v37 = vld [vmem:[#allocation2 + $0xcc] sm:$0xf]  ;;  %2787 = vst [vmem:[#allocation3 + $0x474] sm:$0xf] %v2755_v44  ;;  %v6619_v30 = vld [vmem:[#allocation3 + $0x3c8] sm:$0xf] }
 0x276   : > { %v5942_v1 = vadd.f32 %v5941_v39, %v5911_v22  ;;  %v5602_v28 = vpop.f32.mrf.mxu2  ;;  %v2833_v39 = vld [vmem:[#allocation2 + $0xcc] sm:$0xf]  ;;  %2786 = vst [vmem:[#allocation3 + $0x450] sm:$0xf] %v2754_v37  ;;  %v6644_v22 = vor.u32 %v7113_v55, %v6641_v38  ;;  %v3218_v19 = vrot.slane %v3216_v8, 5  ;;  %v6620_v38 = vor.u32 %v7110_v58, %v6619_v30 }
 0x277   : > { %v3197_v59 = vshrl.u32 %v2833_v39, 16  ;;  %v3200_v57 = vshll.u32 %v2833_v39, 16  ;;  %v6649_v37 = vld [vmem:[#allocation3 + $0x42c] sm:$0xf0] }
 0x278   : > { %v3219_v47 = vsel %vm7745_vm1, %v3214_v61, %v3218_v19  ;;  %v5603_v61 = vadd.f32 %v5602_v28, %v5514_v49  ;;  %v6652_v9 = vor.u32 %v7114_v33, %v6649_v37  ;;  %v7122_v28 = vld [vmem:[#allocation3 + $0x44c] sm:$0xf] }
 0x279   : > { %v5775_v4 = vpop.f32.mrf.mxu0  ;;  %5728 = vmatmul.bf16.gmra.mxu3 %v6616_v10  ;;  %v3199_v24 = vrot.slane %v3197_v59, 4  ;;  %v3202_v62 = vrot.slane %v3200_v57, 5  ;;  %v3489_v10 = vrot.slane %v3487_v7, 4  ;;  %3283 = vst [vmem:[#allocation3 + $0x478] sm:$0xf] %v3219_v47 }
 0x27a   : > { %v5776_v3 = vadd.f32 %v5775_v4, %v5687_v32  ;;  %v5516_v25 = vpop.f32.mrf.mxu1  ;;  %v3488_v32 = vsel %vm7754_vm6, %v6116_v53, %v3487_v7  ;;  %v6655_v7 = vld [vmem:[#allocation3 + $0x410] sm:$0xf] }
 0x27b   : > { %5644 = vmatmul.bf16.gmra.mxu2 %v6648_v43  ;;  %v3203_v63 = vor.u32 %v3202_v62, %v3199_v24  ;;  %3554 = vst [vmem:[#allocation3 + $0x458] sm:$0xf] %v3488_v32  ;;  %v3491_v55 = vsel %vm7754_vm6, %v3489_v10, %v3490_v26  ;;  %v5517_v56 = vadd.f32 %v5516_v25, %v8374_v60  ;;  %v7119_v26 = vld [vmem:[#allocation3 + $0x430] sm:$0xf0] }
 0x27c   : > { %5842 = vst [vmem:[%s8626_s28 + $0x48] sm:$0xff] %v5776_v3  ;;  %v5873_v11 = vadd.f32 %v5872_v17, %v5776_v3  ;;  %v5912_v18 = vmul.f32 %v5776_v3, %v5776_v3  ;;  %v5689_v12 = vpop.f32.mrf.mxu3  ;;  %v7127_v59 = vld [vmem:[#allocation3 + $0x470] sm:$0xf0]  ;;  %v6677_v3 = vld [vmem:[#allocation3 + $0x46c] sm:$0xf0]  ;;  %v6656_v19 = vor.u32 %v7119_v26, %v6655_v7 }
 0x27d   : > { %v5690_v40 = vadd.f32 %v5689_v12, %v5601_v34  ;;  %v3204_v17 = vrot.slane %v3203_v63, 4  ;;  %5555 = vmatmul.bf16.gmra.mxu1 %v6644_v22  ;;  %3555 = vst [vmem:[#allocation3 + $0x47c] sm:$0xf] %v3491_v55  ;;  %v6683_v50 = vld [vmem:[#allocation3 + $0x450] sm:$0xf]  ;;  %v6680_v62 = vor.u32 %v7122_v28, %v6677_v3 }
 0x27e   : > { %v5943_v35 = vadd.f32 %v5942_v1, %v5912_v18  ;;  %v5605_v31 = vpop.f32.mrf.mxu2  ;;  %v6684_v34 = vor.u32 %v7127_v59, %v6683_v50 }
 0x27f   : > { %v3209_v1 = vsel %vm7745_vm1, %v3204_v17, %v8702_v23  ;;  %v5606_v48 = vadd.f32 %v5605_v31, %v5517_v56 }
 0x280   : > { %3282 = vst [vmem:[#allocation3 + $0x454] sm:$0xf] %v3209_v1  ;;  %v6685_v10 = vld [vmem:[#allocation3 + $0x474] sm:$0xf0] }
 0x281   : > { %v5778_v44 = vpop.f32.mrf.mxu0 }
 0x282   : > { %v5779_v13 = vadd.f32 %v5778_v44, %v5690_v40  ;;  %v5518_v41 = vpop.f32.mrf.mxu1  ;;  %v6691_v37 = vld [vmem:[#allocation3 + $0x458] sm:$0xf] }
 0x283   : > { %v5519_v30 = vadd.f32 %v5518_v41, %v8387_v45 }
 0x284   : > { %5817 = vmatmul.bf16.gmra.mxu0 %v6620_v38  ;;  %5843 = vst [vmem:[%s8626_s28 + $0x50] sm:$0xff] %v5779_v13  ;;  %v5874_v14 = vadd.f32 %v5873_v11, %v5779_v13  ;;  %v5913_v39 = vmul.f32 %v5779_v13, %v5779_v13  ;;  %v5691_v4 = vpop.f32.mrf.mxu3 }
 0x285   : > { %v5692_v43 = vadd.f32 %v5691_v4, %v5603_v61 }
 0x286   : > { %v5944_v36 = vadd.f32 %v5943_v35, %v5913_v39  ;;  %v5607_v23 = vpop.f32.mrf.mxu2 }
 0x287   : > { %v5608_v63 = vadd.f32 %v5607_v23, %v5519_v30  ;;  %v7123_v32 = vld [vmem:[#allocation3 + $0x454] sm:$0xf] }
 0x288   : > { %v6688_v49 = vor.u32 %v7123_v32, %v6685_v10 }
 0x289   : > { %v5780_v57 = vpop.f32.mrf.mxu0  ;;  %5733 = vmatmul.bf16.gmra.mxu3 %v6652_v9 }
 0x28a   : > { %v5781_v8 = vadd.f32 %v5780_v57, %v5692_v43  ;;  %v5521_v18 = vpop.f32.mrf.mxu1 }
 0x28b   : > { %5649 = vmatmul.bf16.gmra.mxu2 %v6684_v34  ;;  %v5522_v31 = vadd.f32 %v5521_v18, %v8404_v5 }
 0x28c   : > { %5844 = vst [vmem:[%s8626_s28 + $0x58] sm:$0xff] %v5781_v8  ;;  %v5875_v53 = vadd.f32 %v5874_v14, %v5781_v8  ;;  %v5914_v24 = vmul.f32 %v5781_v8, %v5781_v8  ;;  %v5694_v11 = vpop.f32.mrf.mxu3  ;;  %v7128_v14 = vld [vmem:[#allocation3 + $0x478] sm:$0xf0] }
 0x28d   : > { %v5695_v60 = vadd.f32 %v5694_v11, %v5606_v48  ;;  %5560 = vmatmul.bf16.gmra.mxu1 %v6680_v62  ;;  %v6692_v43 = vor.u32 %v7128_v14, %v6691_v37 }
 0x28e   : > { %v5945_v22 = vadd.f32 %v5944_v36, %v5914_v24  ;;  %v5610_v58 = vpop.f32.mrf.mxu2 }
 0x28f   : > { %v5611_v13 = vadd.f32 %v5610_v58, %v5522_v31 }
 0x291   : > { %v5783_v12 = vpop.f32.mrf.mxu0 }
 0x292   : > { %v5784_v25 = vadd.f32 %v5783_v12, %v5695_v60  ;;  %v5523_v17 = vpop.f32.mrf.mxu1 }
 0x293   : > { %v5524_v9 = vadd.f32 %v5523_v17, %v8419_v52 }
 0x294   : > { %5822 = vmatmul.bf16.gmra.mxu0 %v6656_v19  ;;  %5845 = vst [vmem:[%s8626_s28 + $0x60] sm:$0xff] %v5784_v25  ;;  %v5876_v35 = vadd.f32 %v5875_v53, %v5784_v25  ;;  %v5915_v40 = vmul.f32 %v5784_v25, %v5784_v25  ;;  %v5696_v47 = vpop.f32.mrf.mxu3 }
 0x295   : > { %v5697_v38 = vadd.f32 %v5696_v47, %v5608_v63 }
 0x296   : > { %v5946_v55 = vadd.f32 %v5945_v22, %v5915_v40  ;;  %v5612_v45 = vpop.f32.mrf.mxu2 }
 0x297   : > { %v5613_v56 = vadd.f32 %v5612_v45, %v5524_v9 }
 0x299   : > { %v5785_v44 = vpop.f32.mrf.mxu0  ;;  %5738 = vmatmul.bf16.gmra.mxu3 %v6688_v49 }
 0x29a   : > { %v5786_v1 = vadd.f32 %v5785_v44, %v5697_v38  ;;  %v5526_v4 = vpop.f32.mrf.mxu1 }
 0x29b   : > { %v5527_v48 = vadd.f32 %v5526_v4, %v8430_v46 }
 0x29c   : > { %5846 = vst [vmem:[%s8626_s28 + $0x68] sm:$0xff] %v5786_v1  ;;  %v5877_v61 = vadd.f32 %v5876_v35, %v5786_v1  ;;  %v5916_v33 = vmul.f32 %v5786_v1, %v5786_v1  ;;  %v5699_v39 = vpop.f32.mrf.mxu3 }
 0x29d   : > { %v5700_v36 = vadd.f32 %v5699_v39, %v5611_v13 }
 0x29e   : > { %v5947_v41 = vadd.f32 %v5946_v55, %v5916_v33  ;;  %v5615_v50 = vpop.f32.mrf.mxu2 }
 0x29f   : > { %v5616_v52 = vadd.f32 %v5615_v50, %v5527_v48 }
 0x2a1   : > { %v5788_v5 = vpop.f32.mrf.mxu0 }
 0x2a2   : > { %v5789_v59 = vadd.f32 %v5788_v5, %v5700_v36  ;;  %v5528_v3 = vpop.f32.mrf.mxu1 }
 0x2a3   : > { %v5529_v19 = vadd.f32 %v5528_v3, %v8449_v21 }
 0x2a4   : > { %5827 = vmatmul.bf16.gmra.mxu0 %v6692_v43  ;;  %5847 = vst [vmem:[%s8626_s28 + $0x70] sm:$0xff] %v5789_v59  ;;  %v5878_v23 = vadd.f32 %v5877_v61, %v5789_v59  ;;  %v5917_v57 = vmul.f32 %v5789_v59, %v5789_v59  ;;  %v5701_v28 = vpop.f32.mrf.mxu3 }
 0x2a5   : > { %v5702_v8 = vadd.f32 %v5701_v28, %v5613_v56 }
 0x2a6   : > { %v5948_v34 = vadd.f32 %v5947_v41, %v5917_v57  ;;  %v5617_v53 = vpop.f32.mrf.mxu2 }
 0x2a7   : > { %v5618_v25 = vadd.f32 %v5617_v53, %v5529_v19 }
 0x2a9   : > { %v5790_v24 = vpop.f32.mrf.mxu0 }
 0x2aa   : > { %v5791_v62 = vadd.f32 %v5790_v24, %v5702_v8  ;;  %v5531_v18 = vpop.f32.mrf.mxu1 }
 0x2ab   : > { %v5532_v47 = vadd.f32 %v5531_v18, %v8467_v20 }
 0x2ac   : > { %5848 = vst [vmem:[%s8626_s28 + $0x78] sm:$0xff] %v5791_v62  ;;  %v5879_v7 = vadd.f32 %v5878_v23, %v5791_v62  ;;  %v5918_v26 = vmul.f32 %v5791_v62, %v5791_v62  ;;  %v5704_v11 = vpop.f32.mrf.mxu3 }
 0x2ad   : > { %v5705_v60 = vadd.f32 %v5704_v11, %v5616_v52 }
 0x2ae   : > { %v5949_v22 = vadd.f32 %v5948_v34, %v5918_v26  ;;  %v5620_v30 = vpop.f32.mrf.mxu2 }
 0x2af   : > { %v5621_v49 = vadd.f32 %v5620_v30, %v5532_v47 }
 0x2b1   : > { %v5793_v58 = vpop.f32.mrf.mxu0 }
 0x2b2   : > { %v5794_v12 = vadd.f32 %v5793_v58, %v5705_v60  ;;  %v5533_v10 = vpop.f32.mrf.mxu1 }
 0x2b3   : > { %v5534_v61 = vadd.f32 %v5533_v10, %v8480_v16 }
 0x2b4   : > { %5849 = vst [vmem:[%s8626_s28 + $0x80] sm:$0xff] %v5794_v12  ;;  %v5880_v46 = vadd.f32 %v5879_v7, %v5794_v12  ;;  %v5919_v63 = vmul.f32 %v5794_v12, %v5794_v12  ;;  %v5706_v32 = vpop.f32.mrf.mxu3 }
 0x2b5   : > { %v5707_v40 = vadd.f32 %v5706_v32, %v5618_v25 }
 0x2b6   : > { %v5950_v35 = vadd.f32 %v5949_v22, %v5919_v63  ;;  %v5622_v17 = vpop.f32.mrf.mxu2 }
 0x2b7   : > { %v5623_v39 = vadd.f32 %v5622_v17, %v5534_v61 }
 0x2b9   : > { %v5795_v55 = vpop.f32.mrf.mxu0 }
 0x2ba   : > { %v5796_v38 = vadd.f32 %v5795_v55, %v5707_v40  ;;  %v5536_v44 = vpop.f32.mrf.mxu1 }
 0x2bb   : > { %v5537_v50 = vadd.f32 %v5536_v44, %v8492_v29 }
 0x2bc   : > { %5850 = vst [vmem:[%s8626_s28 + $0x88] sm:$0xff] %v5796_v38  ;;  %v5881_v21 = vadd.f32 %v5880_v46, %v5796_v38  ;;  %v5920_v31 = vmul.f32 %v5796_v38, %v5796_v38  ;;  %v5709_v45 = vpop.f32.mrf.mxu3 }
 0x2bd   : > { %v5710_v13 = vadd.f32 %v5709_v45, %v5621_v49 }
 0x2be   : > { %v5951_v1 = vadd.f32 %v5950_v35, %v5920_v31  ;;  %v5625_v33 = vpop.f32.mrf.mxu2 }
 0x2bf   : > { %v5626_v23 = vadd.f32 %v5625_v33, %v5537_v50 }
 0x2c1   : > { %v5798_v37 = vpop.f32.mrf.mxu0 }
 0x2c2   : > { %v5799_v14 = vadd.f32 %v5798_v37, %v5710_v13  ;;  %v5538_v36 = vpop.f32.mrf.mxu1 }
 0x2c3   : > { %v5539_v48 = vadd.f32 %v5538_v36, %v8501_v6 }
 0x2c4   : > { %5851 = vst [vmem:[%s8626_s28 + $0x90] sm:$0xff] %v5799_v14  ;;  %v5882_v20 = vadd.f32 %v5881_v21, %v5799_v14  ;;  %v5921_v4 = vmul.f32 %v5799_v14, %v5799_v14  ;;  %v5711_v41 = vpop.f32.mrf.mxu3 }
 0x2c5   : > { %v5712_v9 = vadd.f32 %v5711_v41, %v5623_v39 }
 0x2c6   : > { %v5952_v43 = vadd.f32 %v5951_v1, %v5921_v4  ;;  %v5627_v5 = vpop.f32.mrf.mxu2 }
 0x2c7   : > { %v5628_v52 = vadd.f32 %v5627_v5, %v5539_v48 }
 0x2c9   : > { %v5800_v59 = vpop.f32.mrf.mxu0 }
 0x2ca   : > { %v5801_v56 = vadd.f32 %v5800_v59, %v5712_v9  ;;  %v5541_v3 = vpop.f32.mrf.mxu1 }
 0x2cb   : > { %v5542_v60 = vadd.f32 %v5541_v3, %v8513_v2 }
 0x2cc   : > { %5852 = vst [vmem:[%s8626_s28 + $0x98] sm:$0xff] %v5801_v56  ;;  %v5883_v16 = vadd.f32 %v5882_v20, %v5801_v56  ;;  %v5922_v57 = vmul.f32 %v5801_v56, %v5801_v56  ;;  %v5714_v28 = vpop.f32.mrf.mxu3 }
 0x2cd   : > { %v5715_v8 = vadd.f32 %v5714_v28, %v5626_v23 }
 0x2ce   : > { %v5953_v34 = vadd.f32 %v5952_v43, %v5922_v57  ;;  %v5630_v53 = vpop.f32.mrf.mxu2 }
 0x2cf   : > { %v5631_v12 = vadd.f32 %v5630_v53, %v5542_v60 }
 0x2d1   : > { %v5803_v24 = vpop.f32.mrf.mxu0 }
 0x2d2   : > { %v5804_v62 = vadd.f32 %v5803_v24, %v5715_v8  ;;  %v5543_v11 = vpop.f32.mrf.mxu1 }
 0x2d3   : > { %v5544_v35 = vadd.f32 %v5543_v11, %v8524_v0 }
 0x2d4   : > { %5853 = vst [vmem:[%s8626_s28 + $0xa0] sm:$0xff] %v5804_v62  ;;  %v5884_v29 = vadd.f32 %v5883_v16, %v5804_v62  ;;  %v5923_v7 = vmul.f32 %v5804_v62, %v5804_v62  ;;  %v5716_v26 = vpop.f32.mrf.mxu3 }
 0x2d5   : > { %v5717_v22 = vadd.f32 %v5716_v26, %v5628_v52 }
 0x2d6   : > { %v5954_v18 = vadd.f32 %v5953_v34, %v5923_v7  ;;  %v5632_v19 = vpop.f32.mrf.mxu2 }
 0x2d7   : > { %v5633_v55 = vadd.f32 %v5632_v19, %v5544_v35 }
 0x2d9   : > { %v5805_v30 = vpop.f32.mrf.mxu0 }
 0x2da   : > { %v5806_v58 = vadd.f32 %v5805_v30, %v5717_v22  ;;  %v5546_v63 = vpop.f32.mrf.mxu1 }
 0x2db   : > { %v5547_v44 = vadd.f32 %v5546_v63, %v8536_v15 }
 0x2dc   : > { %5854 = vst [vmem:[%s8626_s28 + $0xa8] sm:$0xff] %v5806_v58  ;;  %v5885_v6 = vadd.f32 %v5884_v29, %v5806_v58  ;;  %v5924_v25 = vmul.f32 %v5806_v58, %v5806_v58  ;;  %v5719_v46 = vpop.f32.mrf.mxu3  ;;  %v8815_v58 = vld [vmem:[#allocation9_spill] sm:$0xff] }
 0x2dd   : > { %v5720_v10 = vadd.f32 %v5719_v46, %v5631_v12 }
 0x2de   : > { %v5955_v32 = vadd.f32 %v5954_v18, %v5924_v25  ;;  %v5635_v40 = vpop.f32.mrf.mxu2 }
 0x2df   : > { %v5636_v33 = vadd.f32 %v5635_v40, %v5547_v44 }
 0x2e1   : > { %v5808_v47 = vpop.f32.mrf.mxu0 }
 0x2e2   : > { %v5809_v17 = vadd.f32 %v5808_v47, %v5720_v10  ;;  %v5548_v21 = vpop.f32.mrf.mxu1 }
 0x2e3   : > { %v5549_v41 = vadd.f32 %v5548_v21, %v8547_v51 }
 0x2e4   : > { %5855 = vst [vmem:[%s8626_s28 + $0xb0] sm:$0xff] %v5809_v17  ;;  %v5886_v2 = vadd.f32 %v5885_v6, %v5809_v17  ;;  %v5925_v38 = vmul.f32 %v5809_v17, %v5809_v17  ;;  %v5721_v49 = vpop.f32.mrf.mxu3  ;;  %v8816_v17 = vld [vmem:[#allocation11_spill] sm:$0xff] }
 0x2e5   : > { %v5722_v45 = vadd.f32 %v5721_v49, %v5633_v55 }
 0x2e6   : > { %v5956_v31 = vadd.f32 %v5955_v32, %v5925_v38  ;;  %v5637_v1 = vpop.f32.mrf.mxu2 }
 0x2e7   : > { %v5638_v50 = vadd.f32 %v5637_v1, %v5549_v41 }
 0x2e9   : > { %v5810_v13 = vpop.f32.mrf.mxu0 }
 0x2ea   : > { %v5811_v61 = vadd.f32 %v5810_v13, %v5722_v45  ;;  %v5551_v39 = vpop.f32.mrf.mxu1 }
 0x2eb   : > { %v5552_v57 = vadd.f32 %v5551_v39, %v8559_v27 }
 0x2ec   : > { %5856 = vst [vmem:[%s8626_s28 + $0xb8] sm:$0xff] %v5811_v61  ;;  %v5887_v0 = vadd.f32 %v5886_v2, %v5811_v61  ;;  %v5926_v37 = vmul.f32 %v5811_v61, %v5811_v61  ;;  %v5724_v14 = vpop.f32.mrf.mxu3 }
 0x2ed   : > { %v5725_v4 = vadd.f32 %v5724_v14, %v5636_v33  ;;  %v8817_v33 = vld [vmem:[#allocation13_spill] sm:$0xff] }
 0x2ee   : > { %v5957_v20 = vadd.f32 %v5956_v31, %v5926_v37  ;;  %v5640_v36 = vpop.f32.mrf.mxu2 }
 0x2ef   : > { %v5641_v8 = vadd.f32 %v5640_v36, %v5552_v57 }
 0x2f1   : > { %v5813_v43 = vpop.f32.mrf.mxu0 }
 0x2f2   : > { %v5814_v9 = vadd.f32 %v5813_v43, %v5725_v4  ;;  %v5553_v56 = vpop.f32.mrf.mxu1 }
 0x2f3   : > { %v5554_v29 = vadd.f32 %v5553_v56, %v8570_v42 }
 0x2f4   : > { %5857 = vst [vmem:[%s8626_s28 + $0xc0] sm:$0xff] %v5814_v9  ;;  %v5888_v15 = vadd.f32 %v5887_v0, %v5814_v9  ;;  %v5927_v5 = vmul.f32 %v5814_v9, %v5814_v9  ;;  %v5726_v59 = vpop.f32.mrf.mxu3 }
 0x2f5   : > { %v5727_v16 = vadd.f32 %v5726_v59, %v5638_v50 }
 0x2f6   : > { %v5958_v23 = vadd.f32 %v5957_v20, %v5927_v5  ;;  %v5642_v28 = vpop.f32.mrf.mxu2 }
 0x2f7   : > { %v5643_v18 = vadd.f32 %v5642_v28, %v5554_v29 }
 0x2f9   : > { %v5815_v3 = vpop.f32.mrf.mxu0 }
 0x2fa   : > { %v5816_v34 = vadd.f32 %v5815_v3, %v5727_v16  ;;  %v5556_v52 = vpop.f32.mrf.mxu1 }
 0x2fb   : > { %v5557_v12 = vadd.f32 %v5556_v52, %v8815_v58 }
 0x2fc   : > { %5858 = vst [vmem:[%s8626_s28 + $0xc8] sm:$0xff] %v5816_v34  ;;  %v5889_v51 = vadd.f32 %v5888_v15, %v5816_v34  ;;  %v5928_v48 = vmul.f32 %v5816_v34, %v5816_v34  ;;  %v5729_v53 = vpop.f32.mrf.mxu3 }
 0x2fd   : > { %v5730_v62 = vadd.f32 %v5729_v53, %v5641_v8 }
 0x2fe   : > { %v5959_v24 = vadd.f32 %v5958_v23, %v5928_v48  ;;  %v5645_v26 = vpop.f32.mrf.mxu2 }
 0x2ff   : > { %v5646_v63 = vadd.f32 %v5645_v26, %v5557_v12 }
 0x301   : > { %v5818_v7 = vpop.f32.mrf.mxu0 }
 0x302   : > { %v5819_v11 = vadd.f32 %v5818_v7, %v5730_v62  ;;  %v5558_v25 = vpop.f32.mrf.mxu1 }
 0x303   : > { %v5559_v55 = vadd.f32 %v5558_v25, %v8816_v17 }
 0x304   : > { %5859 = vst [vmem:[%s8626_s28 + $0xd0] sm:$0xff] %v5819_v11  ;;  %v5890_v27 = vadd.f32 %v5889_v51, %v5819_v11  ;;  %v5929_v22 = vmul.f32 %v5819_v11, %v5819_v11  ;;  %v5731_v60 = vpop.f32.mrf.mxu3 }
 0x305   : > { %v5732_v30 = vadd.f32 %v5731_v60, %v5643_v18 }
 0x306   : > { %v5960_v19 = vadd.f32 %v5959_v24, %v5929_v22  ;;  %v5647_v32 = vpop.f32.mrf.mxu2 }
 0x307   : > { %v5648_v49 = vadd.f32 %v5647_v32, %v5559_v55 }
 0x309   : > { %v5820_v6 = vpop.f32.mrf.mxu0 }
 0x30a   : > { %v5821_v46 = vadd.f32 %v5820_v6, %v5732_v30  ;;  %v5561_v21 = vpop.f32.mrf.mxu1 }
 0x30b   : > { %v5562_v0 = vadd.f32 %v5561_v21, %v8817_v33 }
 0x30c   : > { %5860 = vst [vmem:[%s8626_s28 + $0xd8] sm:$0xff] %v5821_v46  ;;  %v5891_v42 = vadd.f32 %v5890_v27, %v5821_v46  ;;  %v5930_v10 = vmul.f32 %v5821_v46, %v5821_v46  ;;  %v5734_v35 = vpop.f32.mrf.mxu3 }
 0x30d   : > { %v5735_v47 = vadd.f32 %v5734_v35, %v5646_v63 }
 0x30e   : > { %v5961_v40 = vadd.f32 %v5960_v19, %v5930_v10  ;;  %v5650_v1 = vpop.f32.mrf.mxu2 }
 0x30f   : > { %v5651_v39 = vadd.f32 %v5650_v1, %v5562_v0 }
 0x311   : > { %v5823_v2 = vpop.f32.mrf.mxu0 }
 0x312   : > { %v5824_v38 = vadd.f32 %v5823_v2, %v5735_v47  ;;  %v5563_v36 = vpop.f32.mrf.mxu1 }
 0x313   : > { %v5564_v15 = vadd.f32 %v5563_v36, %v8612_v54 }
 0x314   : > { %5861 = vst [vmem:[%s8626_s28 + $0xe0] sm:$0xff] %v5824_v38  ;;  %v5892_v31 = vadd.f32 %v5891_v42, %v5824_v38  ;;  %v5931_v45 = vmul.f32 %v5824_v38, %v5824_v38  ;;  %v5736_v44 = vpop.f32.mrf.mxu3 }
 0x315   : > { %v5737_v61 = vadd.f32 %v5736_v44, %v5648_v49 }
 0x316   : > { %v5962_v13 = vadd.f32 %v5961_v40, %v5931_v45  ;;  %v5652_v50 = vpop.f32.mrf.mxu2 }
 0x317   : > { %v5653_v56 = vadd.f32 %v5652_v50, %v5564_v15 }
 0x319   : > { %v5825_v37 = vpop.f32.mrf.mxu0 }
 0x31a   : > { %v5826_v14 = vadd.f32 %v5825_v37, %v5737_v61 }
 0x31c   : > { %5862 = vst [vmem:[%s8626_s28 + $0xe8] sm:$0xff] %v5826_v14  ;;  %v5893_v20 = vadd.f32 %v5892_v31, %v5826_v14  ;;  %v5932_v4 = vmul.f32 %v5826_v14, %v5826_v14  ;;  %v5739_v41 = vpop.f32.mrf.mxu3 }
 0x31d   : > { %v5740_v9 = vadd.f32 %v5739_v41, %v5651_v39 }
 0x31e   : > { %v5963_v43 = vadd.f32 %v5962_v13, %v5932_v4 }
 0x321   : > { %v5828_v5 = vpop.f32.mrf.mxu0 }
 0x322   : > { %v5829_v59 = vadd.f32 %v5828_v5, %v5740_v9 }
 0x324   : > { %5863 = vst [vmem:[%s8626_s28 + $0xf0] sm:$0xff] %v5829_v59  ;;  %v5894_v23 = vadd.f32 %v5893_v20, %v5829_v59  ;;  %v5933_v16 = vmul.f32 %v5829_v59, %v5829_v59  ;;  %v5741_v57 = vpop.f32.mrf.mxu3 }
 0x325   : > { %v5742_v3 = vadd.f32 %v5741_v57, %v5653_v56 }
 0x326   : > { %v5964_v28 = vadd.f32 %v5963_v43, %v5933_v16 }
 0x329   : > { %v5830_v34 = vpop.f32.mrf.mxu0 }
 0x32a   : > { %v5831_v8 = vadd.f32 %v5830_v34, %v5742_v3 }
 0x32c   : > { %5864 = vst [vmem:[%s8626_s28 + $0xf8] sm:$0xff] %v5831_v8  ;;  %v5895_v51 = vadd.f32 %v5894_v23, %v5831_v8  ;;  %v5934_v48 = vmul.f32 %v5831_v8, %v5831_v8 }
 0x32e   : > { %v5896_v53 = vrot.slane %v5895_v51, 4  ;;  %v5965_v24 = vadd.f32 %v5964_v28, %v5934_v48 }
 0x330   : > { %v5897_v62 = vadd.f32 %v5896_v53, %v5895_v51  ;;  %v5966_v52 = vrot.slane %v5965_v24, 4 }
 0x332   : > { %v5898_v54 = vrot.slane %v5897_v62, 2  ;;  %v5967_v29 = vadd.f32 %v5966_v52, %v5965_v24 }
 0x334   : > { %v5899_v7 = vadd.f32 %v5898_v54, %v5897_v62  ;;  %v5968_v26 = vrot.slane %v5967_v29, 2 }
 0x336   : > { %v5900_v11 = vrot.slane %v5899_v7, 1  ;;  %v5969_v18 = vadd.f32 %v5968_v26, %v5967_v29 }
 0x338   : > { %v5901_v27 = vadd.f32 %v5900_v11, %v5899_v7  ;;  %v5970_v22 = vrot.slane %v5969_v18, 1 }
 0x33a   : > { %5902 = vst [vmem:[%s262_s9] sm:$0x1] %v5901_v27  ;;  %v5971_v60 = vadd.f32 %v5970_v22, %v5969_v18 }
 0x33c   : > { %5972 = vst [vmem:[%s262_s9 + $0x1] sm:$0x1] %v5971_v60 }
 0x33d PF: > { %s17_s21 = sadd.s32 1, %s7249_s21  }
 0x33e   : > { %p14_p4 = scmp.ge.s32.totalorder %s17_s21, 4  }
 0x340   :  { %16 = sbr.rel (!%p14_p4) target bundleno = 1 (0x1), region = 85 }

</bundles_post_ra>
